<compile_context>
chip_gen: v7x
topology: tpu7x:2x2x1
jax: 0.10.0
libtpu: 0.0.40
codegen_flags: <defaults>
</compile_context>

<pallas_src>
import math

import jax
import jax.numpy as jnp
from jax import lax
from jax.experimental import pallas as pl
from jax.experimental.pallas import tpu as pltpu


_VMEM = pl.BlockSpec(memory_space=pltpu.MemorySpace.VMEM)
_ANY = pl.BlockSpec(memory_space=pl.ANY)


# ----------------------------------------------------------------------------- #
# Fused Pallas kernel (2 BiLSTM layers + attention + fc)
# ----------------------------------------------------------------------------- #
def _build_dfs_kernel(num_layers, seq_len, batch, hidden):
    S, B, H, L = seq_len, batch, hidden, num_layers
    n_stream = 3 * (L - 1) + 2          # layer>=1 LSTM weights + fc weights, DMA'd manually

    def kernel(*args):
        i = 0
        x_ref = args[i]; i += 1                            # (S*B, E) bf16, time-major rows
        w_ih0_ref, w_hh0_ref, b0_ref = args[i:i + 3]; i += 3
        hbm_refs = args[i:i + n_stream]; i += n_stream     # layer>=1 + fc weights (HBM)
        out_ref = args[i]; i += 1                          # (B, H) f32
        bufs = args[i:i + n_stream]; i += n_stream         # VMEM landing buffers
        sem = args[i]                                      # DMA semaphores (n_stream,)

        # Kick off all layer>=1 / fc weight DMAs now so they overlap layer-0 compute.
        copies = [pltpu.make_async_copy(hbm_refs[k], bufs[k], sem.at[k])
                  for k in range(n_stream)]
        for cp in copies:
            cp.start()

        row_is_fwd = lax.broadcasted_iota(jnp.int32, (2 * B, 4 * H), 0) < B

        def bilstm(x_bf, w_ih_ref, w_hh_ref, b_ref):
            # Hoisted input projection for BOTH directions in one bf16 MXU matmul,
            # bias folded in: (S*B, D) @ (D, 8H); cols [0:4H]=fwd gates, [4H:8H]=bwd.
            g_in = jnp.dot(x_bf, w_ih_ref[...],
                           preferred_element_type=jnp.float32) + b_ref[...]
            w_hh = w_hh_ref[...]                           # (H, 8H) bf16: [fwd 4H | bwd 4H]

            h_all = jnp.zeros((2 * B, H), jnp.float32)     # rows [0:B] fwd, [B:2B] bwd
            c_all = jnp.zeros((2 * B, H), jnp.float32)
            h_hist = []
            # S=8 is static: fully-unrolled recurrence (LLO sees across timesteps);
            # TODO(synk): switch to lax.fori_loop(..., unroll=2-4) with pl.ds indices
            # once S grows beyond a few dozen.
            for t in range(S):
                tb = S - 1 - t
                # Stacked input gates for this step (no h dependence -> off serial chain).
                g_step = jnp.concatenate(
                    [g_in[t * B:(t + 1) * B, :4 * H],      # fwd gates, time t
                     g_in[tb * B:(tb + 1) * B, 4 * H:]],   # bwd gates, time S-1-t
                    axis=0)                                # (2B, 4H)
                # One recurrent matmul serves both directions.
                rec = jnp.dot(h_all.astype(jnp.bfloat16), w_hh,
                              preferred_element_type=jnp.float32)       # (2B, 8H)
                gates = jnp.where(row_is_fwd, rec[:, :4 * H], rec[:, 4 * H:]) + g_step
                sig = jax.nn.sigmoid(gates[:, :3 * H])     # gate order i | f | o
                i_g = sig[:, :H]
                f_g = sig[:, H:2 * H]
                o_g = sig[:, 2 * H:]
                g_g = jnp.tanh(gates[:, 3 * H:])
                c_all = f_g * c_all + i_g * g_g
                h_all = o_g * jnp.tanh(c_all)
                h_hist.append(h_all)

            # Assemble the (S*B, 2H) time-major layer output ONCE from register-resident
            # values (no per-step masked stores, no scratch round-trip).
            yf = jnp.concatenate([h_hist[t][:B] for t in range(S)], axis=0)         # (S*B, H)
            yb = jnp.concatenate([h_hist[S - 1 - t][B:] for t in range(S)], axis=0)
            return jnp.concatenate([yf, yb], axis=1)       # (S*B, 2H) f32

        # TODO(synk): when B grows, add a leading batch grid axis with
        # dimension_semantics=("parallel", ...) to use v7x's second TensorCore; do NOT
        # split fwd/bwd across cores (would need a cross-core exchange every layer).
        x_bf = x_ref[...]
        y = None
        for l in range(L):
            if l == 0:
                w_ih_ref, w_hh_ref, b_ref = w_ih0_ref, w_hh0_ref, b0_ref
            else:
                base = 3 * (l - 1)
                copies[base].wait()        # this layer's weights must have landed by now
                copies[base + 1].wait()
                copies[base + 2].wait()
                w_ih_ref, w_hh_ref, b_ref = bufs[base:base + 3]
            y = bilstm(x_bf, w_ih_ref, w_hh_ref, b_ref)
            x_bf = y.astype(jnp.bfloat16)

        # -------- self-attention (flat time-major layout, q == k == v == y) + fc --------
        # VMEM footprint ~2 MiB total; far under every generation's budget (incl. v7x's
        # 64 MiB) -- k-blocked / batch-tiled attention only needed when B*S ~ thousands.
        SB, dk = S * B, 2 * H
        scores = lax.dot_general(x_bf, x_bf, (((1,), (1,)), ((), ())),
                                 preferred_element_type=jnp.float32) * (1.0 / math.sqrt(dk))
        rb = lax.broadcasted_iota(jnp.int32, (SB, SB), 0) % B
        cb = lax.broadcasted_iota(jnp.int32, (SB, SB), 1) % B
        # |score| <= 16 (tanh-bounded LSTM outputs) -> exp() safe without max-subtraction.
        e = jnp.where(rb == cb, jnp.exp(scores), 0.0)      # symmetric, cross-batch zeroed
        # Softmax denominators as a ROW vector (column sums == row sums by symmetry of e).
        inv_d = pl.reciprocal(jnp.sum(e, axis=0, keepdims=True), approx=True)       # (1, SB)
        # Per-key attention mass: w[k] = sum_q p[q,k] = sum_q e[k,q] / d[q]   (e symmetric)
        w_key = jnp.sum(e * inv_d, axis=1, keepdims=True)                           # (SB, 1)
        # context[b] = sum_{k in batch b} w[k] * y[k]   -- weighted sum kept in f32.
        context = jnp.sum((w_key * y).reshape(S, B, dk), axis=0)                    # (B, 2H)

        copies[-2].wait()
        copies[-1].wait()
        fc_w = bufs[-2][...]                               # (2H, H) bf16
        fc_b = bufs[-1][...]                               # (1, H)  f32
        out_ref[...] = jnp.dot(context.astype(jnp.bfloat16), fc_w,
                               preferred_element_type=jnp.float32) + fc_b

    return kernel


# ----------------------------------------------------------------------------- #
# Wrapper
# ----------------------------------------------------------------------------- #
def dfs_attention_forward(tokens, kparams, hidden, num_layers):
    B, S = tokens.shape
    H, L = hidden, num_layers
    # Embedding gather (plain-JAX glue). Rows emitted in time-major order (row = t*B + b)
    # and cast to bf16 (only feeds bf16 MXU matmuls) to halve the input DMA.
    x = jnp.take(kparams["emb"], tokens.T.reshape(-1), axis=0).astype(jnp.bfloat16)

    operands = [x, kparams["w_ih"][0], kparams["w_hh"][0], kparams["b"][0]]
    streamed = []
    for l in range(1, L):
        streamed += [kparams["w_ih"][l], kparams["w_hh"][l], kparams["b"][l]]
    streamed += [kparams["fc_w"], kparams["fc_b"]]
    operands += streamed

    scratch = [pltpu.VMEM(a.shape, a.dtype) for a in streamed]
    scratch.append(pltpu.SemaphoreType.DMA((len(streamed),)))

    return pl.pallas_call(
        _build_dfs_kernel(L, S, B, H),
        out_shape=jax.ShapeDtypeStruct((B, H), jnp.float32),
        in_specs=[_VMEM] * 4 + [_ANY] * len(streamed),
        out_specs=_VMEM,
        scratch_shapes=scratch,
    )(*operands)


# ----------------------------------------------------------------------------- #
# Parameter construction (PyTorch layout) + kernel-layout prep
# ----------------------------------------------------------------------------- #
def make_params(key, vocab, embed_dim, hidden, num_layers):
    """Parameters in PyTorch layout: w_ih (4H, D_in), gate order (i, f, g, o)."""
    keys = iter(jax.random.split(key, 3 + num_layers * 8))

    # vocab2vec with row 1 zeroed (as in the module's __init__).
    emb = jax.random.normal(next(keys), (vocab, embed_dim), jnp.float32) * 0.1
    emb = emb.at[1, :].set(0.0)

    k = 1.0 / math.sqrt(hidden)
    uni = lambda kk, shape: jax.random.uniform(kk, shape, jnp.float32, -k, k)

    layers = []
    for li in range(num_layers):
        d_in = embed_dim if li == 0 else 2 * hidden
        layer = {}
        for tag in ("f", "b"):
            layer["w_ih_" + tag] = uni(next(keys), (4 * hidden, d_in))
            layer["w_hh_" + tag] = uni(next(keys), (4 * hidden, hidden))
            layer["b_ih_" + tag] = uni(next(keys), (4 * hidden,))
            layer["b_hh_" + tag] = uni(next(keys), (4 * hidden,))
        layers.append(layer)

    fc_w = uni(next(keys), (hidden, 2 * hidden))            # torch Linear: (out, in)
    fc_b = uni(next(keys), (hidden,))
    return {"emb": emb, "lstm": layers, "fc_w": fc_w, "fc_b": fc_b}


def _regroup_gates(w, H):
    """PyTorch LSTM gate order (i, f, g, o) -> kernel order (i, f, o, g)."""
    return jnp.concatenate([w[:2 * H], w[3 * H:], w[2 * H:3 * H]], axis=0)


def prep_kernel_params(params, hidden):
    """Transpose, regroup gates, fuse fwd|bwd weights/biases, cast weights to bf16."""
    H = hidden
    kp = {"emb": params["emb"], "w_ih": [], "w_hh": [], "b": []}
    for layer in params["lstm"]:
        w_ih_f = _regroup_gates(layer["w_ih_f"], H).T                      # (D_in, 4H)
        w_ih_b = _regroup_gates(layer["w_ih_b"], H).T
        w_hh_f = _regroup_gates(layer["w_hh_f"], H).T                      # (H, 4H)
        w_hh_b = _regroup_gates(layer["w_hh_b"], H).T
        b_f = _regroup_gates(layer["b_ih_f"] + layer["b_hh_f"], H)
        b_b = _regroup_gates(layer["b_ih_b"] + layer["b_hh_b"], H)
        kp["w_ih"].append(jnp.concatenate([w_ih_f, w_ih_b], axis=1).astype(jnp.bfloat16))  # (D_in, 8H)
        kp["w_hh"].append(jnp.concatenate([w_hh_f, w_hh_b], axis=1).astype(jnp.bfloat16))  # (H, 8H)
        kp["b"].append(jnp.concatenate([b_f, b_b]).reshape(1, -1).astype(jnp.float32))     # (1, 8H)
    kp["fc_w"] = params["fc_w"].T.astype(jnp.bfloat16)                     # (2H, H)
    kp["fc_b"] = params["fc_b"].reshape(1, -1).astype(jnp.float32)         # (1, H)
    return kp


# ----------------------------------------------------------------------------- #
# Pure-JAX fp32 reference (PyTorch semantics)
# ----------------------------------------------------------------------------- #
def _lstm_dir_ref(x_bsd, w_ih, w_hh, b_ih, b_hh, H):
    B = x_bsd.shape[0]

    def step(carry, x_t):
        h, c = carry
        gates = x_t @ w_ih.T + h @ w_hh.T + b_ih + b_hh
        i = jax.nn.sigmoid(gates[:, :H])
        f = jax.nn.sigmoid(gates[:, H:2 * H])
        g = jnp.tanh(gates[:, 2 * H:3 * H])
        o = jax.nn.sigmoid(gates[:, 3 * H:])
        c = f * c + i * g
        h = o * jnp.tanh(c)
        return (h, c), h

    init = (jnp.zeros((B, H), jnp.float32), jnp.zeros((B, H), jnp.float32))
    _, ys = lax.scan(step, init, jnp.transpose(x_bsd, (1, 0, 2)))
    return jnp.transpose(ys, (1, 0, 2))


def dfs_attention_ref(tokens, params, H):
    x = jnp.take(params["emb"], tokens, axis=0)
    for layer in params["lstm"]:
        yf = _lstm_dir_ref(x, layer["w_ih_f"], layer["w_hh_f"],
                           layer["b_ih_f"], layer["b_hh_f"], H)
        yb = _lstm_dir_ref(x[:, ::-1], layer["w_ih_b"], layer["w_hh_b"],
                           layer["b_ih_b"], layer["b_hh_b"], H)[:, ::-1]
        x = jnp.concatenate([yf, yb], axis=-1)
    d_k = x.shape[-1]
    scores = jnp.einsum("bqd,bkd->bqk", x, x) / math.sqrt(d_k)
    p = jax.nn.softmax(scores, axis=-1)
    context = jnp.einsum("bqk,bkd->bqd", p, x).sum(1)
    return context @ params["fc_w"].T + params["fc_b"]


# ----------------------------------------------------------------------------- #
# Run
# ----------------------------------------------------------------------------- #
if __name__ == "__main__":
    # HIDDEN = EMBED = 128 keeps every gate slice lane aligned.
    VOCAB, EMBED, HIDDEN, LAYERS = 50, 128, 128, 2
    B, S = 2, 8

    root = jax.random.PRNGKey(0)
    k_params, k_tok = jax.random.split(root)
    params = make_params(k_params, VOCAB, EMBED, HIDDEN, LAYERS)
    kparams = prep_kernel_params(params, HIDDEN)
    tokens = jax.random.randint(k_tok, (B, S), 0, VOCAB, dtype=jnp.int32)

    # TODO(synk): nn.Dropout is identity in eval mode; training-mode dropout would need pltpu.prng_*.
    fwd = jax.jit(lambda tok, kp: dfs_attention_forward(tok, kp, HIDDEN, LAYERS))
    logit = jax.block_until_ready(fwd(tokens, kparams))
    ref = jax.block_until_ready(dfs_attention_ref(tokens, params, HIDDEN))

    assert logit.shape == (B, HIDDEN), logit.shape
    max_err = float(jnp.max(jnp.abs(logit - ref)))
    # bf16 MXU operands with f32 accumulation -> expect ~1e-2-level deviation vs fp32 ref.
    assert max_err < 5e-2, f"mismatch vs reference: {max_err}"

    print("KERNEL_OK")
</pallas_src>

<mosaic_0001>
module attributes {stable_mosaic.version = 11 : i64} {
  func.func @kernel(%arg0: memref<16x128xbf16, #tpu.memory_space<vmem>>, %arg1: memref<128x1024xbf16, #tpu.memory_space<vmem>>, %arg2: memref<128x1024xbf16, #tpu.memory_space<vmem>>, %arg3: memref<1x1024xf32, #tpu.memory_space<vmem>>, %arg4: memref<256x1024xbf16, #tpu.memory_space<any>>, %arg5: memref<128x1024xbf16, #tpu.memory_space<any>>, %arg6: memref<1x1024xf32, #tpu.memory_space<any>>, %arg7: memref<256x128xbf16, #tpu.memory_space<any>>, %arg8: memref<1x128xf32, #tpu.memory_space<any>>, %arg9: memref<2x128xf32, #tpu.memory_space<vmem>>, %arg10: memref<256x1024xbf16, #tpu.memory_space<vmem>>, %arg11: memref<128x1024xbf16, #tpu.memory_space<vmem>>, %arg12: memref<1x1024xf32, #tpu.memory_space<vmem>>, %arg13: memref<256x128xbf16, #tpu.memory_space<vmem>>, %arg14: memref<1x128xf32, #tpu.memory_space<vmem>>, %arg15: memref<5x!tpu.dma_semaphore, #tpu.memory_space<semaphore_mem>>) attributes {dimension_semantics = [], scalar_prefetch = 0 : i64, scratch_operands = 6 : i64, tpu.core_type = #tpu.core_type<tc>} {
    %c0_i32 = arith.constant 0 : i32
    %0 = tpu.memref_slice %arg15[%c0_i32] : memref<5x!tpu.dma_semaphore, #tpu.memory_space<semaphore_mem>> -> memref<1x!tpu.dma_semaphore, #tpu.memory_space<semaphore_mem>>
    %1 = tpu.memref_squeeze %0 : memref<1x!tpu.dma_semaphore, #tpu.memory_space<semaphore_mem>> -> memref<!tpu.dma_semaphore, #tpu.memory_space<semaphore_mem>>
    tpu.enqueue_dma source(%arg4 : memref<256x1024xbf16, #tpu.memory_space<any>>) target(%arg10 : memref<256x1024xbf16, #tpu.memory_space<vmem>>) target_semaphore(%1 : memref<!tpu.dma_semaphore, #tpu.memory_space<semaphore_mem>>)
    %c1_i32 = arith.constant 1 : i32
    %2 = tpu.memref_slice %arg15[%c1_i32] : memref<5x!tpu.dma_semaphore, #tpu.memory_space<semaphore_mem>> -> memref<1x!tpu.dma_semaphore, #tpu.memory_space<semaphore_mem>>
    %3 = tpu.memref_squeeze %2 : memref<1x!tpu.dma_semaphore, #tpu.memory_space<semaphore_mem>> -> memref<!tpu.dma_semaphore, #tpu.memory_space<semaphore_mem>>
    tpu.enqueue_dma source(%arg5 : memref<128x1024xbf16, #tpu.memory_space<any>>) target(%arg11 : memref<128x1024xbf16, #tpu.memory_space<vmem>>) target_semaphore(%3 : memref<!tpu.dma_semaphore, #tpu.memory_space<semaphore_mem>>)
    %c2_i32 = arith.constant 2 : i32
    %4 = tpu.memref_slice %arg15[%c2_i32] : memref<5x!tpu.dma_semaphore, #tpu.memory_space<semaphore_mem>> -> memref<1x!tpu.dma_semaphore, #tpu.memory_space<semaphore_mem>>
    %5 = tpu.memref_squeeze %4 : memref<1x!tpu.dma_semaphore, #tpu.memory_space<semaphore_mem>> -> memref<!tpu.dma_semaphore, #tpu.memory_space<semaphore_mem>>
    tpu.enqueue_dma source(%arg6 : memref<1x1024xf32, #tpu.memory_space<any>>) target(%arg12 : memref<1x1024xf32, #tpu.memory_space<vmem>>) target_semaphore(%5 : memref<!tpu.dma_semaphore, #tpu.memory_space<semaphore_mem>>)
    %c3_i32 = arith.constant 3 : i32
    %6 = tpu.memref_slice %arg15[%c3_i32] : memref<5x!tpu.dma_semaphore, #tpu.memory_space<semaphore_mem>> -> memref<1x!tpu.dma_semaphore, #tpu.memory_space<semaphore_mem>>
    %7 = tpu.memref_squeeze %6 : memref<1x!tpu.dma_semaphore, #tpu.memory_space<semaphore_mem>> -> memref<!tpu.dma_semaphore, #tpu.memory_space<semaphore_mem>>
    tpu.enqueue_dma source(%arg7 : memref<256x128xbf16, #tpu.memory_space<any>>) target(%arg13 : memref<256x128xbf16, #tpu.memory_space<vmem>>) target_semaphore(%7 : memref<!tpu.dma_semaphore, #tpu.memory_space<semaphore_mem>>)
    %c4_i32 = arith.constant 4 : i32
    %8 = tpu.memref_slice %arg15[%c4_i32] : memref<5x!tpu.dma_semaphore, #tpu.memory_space<semaphore_mem>> -> memref<1x!tpu.dma_semaphore, #tpu.memory_space<semaphore_mem>>
    %9 = tpu.memref_squeeze %8 : memref<1x!tpu.dma_semaphore, #tpu.memory_space<semaphore_mem>> -> memref<!tpu.dma_semaphore, #tpu.memory_space<semaphore_mem>>
    tpu.enqueue_dma source(%arg8 : memref<1x128xf32, #tpu.memory_space<any>>) target(%arg14 : memref<1x128xf32, #tpu.memory_space<vmem>>) target_semaphore(%9 : memref<!tpu.dma_semaphore, #tpu.memory_space<semaphore_mem>>)
    %10 = tpu.iota {dimensions = array<i32: 0>} : vector<4x512xi32>
    %c2_i32_0 = arith.constant 2 : i32
    %11 = vector.broadcast %c2_i32_0 : i32 to vector<4x512xi32>
    %12 = arith.cmpi slt, %10, %11 : vector<4x512xi32>
    %c0 = arith.constant 0 : index
    %c0_1 = arith.constant 0 : index
    %13 = vector.load %arg0[%c0, %c0_1] : memref<16x128xbf16, #tpu.memory_space<vmem>>, vector<16x128xbf16>
    %c0_2 = arith.constant 0 : index
    %c0_3 = arith.constant 0 : index
    %14 = vector.load %arg1[%c0_2, %c0_3] : memref<128x1024xbf16, #tpu.memory_space<vmem>>, vector<128x1024xbf16>
    %cst = arith.constant dense<0.000000e+00> : vector<16x1024xf32>
    %15 = tpu.matmul %13, %14, %cst {dimension_numbers = #tpu.dot_dimension_numbers<[1], [0], [0], [1], [0, 0, 1, 1], [], []>} : vector<16x128xbf16>, vector<128x1024xbf16>, vector<16x1024xf32> -> vector<16x1024xf32>
    %c0_4 = arith.constant 0 : index
    %c0_5 = arith.constant 0 : index
    %16 = vector.load %arg3[%c0_4, %c0_5] : memref<1x1024xf32, #tpu.memory_space<vmem>>, vector<1x1024xf32>
    %17 = vector.broadcast %16 : vector<1x1024xf32> to vector<16x1024xf32>
    %18 = arith.addf %15, %17 : vector<16x1024xf32>
    %c0_6 = arith.constant 0 : index
    %c0_7 = arith.constant 0 : index
    %19 = vector.load %arg2[%c0_6, %c0_7] : memref<128x1024xbf16, #tpu.memory_space<vmem>>, vector<128x1024xbf16>
    %cst_8 = arith.constant 0.000000e+00 : f32
    %20 = vector.broadcast %cst_8 : f32 to vector<4x128xf32>
    %cst_9 = arith.constant 0.000000e+00 : f32
    %21 = vector.broadcast %cst_9 : f32 to vector<4x128xf32>
    %22 = vector.extract_strided_slice %18 {offsets = [0, 0], sizes = [2, 512], strides = [1, 1]} : vector<16x1024xf32> to vector<2x512xf32>
    %23 = vector.extract_strided_slice %18 {offsets = [14, 512], sizes = [2, 512], strides = [1, 1]} : vector<16x1024xf32> to vector<2x512xf32>
    %24 = tpu.concatenate %22, %23 in 0 : vector<2x512xf32>, vector<2x512xf32> -> vector<4x512xf32>
    %25 = arith.truncf %20 : vector<4x128xf32> to vector<4x128xbf16>
    %cst_10 = arith.constant dense<0.000000e+00> : vector<4x1024xf32>
    %26 = tpu.matmul %25, %19, %cst_10 {dimension_numbers = #tpu.dot_dimension_numbers<[1], [0], [0], [1], [0, 0, 1, 1], [], []>} : vector<4x128xbf16>, vector<128x1024xbf16>, vector<4x1024xf32> -> vector<4x1024xf32>
    %27 = vector.extract_strided_slice %26 {offsets = [0, 0], sizes = [4, 512], strides = [1, 1]} : vector<4x1024xf32> to vector<4x512xf32>
    %28 = vector.extract_strided_slice %26 {offsets = [0, 512], sizes = [4, 512], strides = [1, 1]} : vector<4x1024xf32> to vector<4x512xf32>
    %29 = arith.select %12, %27, %28 : vector<4x512xi1>, vector<4x512xf32>
    %30 = arith.addf %29, %24 : vector<4x512xf32>
    %31 = vector.extract_strided_slice %30 {offsets = [0, 0], sizes = [4, 384], strides = [1, 1]} : vector<4x512xf32> to vector<4x384xf32>
    %32 = arith.negf %31 : vector<4x384xf32>
    %33 = math.exp %32 : vector<4x384xf32>
    %cst_11 = arith.constant 1.000000e+00 : f32
    %34 = vector.broadcast %cst_11 : f32 to vector<4x384xf32>
    %35 = arith.addf %34, %33 : vector<4x384xf32>
    %36 = arith.divf %34, %35 : vector<4x384xf32>
    %37 = vector.extract_strided_slice %36 {offsets = [0, 0], sizes = [4, 128], strides = [1, 1]} : vector<4x384xf32> to vector<4x128xf32>
    %38 = vector.extract_strided_slice %36 {offsets = [0, 128], sizes = [4, 128], strides = [1, 1]} : vector<4x384xf32> to vector<4x128xf32>
    %39 = vector.extract_strided_slice %36 {offsets = [0, 256], sizes = [4, 128], strides = [1, 1]} : vector<4x384xf32> to vector<4x128xf32>
    %40 = vector.extract_strided_slice %30 {offsets = [0, 384], sizes = [4, 128], strides = [1, 1]} : vector<4x512xf32> to vector<4x128xf32>
    %41 = math.tanh %40 : vector<4x128xf32>
    %42 = arith.mulf %38, %21 : vector<4x128xf32>
    %43 = arith.mulf %37, %41 : vector<4x128xf32>
    %44 = arith.addf %42, %43 : vector<4x128xf32>
    %45 = math.tanh %44 : vector<4x128xf32>
    %46 = arith.mulf %39, %45 : vector<4x128xf32>
    %47 = vector.extract_strided_slice %18 {offsets = [2, 0], sizes = [2, 512], strides = [1, 1]} : vector<16x1024xf32> to vector<2x512xf32>
    %48 = vector.extract_strided_slice %18 {offsets = [12, 512], sizes = [2, 512], strides = [1, 1]} : vector<16x1024xf32> to vector<2x512xf32>
    %49 = tpu.concatenate %47, %48 in 0 : vector<2x512xf32>, vector<2x512xf32> -> vector<4x512xf32>
    %50 = arith.truncf %46 : vector<4x128xf32> to vector<4x128xbf16>
    %cst_12 = arith.constant dense<0.000000e+00> : vector<4x1024xf32>
    %51 = tpu.matmul %50, %19, %cst_12 {dimension_numbers = #tpu.dot_dimension_numbers<[1], [0], [0], [1], [0, 0, 1, 1], [], []>} : vector<4x128xbf16>, vector<128x1024xbf16>, vector<4x1024xf32> -> vector<4x1024xf32>
    %52 = vector.extract_strided_slice %51 {offsets = [0, 0], sizes = [4, 512], strides = [1, 1]} : vector<4x1024xf32> to vector<4x512xf32>
    %53 = vector.extract_strided_slice %51 {offsets = [0, 512], sizes = [4, 512], strides = [1, 1]} : vector<4x1024xf32> to vector<4x512xf32>
    %54 = arith.select %12, %52, %53 : vector<4x512xi1>, vector<4x512xf32>
    %55 = arith.addf %54, %49 : vector<4x512xf32>
    %56 = vector.extract_strided_slice %55 {offsets = [0, 0], sizes = [4, 384], strides = [1, 1]} : vector<4x512xf32> to vector<4x384xf32>
    %57 = arith.negf %56 : vector<4x384xf32>
    %58 = math.exp %57 : vector<4x384xf32>
    %cst_13 = arith.constant 1.000000e+00 : f32
    %59 = vector.broadcast %cst_13 : f32 to vector<4x384xf32>
    %60 = arith.addf %59, %58 : vector<4x384xf32>
    %61 = arith.divf %59, %60 : vector<4x384xf32>
    %62 = vector.extract_strided_slice %61 {offsets = [0, 0], sizes = [4, 128], strides = [1, 1]} : vector<4x384xf32> to vector<4x128xf32>
    %63 = vector.extract_strided_slice %61 {offsets = [0, 128], sizes = [4, 128], strides = [1, 1]} : vector<4x384xf32> to vector<4x128xf32>
    %64 = vector.extract_strided_slice %61 {offsets = [0, 256], sizes = [4, 128], strides = [1, 1]} : vector<4x384xf32> to vector<4x128xf32>
    %65 = vector.extract_strided_slice %55 {offsets = [0, 384], sizes = [4, 128], strides = [1, 1]} : vector<4x512xf32> to vector<4x128xf32>
    %66 = math.tanh %65 : vector<4x128xf32>
    %67 = arith.mulf %63, %44 : vector<4x128xf32>
    %68 = arith.mulf %62, %66 : vector<4x128xf32>
    %69 = arith.addf %67, %68 : vector<4x128xf32>
    %70 = math.tanh %69 : vector<4x128xf32>
    %71 = arith.mulf %64, %70 : vector<4x128xf32>
    %72 = vector.extract_strided_slice %18 {offsets = [4, 0], sizes = [2, 512], strides = [1, 1]} : vector<16x1024xf32> to vector<2x512xf32>
    %73 = vector.extract_strided_slice %18 {offsets = [10, 512], sizes = [2, 512], strides = [1, 1]} : vector<16x1024xf32> to vector<2x512xf32>
    %74 = tpu.concatenate %72, %73 in 0 : vector<2x512xf32>, vector<2x512xf32> -> vector<4x512xf32>
    %75 = arith.truncf %71 : vector<4x128xf32> to vector<4x128xbf16>
    %cst_14 = arith.constant dense<0.000000e+00> : vector<4x1024xf32>
    %76 = tpu.matmul %75, %19, %cst_14 {dimension_numbers = #tpu.dot_dimension_numbers<[1], [0], [0], [1], [0, 0, 1, 1], [], []>} : vector<4x128xbf16>, vector<128x1024xbf16>, vector<4x1024xf32> -> vector<4x1024xf32>
    %77 = vector.extract_strided_slice %76 {offsets = [0, 0], sizes = [4, 512], strides = [1, 1]} : vector<4x1024xf32> to vector<4x512xf32>
    %78 = vector.extract_strided_slice %76 {offsets = [0, 512], sizes = [4, 512], strides = [1, 1]} : vector<4x1024xf32> to vector<4x512xf32>
    %79 = arith.select %12, %77, %78 : vector<4x512xi1>, vector<4x512xf32>
    %80 = arith.addf %79, %74 : vector<4x512xf32>
    %81 = vector.extract_strided_slice %80 {offsets = [0, 0], sizes = [4, 384], strides = [1, 1]} : vector<4x512xf32> to vector<4x384xf32>
    %82 = arith.negf %81 : vector<4x384xf32>
    %83 = math.exp %82 : vector<4x384xf32>
    %cst_15 = arith.constant 1.000000e+00 : f32
    %84 = vector.broadcast %cst_15 : f32 to vector<4x384xf32>
    %85 = arith.addf %84, %83 : vector<4x384xf32>
    %86 = arith.divf %84, %85 : vector<4x384xf32>
    %87 = vector.extract_strided_slice %86 {offsets = [0, 0], sizes = [4, 128], strides = [1, 1]} : vector<4x384xf32> to vector<4x128xf32>
    %88 = vector.extract_strided_slice %86 {offsets = [0, 128], sizes = [4, 128], strides = [1, 1]} : vector<4x384xf32> to vector<4x128xf32>
    %89 = vector.extract_strided_slice %86 {offsets = [0, 256], sizes = [4, 128], strides = [1, 1]} : vector<4x384xf32> to vector<4x128xf32>
    %90 = vector.extract_strided_slice %80 {offsets = [0, 384], sizes = [4, 128], strides = [1, 1]} : vector<4x512xf32> to vector<4x128xf32>
    %91 = math.tanh %90 : vector<4x128xf32>
    %92 = arith.mulf %88, %69 : vector<4x128xf32>
    %93 = arith.mulf %87, %91 : vector<4x128xf32>
    %94 = arith.addf %92, %93 : vector<4x128xf32>
    %95 = math.tanh %94 : vector<4x128xf32>
    %96 = arith.mulf %89, %95 : vector<4x128xf32>
    %97 = vector.extract_strided_slice %18 {offsets = [6, 0], sizes = [2, 512], strides = [1, 1]} : vector<16x1024xf32> to vector<2x512xf32>
    %98 = vector.extract_strided_slice %18 {offsets = [8, 512], sizes = [2, 512], strides = [1, 1]} : vector<16x1024xf32> to vector<2x512xf32>
    %99 = tpu.concatenate %97, %98 in 0 : vector<2x512xf32>, vector<2x512xf32> -> vector<4x512xf32>
    %100 = arith.truncf %96 : vector<4x128xf32> to vector<4x128xbf16>
    %cst_16 = arith.constant dense<0.000000e+00> : vector<4x1024xf32>
    %101 = tpu.matmul %100, %19, %cst_16 {dimension_numbers = #tpu.dot_dimension_numbers<[1], [0], [0], [1], [0, 0, 1, 1], [], []>} : vector<4x128xbf16>, vector<128x1024xbf16>, vector<4x1024xf32> -> vector<4x1024xf32>
    %102 = vector.extract_strided_slice %101 {offsets = [0, 0], sizes = [4, 512], strides = [1, 1]} : vector<4x1024xf32> to vector<4x512xf32>
    %103 = vector.extract_strided_slice %101 {offsets = [0, 512], sizes = [4, 512], strides = [1, 1]} : vector<4x1024xf32> to vector<4x512xf32>
    %104 = arith.select %12, %102, %103 : vector<4x512xi1>, vector<4x512xf32>
    %105 = arith.addf %104, %99 : vector<4x512xf32>
    %106 = vector.extract_strided_slice %105 {offsets = [0, 0], sizes = [4, 384], strides = [1, 1]} : vector<4x512xf32> to vector<4x384xf32>
    %107 = arith.negf %106 : vector<4x384xf32>
    %108 = math.exp %107 : vector<4x384xf32>
    %cst_17 = arith.constant 1.000000e+00 : f32
    %109 = vector.broadcast %cst_17 : f32 to vector<4x384xf32>
    %110 = arith.addf %109, %108 : vector<4x384xf32>
    %111 = arith.divf %109, %110 : vector<4x384xf32>
    %112 = vector.extract_strided_slice %111 {offsets = [0, 0], sizes = [4, 128], strides = [1, 1]} : vector<4x384xf32> to vector<4x128xf32>
    %113 = vector.extract_strided_slice %111 {offsets = [0, 128], sizes = [4, 128], strides = [1, 1]} : vector<4x384xf32> to vector<4x128xf32>
    %114 = vector.extract_strided_slice %111 {offsets = [0, 256], sizes = [4, 128], strides = [1, 1]} : vector<4x384xf32> to vector<4x128xf32>
    %115 = vector.extract_strided_slice %105 {offsets = [0, 384], sizes = [4, 128], strides = [1, 1]} : vector<4x512xf32> to vector<4x128xf32>
    %116 = math.tanh %115 : vector<4x128xf32>
    %117 = arith.mulf %113, %94 : vector<4x128xf32>
    %118 = arith.mulf %112, %116 : vector<4x128xf32>
    %119 = arith.addf %117, %118 : vector<4x128xf32>
    %120 = math.tanh %119 : vector<4x128xf32>
    %121 = arith.mulf %114, %120 : vector<4x128xf32>
    %122 = vector.extract_strided_slice %18 {offsets = [8, 0], sizes = [2, 512], strides = [1, 1]} : vector<16x1024xf32> to vector<2x512xf32>
    %123 = vector.extract_strided_slice %18 {offsets = [6, 512], sizes = [2, 512], strides = [1, 1]} : vector<16x1024xf32> to vector<2x512xf32>
    %124 = tpu.concatenate %122, %123 in 0 : vector<2x512xf32>, vector<2x512xf32> -> vector<4x512xf32>
    %125 = arith.truncf %121 : vector<4x128xf32> to vector<4x128xbf16>
    %cst_18 = arith.constant dense<0.000000e+00> : vector<4x1024xf32>
    %126 = tpu.matmul %125, %19, %cst_18 {dimension_numbers = #tpu.dot_dimension_numbers<[1], [0], [0], [1], [0, 0, 1, 1], [], []>} : vector<4x128xbf16>, vector<128x1024xbf16>, vector<4x1024xf32> -> vector<4x1024xf32>
    %127 = vector.extract_strided_slice %126 {offsets = [0, 0], sizes = [4, 512], strides = [1, 1]} : vector<4x1024xf32> to vector<4x512xf32>
    %128 = vector.extract_strided_slice %126 {offsets = [0, 512], sizes = [4, 512], strides = [1, 1]} : vector<4x1024xf32> to vector<4x512xf32>
    %129 = arith.select %12, %127, %128 : vector<4x512xi1>, vector<4x512xf32>
    %130 = arith.addf %129, %124 : vector<4x512xf32>
    %131 = vector.extract_strided_slice %130 {offsets = [0, 0], sizes = [4, 384], strides = [1, 1]} : vector<4x512xf32> to vector<4x384xf32>
    %132 = arith.negf %131 : vector<4x384xf32>
    %133 = math.exp %132 : vector<4x384xf32>
    %cst_19 = arith.constant 1.000000e+00 : f32
    %134 = vector.broadcast %cst_19 : f32 to vector<4x384xf32>
    %135 = arith.addf %134, %133 : vector<4x384xf32>
    %136 = arith.divf %134, %135 : vector<4x384xf32>
    %137 = vector.extract_strided_slice %136 {offsets = [0, 0], sizes = [4, 128], strides = [1, 1]} : vector<4x384xf32> to vector<4x128xf32>
    %138 = vector.extract_strided_slice %136 {offsets = [0, 128], sizes = [4, 128], strides = [1, 1]} : vector<4x384xf32> to vector<4x128xf32>
    %139 = vector.extract_strided_slice %136 {offsets = [0, 256], sizes = [4, 128], strides = [1, 1]} : vector<4x384xf32> to vector<4x128xf32>
    %140 = vector.extract_strided_slice %130 {offsets = [0, 384], sizes = [4, 128], strides = [1, 1]} : vector<4x512xf32> to vector<4x128xf32>
    %141 = math.tanh %140 : vector<4x128xf32>
    %142 = arith.mulf %138, %119 : vector<4x128xf32>
    %143 = arith.mulf %137, %141 : vector<4x128xf32>
    %144 = arith.addf %142, %143 : vector<4x128xf32>
    %145 = math.tanh %144 : vector<4x128xf32>
    %146 = arith.mulf %139, %145 : vector<4x128xf32>
    %147 = vector.extract_strided_slice %18 {offsets = [10, 0], sizes = [2, 512], strides = [1, 1]} : vector<16x1024xf32> to vector<2x512xf32>
    %148 = vector.extract_strided_slice %18 {offsets = [4, 512], sizes = [2, 512], strides = [1, 1]} : vector<16x1024xf32> to vector<2x512xf32>
    %149 = tpu.concatenate %147, %148 in 0 : vector<2x512xf32>, vector<2x512xf32> -> vector<4x512xf32>
    %150 = arith.truncf %146 : vector<4x128xf32> to vector<4x128xbf16>
    %cst_20 = arith.constant dense<0.000000e+00> : vector<4x1024xf32>
    %151 = tpu.matmul %150, %19, %cst_20 {dimension_numbers = #tpu.dot_dimension_numbers<[1], [0], [0], [1], [0, 0, 1, 1], [], []>} : vector<4x128xbf16>, vector<128x1024xbf16>, vector<4x1024xf32> -> vector<4x1024xf32>
    %152 = vector.extract_strided_slice %151 {offsets = [0, 0], sizes = [4, 512], strides = [1, 1]} : vector<4x1024xf32> to vector<4x512xf32>
    %153 = vector.extract_strided_slice %151 {offsets = [0, 512], sizes = [4, 512], strides = [1, 1]} : vector<4x1024xf32> to vector<4x512xf32>
    %154 = arith.select %12, %152, %153 : vector<4x512xi1>, vector<4x512xf32>
    %155 = arith.addf %154, %149 : vector<4x512xf32>
    %156 = vector.extract_strided_slice %155 {offsets = [0, 0], sizes = [4, 384], strides = [1, 1]} : vector<4x512xf32> to vector<4x384xf32>
    %157 = arith.negf %156 : vector<4x384xf32>
    %158 = math.exp %157 : vector<4x384xf32>
    %cst_21 = arith.constant 1.000000e+00 : f32
    %159 = vector.broadcast %cst_21 : f32 to vector<4x384xf32>
    %160 = arith.addf %159, %158 : vector<4x384xf32>
    %161 = arith.divf %159, %160 : vector<4x384xf32>
    %162 = vector.extract_strided_slice %161 {offsets = [0, 0], sizes = [4, 128], strides = [1, 1]} : vector<4x384xf32> to vector<4x128xf32>
    %163 = vector.extract_strided_slice %161 {offsets = [0, 128], sizes = [4, 128], strides = [1, 1]} : vector<4x384xf32> to vector<4x128xf32>
    %164 = vector.extract_strided_slice %161 {offsets = [0, 256], sizes = [4, 128], strides = [1, 1]} : vector<4x384xf32> to vector<4x128xf32>
    %165 = vector.extract_strided_slice %155 {offsets = [0, 384], sizes = [4, 128], strides = [1, 1]} : vector<4x512xf32> to vector<4x128xf32>
    %166 = math.tanh %165 : vector<4x128xf32>
    %167 = arith.mulf %163, %144 : vector<4x128xf32>
    %168 = arith.mulf %162, %166 : vector<4x128xf32>
    %169 = arith.addf %167, %168 : vector<4x128xf32>
    %170 = math.tanh %169 : vector<4x128xf32>
    %171 = arith.mulf %164, %170 : vector<4x128xf32>
    %172 = vector.extract_strided_slice %18 {offsets = [12, 0], sizes = [2, 512], strides = [1, 1]} : vector<16x1024xf32> to vector<2x512xf32>
    %173 = vector.extract_strided_slice %18 {offsets = [2, 512], sizes = [2, 512], strides = [1, 1]} : vector<16x1024xf32> to vector<2x512xf32>
    %174 = tpu.concatenate %172, %173 in 0 : vector<2x512xf32>, vector<2x512xf32> -> vector<4x512xf32>
    %175 = arith.truncf %171 : vector<4x128xf32> to vector<4x128xbf16>
    %cst_22 = arith.constant dense<0.000000e+00> : vector<4x1024xf32>
    %176 = tpu.matmul %175, %19, %cst_22 {dimension_numbers = #tpu.dot_dimension_numbers<[1], [0], [0], [1], [0, 0, 1, 1], [], []>} : vector<4x128xbf16>, vector<128x1024xbf16>, vector<4x1024xf32> -> vector<4x1024xf32>
    %177 = vector.extract_strided_slice %176 {offsets = [0, 0], sizes = [4, 512], strides = [1, 1]} : vector<4x1024xf32> to vector<4x512xf32>
    %178 = vector.extract_strided_slice %176 {offsets = [0, 512], sizes = [4, 512], strides = [1, 1]} : vector<4x1024xf32> to vector<4x512xf32>
    %179 = arith.select %12, %177, %178 : vector<4x512xi1>, vector<4x512xf32>
    %180 = arith.addf %179, %174 : vector<4x512xf32>
    %181 = vector.extract_strided_slice %180 {offsets = [0, 0], sizes = [4, 384], strides = [1, 1]} : vector<4x512xf32> to vector<4x384xf32>
    %182 = arith.negf %181 : vector<4x384xf32>
    %183 = math.exp %182 : vector<4x384xf32>
    %cst_23 = arith.constant 1.000000e+00 : f32
    %184 = vector.broadcast %cst_23 : f32 to vector<4x384xf32>
    %185 = arith.addf %184, %183 : vector<4x384xf32>
    %186 = arith.divf %184, %185 : vector<4x384xf32>
    %187 = vector.extract_strided_slice %186 {offsets = [0, 0], sizes = [4, 128], strides = [1, 1]} : vector<4x384xf32> to vector<4x128xf32>
    %188 = vector.extract_strided_slice %186 {offsets = [0, 128], sizes = [4, 128], strides = [1, 1]} : vector<4x384xf32> to vector<4x128xf32>
    %189 = vector.extract_strided_slice %186 {offsets = [0, 256], sizes = [4, 128], strides = [1, 1]} : vector<4x384xf32> to vector<4x128xf32>
    %190 = vector.extract_strided_slice %180 {offsets = [0, 384], sizes = [4, 128], strides = [1, 1]} : vector<4x512xf32> to vector<4x128xf32>
    %191 = math.tanh %190 : vector<4x128xf32>
    %192 = arith.mulf %188, %169 : vector<4x128xf32>
    %193 = arith.mulf %187, %191 : vector<4x128xf32>
    %194 = arith.addf %192, %193 : vector<4x128xf32>
    %195 = math.tanh %194 : vector<4x128xf32>
    %196 = arith.mulf %189, %195 : vector<4x128xf32>
    %197 = vector.extract_strided_slice %18 {offsets = [14, 0], sizes = [2, 512], strides = [1, 1]} : vector<16x1024xf32> to vector<2x512xf32>
    %198 = vector.extract_strided_slice %18 {offsets = [0, 512], sizes = [2, 512], strides = [1, 1]} : vector<16x1024xf32> to vector<2x512xf32>
    %199 = tpu.concatenate %197, %198 in 0 : vector<2x512xf32>, vector<2x512xf32> -> vector<4x512xf32>
    %200 = arith.truncf %196 : vector<4x128xf32> to vector<4x128xbf16>
    %cst_24 = arith.constant dense<0.000000e+00> : vector<4x1024xf32>
    %201 = tpu.matmul %200, %19, %cst_24 {dimension_numbers = #tpu.dot_dimension_numbers<[1], [0], [0], [1], [0, 0, 1, 1], [], []>} : vector<4x128xbf16>, vector<128x1024xbf16>, vector<4x1024xf32> -> vector<4x1024xf32>
    %202 = vector.extract_strided_slice %201 {offsets = [0, 0], sizes = [4, 512], strides = [1, 1]} : vector<4x1024xf32> to vector<4x512xf32>
    %203 = vector.extract_strided_slice %201 {offsets = [0, 512], sizes = [4, 512], strides = [1, 1]} : vector<4x1024xf32> to vector<4x512xf32>
    %204 = arith.select %12, %202, %203 : vector<4x512xi1>, vector<4x512xf32>
    %205 = arith.addf %204, %199 : vector<4x512xf32>
    %206 = vector.extract_strided_slice %205 {offsets = [0, 0], sizes = [4, 384], strides = [1, 1]} : vector<4x512xf32> to vector<4x384xf32>
    %207 = arith.negf %206 : vector<4x384xf32>
    %208 = math.exp %207 : vector<4x384xf32>
    %cst_25 = arith.constant 1.000000e+00 : f32
    %209 = vector.broadcast %cst_25 : f32 to vector<4x384xf32>
    %210 = arith.addf %209, %208 : vector<4x384xf32>
    %211 = arith.divf %209, %210 : vector<4x384xf32>
    %212 = vector.extract_strided_slice %211 {offsets = [0, 0], sizes = [4, 128], strides = [1, 1]} : vector<4x384xf32> to vector<4x128xf32>
    %213 = vector.extract_strided_slice %211 {offsets = [0, 128], sizes = [4, 128], strides = [1, 1]} : vector<4x384xf32> to vector<4x128xf32>
    %214 = vector.extract_strided_slice %211 {offsets = [0, 256], sizes = [4, 128], strides = [1, 1]} : vector<4x384xf32> to vector<4x128xf32>
    %215 = vector.extract_strided_slice %205 {offsets = [0, 384], sizes = [4, 128], strides = [1, 1]} : vector<4x512xf32> to vector<4x128xf32>
    %216 = math.tanh %215 : vector<4x128xf32>
    %217 = arith.mulf %213, %194 : vector<4x128xf32>
    %218 = arith.mulf %212, %216 : vector<4x128xf32>
    %219 = arith.addf %217, %218 : vector<4x128xf32>
    %220 = math.tanh %219 : vector<4x128xf32>
    %221 = arith.mulf %214, %220 : vector<4x128xf32>
    %222 = vector.extract_strided_slice %46 {offsets = [0, 0], sizes = [2, 128], strides = [1, 1]} : vector<4x128xf32> to vector<2x128xf32>
    %223 = vector.extract_strided_slice %71 {offsets = [0, 0], sizes = [2, 128], strides = [1, 1]} : vector<4x128xf32> to vector<2x128xf32>
    %224 = vector.extract_strided_slice %96 {offsets = [0, 0], sizes = [2, 128], strides = [1, 1]} : vector<4x128xf32> to vector<2x128xf32>
    %225 = vector.extract_strided_slice %121 {offsets = [0, 0], sizes = [2, 128], strides = [1, 1]} : vector<4x128xf32> to vector<2x128xf32>
    %226 = vector.extract_strided_slice %146 {offsets = [0, 0], sizes = [2, 128], strides = [1, 1]} : vector<4x128xf32> to vector<2x128xf32>
    %227 = vector.extract_strided_slice %171 {offsets = [0, 0], sizes = [2, 128], strides = [1, 1]} : vector<4x128xf32> to vector<2x128xf32>
    %228 = vector.extract_strided_slice %196 {offsets = [0, 0], sizes = [2, 128], strides = [1, 1]} : vector<4x128xf32> to vector<2x128xf32>
    %229 = vector.extract_strided_slice %221 {offsets = [0, 0], sizes = [2, 128], strides = [1, 1]} : vector<4x128xf32> to vector<2x128xf32>
    %230 = tpu.concatenate %222, %223, %224, %225, %226, %227, %228, %229 in 0 : vector<2x128xf32>, vector<2x128xf32>, vector<2x128xf32>, vector<2x128xf32>, vector<2x128xf32>, vector<2x128xf32>, vector<2x128xf32>, vector<2x128xf32> -> vector<16x128xf32>
    %231 = vector.extract_strided_slice %221 {offsets = [2, 0], sizes = [2, 128], strides = [1, 1]} : vector<4x128xf32> to vector<2x128xf32>
    %232 = vector.extract_strided_slice %196 {offsets = [2, 0], sizes = [2, 128], strides = [1, 1]} : vector<4x128xf32> to vector<2x128xf32>
    %233 = vector.extract_strided_slice %171 {offsets = [2, 0], sizes = [2, 128], strides = [1, 1]} : vector<4x128xf32> to vector<2x128xf32>
    %234 = vector.extract_strided_slice %146 {offsets = [2, 0], sizes = [2, 128], strides = [1, 1]} : vector<4x128xf32> to vector<2x128xf32>
    %235 = vector.extract_strided_slice %121 {offsets = [2, 0], sizes = [2, 128], strides = [1, 1]} : vector<4x128xf32> to vector<2x128xf32>
    %236 = vector.extract_strided_slice %96 {offsets = [2, 0], sizes = [2, 128], strides = [1, 1]} : vector<4x128xf32> to vector<2x128xf32>
    %237 = vector.extract_strided_slice %71 {offsets = [2, 0], sizes = [2, 128], strides = [1, 1]} : vector<4x128xf32> to vector<2x128xf32>
    %238 = vector.extract_strided_slice %46 {offsets = [2, 0], sizes = [2, 128], strides = [1, 1]} : vector<4x128xf32> to vector<2x128xf32>
    %239 = tpu.concatenate %231, %232, %233, %234, %235, %236, %237, %238 in 0 : vector<2x128xf32>, vector<2x128xf32>, vector<2x128xf32>, vector<2x128xf32>, vector<2x128xf32>, vector<2x128xf32>, vector<2x128xf32>, vector<2x128xf32> -> vector<16x128xf32>
    %240 = tpu.concatenate %230, %239 in 1 : vector<16x128xf32>, vector<16x128xf32> -> vector<16x256xf32>
    %241 = arith.truncf %240 : vector<16x256xf32> to vector<16x256xbf16>
    %c0_i32_26 = arith.constant 0 : i32
    %242 = tpu.memref_slice %arg15[%c0_i32_26] : memref<5x!tpu.dma_semaphore, #tpu.memory_space<semaphore_mem>> -> memref<1x!tpu.dma_semaphore, #tpu.memory_space<semaphore_mem>>
    %243 = tpu.memref_squeeze %242 : memref<1x!tpu.dma_semaphore, #tpu.memory_space<semaphore_mem>> -> memref<!tpu.dma_semaphore, #tpu.memory_space<semaphore_mem>>
    tpu.wait_dma2 semaphore(%243 : memref<!tpu.dma_semaphore, #tpu.memory_space<semaphore_mem>>) src(%arg4 : memref<256x1024xbf16, #tpu.memory_space<any>>) dst(%arg10 : memref<256x1024xbf16, #tpu.memory_space<vmem>>)
    %c1_i32_27 = arith.constant 1 : i32
    %244 = tpu.memref_slice %arg15[%c1_i32_27] : memref<5x!tpu.dma_semaphore, #tpu.memory_space<semaphore_mem>> -> memref<1x!tpu.dma_semaphore, #tpu.memory_space<semaphore_mem>>
    %245 = tpu.memref_squeeze %244 : memref<1x!tpu.dma_semaphore, #tpu.memory_space<semaphore_mem>> -> memref<!tpu.dma_semaphore, #tpu.memory_space<semaphore_mem>>
    tpu.wait_dma2 semaphore(%245 : memref<!tpu.dma_semaphore, #tpu.memory_space<semaphore_mem>>) src(%arg5 : memref<128x1024xbf16, #tpu.memory_space<any>>) dst(%arg11 : memref<128x1024xbf16, #tpu.memory_space<vmem>>)
    %c2_i32_28 = arith.constant 2 : i32
    %246 = tpu.memref_slice %arg15[%c2_i32_28] : memref<5x!tpu.dma_semaphore, #tpu.memory_space<semaphore_mem>> -> memref<1x!tpu.dma_semaphore, #tpu.memory_space<semaphore_mem>>
    %247 = tpu.memref_squeeze %246 : memref<1x!tpu.dma_semaphore, #tpu.memory_space<semaphore_mem>> -> memref<!tpu.dma_semaphore, #tpu.memory_space<semaphore_mem>>
    tpu.wait_dma2 semaphore(%247 : memref<!tpu.dma_semaphore, #tpu.memory_space<semaphore_mem>>) src(%arg6 : memref<1x1024xf32, #tpu.memory_space<any>>) dst(%arg12 : memref<1x1024xf32, #tpu.memory_space<vmem>>)
    %c0_29 = arith.constant 0 : index
    %c0_30 = arith.constant 0 : index
    %248 = vector.load %arg10[%c0_29, %c0_30] : memref<256x1024xbf16, #tpu.memory_space<vmem>>, vector<256x1024xbf16>
    %cst_31 = arith.constant dense<0.000000e+00> : vector<16x1024xf32>
    %249 = tpu.matmul %241, %248, %cst_31 {dimension_numbers = #tpu.dot_dimension_numbers<[1], [0], [0], [1], [0, 0, 1, 1], [], []>} : vector<16x256xbf16>, vector<256x1024xbf16>, vector<16x1024xf32> -> vector<16x1024xf32>
    %c0_32 = arith.constant 0 : index
    %c0_33 = arith.constant 0 : index
    %250 = vector.load %arg12[%c0_32, %c0_33] : memref<1x1024xf32, #tpu.memory_space<vmem>>, vector<1x1024xf32>
    %251 = vector.broadcast %250 : vector<1x1024xf32> to vector<16x1024xf32>
    %252 = arith.addf %249, %251 : vector<16x1024xf32>
    %c0_34 = arith.constant 0 : index
    %c0_35 = arith.constant 0 : index
    %253 = vector.load %arg11[%c0_34, %c0_35] : memref<128x1024xbf16, #tpu.memory_space<vmem>>, vector<128x1024xbf16>
    %cst_36 = arith.constant 0.000000e+00 : f32
    %254 = vector.broadcast %cst_36 : f32 to vector<4x128xf32>
    %cst_37 = arith.constant 0.000000e+00 : f32
    %255 = vector.broadcast %cst_37 : f32 to vector<4x128xf32>
    %256 = vector.extract_strided_slice %252 {offsets = [0, 0], sizes = [2, 512], strides = [1, 1]} : vector<16x1024xf32> to vector<2x512xf32>
    %257 = vector.extract_strided_slice %252 {offsets = [14, 512], sizes = [2, 512], strides = [1, 1]} : vector<16x1024xf32> to vector<2x512xf32>
    %258 = tpu.concatenate %256, %257 in 0 : vector<2x512xf32>, vector<2x512xf32> -> vector<4x512xf32>
    %259 = arith.truncf %254 : vector<4x128xf32> to vector<4x128xbf16>
    %cst_38 = arith.constant dense<0.000000e+00> : vector<4x1024xf32>
    %260 = tpu.matmul %259, %253, %cst_38 {dimension_numbers = #tpu.dot_dimension_numbers<[1], [0], [0], [1], [0, 0, 1, 1], [], []>} : vector<4x128xbf16>, vector<128x1024xbf16>, vector<4x1024xf32> -> vector<4x1024xf32>
    %261 = vector.extract_strided_slice %260 {offsets = [0, 0], sizes = [4, 512], strides = [1, 1]} : vector<4x1024xf32> to vector<4x512xf32>
    %262 = vector.extract_strided_slice %260 {offsets = [0, 512], sizes = [4, 512], strides = [1, 1]} : vector<4x1024xf32> to vector<4x512xf32>
    %263 = arith.select %12, %261, %262 : vector<4x512xi1>, vector<4x512xf32>
    %264 = arith.addf %263, %258 : vector<4x512xf32>
    %265 = vector.extract_strided_slice %264 {offsets = [0, 0], sizes = [4, 384], strides = [1, 1]} : vector<4x512xf32> to vector<4x384xf32>
    %266 = arith.negf %265 : vector<4x384xf32>
    %267 = math.exp %266 : vector<4x384xf32>
    %cst_39 = arith.constant 1.000000e+00 : f32
    %268 = vector.broadcast %cst_39 : f32 to vector<4x384xf32>
    %269 = arith.addf %268, %267 : vector<4x384xf32>
    %270 = arith.divf %268, %269 : vector<4x384xf32>
    %271 = vector.extract_strided_slice %270 {offsets = [0, 0], sizes = [4, 128], strides = [1, 1]} : vector<4x384xf32> to vector<4x128xf32>
    %272 = vector.extract_strided_slice %270 {offsets = [0, 128], sizes = [4, 128], strides = [1, 1]} : vector<4x384xf32> to vector<4x128xf32>
    %273 = vector.extract_strided_slice %270 {offsets = [0, 256], sizes = [4, 128], strides = [1, 1]} : vector<4x384xf32> to vector<4x128xf32>
    %274 = vector.extract_strided_slice %264 {offsets = [0, 384], sizes = [4, 128], strides = [1, 1]} : vector<4x512xf32> to vector<4x128xf32>
    %275 = math.tanh %274 : vector<4x128xf32>
    %276 = arith.mulf %272, %255 : vector<4x128xf32>
    %277 = arith.mulf %271, %275 : vector<4x128xf32>
    %278 = arith.addf %276, %277 : vector<4x128xf32>
    %279 = math.tanh %278 : vector<4x128xf32>
    %280 = arith.mulf %273, %279 : vector<4x128xf32>
    %281 = vector.extract_strided_slice %252 {offsets = [2, 0], sizes = [2, 512], strides = [1, 1]} : vector<16x1024xf32> to vector<2x512xf32>
    %282 = vector.extract_strided_slice %252 {offsets = [12, 512], sizes = [2, 512], strides = [1, 1]} : vector<16x1024xf32> to vector<2x512xf32>
    %283 = tpu.concatenate %281, %282 in 0 : vector<2x512xf32>, vector<2x512xf32> -> vector<4x512xf32>
    %284 = arith.truncf %280 : vector<4x128xf32> to vector<4x128xbf16>
    %cst_40 = arith.constant dense<0.000000e+00> : vector<4x1024xf32>
    %285 = tpu.matmul %284, %253, %cst_40 {dimension_numbers = #tpu.dot_dimension_numbers<[1], [0], [0], [1], [0, 0, 1, 1], [], []>} : vector<4x128xbf16>, vector<128x1024xbf16>, vector<4x1024xf32> -> vector<4x1024xf32>
    %286 = vector.extract_strided_slice %285 {offsets = [0, 0], sizes = [4, 512], strides = [1, 1]} : vector<4x1024xf32> to vector<4x512xf32>
    %287 = vector.extract_strided_slice %285 {offsets = [0, 512], sizes = [4, 512], strides = [1, 1]} : vector<4x1024xf32> to vector<4x512xf32>
    %288 = arith.select %12, %286, %287 : vector<4x512xi1>, vector<4x512xf32>
    %289 = arith.addf %288, %283 : vector<4x512xf32>
    %290 = vector.extract_strided_slice %289 {offsets = [0, 0], sizes = [4, 384], strides = [1, 1]} : vector<4x512xf32> to vector<4x384xf32>
    %291 = arith.negf %290 : vector<4x384xf32>
    %292 = math.exp %291 : vector<4x384xf32>
    %cst_41 = arith.constant 1.000000e+00 : f32
    %293 = vector.broadcast %cst_41 : f32 to vector<4x384xf32>
    %294 = arith.addf %293, %292 : vector<4x384xf32>
    %295 = arith.divf %293, %294 : vector<4x384xf32>
    %296 = vector.extract_strided_slice %295 {offsets = [0, 0], sizes = [4, 128], strides = [1, 1]} : vector<4x384xf32> to vector<4x128xf32>
    %297 = vector.extract_strided_slice %295 {offsets = [0, 128], sizes = [4, 128], strides = [1, 1]} : vector<4x384xf32> to vector<4x128xf32>
    %298 = vector.extract_strided_slice %295 {offsets = [0, 256], sizes = [4, 128], strides = [1, 1]} : vector<4x384xf32> to vector<4x128xf32>
    %299 = vector.extract_strided_slice %289 {offsets = [0, 384], sizes = [4, 128], strides = [1, 1]} : vector<4x512xf32> to vector<4x128xf32>
    %300 = math.tanh %299 : vector<4x128xf32>
    %301 = arith.mulf %297, %278 : vector<4x128xf32>
    %302 = arith.mulf %296, %300 : vector<4x128xf32>
    %303 = arith.addf %301, %302 : vector<4x128xf32>
    %304 = math.tanh %303 : vector<4x128xf32>
    %305 = arith.mulf %298, %304 : vector<4x128xf32>
    %306 = vector.extract_strided_slice %252 {offsets = [4, 0], sizes = [2, 512], strides = [1, 1]} : vector<16x1024xf32> to vector<2x512xf32>
    %307 = vector.extract_strided_slice %252 {offsets = [10, 512], sizes = [2, 512], strides = [1, 1]} : vector<16x1024xf32> to vector<2x512xf32>
    %308 = tpu.concatenate %306, %307 in 0 : vector<2x512xf32>, vector<2x512xf32> -> vector<4x512xf32>
    %309 = arith.truncf %305 : vector<4x128xf32> to vector<4x128xbf16>
    %cst_42 = arith.constant dense<0.000000e+00> : vector<4x1024xf32>
    %310 = tpu.matmul %309, %253, %cst_42 {dimension_numbers = #tpu.dot_dimension_numbers<[1], [0], [0], [1], [0, 0, 1, 1], [], []>} : vector<4x128xbf16>, vector<128x1024xbf16>, vector<4x1024xf32> -> vector<4x1024xf32>
    %311 = vector.extract_strided_slice %310 {offsets = [0, 0], sizes = [4, 512], strides = [1, 1]} : vector<4x1024xf32> to vector<4x512xf32>
    %312 = vector.extract_strided_slice %310 {offsets = [0, 512], sizes = [4, 512], strides = [1, 1]} : vector<4x1024xf32> to vector<4x512xf32>
    %313 = arith.select %12, %311, %312 : vector<4x512xi1>, vector<4x512xf32>
    %314 = arith.addf %313, %308 : vector<4x512xf32>
    %315 = vector.extract_strided_slice %314 {offsets = [0, 0], sizes = [4, 384], strides = [1, 1]} : vector<4x512xf32> to vector<4x384xf32>
    %316 = arith.negf %315 : vector<4x384xf32>
    %317 = math.exp %316 : vector<4x384xf32>
    %cst_43 = arith.constant 1.000000e+00 : f32
    %318 = vector.broadcast %cst_43 : f32 to vector<4x384xf32>
    %319 = arith.addf %318, %317 : vector<4x384xf32>
    %320 = arith.divf %318, %319 : vector<4x384xf32>
    %321 = vector.extract_strided_slice %320 {offsets = [0, 0], sizes = [4, 128], strides = [1, 1]} : vector<4x384xf32> to vector<4x128xf32>
    %322 = vector.extract_strided_slice %320 {offsets = [0, 128], sizes = [4, 128], strides = [1, 1]} : vector<4x384xf32> to vector<4x128xf32>
    %323 = vector.extract_strided_slice %320 {offsets = [0, 256], sizes = [4, 128], strides = [1, 1]} : vector<4x384xf32> to vector<4x128xf32>
    %324 = vector.extract_strided_slice %314 {offsets = [0, 384], sizes = [4, 128], strides = [1, 1]} : vector<4x512xf32> to vector<4x128xf32>
    %325 = math.tanh %324 : vector<4x128xf32>
    %326 = arith.mulf %322, %303 : vector<4x128xf32>
    %327 = arith.mulf %321, %325 : vector<4x128xf32>
    %328 = arith.addf %326, %327 : vector<4x128xf32>
    %329 = math.tanh %328 : vector<4x128xf32>
    %330 = arith.mulf %323, %329 : vector<4x128xf32>
    %331 = vector.extract_strided_slice %252 {offsets = [6, 0], sizes = [2, 512], strides = [1, 1]} : vector<16x1024xf32> to vector<2x512xf32>
    %332 = vector.extract_strided_slice %252 {offsets = [8, 512], sizes = [2, 512], strides = [1, 1]} : vector<16x1024xf32> to vector<2x512xf32>
    %333 = tpu.concatenate %331, %332 in 0 : vector<2x512xf32>, vector<2x512xf32> -> vector<4x512xf32>
    %334 = arith.truncf %330 : vector<4x128xf32> to vector<4x128xbf16>
    %cst_44 = arith.constant dense<0.000000e+00> : vector<4x1024xf32>
    %335 = tpu.matmul %334, %253, %cst_44 {dimension_numbers = #tpu.dot_dimension_numbers<[1], [0], [0], [1], [0, 0, 1, 1], [], []>} : vector<4x128xbf16>, vector<128x1024xbf16>, vector<4x1024xf32> -> vector<4x1024xf32>
    %336 = vector.extract_strided_slice %335 {offsets = [0, 0], sizes = [4, 512], strides = [1, 1]} : vector<4x1024xf32> to vector<4x512xf32>
    %337 = vector.extract_strided_slice %335 {offsets = [0, 512], sizes = [4, 512], strides = [1, 1]} : vector<4x1024xf32> to vector<4x512xf32>
    %338 = arith.select %12, %336, %337 : vector<4x512xi1>, vector<4x512xf32>
    %339 = arith.addf %338, %333 : vector<4x512xf32>
    %340 = vector.extract_strided_slice %339 {offsets = [0, 0], sizes = [4, 384], strides = [1, 1]} : vector<4x512xf32> to vector<4x384xf32>
    %341 = arith.negf %340 : vector<4x384xf32>
    %342 = math.exp %341 : vector<4x384xf32>
    %cst_45 = arith.constant 1.000000e+00 : f32
    %343 = vector.broadcast %cst_45 : f32 to vector<4x384xf32>
    %344 = arith.addf %343, %342 : vector<4x384xf32>
    %345 = arith.divf %343, %344 : vector<4x384xf32>
    %346 = vector.extract_strided_slice %345 {offsets = [0, 0], sizes = [4, 128], strides = [1, 1]} : vector<4x384xf32> to vector<4x128xf32>
    %347 = vector.extract_strided_slice %345 {offsets = [0, 128], sizes = [4, 128], strides = [1, 1]} : vector<4x384xf32> to vector<4x128xf32>
    %348 = vector.extract_strided_slice %345 {offsets = [0, 256], sizes = [4, 128], strides = [1, 1]} : vector<4x384xf32> to vector<4x128xf32>
    %349 = vector.extract_strided_slice %339 {offsets = [0, 384], sizes = [4, 128], strides = [1, 1]} : vector<4x512xf32> to vector<4x128xf32>
    %350 = math.tanh %349 : vector<4x128xf32>
    %351 = arith.mulf %347, %328 : vector<4x128xf32>
    %352 = arith.mulf %346, %350 : vector<4x128xf32>
    %353 = arith.addf %351, %352 : vector<4x128xf32>
    %354 = math.tanh %353 : vector<4x128xf32>
    %355 = arith.mulf %348, %354 : vector<4x128xf32>
    %356 = vector.extract_strided_slice %252 {offsets = [8, 0], sizes = [2, 512], strides = [1, 1]} : vector<16x1024xf32> to vector<2x512xf32>
    %357 = vector.extract_strided_slice %252 {offsets = [6, 512], sizes = [2, 512], strides = [1, 1]} : vector<16x1024xf32> to vector<2x512xf32>
    %358 = tpu.concatenate %356, %357 in 0 : vector<2x512xf32>, vector<2x512xf32> -> vector<4x512xf32>
    %359 = arith.truncf %355 : vector<4x128xf32> to vector<4x128xbf16>
    %cst_46 = arith.constant dense<0.000000e+00> : vector<4x1024xf32>
    %360 = tpu.matmul %359, %253, %cst_46 {dimension_numbers = #tpu.dot_dimension_numbers<[1], [0], [0], [1], [0, 0, 1, 1], [], []>} : vector<4x128xbf16>, vector<128x1024xbf16>, vector<4x1024xf32> -> vector<4x1024xf32>
    %361 = vector.extract_strided_slice %360 {offsets = [0, 0], sizes = [4, 512], strides = [1, 1]} : vector<4x1024xf32> to vector<4x512xf32>
    %362 = vector.extract_strided_slice %360 {offsets = [0, 512], sizes = [4, 512], strides = [1, 1]} : vector<4x1024xf32> to vector<4x512xf32>
    %363 = arith.select %12, %361, %362 : vector<4x512xi1>, vector<4x512xf32>
    %364 = arith.addf %363, %358 : vector<4x512xf32>
    %365 = vector.extract_strided_slice %364 {offsets = [0, 0], sizes = [4, 384], strides = [1, 1]} : vector<4x512xf32> to vector<4x384xf32>
    %366 = arith.negf %365 : vector<4x384xf32>
    %367 = math.exp %366 : vector<4x384xf32>
    %cst_47 = arith.constant 1.000000e+00 : f32
    %368 = vector.broadcast %cst_47 : f32 to vector<4x384xf32>
    %369 = arith.addf %368, %367 : vector<4x384xf32>
    %370 = arith.divf %368, %369 : vector<4x384xf32>
    %371 = vector.extract_strided_slice %370 {offsets = [0, 0], sizes = [4, 128], strides = [1, 1]} : vector<4x384xf32> to vector<4x128xf32>
    %372 = vector.extract_strided_slice %370 {offsets = [0, 128], sizes = [4, 128], strides = [1, 1]} : vector<4x384xf32> to vector<4x128xf32>
    %373 = vector.extract_strided_slice %370 {offsets = [0, 256], sizes = [4, 128], strides = [1, 1]} : vector<4x384xf32> to vector<4x128xf32>
    %374 = vector.extract_strided_slice %364 {offsets = [0, 384], sizes = [4, 128], strides = [1, 1]} : vector<4x512xf32> to vector<4x128xf32>
    %375 = math.tanh %374 : vector<4x128xf32>
    %376 = arith.mulf %372, %353 : vector<4x128xf32>
    %377 = arith.mulf %371, %375 : vector<4x128xf32>
    %378 = arith.addf %376, %377 : vector<4x128xf32>
    %379 = math.tanh %378 : vector<4x128xf32>
    %380 = arith.mulf %373, %379 : vector<4x128xf32>
    %381 = vector.extract_strided_slice %252 {offsets = [10, 0], sizes = [2, 512], strides = [1, 1]} : vector<16x1024xf32> to vector<2x512xf32>
    %382 = vector.extract_strided_slice %252 {offsets = [4, 512], sizes = [2, 512], strides = [1, 1]} : vector<16x1024xf32> to vector<2x512xf32>
    %383 = tpu.concatenate %381, %382 in 0 : vector<2x512xf32>, vector<2x512xf32> -> vector<4x512xf32>
    %384 = arith.truncf %380 : vector<4x128xf32> to vector<4x128xbf16>
    %cst_48 = arith.constant dense<0.000000e+00> : vector<4x1024xf32>
    %385 = tpu.matmul %384, %253, %cst_48 {dimension_numbers = #tpu.dot_dimension_numbers<[1], [0], [0], [1], [0, 0, 1, 1], [], []>} : vector<4x128xbf16>, vector<128x1024xbf16>, vector<4x1024xf32> -> vector<4x1024xf32>
    %386 = vector.extract_strided_slice %385 {offsets = [0, 0], sizes = [4, 512], strides = [1, 1]} : vector<4x1024xf32> to vector<4x512xf32>
    %387 = vector.extract_strided_slice %385 {offsets = [0, 512], sizes = [4, 512], strides = [1, 1]} : vector<4x1024xf32> to vector<4x512xf32>
    %388 = arith.select %12, %386, %387 : vector<4x512xi1>, vector<4x512xf32>
    %389 = arith.addf %388, %383 : vector<4x512xf32>
    %390 = vector.extract_strided_slice %389 {offsets = [0, 0], sizes = [4, 384], strides = [1, 1]} : vector<4x512xf32> to vector<4x384xf32>
    %391 = arith.negf %390 : vector<4x384xf32>
    %392 = math.exp %391 : vector<4x384xf32>
    %cst_49 = arith.constant 1.000000e+00 : f32
    %393 = vector.broadcast %cst_49 : f32 to vector<4x384xf32>
    %394 = arith.addf %393, %392 : vector<4x384xf32>
    %395 = arith.divf %393, %394 : vector<4x384xf32>
    %396 = vector.extract_strided_slice %395 {offsets = [0, 0], sizes = [4, 128], strides = [1, 1]} : vector<4x384xf32> to vector<4x128xf32>
    %397 = vector.extract_strided_slice %395 {offsets = [0, 128], sizes = [4, 128], strides = [1, 1]} : vector<4x384xf32> to vector<4x128xf32>
    %398 = vector.extract_strided_slice %395 {offsets = [0, 256], sizes = [4, 128], strides = [1, 1]} : vector<4x384xf32> to vector<4x128xf32>
    %399 = vector.extract_strided_slice %389 {offsets = [0, 384], sizes = [4, 128], strides = [1, 1]} : vector<4x512xf32> to vector<4x128xf32>
    %400 = math.tanh %399 : vector<4x128xf32>
    %401 = arith.mulf %397, %378 : vector<4x128xf32>
    %402 = arith.mulf %396, %400 : vector<4x128xf32>
    %403 = arith.addf %401, %402 : vector<4x128xf32>
    %404 = math.tanh %403 : vector<4x128xf32>
    %405 = arith.mulf %398, %404 : vector<4x128xf32>
    %406 = vector.extract_strided_slice %252 {offsets = [12, 0], sizes = [2, 512], strides = [1, 1]} : vector<16x1024xf32> to vector<2x512xf32>
    %407 = vector.extract_strided_slice %252 {offsets = [2, 512], sizes = [2, 512], strides = [1, 1]} : vector<16x1024xf32> to vector<2x512xf32>
    %408 = tpu.concatenate %406, %407 in 0 : vector<2x512xf32>, vector<2x512xf32> -> vector<4x512xf32>
    %409 = arith.truncf %405 : vector<4x128xf32> to vector<4x128xbf16>
    %cst_50 = arith.constant dense<0.000000e+00> : vector<4x1024xf32>
    %410 = tpu.matmul %409, %253, %cst_50 {dimension_numbers = #tpu.dot_dimension_numbers<[1], [0], [0], [1], [0, 0, 1, 1], [], []>} : vector<4x128xbf16>, vector<128x1024xbf16>, vector<4x1024xf32> -> vector<4x1024xf32>
    %411 = vector.extract_strided_slice %410 {offsets = [0, 0], sizes = [4, 512], strides = [1, 1]} : vector<4x1024xf32> to vector<4x512xf32>
    %412 = vector.extract_strided_slice %410 {offsets = [0, 512], sizes = [4, 512], strides = [1, 1]} : vector<4x1024xf32> to vector<4x512xf32>
    %413 = arith.select %12, %411, %412 : vector<4x512xi1>, vector<4x512xf32>
    %414 = arith.addf %413, %408 : vector<4x512xf32>
    %415 = vector.extract_strided_slice %414 {offsets = [0, 0], sizes = [4, 384], strides = [1, 1]} : vector<4x512xf32> to vector<4x384xf32>
    %416 = arith.negf %415 : vector<4x384xf32>
    %417 = math.exp %416 : vector<4x384xf32>
    %cst_51 = arith.constant 1.000000e+00 : f32
    %418 = vector.broadcast %cst_51 : f32 to vector<4x384xf32>
    %419 = arith.addf %418, %417 : vector<4x384xf32>
    %420 = arith.divf %418, %419 : vector<4x384xf32>
    %421 = vector.extract_strided_slice %420 {offsets = [0, 0], sizes = [4, 128], strides = [1, 1]} : vector<4x384xf32> to vector<4x128xf32>
    %422 = vector.extract_strided_slice %420 {offsets = [0, 128], sizes = [4, 128], strides = [1, 1]} : vector<4x384xf32> to vector<4x128xf32>
    %423 = vector.extract_strided_slice %420 {offsets = [0, 256], sizes = [4, 128], strides = [1, 1]} : vector<4x384xf32> to vector<4x128xf32>
    %424 = vector.extract_strided_slice %414 {offsets = [0, 384], sizes = [4, 128], strides = [1, 1]} : vector<4x512xf32> to vector<4x128xf32>
    %425 = math.tanh %424 : vector<4x128xf32>
    %426 = arith.mulf %422, %403 : vector<4x128xf32>
    %427 = arith.mulf %421, %425 : vector<4x128xf32>
    %428 = arith.addf %426, %427 : vector<4x128xf32>
    %429 = math.tanh %428 : vector<4x128xf32>
    %430 = arith.mulf %423, %429 : vector<4x128xf32>
    %431 = vector.extract_strided_slice %252 {offsets = [14, 0], sizes = [2, 512], strides = [1, 1]} : vector<16x1024xf32> to vector<2x512xf32>
    %432 = vector.extract_strided_slice %252 {offsets = [0, 512], sizes = [2, 512], strides = [1, 1]} : vector<16x1024xf32> to vector<2x512xf32>
    %433 = tpu.concatenate %431, %432 in 0 : vector<2x512xf32>, vector<2x512xf32> -> vector<4x512xf32>
    %434 = arith.truncf %430 : vector<4x128xf32> to vector<4x128xbf16>
    %cst_52 = arith.constant dense<0.000000e+00> : vector<4x1024xf32>
    %435 = tpu.matmul %434, %253, %cst_52 {dimension_numbers = #tpu.dot_dimension_numbers<[1], [0], [0], [1], [0, 0, 1, 1], [], []>} : vector<4x128xbf16>, vector<128x1024xbf16>, vector<4x1024xf32> -> vector<4x1024xf32>
    %436 = vector.extract_strided_slice %435 {offsets = [0, 0], sizes = [4, 512], strides = [1, 1]} : vector<4x1024xf32> to vector<4x512xf32>
    %437 = vector.extract_strided_slice %435 {offsets = [0, 512], sizes = [4, 512], strides = [1, 1]} : vector<4x1024xf32> to vector<4x512xf32>
    %438 = arith.select %12, %436, %437 : vector<4x512xi1>, vector<4x512xf32>
    %439 = arith.addf %438, %433 : vector<4x512xf32>
    %440 = vector.extract_strided_slice %439 {offsets = [0, 0], sizes = [4, 384], strides = [1, 1]} : vector<4x512xf32> to vector<4x384xf32>
    %441 = arith.negf %440 : vector<4x384xf32>
    %442 = math.exp %441 : vector<4x384xf32>
    %cst_53 = arith.constant 1.000000e+00 : f32
    %443 = vector.broadcast %cst_53 : f32 to vector<4x384xf32>
    %444 = arith.addf %443, %442 : vector<4x384xf32>
    %445 = arith.divf %443, %444 : vector<4x384xf32>
    %446 = vector.extract_strided_slice %445 {offsets = [0, 0], sizes = [4, 128], strides = [1, 1]} : vector<4x384xf32> to vector<4x128xf32>
    %447 = vector.extract_strided_slice %445 {offsets = [0, 128], sizes = [4, 128], strides = [1, 1]} : vector<4x384xf32> to vector<4x128xf32>
    %448 = vector.extract_strided_slice %445 {offsets = [0, 256], sizes = [4, 128], strides = [1, 1]} : vector<4x384xf32> to vector<4x128xf32>
    %449 = vector.extract_strided_slice %439 {offsets = [0, 384], sizes = [4, 128], strides = [1, 1]} : vector<4x512xf32> to vector<4x128xf32>
    %450 = math.tanh %449 : vector<4x128xf32>
    %451 = arith.mulf %447, %428 : vector<4x128xf32>
    %452 = arith.mulf %446, %450 : vector<4x128xf32>
    %453 = arith.addf %451, %452 : vector<4x128xf32>
    %454 = math.tanh %453 : vector<4x128xf32>
    %455 = arith.mulf %448, %454 : vector<4x128xf32>
    %456 = vector.extract_strided_slice %280 {offsets = [0, 0], sizes = [2, 128], strides = [1, 1]} : vector<4x128xf32> to vector<2x128xf32>
    %457 = vector.extract_strided_slice %305 {offsets = [0, 0], sizes = [2, 128], strides = [1, 1]} : vector<4x128xf32> to vector<2x128xf32>
    %458 = vector.extract_strided_slice %330 {offsets = [0, 0], sizes = [2, 128], strides = [1, 1]} : vector<4x128xf32> to vector<2x128xf32>
    %459 = vector.extract_strided_slice %355 {offsets = [0, 0], sizes = [2, 128], strides = [1, 1]} : vector<4x128xf32> to vector<2x128xf32>
    %460 = vector.extract_strided_slice %380 {offsets = [0, 0], sizes = [2, 128], strides = [1, 1]} : vector<4x128xf32> to vector<2x128xf32>
    %461 = vector.extract_strided_slice %405 {offsets = [0, 0], sizes = [2, 128], strides = [1, 1]} : vector<4x128xf32> to vector<2x128xf32>
    %462 = vector.extract_strided_slice %430 {offsets = [0, 0], sizes = [2, 128], strides = [1, 1]} : vector<4x128xf32> to vector<2x128xf32>
    %463 = vector.extract_strided_slice %455 {offsets = [0, 0], sizes = [2, 128], strides = [1, 1]} : vector<4x128xf32> to vector<2x128xf32>
    %464 = tpu.concatenate %456, %457, %458, %459, %460, %461, %462, %463 in 0 : vector<2x128xf32>, vector<2x128xf32>, vector<2x128xf32>, vector<2x128xf32>, vector<2x128xf32>, vector<2x128xf32>, vector<2x128xf32>, vector<2x128xf32> -> vector<16x128xf32>
    %465 = vector.extract_strided_slice %455 {offsets = [2, 0], sizes = [2, 128], strides = [1, 1]} : vector<4x128xf32> to vector<2x128xf32>
    %466 = vector.extract_strided_slice %430 {offsets = [2, 0], sizes = [2, 128], strides = [1, 1]} : vector<4x128xf32> to vector<2x128xf32>
    %467 = vector.extract_strided_slice %405 {offsets = [2, 0], sizes = [2, 128], strides = [1, 1]} : vector<4x128xf32> to vector<2x128xf32>
    %468 = vector.extract_strided_slice %380 {offsets = [2, 0], sizes = [2, 128], strides = [1, 1]} : vector<4x128xf32> to vector<2x128xf32>
    %469 = vector.extract_strided_slice %355 {offsets = [2, 0], sizes = [2, 128], strides = [1, 1]} : vector<4x128xf32> to vector<2x128xf32>
    %470 = vector.extract_strided_slice %330 {offsets = [2, 0], sizes = [2, 128], strides = [1, 1]} : vector<4x128xf32> to vector<2x128xf32>
    %471 = vector.extract_strided_slice %305 {offsets = [2, 0], sizes = [2, 128], strides = [1, 1]} : vector<4x128xf32> to vector<2x128xf32>
    %472 = vector.extract_strided_slice %280 {offsets = [2, 0], sizes = [2, 128], strides = [1, 1]} : vector<4x128xf32> to vector<2x128xf32>
    %473 = tpu.concatenate %465, %466, %467, %468, %469, %470, %471, %472 in 0 : vector<2x128xf32>, vector<2x128xf32>, vector<2x128xf32>, vector<2x128xf32>, vector<2x128xf32>, vector<2x128xf32>, vector<2x128xf32>, vector<2x128xf32> -> vector<16x128xf32>
    %474 = tpu.concatenate %464, %473 in 1 : vector<16x128xf32>, vector<16x128xf32> -> vector<16x256xf32>
    %475 = arith.truncf %474 : vector<16x256xf32> to vector<16x256xbf16>
    %cst_54 = arith.constant dense<0.000000e+00> : vector<16x16xf32>
    %476 = tpu.matmul %475, %475, %cst_54 {dimension_numbers = #tpu.dot_dimension_numbers<[1], [1], [0], [0], [0, 0, 1, 0], [], []>} : vector<16x256xbf16>, vector<16x256xbf16>, vector<16x16xf32> -> vector<16x16xf32>
    %cst_55 = arith.constant 6.250000e-02 : f32
    %477 = vector.broadcast %cst_55 : f32 to vector<16x16xf32>
    %478 = arith.mulf %476, %477 : vector<16x16xf32>
    %479 = tpu.iota {dimensions = array<i32: 0>} : vector<16x16xi32>
    %c2_i32_56 = arith.constant 2 : i32
    %c0_i32_57 = arith.constant 0 : i32
    %480 = arith.cmpi eq, %c2_i32_56, %c0_i32_57 : i32
    %c1_i32_58 = arith.constant 1 : i32
    %481 = arith.select %480, %c1_i32_58, %c2_i32_56 : i32
    %482 = vector.broadcast %481 : i32 to vector<16x16xi32>
    %483 = arith.remsi %479, %482 : vector<16x16xi32>
    %c0_i32_59 = arith.constant 0 : i32
    %484 = vector.broadcast %c0_i32_59 : i32 to vector<16x16xi32>
    %485 = arith.cmpi ne, %483, %484 : vector<16x16xi32>
    %c0_i32_60 = arith.constant 0 : i32
    %486 = vector.broadcast %c0_i32_60 : i32 to vector<16x16xi32>
    %487 = arith.cmpi slt, %483, %486 : vector<16x16xi32>
    %c0_i32_61 = arith.constant 0 : i32
    %488 = arith.cmpi slt, %481, %c0_i32_61 : i32
    %489 = vector.broadcast %488 : i1 to vector<16x16xi1>
    %490 = vector.broadcast %489 : vector<16x16xi1> to vector<16x16xi1>
    %491 = arith.xori %487, %490 : vector<16x16xi1>
    %492 = arith.andi %491, %485 : vector<16x16xi1>
    %493 = vector.broadcast %481 : i32 to vector<16x16xi32>
    %494 = arith.addi %483, %493 : vector<16x16xi32>
    %495 = arith.select %492, %494, %483 : vector<16x16xi1>, vector<16x16xi32>
    %496 = tpu.iota {dimensions = array<i32: 1>} : vector<16x16xi32>
    %c2_i32_62 = arith.constant 2 : i32
    %c0_i32_63 = arith.constant 0 : i32
    %497 = arith.cmpi eq, %c2_i32_62, %c0_i32_63 : i32
    %c1_i32_64 = arith.constant 1 : i32
    %498 = arith.select %497, %c1_i32_64, %c2_i32_62 : i32
    %499 = vector.broadcast %498 : i32 to vector<16x16xi32>
    %500 = arith.remsi %496, %499 : vector<16x16xi32>
    %c0_i32_65 = arith.constant 0 : i32
    %501 = vector.broadcast %c0_i32_65 : i32 to vector<16x16xi32>
    %502 = arith.cmpi ne, %500, %501 : vector<16x16xi32>
    %c0_i32_66 = arith.constant 0 : i32
    %503 = vector.broadcast %c0_i32_66 : i32 to vector<16x16xi32>
    %504 = arith.cmpi slt, %500, %503 : vector<16x16xi32>
    %c0_i32_67 = arith.constant 0 : i32
    %505 = arith.cmpi slt, %498, %c0_i32_67 : i32
    %506 = vector.broadcast %505 : i1 to vector<16x16xi1>
    %507 = vector.broadcast %506 : vector<16x16xi1> to vector<16x16xi1>
    %508 = arith.xori %504, %507 : vector<16x16xi1>
    %509 = arith.andi %508, %502 : vector<16x16xi1>
    %510 = vector.broadcast %498 : i32 to vector<16x16xi32>
    %511 = arith.addi %500, %510 : vector<16x16xi32>
    %512 = arith.select %509, %511, %500 : vector<16x16xi1>, vector<16x16xi32>
    %513 = arith.cmpi eq, %495, %512 : vector<16x16xi32>
    %514 = math.exp %478 : vector<16x16xf32>
    %cst_68 = arith.constant 0.000000e+00 : f32
    %515 = vector.broadcast %cst_68 : f32 to vector<16x16xf32>
    %516 = arith.select %513, %514, %515 : vector<16x16xi1>, vector<16x16xf32>
    %cst_69 = arith.constant dense<0.000000e+00> : vector<16xf32>
    %517 = vector.multi_reduction <add>, %516, %cst_69 [0] : vector<16x16xf32> to vector<16xf32>
    %518 = vector.shape_cast %517 : vector<16xf32> to vector<1x16xf32>
    %519 = tpu.reciprocal %518 {approx = true} : vector<1x16xf32> -> vector<1x16xf32>
    %520 = vector.broadcast %519 : vector<1x16xf32> to vector<16x16xf32>
    %521 = arith.mulf %516, %520 : vector<16x16xf32>
    %cst_70 = arith.constant dense<0.000000e+00> : vector<16xf32>
    %522 = vector.multi_reduction <add>, %521, %cst_70 [1] : vector<16x16xf32> to vector<16xf32>
    %523 = vector.shape_cast %522 : vector<16xf32> to vector<16x1xf32>
    %524 = vector.broadcast %523 : vector<16x1xf32> to vector<16x256xf32>
    %525 = arith.mulf %524, %474 : vector<16x256xf32>
    %526 = vector.shape_cast %525 : vector<16x256xf32> to vector<8x2x256xf32>
    %cst_71 = arith.constant dense<0.000000e+00> : vector<2x256xf32>
    %527 = vector.multi_reduction <add>, %526, %cst_71 [0] : vector<8x2x256xf32> to vector<2x256xf32>
    %c3_i32_72 = arith.constant 3 : i32
    %528 = tpu.memref_slice %arg15[%c3_i32_72] : memref<5x!tpu.dma_semaphore, #tpu.memory_space<semaphore_mem>> -> memref<1x!tpu.dma_semaphore, #tpu.memory_space<semaphore_mem>>
    %529 = tpu.memref_squeeze %528 : memref<1x!tpu.dma_semaphore, #tpu.memory_space<semaphore_mem>> -> memref<!tpu.dma_semaphore, #tpu.memory_space<semaphore_mem>>
    tpu.wait_dma2 semaphore(%529 : memref<!tpu.dma_semaphore, #tpu.memory_space<semaphore_mem>>) src(%arg7 : memref<256x128xbf16, #tpu.memory_space<any>>) dst(%arg13 : memref<256x128xbf16, #tpu.memory_space<vmem>>)
    %c4_i32_73 = arith.constant 4 : i32
    %530 = tpu.memref_slice %arg15[%c4_i32_73] : memref<5x!tpu.dma_semaphore, #tpu.memory_space<semaphore_mem>> -> memref<1x!tpu.dma_semaphore, #tpu.memory_space<semaphore_mem>>
    %531 = tpu.memref_squeeze %530 : memref<1x!tpu.dma_semaphore, #tpu.memory_space<semaphore_mem>> -> memref<!tpu.dma_semaphore, #tpu.memory_space<semaphore_mem>>
    tpu.wait_dma2 semaphore(%531 : memref<!tpu.dma_semaphore, #tpu.memory_space<semaphore_mem>>) src(%arg8 : memref<1x128xf32, #tpu.memory_space<any>>) dst(%arg14 : memref<1x128xf32, #tpu.memory_space<vmem>>)
    %c0_74 = arith.constant 0 : index
    %c0_75 = arith.constant 0 : index
    %532 = vector.load %arg13[%c0_74, %c0_75] : memref<256x128xbf16, #tpu.memory_space<vmem>>, vector<256x128xbf16>
    %c0_76 = arith.constant 0 : index
    %c0_77 = arith.constant 0 : index
    %533 = vector.load %arg14[%c0_76, %c0_77] : memref<1x128xf32, #tpu.memory_space<vmem>>, vector<1x128xf32>
    %534 = arith.truncf %527 : vector<2x256xf32> to vector<2x256xbf16>
    %cst_78 = arith.constant dense<0.000000e+00> : vector<2x128xf32>
    %535 = tpu.matmul %534, %532, %cst_78 {dimension_numbers = #tpu.dot_dimension_numbers<[1], [0], [0], [1], [0, 0, 1, 1], [], []>} : vector<2x256xbf16>, vector<256x128xbf16>, vector<2x128xf32> -> vector<2x128xf32>
    %536 = vector.broadcast %533 : vector<1x128xf32> to vector<2x128xf32>
    %537 = arith.addf %535, %536 : vector<2x128xf32>
    %c0_79 = arith.constant 0 : index
    %c0_80 = arith.constant 0 : index
    %538 = vector.load %arg9[%c0_79, %c0_80] : memref<2x128xf32, #tpu.memory_space<vmem>>, vector<2x128xf32>
    tpu.vector_store %arg9[%c0_79, %c0_80], %537 {strides = array<i32>} : memref<2x128xf32, #tpu.memory_space<vmem>>, vector<2x128xf32>,
    return
  }
}

</mosaic_0001>

<bundles_post_ra>
// kernel: _lambda_.1
= control target key start
LH: loop header
LB: loop body
LE: loop exit
PB: predicated region body
PF: predicated region fallthrough
CT: control target
= control target key end

     0   :  { %14 = vsyncpa [#allocation9], 0  ;;  %s8704_s0 = inlined_call_operand.vmem [shape: bf16[16,128], index: 0, kind: input, shape index: {}]   ;;  %s8705_s1 = inlined_call_operand.hbm [shape: bf16[128,1024], index: 1, kind: input, shape index: {}]   ;;  %s8706_s2 = inlined_call_operand.hbm [shape: bf16[128,1024], index: 2, kind: input, shape index: {}]   ;;  %s8707_s3 = inlined_call_operand.vmem [shape: f32[1,1024], index: 3, kind: input, shape index: {}]   ;;  %s8708_s4 = inlined_call_operand.hbm [shape: bf16[256,1024], index: 4, kind: input, shape index: {}]   ;;  %s8709_s5 = inlined_call_operand.hbm [shape: bf16[128,1024], index: 5, kind: input, shape index: {}]   ;;  %s8710_s6 = inlined_call_operand.vmem [shape: f32[1,1024], index: 6, kind: input, shape index: {}]   ;;  %s8711_s7 = inlined_call_operand.vmem [shape: bf16[256,128], index: 7, kind: input, shape index: {}]   ;;  %s8712_s8 = inlined_call_operand.vmem [shape: f32[1,128], index: 8, kind: input, shape index: {}]   ;;  %s8713_s9 = inlined_call_operand.hbm [shape: f32[2,128], index: 9, kind: output, shape index: {}]  }
   0x1   :  { %15 = vsyncpa [#allocation12], 0 }
   0x2   :  { %16 = vsyncpa [#allocation10], 0  ;;  %s6258_s30 = smov [#allocation8]   ;;  %s6176_s13 = scalar_lea.hbm %s8705_s1, 8192 }
   0x3   :  { %s24_s10 = sshll.u32 %s6258_s30, 4  ;;  %p6177_p0 = scmp.ne.s32.totalorder %s8705_s1, %s6176_s13  ;;  %s25_s10 = int_to_ptr.vmem [resolvable:$true] %s24_s10 }
   0x4   :  { %p6180_p1 = scmp.lt.u32.totalorder %s6176_s13, %s8705_s1 }
   0x6   :  { %p6182_p2 = pnand %p6180_p1, %p6177_p0 }
   0x8   :  { %6185 = shalt.err (!%p6182_p2)
}
   0x9   :  { %s6186_s18 = scalar_lea.vmem %s25_s10, 8192  ;;  %p6191_p4 = scmp.lt.s32.totalorder %s25_s10, %s25_s10 }
   0xa   :  { %p6187_p3 = scmp.ne.s32.totalorder %s25_s10, %s6186_s18  ;;  %p6192_p5 = scmp.lt.s32.totalorder %s6186_s18, %s6186_s18 }
   0xc   :  { %p6193_p6 = por %p6192_p5, %p6191_p4 }
   0xe   :  { %p6194_p7 = pnand %p6193_p6, %p6187_p3 }
  0x10   :  { %6197 = shalt.err (!%p6194_p7)
}
  0x11   :  { %s6259_s19 = smov 512   ;;  %s6260_s20 = smov 32  }
  0x12   :  { %30 = dma.hbm_to_vmem [thread:$0]  %s8705_s1, 8192, %s25_s10, [#allocation9], %s6259_s19, %s6259_s19, %s6260_s20  }
  0x13   :  { %s6261_s23 = smov [#allocation11]   ;;  %s6198_s27 = scalar_lea.hbm %s8706_s2, 8192 }
  0x14   :  { %s36_s24 = sshll.u32 %s6261_s23, 4  ;;  %p6199_p8 = scmp.ne.s32.totalorder %s8706_s2, %s6198_s27  ;;  %s37_s24 = int_to_ptr.vmem [resolvable:$true] %s36_s24 }
  0x15   :  { %p6202_p9 = scmp.lt.u32.totalorder %s6198_s27, %s8706_s2 }
  0x17   :  { %p6204_p10 = pnand %p6202_p9, %p6199_p8 }
  0x19   :  { %6207 = shalt.err (!%p6204_p10)
}
  0x1a   :  { %s6208_s12 = scalar_lea.vmem %s37_s24, 8192  ;;  %p6213_p12 = scmp.lt.s32.totalorder %s37_s24, %s37_s24 }
  0x1b   :  { %p6209_p11 = scmp.ne.s32.totalorder %s37_s24, %s6208_s12  ;;  %p6214_p13 = scmp.lt.s32.totalorder %s6208_s12, %s6208_s12 }
  0x1d   :  { %p6215_p0 = por %p6214_p13, %p6213_p12 }
  0x1f   :  { %p6216_p1 = pnand %p6215_p0, %p6209_p11 }
  0x21   :  { %6219 = shalt.err (!%p6216_p1)
}
  0x22   :  { %42 = dma.hbm_to_vmem [thread:$0]  %s8706_s2, 8192, %s37_s24, [#allocation12], %s6259_s19, %s6259_s19, %s6260_s20  }
  0x23   :  { %6242 = dma.done.wait [#allocation9], 8192  }
  0x24   :  { %6243 = vsyncadd [#allocation9], 4294959104 }
  0x25   :  { %6244 = dma.done.wait [#allocation12], 8192  }
  0x26   :  { %6245 = vsyncadd [#allocation12], 4294959104  ;;  %s56_s13 = sld [smem:[#allocation0]]   ;;  %80 = sst [smem:[#allocation15 + $0x6]] %s6259_s19 }
  0x27   :  { %s6262_s14 = smov [#allocation2]   ;;  %s6263_s16 = smov 1024  }
  0x28   :  { %s64_s15 = sshll.u32 %s6262_s14, 4  ;;  %68 = sst [smem:[#allocation15]] %s6263_s16  ;;  %s65_s15 = int_to_ptr.vmem [resolvable:$true] %s64_s15 }
  0x29   :  { %70 = sst [smem:[#allocation15 + $0x1]] %s6263_s16  ;;  %s6264_s17 = smov 8  }
  0x2a   :  { %72 = sst [smem:[#allocation15 + $0x2]] %s6264_s17  ;;  %s6265_s18 = smov 64  }
  0x2b   :  { %74 = sst [smem:[#allocation15 + $0x3]] %s6265_s18  ;;  %s6266_s22 = smov 128  }
  0x2c   :  { %s5621_s21 = sshll.u32 %s56_s13, 26  ;;  %76 = sst [smem:[#allocation15 + $0x4]] %s6266_s22 }
  0x2d   :  { %s5622_s2 = sadd.s32 134217728, %s5621_s21  ;;  %s6267_s20 = smov 2  }
  0x2e   :  { %78 = sst [smem:[#allocation15 + $0x5]] %s6267_s20  ;;  %s6268_s23 = smov 4  }
  0x2f   :  { %82 = sst [smem:[#allocation15 + $0x7]] %s6265_s18  ;;  %s6269_s24 = smov [#allocation7]  }
  0x30   :  { %84 = sst [smem:[#allocation15 + $0x8]] %s6268_s23  ;;  %s6270_s25 = smov [#allocation14]  }
  0x31   :  { %86 = dma.general %s8708_s4, 16384, %s65_s15, %s6269_s24, %s6270_s25, [#allocation15], %s5622_s2, 0  }
  0x32   :  { %103 = sst [smem:[#allocation17]] %s6263_s16  ;;  %s6271_s28 = smov [#allocation3]  }
  0x33   :  { %105 = sst [smem:[#allocation17 + $0x1]] %s6263_s16  ;;  %s99_s29 = sshll.u32 %s6271_s28, 4  ;;  %s100_s29 = int_to_ptr.vmem [resolvable:$true] %s99_s29 }
  0x34   :  { %107 = sst [smem:[#allocation17 + $0x2]] %s6264_s17  ;;  %s6272_s30 = smov [#allocation7 + $0x1]  }
  0x35   :  { %109 = sst [smem:[#allocation17 + $0x3]] %s6265_s18  ;;  %s6273_s11 = smov [#allocation16]  }
  0x36   :  { %111 = sst [smem:[#allocation17 + $0x4]] %s6266_s22 }
  0x37   :  { %113 = sst [smem:[#allocation17 + $0x5]] %s6267_s20 }
  0x38   :  { %115 = sst [smem:[#allocation17 + $0x6]] %s6259_s19 }
  0x39   :  { %117 = sst [smem:[#allocation17 + $0x7]] %s6265_s18 }
  0x3a   :  { %119 = sst [smem:[#allocation17 + $0x8]] %s6268_s23 }
  0x3b   :  { %121 = dma.general %s8709_s5, 8192, %s100_s29, %s6272_s30, %s6273_s11, [#allocation17], %s5622_s2, 0  }
  0x3c   :  { %v6366_v0 = vld [vmem:[%s8710_s6] sm:$0xff] }
  0x3d   :  { %8978 = vst [vmem:[#allocation29_spill] sm:$0xff] %v6366_v0 }
  0x3e   :  { %164 = vsyncadd [#allocation7 + $0x2], 128  ;;  %v6371_v1 = vld [vmem:[%s8711_s7] sm:$0xff]  ;;  %v6376_v2 = vld [vmem:[%s8711_s7 + $0x8] sm:$0xff] }
  0x3f   :  { %8979 = vst [vmem:[#allocation30_spill] sm:$0xff] %v6371_v1  ;;  %8980 = vst [vmem:[#allocation31_spill] sm:$0xff] %v6376_v2  ;;  %v6381_v3 = vld [vmem:[%s8711_s7 + $0x10] sm:$0xff]  ;;  %v6386_v4 = vld [vmem:[%s8711_s7 + $0x18] sm:$0xff] }
  0x40   :  { %8981 = vst [vmem:[#allocation32_spill] sm:$0xff] %v6381_v3  ;;  %8982 = vst [vmem:[#allocation33_spill] sm:$0xff] %v6386_v4  ;;  %v6391_v5 = vld [vmem:[%s8711_s7 + $0x20] sm:$0xff]  ;;  %v6396_v6 = vld [vmem:[%s8711_s7 + $0x28] sm:$0xff] }
  0x41   :  { %8983 = vst [vmem:[#allocation34_spill] sm:$0xff] %v6391_v5  ;;  %8984 = vst [vmem:[#allocation35_spill] sm:$0xff] %v6396_v6  ;;  %v6401_v7 = vld [vmem:[%s8711_s7 + $0x30] sm:$0xff]  ;;  %v6406_v8 = vld [vmem:[%s8711_s7 + $0x38] sm:$0xff] }
  0x42   :  { %8985 = vst [vmem:[#allocation36_spill] sm:$0xff] %v6401_v7  ;;  %8986 = vst [vmem:[#allocation37_spill] sm:$0xff] %v6406_v8  ;;  %v6411_v9 = vld [vmem:[%s8711_s7 + $0x40] sm:$0xff]  ;;  %v6416_v10 = vld [vmem:[%s8711_s7 + $0x48] sm:$0xff] }
  0x43   :  { %8987 = vst [vmem:[#allocation38_spill] sm:$0xff] %v6411_v9  ;;  %8988 = vst [vmem:[#allocation39_spill] sm:$0xff] %v6416_v10  ;;  %v6421_v11 = vld [vmem:[%s8711_s7 + $0x50] sm:$0xff]  ;;  %v6426_v12 = vld [vmem:[%s8711_s7 + $0x58] sm:$0xff] }
  0x44   :  { %8989 = vst [vmem:[#allocation40_spill] sm:$0xff] %v6421_v11  ;;  %8990 = vst [vmem:[#allocation41_spill] sm:$0xff] %v6426_v12  ;;  %v6431_v13 = vld [vmem:[%s8711_s7 + $0x60] sm:$0xff]  ;;  %v6436_v14 = vld [vmem:[%s8711_s7 + $0x68] sm:$0xff] }
  0x45   :  { %8991 = vst [vmem:[#allocation42_spill] sm:$0xff] %v6431_v13  ;;  %8992 = vst [vmem:[#allocation43_spill] sm:$0xff] %v6436_v14  ;;  %v6441_v15 = vld [vmem:[%s8711_s7 + $0x70] sm:$0xff]  ;;  %v6446_v16 = vld [vmem:[%s8711_s7 + $0x78] sm:$0xff] }
  0x46   :  { %8993 = vst [vmem:[#allocation44_spill] sm:$0xff] %v6441_v15  ;;  %8994 = vst [vmem:[#allocation45_spill] sm:$0xff] %v6446_v16 }
  0x47   :  { %237 = vsyncadd [#allocation7 + $0x3], 2048  ;;  %v256_v17 = vld [vmem:[%s8712_s8] sm:$0x1] }
  0x48   :  { %257 = vst [vmem:[#allocation6] sm:$0x1] %v256_v17 }
  0x49   :  { %282 = vsyncadd [#allocation7 + $0x4], 16  ;;  %v288_v18 = vld [vmem:[#allocation8] sm:$0xff]  ;;  %v289_v21 = vld [vmem:[#allocation8 + $0x8] sm:$0xff]  ;;  %v8714_v25 = vmov 0   ;;  %v9029_v16 = vmov 0  }
  0x4a   :  { %v292_v19 = vld [vmem:[#allocation8 + $0x20] sm:$0xff]  ;;  %v293_v22 = vld [vmem:[#allocation8 + $0x28] sm:$0xff]  ;;  %752 = vmatprep.mubr.bf16.mxu0 %v8714_v25  ;;  %795 = vmatprep.mubr.bf16.mxu1 %v8714_v25  ;;  %v914_v8 = vld [vmem:[#allocation11 + $0xb0] sm:$0xff]  ;;  %vm968_vm0 = vcmask 1041408   ;;  %vm3015_vm2 = vcmask 1043456   ;;  %vm3017_vm3 = vcmask 1045504  }
  0x4b   :  { %v5627_v20 = vcombine.high %v288_v18, %v292_v19  ;;  %v5626_v23 = vcombine.low %v288_v18, %v292_v19  ;;  %v296_v24 = vld [vmem:[#allocation8 + $0x40] sm:$0xff]  ;;  %v5629_v26 = vcombine.high %v289_v21, %v293_v22  ;;  %v5628_v27 = vcombine.low %v289_v21, %v293_v22  ;;  %v297_v29 = vld [vmem:[#allocation8 + $0x48] sm:$0xff]  ;;  %v911_v7 = vld [vmem:[#allocation11 + $0x98] sm:$0xff] }
  0x4c   :  { %v300_v28 = vld [vmem:[#allocation8 + $0x60] sm:$0xff]  ;;  %v301_v30 = vld [vmem:[#allocation8 + $0x68] sm:$0xff]  ;;  %v915_v15 = vld [vmem:[#allocation11 + $0xb8] sm:$0xff] }
  0x4d   :  { %720 = vmatprep.subr.bf16.mxu0 %v5627_v20  ;;  %v5635_v31 = vcombine.high %v296_v24, %v300_v28  ;;  %v5637_v32 = vcombine.high %v297_v29, %v301_v30  ;;  %v304_v33 = vld [vmem:[#allocation8 + $0x80] sm:$0xff]  ;;  %v305_v35 = vld [vmem:[#allocation8 + $0x88] sm:$0xff]  ;;  %763 = vmatprep.subr.bf16.mxu1 %v5629_v26  ;;  %v5634_v36 = vcombine.low %v296_v24, %v300_v28  ;;  %v918_v6 = vld [vmem:[#allocation11 + $0xd0] sm:$0xff] }
  0x4e   :  { %v308_v34 = vld [vmem:[#allocation8 + $0xa0] sm:$0xff]  ;;  %721 = vmatpush1.bf16.msra.mxu0 %v5626_v23  ;;  %v309_v37 = vld [vmem:[#allocation8 + $0xa8] sm:$0xff]  ;;  %764 = vmatpush1.bf16.msra.mxu1 %v5628_v27  ;;  %v5636_v38 = vcombine.low %v297_v29, %v301_v30  ;;  %v922_v14 = vld [vmem:[#allocation11 + $0xf0] sm:$0xff] }
  0x4f   :  { %722 = vmatprep.subr.bf16.mxu0 %v5635_v31  ;;  %v5643_v39 = vcombine.high %v304_v33, %v308_v34  ;;  %765 = vmatprep.subr.bf16.mxu1 %v5637_v32  ;;  %v5645_v40 = vcombine.high %v305_v35, %v309_v37  ;;  %v312_v41 = vld [vmem:[#allocation8 + $0xc0] sm:$0xff]  ;;  %v313_v43 = vld [vmem:[#allocation8 + $0xc8] sm:$0xff]  ;;  %v5642_v45 = vcombine.low %v304_v33, %v308_v34  ;;  %v919_v5 = vld [vmem:[#allocation11 + $0xd8] sm:$0xff] }
  0x50   :  { %v316_v42 = vld [vmem:[#allocation8 + $0xe0] sm:$0xff]  ;;  %v317_v44 = vld [vmem:[#allocation8 + $0xe8] sm:$0xff]  ;;  %v5644_v46 = vcombine.low %v305_v35, %v309_v37  ;;  %v290_v35 = vld [vmem:[#allocation8 + $0x10] sm:$0xff] }
  0x51   :  { %v5651_v47 = vcombine.high %v312_v41, %v316_v42  ;;  %v5653_v48 = vcombine.high %v313_v43, %v317_v44  ;;  %v320_v49 = vld [vmem:[#allocation8 + $0x100] sm:$0xff]  ;;  %v321_v51 = vld [vmem:[#allocation8 + $0x108] sm:$0xff]  ;;  %v5650_v53 = vcombine.low %v312_v41, %v316_v42  ;;  %v5652_v54 = vcombine.low %v313_v43, %v317_v44  ;;  %v291_v37 = vld [vmem:[#allocation8 + $0x18] sm:$0xff] }
  0x52   :  { %723 = vmatpush1.bf16.msra.mxu0 %v5634_v36  ;;  %766 = vmatpush1.bf16.msra.mxu1 %v5636_v38  ;;  %v324_v50 = vld [vmem:[#allocation8 + $0x120] sm:$0xff]  ;;  %v325_v52 = vld [vmem:[#allocation8 + $0x128] sm:$0xff]  ;;  %v294_v36 = vld [vmem:[#allocation8 + $0x30] sm:$0xff] }
  0x53   :  { %724 = vmatprep.subr.bf16.mxu0 %v5643_v39  ;;  %767 = vmatprep.subr.bf16.mxu1 %v5645_v40  ;;  %v5659_v55 = vcombine.high %v320_v49, %v324_v50  ;;  %v5661_v56 = vcombine.high %v321_v51, %v325_v52  ;;  %v328_v57 = vld [vmem:[#allocation8 + $0x140] sm:$0xff]  ;;  %v329_v59 = vld [vmem:[#allocation8 + $0x148] sm:$0xff]  ;;  %v5658_v61 = vcombine.low %v320_v49, %v324_v50  ;;  %v295_v38 = vld [vmem:[#allocation8 + $0x38] sm:$0xff] }
  0x54   :  { %v332_v58 = vld [vmem:[#allocation8 + $0x160] sm:$0xff]  ;;  %v333_v60 = vld [vmem:[#allocation8 + $0x168] sm:$0xff]  ;;  %v5660_v62 = vcombine.low %v321_v51, %v325_v52  ;;  %v5631_v41 = vcombine.high %v290_v35, %v294_v36  ;;  %v5633_v42 = vcombine.high %v291_v37, %v295_v38  ;;  %v298_v43 = vld [vmem:[#allocation8 + $0x50] sm:$0xff]  ;;  %v5632_v49 = vcombine.low %v291_v37, %v295_v38 }
  0x55   :  { %v5667_v63 = vcombine.high %v328_v57, %v332_v58  ;;  %v5669_v17 = vcombine.high %v329_v59, %v333_v60  ;;  %v336_v18 = vld [vmem:[#allocation8 + $0x180] sm:$0xff]  ;;  %v337_v20 = vld [vmem:[#allocation8 + $0x188] sm:$0xff]  ;;  %v5666_v22 = vcombine.low %v328_v57, %v332_v58  ;;  %v5668_v23 = vcombine.low %v329_v59, %v333_v60  ;;  %v302_v44 = vld [vmem:[#allocation8 + $0x70] sm:$0xff] }
  0x56   :  { %725 = vmatpush1.bf16.msra.mxu0 %v5642_v45  ;;  %768 = vmatpush1.bf16.msra.mxu1 %v5644_v46  ;;  %v340_v19 = vld [vmem:[#allocation8 + $0x1a0] sm:$0xff]  ;;  %v341_v21 = vld [vmem:[#allocation8 + $0x1a8] sm:$0xff]  ;;  %v299_v46 = vld [vmem:[#allocation8 + $0x58] sm:$0xff]  ;;  %v5639_v50 = vcombine.high %v298_v43, %v302_v44 }
  0x57   :  { %726 = vmatprep.subr.bf16.mxu0 %v5651_v47  ;;  %769 = vmatprep.subr.bf16.mxu1 %v5653_v48  ;;  %v5675_v24 = vcombine.high %v336_v18, %v340_v19  ;;  %v5677_v26 = vcombine.high %v337_v20, %v341_v21  ;;  %v344_v27 = vld [vmem:[#allocation8 + $0x1c0] sm:$0xff]  ;;  %v345_v29 = vld [vmem:[#allocation8 + $0x1c8] sm:$0xff]  ;;  %v5674_v31 = vcombine.low %v336_v18, %v340_v19  ;;  %v303_v47 = vld [vmem:[#allocation8 + $0x78] sm:$0xff] }
  0x58   :  { %v348_v28 = vld [vmem:[#allocation8 + $0x1e0] sm:$0xff]  ;;  %v349_v30 = vld [vmem:[#allocation8 + $0x1e8] sm:$0xff]  ;;  %v5676_v32 = vcombine.low %v337_v20, %v341_v21  ;;  %v5630_v48 = vcombine.low %v290_v35, %v294_v36  ;;  %v5641_v51 = vcombine.high %v299_v46, %v303_v47  ;;  %v306_v52 = vld [vmem:[#allocation8 + $0x90] sm:$0xff]  ;;  %v5640_v57 = vcombine.low %v299_v46, %v303_v47 }
  0x59   :  { %v5683_v33 = vcombine.high %v344_v27, %v348_v28  ;;  %v5685_v34 = vcombine.high %v345_v29, %v349_v30  ;;  %v5682_v39 = vcombine.low %v344_v27, %v348_v28  ;;  %v5684_v40 = vcombine.low %v345_v29, %v349_v30  ;;  %v6456_v45 = vld [vmem:[%s8704_s0] sm:$0xff]   ;;  %v314_v60 = vld [vmem:[#allocation8 + $0xd0] sm:$0xff] }
  0x5a   :  { %727 = vmatpush1.bf16.msra.mxu0 %v5650_v53  ;;  %770 = vmatpush1.bf16.msra.mxu1 %v5652_v54  ;;  %v310_v53 = vld [vmem:[#allocation8 + $0xb0] sm:$0xff]  ;;  %v307_v54 = vld [vmem:[#allocation8 + $0x98] sm:$0xff] }
  0x5b   :  { %728 = vmatprep.subr.bf16.mxu0 %v5659_v55  ;;  %771 = vmatprep.subr.bf16.mxu1 %v5661_v56  ;;  %v311_v55 = vld [vmem:[#allocation8 + $0xb8] sm:$0xff]  ;;  %v5638_v56 = vcombine.low %v298_v43, %v302_v44  ;;  %v5647_v58 = vcombine.high %v306_v52, %v310_v53  ;;  %v322_v21 = vld [vmem:[#allocation8 + $0x110] sm:$0xff] }
  0x5c   :  { %v5649_v59 = vcombine.high %v307_v54, %v311_v55  ;;  %v5648_v18 = vcombine.low %v307_v54, %v311_v55  ;;  %v330_v30 = vld [vmem:[#allocation8 + $0x150] sm:$0xff]  ;;  %v892_v55 = vld [vmem:[#allocation11] sm:$0xff]  ;;  %v923_v13 = vld [vmem:[#allocation11 + $0xf8] sm:$0xff] }
  0x5d   :  { %v338_v38 = vld [vmem:[#allocation8 + $0x190] sm:$0xff]  ;;  %v927_v3 = vld [vmem:[#allocation11 + $0x118] sm:$0xff] }
  0x5e   :  { %729 = vmatpush1.bf16.msra.mxu0 %v5658_v61  ;;  %772 = vmatpush1.bf16.msra.mxu1 %v5660_v62  ;;  %v318_v61 = vld [vmem:[#allocation8 + $0xf0] sm:$0xff]  ;;  %v315_v62 = vld [vmem:[#allocation8 + $0xd8] sm:$0xff] }
  0x5f   :  { %730 = vmatprep.subr.bf16.mxu0 %v5667_v63  ;;  %773 = vmatprep.subr.bf16.mxu1 %v5669_v17  ;;  %v319_v63 = vld [vmem:[#allocation8 + $0xf8] sm:$0xff]  ;;  %v5646_v17 = vcombine.low %v306_v52, %v310_v53  ;;  %v5655_v19 = vcombine.high %v314_v60, %v318_v61  ;;  %v346_v47 = vld [vmem:[#allocation8 + $0x1d0] sm:$0xff] }
  0x60   :  { %v5657_v20 = vcombine.high %v315_v62, %v319_v63  ;;  %v5656_v27 = vcombine.low %v315_v62, %v319_v63  ;;  %v900_v63 = vld [vmem:[#allocation11 + $0x40] sm:$0xff]  ;;  %v926_v4 = vld [vmem:[#allocation11 + $0x110] sm:$0xff]  ;;  %v931_v11 = vld [vmem:[#allocation11 + $0x138] sm:$0xff] }
  0x61   :  { %v930_v12 = vld [vmem:[#allocation11 + $0x130] sm:$0xff]  ;;  %v935_v1 = vld [vmem:[#allocation11 + $0x158] sm:$0xff] }
  0x62   :  { %731 = vmatpush1.bf16.msra.mxu0 %v5666_v22  ;;  %774 = vmatpush1.bf16.msra.mxu1 %v5668_v23  ;;  %v326_v22 = vld [vmem:[#allocation8 + $0x130] sm:$0xff]  ;;  %v323_v23 = vld [vmem:[#allocation8 + $0x118] sm:$0xff] }
  0x63   :  { %732 = vmatprep.subr.bf16.mxu0 %v5675_v24  ;;  %775 = vmatprep.subr.bf16.mxu1 %v5677_v26  ;;  %v327_v24 = vld [vmem:[#allocation8 + $0x138] sm:$0xff]  ;;  %v5654_v26 = vcombine.low %v314_v60, %v318_v61  ;;  %v5663_v28 = vcombine.high %v322_v21, %v326_v22  ;;  %v934_v2 = vld [vmem:[#allocation11 + $0x150] sm:$0xff] }
  0x64   :  { %v5665_v29 = vcombine.high %v323_v23, %v327_v24  ;;  %v5664_v35 = vcombine.low %v323_v23, %v327_v24  ;;  %v908_v24 = vld [vmem:[#allocation11 + $0x80] sm:$0xff]  ;;  %v938_v10 = vld [vmem:[#allocation11 + $0x170] sm:$0xff]  ;;  %v939_v9 = vld [vmem:[#allocation11 + $0x178] sm:$0xff] }
  0x65   :  { %v942_v0 = vld [vmem:[#allocation11 + $0x190] sm:$0xff] }
  0x66   :  { %733 = vmatpush1.bf16.msra.mxu0 %v5674_v31  ;;  %776 = vmatpush1.bf16.msra.mxu1 %v5676_v32  ;;  %v334_v31 = vld [vmem:[#allocation8 + $0x170] sm:$0xff]  ;;  %v331_v32 = vld [vmem:[#allocation8 + $0x158] sm:$0xff] }
  0x67   :  { %734 = vmatprep.subr.bf16.mxu0 %v5683_v33  ;;  %777 = vmatprep.subr.bf16.mxu1 %v5685_v34  ;;  %v335_v33 = vld [vmem:[#allocation8 + $0x178] sm:$0xff]  ;;  %v5662_v34 = vcombine.low %v322_v21, %v326_v22  ;;  %v5671_v36 = vcombine.high %v330_v30, %v334_v31 }
  0x68   :  { %v5673_v37 = vcombine.high %v331_v32, %v335_v33  ;;  %v5672_v43 = vcombine.low %v331_v32, %v335_v33  ;;  %v916_v33 = vld [vmem:[#allocation11 + $0xc0] sm:$0xff] }
  0x6a   :  { %735 = vmatpush1.bf16.msra.mxu0 %v5682_v39  ;;  %778 = vmatpush1.bf16.msra.mxu1 %v5684_v40  ;;  %v342_v39 = vld [vmem:[#allocation8 + $0x1b0] sm:$0xff]  ;;  %v339_v40 = vld [vmem:[#allocation8 + $0x198] sm:$0xff] }
  0x6b   :  { %806 = vmatprep.subr.bf16.mxu0 %v5631_v41  ;;  %849 = vmatprep.subr.bf16.mxu1 %v5633_v42  ;;  %v343_v41 = vld [vmem:[#allocation8 + $0x1b8] sm:$0xff]  ;;  %v5670_v42 = vcombine.low %v330_v30, %v334_v31  ;;  %v5679_v44 = vcombine.high %v338_v38, %v342_v39 }
  0x6c   :  { %v5681_v46 = vcombine.high %v339_v40, %v343_v41  ;;  %v5680_v52 = vcombine.low %v339_v40, %v343_v41  ;;  %v924_v40 = vld [vmem:[#allocation11 + $0x100] sm:$0xff] }
  0x6d   :  { %753 = vmatmul.mubr.bf16.vlgmr.msra.gmra.mrb[0].mxu0 %v6456_v45  ;;  %796 = vmatmul.mubr.bf16.vlgmr.msra.gmra.mrb[0].mxu1 %v6456_v45  ;;  %v928_v41 = vld [vmem:[#allocation11 + $0x120] sm:$0xff] }
  0x6e   :  { %807 = vmatpush1.bf16.msra.mxu0 %v5630_v48  ;;  %850 = vmatpush1.bf16.msra.mxu1 %v5632_v49  ;;  %v350_v48 = vld [vmem:[#allocation8 + $0x1f0] sm:$0xff]  ;;  %v347_v49 = vld [vmem:[#allocation8 + $0x1d8] sm:$0xff] }
  0x6f   :  { %808 = vmatprep.subr.bf16.mxu0 %v5639_v50  ;;  %851 = vmatprep.subr.bf16.mxu1 %v5641_v51  ;;  %v351_v50 = vld [vmem:[#allocation8 + $0x1f8] sm:$0xff]  ;;  %v5678_v51 = vcombine.low %v338_v38, %v342_v39  ;;  %v5687_v53 = vcombine.high %v346_v47, %v350_v48 }
  0x70   :  { %838 = vmatprep.mubr.bf16.mxu0 %v8714_v25  ;;  %881 = vmatprep.mubr.bf16.mxu1 %v8714_v25  ;;  %v5689_v54 = vcombine.high %v347_v49, %v351_v50  ;;  %v5688_v60 = vcombine.low %v347_v49, %v351_v50  ;;  %v932_v49 = vld [vmem:[#allocation11 + $0x140] sm:$0xff] }
  0x71   :  { %v936_v50 = vld [vmem:[#allocation11 + $0x160] sm:$0xff] }
  0x72   :  { %809 = vmatpush1.bf16.msra.mxu0 %v5638_v56  ;;  %852 = vmatpush1.bf16.msra.mxu1 %v5640_v57  ;;  %v896_v56 = vld [vmem:[#allocation11 + $0x20] sm:$0xff]  ;;  %v893_v57 = vld [vmem:[#allocation11 + $0x8] sm:$0xff] }
  0x73   :  { %810 = vmatprep.subr.bf16.mxu0 %v5647_v58  ;;  %853 = vmatprep.subr.bf16.mxu1 %v5649_v59  ;;  %v897_v58 = vld [vmem:[#allocation11 + $0x28] sm:$0xff]  ;;  %v5686_v59 = vcombine.low %v346_v47, %v350_v48  ;;  %v6462_v61 = vcombine.high %v892_v55, %v896_v56  ;;  %v6511_v47 = vcombine.high %v924_v40, %v928_v41 }
  0x74   :  { %v6464_v62 = vcombine.high %v893_v57, %v897_v58  ;;  %v6469_v21 = vcombine.low %v893_v57, %v897_v58  ;;  %v940_v57 = vld [vmem:[#allocation11 + $0x180] sm:$0xff] }
  0x75   :  { %8995 = vst [vmem:[#allocation46_spill] sm:$0xff] %v6462_v61  ;;  %9011 = vst [vmem:[#allocation62_spill] sm:$0xff] %v6511_v47  ;;  %v944_v58 = vld [vmem:[#allocation11 + $0x1a0] sm:$0xff] }
  0x76   :  { %811 = vmatpush1.bf16.msra.mxu0 %v5646_v17  ;;  %854 = vmatpush1.bf16.msra.mxu1 %v5648_v18  ;;  %8996 = vst [vmem:[#allocation47_spill] sm:$0xff] %v6464_v62  ;;  %v904_v17 = vld [vmem:[#allocation11 + $0x60] sm:$0xff]  ;;  %v901_v18 = vld [vmem:[#allocation11 + $0x48] sm:$0xff]  ;;  %8998 = vst [vmem:[#allocation49_spill] sm:$0xff] %v6469_v21 }
  0x77   :  { %812 = vmatprep.subr.bf16.mxu0 %v5655_v19  ;;  %855 = vmatprep.subr.bf16.mxu1 %v5657_v20  ;;  %v905_v19 = vld [vmem:[#allocation11 + $0x68] sm:$0xff]  ;;  %v6466_v20 = vcombine.low %v892_v55, %v896_v56  ;;  %v6471_v22 = vcombine.high %v900_v63, %v904_v17  ;;  %v6523_v55 = vcombine.high %v932_v49, %v936_v50 }
  0x78   :  { %v6474_v23 = vcombine.high %v901_v18, %v905_v19  ;;  %v6483_v30 = vcombine.low %v901_v18, %v905_v19  ;;  %v6535_v18 = vcombine.high %v940_v57, %v944_v58 }
  0x79   :  { %8997 = vst [vmem:[#allocation48_spill] sm:$0xff] %v6466_v20  ;;  %8999 = vst [vmem:[#allocation50_spill] sm:$0xff] %v6471_v22 }
  0x7a   :  { %813 = vmatpush1.bf16.msra.mxu0 %v5654_v26  ;;  %856 = vmatpush1.bf16.msra.mxu1 %v5656_v27  ;;  %9000 = vst [vmem:[#allocation51_spill] sm:$0xff] %v6474_v23  ;;  %v912_v26 = vld [vmem:[#allocation11 + $0xa0] sm:$0xff]  ;;  %v909_v27 = vld [vmem:[#allocation11 + $0x88] sm:$0xff]  ;;  %9002 = vst [vmem:[#allocation53_spill] sm:$0xff] %v6483_v30 }
  0x7b   :  { %814 = vmatprep.subr.bf16.mxu0 %v5663_v28  ;;  %857 = vmatprep.subr.bf16.mxu1 %v5665_v29  ;;  %v913_v28 = vld [vmem:[#allocation11 + $0xa8] sm:$0xff]  ;;  %v6479_v29 = vcombine.low %v900_v63, %v904_v17  ;;  %v6485_v31 = vcombine.high %v908_v24, %v912_v26  ;;  %9015 = vst [vmem:[#allocation66_spill] sm:$0xff] %v6523_v55  ;;  %9019 = vst [vmem:[#allocation70_spill] sm:$0xff] %v6535_v18 }
  0x7c   :  { %v6488_v32 = vcombine.high %v909_v27, %v913_v28  ;;  %v6529_v63 = vcombine.low %v932_v49, %v936_v50 }
  0x7d   :  { %9001 = vst [vmem:[#allocation52_spill] sm:$0xff] %v6479_v29  ;;  %9003 = vst [vmem:[#allocation54_spill] sm:$0xff] %v6485_v31 }
  0x7e   :  { %815 = vmatpush1.bf16.msra.mxu0 %v5662_v34  ;;  %858 = vmatpush1.bf16.msra.mxu1 %v5664_v35  ;;  %9004 = vst [vmem:[#allocation55_spill] sm:$0xff] %v6488_v32  ;;  %v920_v34 = vld [vmem:[#allocation11 + $0xe0] sm:$0xff]  ;;  %v921_v35 = vld [vmem:[#allocation11 + $0xe8] sm:$0xff]  ;;  %9017 = vst [vmem:[#allocation68_spill] sm:$0xff] %v6529_v63 }
  0x7f   :  { %816 = vmatprep.subr.bf16.mxu0 %v5671_v36  ;;  %859 = vmatprep.subr.bf16.mxu1 %v5673_v37  ;;  %v6493_v36 = vcombine.low %v908_v24, %v912_v26  ;;  %v6497_v37 = vcombine.low %v909_v27, %v913_v28  ;;  %v6499_v38 = vcombine.high %v916_v33, %v920_v34  ;;  %v948_v24 = vld [vmem:[#allocation11 + $0x1c0] sm:$0xff]  ;;  %v949_v27 = vld [vmem:[#allocation11 + $0x1c8] sm:$0xff] }
  0x80   :  { %v952_v26 = vld [vmem:[#allocation11 + $0x1e0] sm:$0xff]  ;;  %v953_v28 = vld [vmem:[#allocation11 + $0x1e8] sm:$0xff] }
  0x81   :  { %9005 = vst [vmem:[#allocation56_spill] sm:$0xff] %v6493_v36  ;;  %9006 = vst [vmem:[#allocation57_spill] sm:$0xff] %v6497_v37  ;;  %v6553_v49 = vcombine.low %v948_v24, %v952_v26  ;;  %v6557_v50 = vcombine.low %v949_v27, %v953_v28 }
  0x82   :  { %817 = vmatpush1.bf16.msra.mxu0 %v5670_v42  ;;  %860 = vmatpush1.bf16.msra.mxu1 %v5672_v43  ;;  %9007 = vst [vmem:[#allocation58_spill] sm:$0xff] %v6499_v38  ;;  %v925_v42 = vld [vmem:[#allocation11 + $0x108] sm:$0xff] }
  0x83   :  { %818 = vmatprep.subr.bf16.mxu0 %v5679_v44  ;;  %861 = vmatprep.subr.bf16.mxu1 %v5681_v46  ;;  %v929_v43 = vld [vmem:[#allocation11 + $0x128] sm:$0xff]  ;;  %v6505_v44 = vcombine.low %v916_v33, %v920_v34  ;;  %v6541_v33 = vcombine.low %v940_v57, %v944_v58  ;;  %9025 = vst [vmem:[#allocation76_spill] sm:$0xff] %v6553_v49  ;;  %9026 = vst [vmem:[#allocation77_spill] sm:$0xff] %v6557_v50  ;;  %v902_v57 = vld [vmem:[#allocation11 + $0x50] sm:$0xff] }
  0x84   :  { %v6514_v48 = vcombine.high %v925_v42, %v929_v43  ;;  %v906_v58 = vld [vmem:[#allocation11 + $0x70] sm:$0xff] }
  0x85   :  { %9009 = vst [vmem:[#allocation60_spill] sm:$0xff] %v6505_v44  ;;  %9021 = vst [vmem:[#allocation72_spill] sm:$0xff] %v6541_v33 }
  0x86   :  { %819 = vmatpush1.bf16.msra.mxu0 %v5678_v51  ;;  %862 = vmatpush1.bf16.msra.mxu1 %v5680_v52  ;;  %9012 = vst [vmem:[#allocation63_spill] sm:$0xff] %v6514_v48  ;;  %v933_v51 = vld [vmem:[#allocation11 + $0x148] sm:$0xff] }
  0x87   :  { %820 = vmatprep.subr.bf16.mxu0 %v5687_v53  ;;  %863 = vmatprep.subr.bf16.mxu1 %v5689_v54  ;;  %v937_v52 = vld [vmem:[#allocation11 + $0x168] sm:$0xff]  ;;  %v6517_v53 = vcombine.low %v924_v40, %v928_v41  ;;  %v6521_v54 = vcombine.low %v925_v42, %v929_v43  ;;  %v894_v40 = vld [vmem:[#allocation11 + $0x10] sm:$0xff]  ;;  %v895_v42 = vld [vmem:[#allocation11 + $0x18] sm:$0xff] }
  0x88   :  { %v6526_v56 = vcombine.high %v933_v51, %v937_v52  ;;  %v6533_v17 = vcombine.low %v933_v51, %v937_v52  ;;  %v898_v41 = vld [vmem:[#allocation11 + $0x30] sm:$0xff]  ;;  %v899_v43 = vld [vmem:[#allocation11 + $0x38] sm:$0xff] }
  0x89   :  { %9013 = vst [vmem:[#allocation64_spill] sm:$0xff] %v6517_v53  ;;  %9014 = vst [vmem:[#allocation65_spill] sm:$0xff] %v6521_v54  ;;  %v6559_v51 = vcombine.high %v894_v40, %v898_v41  ;;  %v6562_v52 = vcombine.high %v895_v42, %v899_v43 }
  0x8a   :  { %821 = vmatpush1.bf16.msra.mxu0 %v5686_v59  ;;  %864 = vmatpush1.bf16.msra.mxu1 %v5688_v60  ;;  %9016 = vst [vmem:[#allocation67_spill] sm:$0xff] %v6526_v56  ;;  %v941_v59 = vld [vmem:[#allocation11 + $0x188] sm:$0xff]  ;;  %9018 = vst [vmem:[#allocation69_spill] sm:$0xff] %v6533_v17 }
  0x8b   :  { %1293 = vmatprep.subr.bf16.mxu0 %v6462_v61  ;;  %1334 = vmatprep.subr.bf16.mxu1 %v6464_v62  ;;  %v945_v60 = vld [vmem:[#allocation11 + $0x1a8] sm:$0xff]  ;;  %9027 = vst [vmem:[#allocation78_spill] sm:$0xff] %v6559_v51  ;;  %9028 = vst [vmem:[#allocation79_spill] sm:$0xff] %v6562_v52 }
  0x8c   :  { %v6538_v19 = vcombine.high %v941_v59, %v945_v60  ;;  %v6545_v34 = vcombine.low %v941_v59, %v945_v60  ;;  %v903_v59 = vld [vmem:[#allocation11 + $0x58] sm:$0xff] }
  0x8d   :  { %839 = vmatmul.mubr.bf16.vlgmr.msra.gmra.mrb[4].mxu0 %v6456_v45  ;;  %882 = vmatmul.mubr.bf16.vlgmr.msra.gmra.mrb[4].mxu1 %v6456_v45  ;;  %v917_v45 = vld [vmem:[#allocation11 + $0xc8] sm:$0xff]  ;;  %v907_v60 = vld [vmem:[#allocation11 + $0x78] sm:$0xff] }
  0x8e   :  { %1294 = vmatpush1.bf16.msra.mxu0 %v6466_v20  ;;  %1335 = vmatpush1.bf16.msra.mxu1 %v6469_v21  ;;  %v6502_v39 = vcombine.high %v917_v45, %v921_v35  ;;  %v6509_v46 = vcombine.low %v917_v45, %v921_v35  ;;  %9020 = vst [vmem:[#allocation71_spill] sm:$0xff] %v6538_v19  ;;  %9022 = vst [vmem:[#allocation73_spill] sm:$0xff] %v6545_v34 }
  0x8f   :  { %1295 = vmatprep.subr.bf16.mxu0 %v6471_v22  ;;  %1336 = vmatprep.subr.bf16.mxu1 %v6474_v23  ;;  %v6547_v45 = vcombine.high %v948_v24, %v952_v26  ;;  %v6550_v35 = vcombine.high %v949_v27, %v953_v28  ;;  %v6565_v24 = vcombine.low %v894_v40, %v898_v41 }
  0x90   :  { %1325 = vmatprep.mubr.bf16.mxu0 %v8714_v25  ;;  %1366 = vmatprep.mubr.bf16.mxu1 %v8714_v25  ;;  %9008 = vst [vmem:[#allocation59_spill] sm:$0xff] %v6502_v39  ;;  %9010 = vst [vmem:[#allocation61_spill] sm:$0xff] %v6509_v46  ;;  %v6569_v26 = vcombine.low %v895_v42, %v899_v43  ;;  %v6571_v27 = vcombine.high %v902_v57, %v906_v58  ;;  %v910_v25 = vld [vmem:[#allocation11 + $0x90] sm:$0xff] }
  0x91   :  { %9023 = vst [vmem:[#allocation74_spill] sm:$0xff] %v6547_v45  ;;  %9024 = vst [vmem:[#allocation75_spill] sm:$0xff] %v6550_v35  ;;  %v6574_v28 = vcombine.high %v903_v59, %v907_v60  ;;  %v6579_v40 = vcombine.low %v902_v57, %v906_v58  ;;  %v6583_v41 = vcombine.low %v903_v59, %v907_v60 }
  0x92   :  { %1296 = vmatpush1.bf16.msra.mxu0 %v6479_v29  ;;  %1337 = vmatpush1.bf16.msra.mxu1 %v6483_v30  ;;  %v6585_v42 = vcombine.high %v910_v25, %v914_v8  ;;  %v6588_v43 = vcombine.high %v911_v7, %v915_v15  ;;  %v6593_v57 = vcombine.low %v910_v25, %v914_v8 }
  0x93   :  { %1297 = vmatprep.subr.bf16.mxu0 %v6485_v31  ;;  %1338 = vmatprep.subr.bf16.mxu1 %v6488_v32  ;;  %v6597_v58 = vcombine.low %v911_v7, %v915_v15  ;;  %v6599_v59 = vcombine.high %v918_v6, %v922_v14  ;;  %v6602_v60 = vcombine.high %v919_v5, %v923_v13 }
  0x94   :  { %v6605_v8 = vcombine.low %v918_v6, %v922_v14  ;;  %v6609_v7 = vcombine.low %v919_v5, %v923_v13  ;;  %v6611_v15 = vcombine.high %v926_v4, %v930_v12  ;;  %v6614_v25 = vcombine.high %v927_v3, %v931_v11 }
  0x95   :  { %9030 = vst [vmem:[#allocation80_spill] sm:$0xff] %v6597_v58  ;;  %9031 = vst [vmem:[#allocation81_spill] sm:$0xff] %v6599_v59  ;;  %v6617_v6 = vcombine.low %v926_v4, %v930_v12  ;;  %v6621_v5 = vcombine.low %v927_v3, %v931_v11  ;;  %v6623_v13 = vcombine.high %v934_v2, %v938_v10 }
  0x96   :  { %1298 = vmatpush1.bf16.msra.mxu0 %v6493_v36  ;;  %1339 = vmatpush1.bf16.msra.mxu1 %v6497_v37  ;;  %9032 = vst [vmem:[#allocation82_spill] sm:$0xff] %v6602_v60  ;;  %9033 = vst [vmem:[#allocation83_spill] sm:$0xff] %v6605_v8  ;;  %v6626_v14 = vcombine.high %v935_v1, %v939_v9  ;;  %v6629_v4 = vcombine.low %v934_v2, %v938_v10 }
  0x97   :  { %1299 = vmatprep.subr.bf16.mxu0 %v6499_v38  ;;  %1340 = vmatprep.subr.bf16.mxu1 %v6502_v39  ;;  %9034 = vst [vmem:[#allocation84_spill] sm:$0xff] %v6609_v7  ;;  %9035 = vst [vmem:[#allocation85_spill] sm:$0xff] %v6611_v15  ;;  %v6633_v3 = vcombine.low %v935_v1, %v939_v9 }
  0x98   :  { %9036 = vst [vmem:[#allocation86_spill] sm:$0xff] %v6614_v25  ;;  %9037 = vst [vmem:[#allocation87_spill] sm:$0xff] %v6626_v14 }
  0x9a   :  { %1300 = vmatpush1.bf16.msra.mxu0 %v6505_v44  ;;  %1341 = vmatpush1.bf16.msra.mxu1 %v6509_v46 }
  0x9b   :  { %1301 = vmatprep.subr.bf16.mxu0 %v6511_v47  ;;  %1342 = vmatprep.subr.bf16.mxu1 %v6514_v48 }
  0x9e   :  { %1302 = vmatpush1.bf16.msra.mxu0 %v6517_v53  ;;  %1343 = vmatpush1.bf16.msra.mxu1 %v6521_v54 }
  0x9f   :  { %1303 = vmatprep.subr.bf16.mxu0 %v6523_v55  ;;  %1344 = vmatprep.subr.bf16.mxu1 %v6526_v56 }
  0xa2   :  { %1304 = vmatpush1.bf16.msra.mxu0 %v6529_v63  ;;  %1345 = vmatpush1.bf16.msra.mxu1 %v6533_v17 }
  0xa3   :  { %1305 = vmatprep.subr.bf16.mxu0 %v6535_v18  ;;  %1346 = vmatprep.subr.bf16.mxu1 %v6538_v19 }
  0xa6   :  { %1306 = vmatpush1.bf16.msra.mxu0 %v6541_v33  ;;  %1347 = vmatpush1.bf16.msra.mxu1 %v6545_v34 }
  0xa7   :  { %1307 = vmatprep.subr.bf16.mxu0 %v6547_v45  ;;  %1348 = vmatprep.subr.bf16.mxu1 %v6550_v35 }
  0xaa   :  { %1308 = vmatpush1.bf16.msra.mxu0 %v6553_v49  ;;  %1349 = vmatpush1.bf16.msra.mxu1 %v6557_v50 }
  0xab   :  { %1375 = vmatprep.subr.bf16.mxu0 %v6559_v51  ;;  %1416 = vmatprep.subr.bf16.mxu1 %v6562_v52 }
  0xad   :  { %1326 = vmatmul.mubr.bf16.vlgmr.msra.gmra.mrb[8].mxu0 %v9029_v16  ;;  %1367 = vmatmul.mubr.bf16.vlgmr.msra.gmra.mrb[8].mxu1 %v9029_v16 }
  0xae   :  { %1376 = vmatpush1.bf16.msra.mxu0 %v6565_v24  ;;  %1417 = vmatpush1.bf16.msra.mxu1 %v6569_v26 }
  0xaf   :  { %1377 = vmatprep.subr.bf16.mxu0 %v6571_v27  ;;  %1418 = vmatprep.subr.bf16.mxu1 %v6574_v28 }
  0xb0   :  { %1407 = vmatprep.mubr.bf16.mxu0 %v9029_v16  ;;  %1448 = vmatprep.mubr.bf16.mxu1 %v9029_v16 }
  0xb2   :  { %1378 = vmatpush1.bf16.msra.mxu0 %v6579_v40  ;;  %1419 = vmatpush1.bf16.msra.mxu1 %v6583_v41 }
  0xb3   :  { %1379 = vmatprep.subr.bf16.mxu0 %v6585_v42  ;;  %1420 = vmatprep.subr.bf16.mxu1 %v6588_v43 }
  0xb6   :  { %1380 = vmatpush1.bf16.msra.mxu0 %v6593_v57  ;;  %1421 = vmatpush1.bf16.msra.mxu1 %v6597_v58  ;;  %v947_v58 = vld [vmem:[#allocation11 + $0x1b8] sm:$0xff] }
  0xb7   :  { %1381 = vmatprep.subr.bf16.mxu0 %v6599_v59  ;;  %1422 = vmatprep.subr.bf16.mxu1 %v6602_v60  ;;  %v946_v60 = vld [vmem:[#allocation11 + $0x1b0] sm:$0xff]  ;;  %v943_v59 = vld [vmem:[#allocation11 + $0x198] sm:$0xff] }
  0xb8   :  { %v6635_v11 = vcombine.high %v942_v0, %v946_v60  ;;  %v6638_v12 = vcombine.high %v943_v59, %v947_v58  ;;  %v6641_v2 = vcombine.low %v942_v0, %v946_v60  ;;  %v6645_v1 = vcombine.low %v943_v59, %v947_v58 }
  0xb9   :  { %v8737_v58 = vlaneseq }
  0xba   :  { %1382 = vmatpush1.bf16.msra.mxu0 %v6605_v8  ;;  %1423 = vmatpush1.bf16.msra.mxu1 %v6609_v7  ;;  %v951_v7 = vld [vmem:[#allocation11 + $0x1d8] sm:$0xff] }
  0xbb   :  { %1383 = vmatprep.subr.bf16.mxu0 %v6611_v15  ;;  %1424 = vmatprep.subr.bf16.mxu1 %v6614_v25  ;;  %v950_v25 = vld [vmem:[#allocation11 + $0x1d0] sm:$0xff]  ;;  %v955_v8 = vld [vmem:[#allocation11 + $0x1f8] sm:$0xff]  ;;  %v6701_v59 = vshrl.u32 %v8737_v58, 7 }
  0xbc   :  { %v954_v15 = vld [vmem:[#allocation11 + $0x1f0] sm:$0xff]  ;;  %v6650_v10 = vcombine.high %v951_v7, %v955_v8  ;;  %v6657_v0 = vcombine.low %v951_v7, %v955_v8  ;;  %v352_v8 = vld [vmem:[%s8707_s3] sm:$0xff] }
  0xbd   :  { %v6647_v9 = vcombine.high %v950_v25, %v954_v15  ;;  %v8758_v60 = vsub.s32 0, %v6701_v59  ;;  %v8761_v7 = vsub.s32 2, %v6701_v59  ;;  %vm285_vm1 = vcmp.lt.s32.totalorder %v6701_v59, 2 }
  0xbe   :  { %1384 = vmatpush1.bf16.msra.mxu0 %v6617_v6  ;;  %1425 = vmatpush1.bf16.msra.mxu1 %v6621_v5  ;;  %9039 = vst [vmem:[#allocation89_spill] sm:$0xff] %v6657_v0 }
  0xbf   :  { %1385 = vmatprep.subr.bf16.mxu0 %v6623_v13  ;;  %1426 = vmatprep.subr.bf16.mxu1 %v6626_v14  ;;  %v6653_v14 = vcombine.low %v950_v25, %v954_v15  ;;  %v8764_v15 = vsub.s32 3, %v6701_v59  ;;  %v8767_v25 = vsub.s32 1, %v6701_v59  ;;  %v365_v58 = vrot.slane %v352_v8, %v8761_v7 }
  0xc1   :  { %9038 = vst [vmem:[#allocation88_spill] sm:$0xff] %v6653_v14 }
  0xc2   :  { %1386 = vmatpush1.bf16.msra.mxu0 %v6629_v4  ;;  %1427 = vmatpush1.bf16.msra.mxu1 %v6633_v3 }
  0xc3   :  { %1387 = vmatprep.subr.bf16.mxu0 %v6635_v11  ;;  %1428 = vmatprep.subr.bf16.mxu1 %v6638_v12 }
  0xc6   :  { %1388 = vmatpush1.bf16.msra.mxu0 %v6641_v2  ;;  %1429 = vmatpush1.bf16.msra.mxu1 %v6645_v1 }
  0xc7   :  { %1389 = vmatprep.subr.bf16.mxu0 %v6647_v9  ;;  %1430 = vmatprep.subr.bf16.mxu1 %v6650_v10 }
  0xca   :  { %1390 = vmatpush1.bf16.msra.mxu0 %v6653_v14  ;;  %1431 = vmatpush1.bf16.msra.mxu1 %v6657_v0 }
  0xcb   :  { %1514 = vmatprep.subr.bf16.mxu0 %v6462_v61  ;;  %1555 = vmatprep.subr.bf16.mxu1 %v6464_v62 }
  0xcd   :  { %1408 = vmatmul.mubr.bf16.vlgmr.msra.gmra.mrb[12].mxu0 %v9029_v16  ;;  %1449 = vmatmul.mubr.bf16.vlgmr.msra.gmra.mrb[12].mxu1 %v9029_v16 }
  0xce   :  { %1515 = vmatpush1.bf16.msra.mxu0 %v6466_v20  ;;  %1556 = vmatpush1.bf16.msra.mxu1 %v6469_v21 }
  0xcf   :  { %1516 = vmatprep.subr.bf16.mxu0 %v6471_v22  ;;  %1557 = vmatprep.subr.bf16.mxu1 %v6474_v23 }
  0xd0   :  { %1546 = vmatprep.mubr.bf16.mxu0 %v9029_v16  ;;  %1587 = vmatprep.mubr.bf16.mxu1 %v9029_v16 }
  0xd2   :  { %1517 = vmatpush1.bf16.msra.mxu0 %v6479_v29  ;;  %1558 = vmatpush1.bf16.msra.mxu1 %v6483_v30 }
  0xd3   :  { %1518 = vmatprep.subr.bf16.mxu0 %v6485_v31  ;;  %1559 = vmatprep.subr.bf16.mxu1 %v6488_v32 }
  0xd6   :  { %1519 = vmatpush1.bf16.msra.mxu0 %v6493_v36  ;;  %1560 = vmatpush1.bf16.msra.mxu1 %v6497_v37 }
  0xd7   :  { %1520 = vmatprep.subr.bf16.mxu0 %v6499_v38  ;;  %1561 = vmatprep.subr.bf16.mxu1 %v6502_v39 }
  0xda   :  { %1521 = vmatpush1.bf16.msra.mxu0 %v6505_v44  ;;  %1562 = vmatpush1.bf16.msra.mxu1 %v6509_v46 }
  0xdb   :  { %1522 = vmatprep.subr.bf16.mxu0 %v6511_v47  ;;  %1563 = vmatprep.subr.bf16.mxu1 %v6514_v48 }
  0xde   :  { %1523 = vmatpush1.bf16.msra.mxu0 %v6517_v53  ;;  %1564 = vmatpush1.bf16.msra.mxu1 %v6521_v54  ;;  %v8774_v54 = vsub.s32 5, %v6701_v59 }
  0xdf   :  { %1524 = vmatprep.subr.bf16.mxu0 %v6523_v55  ;;  %1565 = vmatprep.subr.bf16.mxu1 %v6526_v56  ;;  %v8777_v55 = vsub.s32 4, %v6701_v59 }
  0xe0   :  { %v377_v47 = vrot.slane %v352_v8, %v8774_v54 }
  0xe2   :  { %1525 = vmatpush1.bf16.msra.mxu0 %v6529_v63  ;;  %1566 = vmatpush1.bf16.msra.mxu1 %v6533_v17 }
  0xe3   :  { %1526 = vmatprep.subr.bf16.mxu0 %v6535_v18  ;;  %1567 = vmatprep.subr.bf16.mxu1 %v6538_v19 }
  0xe6   :  { %1527 = vmatpush1.bf16.msra.mxu0 %v6541_v33  ;;  %1568 = vmatpush1.bf16.msra.mxu1 %v6545_v34 }
  0xe7   :  { %1528 = vmatprep.subr.bf16.mxu0 %v6547_v45  ;;  %1569 = vmatprep.subr.bf16.mxu1 %v6550_v35  ;;  %v369_v35 = vrot.slane %v352_v8, %v8764_v15  ;;  %v361_v45 = vrot.slane %v352_v8, %v8767_v25  ;;  %v8775_v15 = vsub.s32 6, %v6701_v59 }
  0xea   :  { %1529 = vmatpush1.bf16.msra.mxu0 %v6553_v49  ;;  %1570 = vmatpush1.bf16.msra.mxu1 %v6557_v50 }
  0xeb   :  { %1596 = vmatprep.subr.bf16.mxu0 %v6559_v51  ;;  %1637 = vmatprep.subr.bf16.mxu1 %v6562_v52  ;;  %v357_v51 = vrot.slane %v352_v8, %v8758_v60 }
 0x140   :  { %v754_v52 = vpop.f32.mrb[0].mxu0  ;;  %v797_v49 = vpop.f32.mrb[0].mxu1 }
 0x141   :  { %v756_v50 = vpop.f32.mrb[1].mxu0  ;;  %v799_v33 = vpop.f32.mrb[1].mxu1  ;;  %v6729_v25 = vadd.f32 %v754_v52, %v357_v51  ;;  %v6734_v48 = vadd.f32 %v797_v49, %v365_v58 }
 0x142   :  { %v758_v34 = vpop.f32.mrb[2].mxu0  ;;  %v801_v17 = vpop.f32.mrb[2].mxu1  ;;  %v6732_v53 = vadd.f32 %v756_v50, %v361_v45 }
 0x143   :  { %v6718_v19 = vadd.f32 %v758_v34, %v357_v51  ;;  %v760_v18 = vpop.f32.mrb[3].mxu0  ;;  %v6722_v60 = vadd.f32 %v801_v17, %v365_v58  ;;  %v803_v56 = vpop.f32.mrb[3].mxu1  ;;  %v8776_v34 = vsub.s32 7, %v6701_v59  ;;  %v381_v17 = vrot.slane %v352_v8, %v8775_v15 }
 0x144   :  { %v6720_v63 = vadd.f32 %v760_v18, %v361_v45  ;;  %v6724_v7 = vadd.f32 %v803_v56, %v369_v35  ;;  %v6736_v18 = vadd.f32 %v799_v33, %v369_v35  ;;  %v373_v56 = vrot.slane %v352_v8, %v8777_v55 }
 0x145   :  { %v385_v51 = vrot.slane %v352_v8, %v8776_v34  ;;  %v1493_v45 = vrot.slane %v6729_v25, 2  ;;  %v1710_v49 = vrot.slane %v6729_v25, 4  ;;  %v1495_v33 = vrot.slane %v6734_v48, 2 }
 0x146   :  { %v1494_v35 = vrot.slane %v6732_v53, 2  ;;  %v1496_v50 = vrot.slane %v6736_v18, 2  ;;  %v1712_v52 = vrot.slane %v6734_v48, 4  ;;  %v1711_v58 = vrot.slane %v6732_v53, 4 }
 0x147   :  { %v1713_v54 = vrot.slane %v6736_v18, 4 }
 0x160   :  { %v840_v39 = vpop.f32.mrb[4].mxu0  ;;  %v883_v8 = vpop.f32.mrb[4].mxu1 }
 0x161   :  { %v6764_v15 = vadd.f32 %v840_v39, %v373_v56  ;;  %v842_v31 = vpop.f32.mrb[5].mxu0  ;;  %v6769_v44 = vadd.f32 %v883_v8, %v381_v17  ;;  %v885_v38 = vpop.f32.mrb[5].mxu1 }
 0x162   :  { %v6771_v30 = vadd.f32 %v842_v31, %v377_v47  ;;  %v844_v37 = vpop.f32.mrb[6].mxu0  ;;  %v6775_v39 = vadd.f32 %v885_v38, %v385_v51  ;;  %v887_v23 = vpop.f32.mrb[6].mxu1 }
 0x163   :  { %v845_v29 = vadd.f32 %v844_v37, %v373_v56  ;;  %v846_v22 = vpop.f32.mrb[7].mxu0  ;;  %v2140_v34 = vrot.slane %v6764_v15, 4  ;;  %v2361_v55 = vrot.slane %v6764_v15, 2  ;;  %v888_v46 = vadd.f32 %v887_v23, %v381_v17  ;;  %v889_v21 = vpop.f32.mrb[7].mxu1 }
 0x164   :  { %v847_v8 = vadd.f32 %v846_v22, %v377_v47  ;;  %v2142_v31 = vrot.slane %v6769_v44, 4  ;;  %v2141_v20 = vrot.slane %v6771_v30, 4  ;;  %v890_v62 = vadd.f32 %v889_v21, %v385_v51 }
 0x165   :  { %v960_v36 = vrot.slane %v845_v29, 4  ;;  %v1501_v61 = vrot.slane %v845_v29, 2  ;;  %v6782_v38 = vsel %vm968_vm0, %v1710_v49, %v845_v29  ;;  %v962_v37 = vrot.slane %v888_v46, 4 }
 0x166   :  { %9040 = vst [vmem:[#allocation90_spill] sm:$0xff] %v6782_v38  ;;  %v961_v56 = vrot.slane %v847_v8, 4  ;;  %v1503_v32 = vrot.slane %v888_v46, 2  ;;  %v1502_v0 = vrot.slane %v847_v8, 2  ;;  %v963_v23 = vrot.slane %v890_v62, 4 }
 0x167   :  { %v969_v14 = vsel %vm968_vm0, %v6729_v25, %v960_v36  ;;  %v6787_v22 = vsel %vm968_vm0, %v1493_v45, %v1501_v61  ;;  %v1504_v47 = vrot.slane %v890_v62, 2  ;;  %v971_v21 = vsel %vm968_vm0, %v6734_v48, %v962_v37 }
 0x168   :  { %v970_v17 = vsel %vm968_vm0, %v6732_v53, %v961_v56  ;;  %v6794_v51 = vsel %vm968_vm0, %v1495_v33, %v1503_v32  ;;  %v6797_v49 = vsel %vm968_vm0, %v1494_v35, %v1502_v0  ;;  %v972_v36 = vsel %vm968_vm0, %v6736_v18, %v963_v23 }
 0x169   :  { %v6802_v38 = vsel %vm968_vm0, %v1496_v50, %v1504_v47  ;;  %v6805_v61 = vsel %vm968_vm0, %v1712_v52, %v888_v46  ;;  %v6808_v45 = vsel %vm968_vm0, %v1711_v58, %v847_v8  ;;  %v6811_v37 = vsel %vm968_vm0, %v1713_v54, %v890_v62 }
 0x16a   :  { %9041 = vst [vmem:[#allocation91_spill] sm:$0xff] %v6805_v61  ;;  %9042 = vst [vmem:[#allocation92_spill] sm:$0xff] %v6808_v45  ;;  %v1927_v32 = vrot.slane %v845_v29, 6  ;;  %v1929_v33 = vrot.slane %v888_v46, 6  ;;  %v1928_v56 = vrot.slane %v847_v8, 6  ;;  %v1930_v0 = vrot.slane %v890_v62, 6 }
 0x16b   :  { %9043 = vst [vmem:[#allocation93_spill] sm:$0xff] %v6811_v37  ;;  %v6815_v35 = vsel %vm968_vm0, %v6718_v19, %v2140_v34  ;;  %v6819_v50 = vsel %vm968_vm0, %v6722_v60, %v2142_v31  ;;  %v6823_v52 = vsel %vm968_vm0, %v6720_v63, %v2141_v20  ;;  %v9047_v58 = vrot.slane %v6729_v25, 6  ;;  %v9114_v37 = vld [vmem:[#allocation70_spill] sm:$0xff]  ;;  %v9115_v45 = vld [vmem:[#allocation71_spill] sm:$0xff]  ;;  %v9116_v61 = vld [vmem:[#allocation72_spill] sm:$0xff] }
 0x16c   :  { %9044 = vst [vmem:[#allocation94_spill] sm:$0xff] %v6815_v35  ;;  %9045 = vst [vmem:[#allocation95_spill] sm:$0xff] %v6819_v50  ;;  %v9049_v29 = vrot.slane %v6734_v48, 6  ;;  %v9051_v46 = vrot.slane %v6732_v53, 6  ;;  %v2143_v8 = vrot.slane %v6775_v39, 4  ;;  %v9053_v20 = vrot.slane %v6736_v18, 6 }
 0x16d   :  { %9046 = vst [vmem:[#allocation96_spill] sm:$0xff] %v6823_v52  ;;  %v6828_v54 = vsel %vm968_vm0, %v9047_v58, %v1927_v32  ;;  %v9055_v25 = vrot.slane %v6718_v19, 2  ;;  %v2363_v48 = vrot.slane %v6769_v44, 2  ;;  %v2362_v47 = vrot.slane %v6771_v30, 2  ;;  %v9106_v52 = vld [vmem:[#allocation62_spill] sm:$0xff]  ;;  %v9107_v50 = vld [vmem:[#allocation63_spill] sm:$0xff] }
 0x16e   :  { %9048 = vst [vmem:[#allocation97_spill] sm:$0xff] %v6828_v54  ;;  %v6833_v62 = vsel %vm968_vm0, %v9049_v29, %v1929_v33  ;;  %v6838_v34 = vsel %vm968_vm0, %v9051_v46, %v1928_v56  ;;  %v6844_v31 = vsel %vm968_vm0, %v9053_v20, %v1930_v0  ;;  %v6855_v53 = vsel %vm968_vm0, %v6724_v7, %v2143_v8  ;;  %v9108_v35 = vld [vmem:[#allocation64_spill] sm:$0xff]  ;;  %v9113_v54 = vld [vmem:[#allocation69_spill] sm:$0xff] }
 0x16f   :  { %9050 = vst [vmem:[#allocation98_spill] sm:$0xff] %v6833_v62  ;;  %9052 = vst [vmem:[#allocation99_spill] sm:$0xff] %v6838_v34  ;;  %v6849_v23 = vsel %vm968_vm0, %v9055_v25, %v2361_v55  ;;  %v2364_v32 = vrot.slane %v6775_v39, 2  ;;  %v9058_v18 = vrot.slane %v6718_v19, 4  ;;  %v9060_v55 = vrot.slane %v6722_v60, 4  ;;  %v9111_v34 = vld [vmem:[#allocation67_spill] sm:$0xff] }
 0x170   :  { %9054 = vst [vmem:[#allocation100_spill] sm:$0xff] %v6844_v31  ;;  %9056 = vst [vmem:[#allocation101_spill] sm:$0xff] %v6849_v23  ;;  %v9062_v0 = vrot.slane %v6722_v60, 2  ;;  %v9064_v29 = vrot.slane %v6720_v63, 2  ;;  %v9066_v8 = vrot.slane %v6720_v63, 4  ;;  %v9068_v25 = vrot.slane %v6724_v7, 4 }
 0x171   :  { %9057 = vst [vmem:[#allocation102_spill] sm:$0xff] %v6855_v53  ;;  %v6862_v33 = vsel %vm968_vm0, %v9058_v18, %v6764_v15  ;;  %v6868_v56 = vsel %vm968_vm0, %v9060_v55, %v6769_v44  ;;  %v9104_v23 = vld [vmem:[#allocation60_spill] sm:$0xff]  ;;  %v9105_v53 = vld [vmem:[#allocation61_spill] sm:$0xff]  ;;  %v9110_v31 = vld [vmem:[#allocation66_spill] sm:$0xff] }
 0x172   :  { %9059 = vst [vmem:[#allocation103_spill] sm:$0xff] %v6862_v33  ;;  %9061 = vst [vmem:[#allocation104_spill] sm:$0xff] %v6868_v56  ;;  %v6873_v58 = vsel %vm968_vm0, %v9062_v0, %v2363_v48  ;;  %v6878_v46 = vsel %vm968_vm0, %v9064_v29, %v2362_v47  ;;  %v6884_v20 = vsel %vm968_vm0, %v9066_v8, %v6771_v30  ;;  %v9070_v48 = vrot.slane %v6724_v7, 2  ;;  %v9112_v62 = vld [vmem:[#allocation68_spill] sm:$0xff] }
 0x173   :  { %9063 = vst [vmem:[#allocation105_spill] sm:$0xff] %v6873_v58  ;;  %9065 = vst [vmem:[#allocation106_spill] sm:$0xff] %v6878_v46  ;;  %v6890_v18 = vsel %vm968_vm0, %v9068_v25, %v6775_v39  ;;  %v2787_v47 = vrot.slane %v6764_v15, 6  ;;  %v2789_v0 = vrot.slane %v6769_v44, 6  ;;  %v2788_v29 = vrot.slane %v6771_v30, 6  ;;  %v9102_v46 = vld [vmem:[#allocation58_spill] sm:$0xff] }
 0x174   :  { %9067 = vst [vmem:[#allocation107_spill] sm:$0xff] %v6884_v20  ;;  %9069 = vst [vmem:[#allocation108_spill] sm:$0xff] %v6890_v18  ;;  %v6895_v55 = vsel %vm968_vm0, %v9070_v48, %v2364_v32  ;;  %v2782_v8 = vrot.slane %v6724_v7, 6  ;;  %v2790_v20 = vrot.slane %v6775_v39, 6  ;;  %v9072_v56 = vrot.slane %v6718_v19, 6  ;;  %v9103_v58 = vld [vmem:[#allocation59_spill] sm:$0xff] }
 0x175   :  { %9071 = vst [vmem:[#allocation109_spill] sm:$0xff] %v6895_v55  ;;  %v9074_v18 = vrot.slane %v6722_v60, 6  ;;  %v9076_v15 = vrot.slane %v6720_v63, 6 }
 0x176   :  { %v6905_v25 = vsel %vm968_vm0, %v9072_v56, %v2787_v47  ;;  %v6918_v30 = vsel %vm968_vm0, %v2782_v8, %v2790_v20 }
 0x177   :  { %9073 = vst [vmem:[#allocation110_spill] sm:$0xff] %v6905_v25  ;;  %v6910_v32 = vsel %vm968_vm0, %v9074_v18, %v2789_v0  ;;  %v6915_v44 = vsel %vm968_vm0, %v9076_v15, %v2788_v29  ;;  %9078 = vst [vmem:[#allocation113_spill] sm:$0xff] %v6918_v30 }
 0x178   :  { %9075 = vst [vmem:[#allocation111_spill] sm:$0xff] %v6910_v32  ;;  %9077 = vst [vmem:[#allocation112_spill] sm:$0xff] %v6915_v44 }
 0x180   :  { %v1327_v7 = vpop.f32.mrb[8].mxu0  ;;  %v1368_v48 = vpop.f32.mrb[8].mxu1 }
 0x181   :  { %v1329_v39 = vpop.f32.mrb[9].mxu0  ;;  %v1370_v33 = vpop.f32.mrb[9].mxu1 }
 0x182   :  { %v1331_v19 = vpop.f32.mrb[10].mxu0  ;;  %v1372_v47 = vpop.f32.mrb[10].mxu1 }
 0x183   :  { %v1332_v56 = vpop.f32.mrb[11].mxu0  ;;  %v1373_v25 = vpop.f32.mrb[11].mxu1 }
 0x1a0   :  { %v1409_v60 = vpop.f32.mrb[12].mxu0  ;;  %v1450_v18 = vpop.f32.mrb[12].mxu1 }
 0x1a1   :  { %v1457_v63 = vsel %vm285_vm1, %v1327_v7, %v1409_v60  ;;  %v1411_v0 = vpop.f32.mrb[13].mxu0  ;;  %v1459_v20 = vsel %vm285_vm1, %v1368_v48, %v1450_v18  ;;  %v1452_v15 = vpop.f32.mrb[13].mxu1 }
 0x1a2   :  { %v1461_v29 = vadd.f32 %v1457_v63, %v969_v14  ;;  %v1458_v8 = vsel %vm285_vm1, %v1329_v39, %v1411_v0  ;;  %v1413_v19 = vpop.f32.mrb[14].mxu0  ;;  %v1463_v56 = vadd.f32 %v1459_v20, %v971_v21  ;;  %v1460_v25 = vsel %vm285_vm1, %v1370_v33, %v1452_v15  ;;  %v1454_v44 = vpop.f32.mrb[14].mxu1  ;;  %v9080_v15 = vld [vmem:[#allocation80_spill] sm:$0xff] }
 0x1a3   :  { %v1462_v47 = vadd.f32 %v1458_v8, %v970_v17  ;;  %v1414_v30 = vpop.f32.mrb[15].mxu0  ;;  %v1464_v7 = vadd.f32 %v1460_v25, %v972_v36  ;;  %v1455_v60 = vpop.f32.mrb[15].mxu1  ;;  %v9081_v19 = vld [vmem:[#allocation81_spill] sm:$0xff]  ;;  %v9084_v25 = vld [vmem:[#allocation84_spill] sm:$0xff] }
 0x1a4   :  { %v5754_v32 = vmul.f32 -1.442695, %v1461_v29  ;;  %v5756_v14 = vmul.f32 -1.442695, %v1463_v56  ;;  %v9082_v56 = vld [vmem:[#allocation82_spill] sm:$0xff] }
 0x1a5   :  { %v5755_v55 = vmul.f32 -1.442695, %v1462_v47  ;;  %v9083_v47 = vld [vmem:[#allocation83_spill] sm:$0xff]  ;;  %v9086_v60 = vld [vmem:[#allocation86_spill] sm:$0xff] }
 0x1a6   :  { %5850 = vpow2.f32 %v5754_v32 }
 0x1a7   :  { %5852 = vpow2.f32 %v5755_v55 }
 0x1a8   :  { %5854 = vpow2.f32 %v5756_v14  ;;  %v9087_v14 = vld [vmem:[#allocation87_spill] sm:$0xff] }
 0x1a9   :  { %5856 = vtanh.f32 %v1464_v7  ;;  %v9085_v7 = vld [vmem:[#allocation85_spill] sm:$0xff] }
 0x1b0   :  { %v5851_v48 = vpop.eup %5850 }
 0x1b1   :  { %v1474_v63 = vadd.f32 1.0, %v5851_v48  ;;  %v5853_v39 = vpop.eup %5852  ;;  %v9088_v48 = vld [vmem:[#allocation88_spill] sm:$0xff] }
 0x1b2   :  { %v1475_v21 = vadd.f32 1.0, %v5853_v39  ;;  %v5855_v17 = vpop.eup %5854  ;;  %v9090_v39 = vld [vmem:[#allocation46_spill] sm:$0xff] }
 0x1b3   :  { %5858 = vrcp.f32 %v1474_v63  ;;  %v5857_v18 = vpop.eup %5856  ;;  %v1476_v0 = vadd.f32 1.0, %v5855_v17  ;;  %v9089_v63 = vld [vmem:[#allocation89_spill] sm:$0xff]  ;;  %v9092_v17 = vld [vmem:[#allocation48_spill] sm:$0xff] }
 0x1b4   :  { %5860 = vrcp.f32 %v1475_v21  ;;  %v9091_v21 = vld [vmem:[#allocation47_spill] sm:$0xff] }
 0x1b5   :  { %5862 = vrcp.f32 %v1476_v0  ;;  %v9097_v0 = vld [vmem:[#allocation53_spill] sm:$0xff] }
 0x1bd   :  { %v5859_v33 = vpop.eup %5858 }
 0x1be   :  { %v1485_v30 = vmul.f32 %v5859_v33, %v5857_v18  ;;  %v5861_v44 = vpop.eup %5860  ;;  %v9093_v18 = vld [vmem:[#allocation49_spill] sm:$0xff]  ;;  %v9094_v33 = vld [vmem:[#allocation50_spill] sm:$0xff] }
 0x1bf   :  { %v1484_v36 = vmul.f32 0.0, %v5861_v44  ;;  %v5863_v55 = vpop.eup %5862  ;;  %v9096_v44 = vld [vmem:[#allocation52_spill] sm:$0xff] }
 0x1c1   :  { %v6929_v29 = vadd.f32 %v1485_v30, %v1484_v36  ;;  %v9095_v30 = vld [vmem:[#allocation51_spill] sm:$0xff]  ;;  %v9098_v36 = vld [vmem:[#allocation54_spill] sm:$0xff] }
 0x1c3   :  { %5864 = vtanh.f32 %v6929_v29 }
 0x1cd   :  { %v5865_v32 = vpop.eup %5864 }
 0x1ce   :  { %v6932_v20 = vmul.f32 %v5865_v32, %v5863_v55  ;;  %v9099_v55 = vld [vmem:[#allocation55_spill] sm:$0xff]  ;;  %v9100_v32 = vld [vmem:[#allocation56_spill] sm:$0xff] }
 0x1d0   :  { %9079 = vst [vmem:[#allocation114_spill] sm:$0xff] %v6932_v20  ;;  %v1513_v8 = vpack.c.bf16 %v6932_v20, %v6932_v20  ;;  %v9109_v20 = vld [vmem:[#allocation65_spill] sm:$0xff] }
 0x1d2   :  { %1547 = vmatmul.mubr.bf16.vlgmr.msra.gmra.mrb[16].mxu0 %v1513_v8  ;;  %1588 = vmatmul.mubr.bf16.vlgmr.msra.gmra.mrb[16].mxu1 %v1513_v8 }
 0x1d3   :  { %1597 = vmatpush1.bf16.msra.mxu0 %v6565_v24  ;;  %1638 = vmatpush1.bf16.msra.mxu1 %v6569_v26 }
 0x1d4   :  { %1598 = vmatprep.subr.bf16.mxu0 %v6571_v27  ;;  %1639 = vmatprep.subr.bf16.mxu1 %v6574_v28 }
 0x1d5   :  { %1628 = vmatprep.mubr.bf16.mxu0 %v9029_v16  ;;  %1669 = vmatprep.mubr.bf16.mxu1 %v9029_v16 }
 0x1d7   :  { %1599 = vmatpush1.bf16.msra.mxu0 %v6579_v40  ;;  %1640 = vmatpush1.bf16.msra.mxu1 %v6583_v41 }
 0x1d8   :  { %1600 = vmatprep.subr.bf16.mxu0 %v6585_v42  ;;  %1641 = vmatprep.subr.bf16.mxu1 %v6588_v43 }
 0x1db   :  { %1601 = vmatpush1.bf16.msra.mxu0 %v6593_v57  ;;  %1642 = vmatpush1.bf16.msra.mxu1 %v9080_v15 }
 0x1dc   :  { %1602 = vmatprep.subr.bf16.mxu0 %v9081_v19  ;;  %1643 = vmatprep.subr.bf16.mxu1 %v9082_v56 }
 0x1df   :  { %1603 = vmatpush1.bf16.msra.mxu0 %v9083_v47  ;;  %1644 = vmatpush1.bf16.msra.mxu1 %v9084_v25 }
 0x1e0   :  { %1604 = vmatprep.subr.bf16.mxu0 %v9085_v7  ;;  %1645 = vmatprep.subr.bf16.mxu1 %v9086_v60 }
 0x1e3   :  { %1605 = vmatpush1.bf16.msra.mxu0 %v6617_v6  ;;  %1646 = vmatpush1.bf16.msra.mxu1 %v6621_v5 }
 0x1e4   :  { %1606 = vmatprep.subr.bf16.mxu0 %v6623_v13  ;;  %1647 = vmatprep.subr.bf16.mxu1 %v9087_v14 }
 0x1e7   :  { %1607 = vmatpush1.bf16.msra.mxu0 %v6629_v4  ;;  %1648 = vmatpush1.bf16.msra.mxu1 %v6633_v3 }
 0x1e8   :  { %1608 = vmatprep.subr.bf16.mxu0 %v6635_v11  ;;  %1649 = vmatprep.subr.bf16.mxu1 %v6638_v12 }
 0x1eb   :  { %1609 = vmatpush1.bf16.msra.mxu0 %v6641_v2  ;;  %1650 = vmatpush1.bf16.msra.mxu1 %v6645_v1 }
 0x1ec   :  { %1610 = vmatprep.subr.bf16.mxu0 %v6647_v9  ;;  %1651 = vmatprep.subr.bf16.mxu1 %v6650_v10 }
 0x1ef   :  { %1611 = vmatpush1.bf16.msra.mxu0 %v9088_v48  ;;  %1652 = vmatpush1.bf16.msra.mxu1 %v9089_v63 }
 0x1f0   :  { %1723 = vmatprep.subr.bf16.mxu0 %v9090_v39  ;;  %1764 = vmatprep.subr.bf16.mxu1 %v9091_v21 }
 0x1f2   :  { %1629 = vmatmul.mubr.bf16.vlgmr.msra.gmra.mrb[20].mxu0 %v1513_v8  ;;  %1670 = vmatmul.mubr.bf16.vlgmr.msra.gmra.mrb[20].mxu1 %v1513_v8  ;;  %v9101_v8 = vld [vmem:[#allocation57_spill] sm:$0xff] }
 0x1f3   :  { %1724 = vmatpush1.bf16.msra.mxu0 %v9092_v17  ;;  %1765 = vmatpush1.bf16.msra.mxu1 %v9093_v18 }
 0x1f4   :  { %1725 = vmatprep.subr.bf16.mxu0 %v9094_v33  ;;  %1766 = vmatprep.subr.bf16.mxu1 %v9095_v30 }
 0x1f5   :  { %1755 = vmatprep.mubr.bf16.mxu0 %v9029_v16  ;;  %1796 = vmatprep.mubr.bf16.mxu1 %v9029_v16 }
 0x1f7   :  { %1726 = vmatpush1.bf16.msra.mxu0 %v9096_v44  ;;  %1767 = vmatpush1.bf16.msra.mxu1 %v9097_v0 }
 0x1f8   :  { %1727 = vmatprep.subr.bf16.mxu0 %v9098_v36  ;;  %1768 = vmatprep.subr.bf16.mxu1 %v9099_v55 }
 0x1fb   :  { %1728 = vmatpush1.bf16.msra.mxu0 %v9100_v32  ;;  %1769 = vmatpush1.bf16.msra.mxu1 %v9101_v8 }
 0x1fc   :  { %1729 = vmatprep.subr.bf16.mxu0 %v9102_v46  ;;  %1770 = vmatprep.subr.bf16.mxu1 %v9103_v58 }
 0x1ff   :  { %1730 = vmatpush1.bf16.msra.mxu0 %v9104_v23  ;;  %1771 = vmatpush1.bf16.msra.mxu1 %v9105_v53 }
 0x200   :  { %1731 = vmatprep.subr.bf16.mxu0 %v9106_v52  ;;  %1772 = vmatprep.subr.bf16.mxu1 %v9107_v50  ;;  %v9117_v52 = vld [vmem:[#allocation73_spill] sm:$0xff]  ;;  %v9118_v50 = vld [vmem:[#allocation74_spill] sm:$0xff] }
 0x203   :  { %1732 = vmatpush1.bf16.msra.mxu0 %v9108_v35  ;;  %1773 = vmatpush1.bf16.msra.mxu1 %v9109_v20  ;;  %v9119_v35 = vld [vmem:[#allocation75_spill] sm:$0xff]  ;;  %v9120_v20 = vld [vmem:[#allocation76_spill] sm:$0xff] }
 0x204   :  { %1733 = vmatprep.subr.bf16.mxu0 %v9110_v31  ;;  %1774 = vmatprep.subr.bf16.mxu1 %v9111_v34  ;;  %v9121_v31 = vld [vmem:[#allocation77_spill] sm:$0xff]  ;;  %v9122_v34 = vld [vmem:[#allocation78_spill] sm:$0xff] }
 0x207   :  { %1734 = vmatpush1.bf16.msra.mxu0 %v9112_v62  ;;  %1775 = vmatpush1.bf16.msra.mxu1 %v9113_v54  ;;  %v9123_v62 = vld [vmem:[#allocation79_spill] sm:$0xff] }
 0x208   :  { %1735 = vmatprep.subr.bf16.mxu0 %v9114_v37  ;;  %1776 = vmatprep.subr.bf16.mxu1 %v9115_v45 }
 0x20b   :  { %1736 = vmatpush1.bf16.msra.mxu0 %v9116_v61  ;;  %1777 = vmatpush1.bf16.msra.mxu1 %v9117_v52 }
 0x20c   :  { %1737 = vmatprep.subr.bf16.mxu0 %v9118_v50  ;;  %1778 = vmatprep.subr.bf16.mxu1 %v9119_v35 }
 0x20f   :  { %1738 = vmatpush1.bf16.msra.mxu0 %v9120_v20  ;;  %1779 = vmatpush1.bf16.msra.mxu1 %v9121_v31 }
 0x210   :  { %1805 = vmatprep.subr.bf16.mxu0 %v9122_v34  ;;  %1846 = vmatprep.subr.bf16.mxu1 %v9123_v62 }
 0x2a5   :  { %v1548_v54 = vpop.f32.mrb[16].mxu0  ;;  %v1589_v37 = vpop.f32.mrb[16].mxu1 }
 0x2a6   :  { %v1550_v53 = vpop.f32.mrb[17].mxu0  ;;  %v1591_v45 = vpop.f32.mrb[17].mxu1 }
 0x2a7   :  { %v1552_v23 = vpop.f32.mrb[18].mxu0  ;;  %v1593_v61 = vpop.f32.mrb[18].mxu1 }
 0x2a8   :  { %v1553_v58 = vpop.f32.mrb[19].mxu0  ;;  %v1594_v52 = vpop.f32.mrb[19].mxu1 }
 0x2c5   :  { %v1630_v46 = vpop.f32.mrb[20].mxu0  ;;  %v1671_v50 = vpop.f32.mrb[20].mxu1 }
 0x2c6   :  { %v1678_v35 = vsel %vm285_vm1, %v1548_v54, %v1630_v46  ;;  %v1680_v31 = vsel %vm285_vm1, %v1589_v37, %v1671_v50  ;;  %v1632_v20 = vpop.f32.mrb[21].mxu0  ;;  %v1673_v34 = vpop.f32.mrb[21].mxu1 }
 0x2c7   :  { %v1682_v62 = vadd.f32 %v1678_v35, %v6787_v22  ;;  %v1684_v8 = vadd.f32 %v1680_v31, %v6794_v51  ;;  %v1679_v23 = vsel %vm285_vm1, %v1550_v53, %v1632_v20  ;;  %v1681_v61 = vsel %vm285_vm1, %v1591_v45, %v1673_v34  ;;  %v1634_v52 = vpop.f32.mrb[22].mxu0  ;;  %v1675_v58 = vpop.f32.mrb[22].mxu1 }
 0x2c8   :  { %v1683_v32 = vadd.f32 %v1679_v23, %v6797_v49  ;;  %v1685_v54 = vadd.f32 %v1681_v61, %v6802_v38  ;;  %v1635_v46 = vpop.f32.mrb[23].mxu0  ;;  %v1676_v37 = vpop.f32.mrb[23].mxu1  ;;  %v9126_v58 = vld [vmem:[#allocation56_spill] sm:$0xff] }
 0x2c9   :  { %v5757_v50 = vmul.f32 -1.442695, %v1682_v62  ;;  %v5759_v22 = vmul.f32 -1.442695, %v1684_v8  ;;  %v9128_v46 = vld [vmem:[#allocation58_spill] sm:$0xff]  ;;  %v9129_v37 = vld [vmem:[#allocation59_spill] sm:$0xff] }
 0x2ca   :  { %v5758_v55 = vmul.f32 -1.442695, %v1683_v32 }
 0x2cb   :  { %5866 = vpow2.f32 %v5757_v50  ;;  %v9130_v50 = vld [vmem:[#allocation60_spill] sm:$0xff] }
 0x2cc   :  { %5868 = vpow2.f32 %v5758_v55 }
 0x2cd   :  { %5870 = vtanh.f32 %v1685_v54  ;;  %v9127_v54 = vld [vmem:[#allocation57_spill] sm:$0xff] }
 0x2ce   :  { %5872 = vpow2.f32 %v5759_v22  ;;  %v9131_v22 = vld [vmem:[#allocation61_spill] sm:$0xff] }
 0x2d5   :  { %v5867_v51 = vpop.eup %5866 }
 0x2d6   :  { %v1695_v35 = vadd.f32 1.0, %v5867_v51  ;;  %v5869_v31 = vpop.eup %5868  ;;  %v9132_v51 = vld [vmem:[#allocation62_spill] sm:$0xff] }
 0x2d7   :  { %v1696_v45 = vadd.f32 1.0, %v5869_v31  ;;  %v5871_v34 = vpop.eup %5870  ;;  %v9134_v31 = vld [vmem:[#allocation64_spill] sm:$0xff] }
 0x2d8   :  { %5874 = vrcp.f32 %v1695_v35  ;;  %v5873_v53 = vpop.eup %5872  ;;  %v9133_v35 = vld [vmem:[#allocation63_spill] sm:$0xff] }
 0x2d9   :  { %5876 = vrcp.f32 %v1696_v45  ;;  %v1697_v23 = vadd.f32 1.0, %v5873_v53  ;;  %v9135_v45 = vld [vmem:[#allocation65_spill] sm:$0xff]  ;;  %v9137_v53 = vld [vmem:[#allocation67_spill] sm:$0xff] }
 0x2db   :  { %5878 = vrcp.f32 %v1697_v23  ;;  %v9141_v23 = vld [vmem:[#allocation71_spill] sm:$0xff] }
 0x2e2   :  { %v5875_v49 = vpop.eup %5874 }
 0x2e3   :  { %v1706_v20 = vmul.f32 %v5875_v49, %v5871_v34  ;;  %v5877_v38 = vpop.eup %5876  ;;  %v9136_v34 = vld [vmem:[#allocation66_spill] sm:$0xff]  ;;  %v9138_v49 = vld [vmem:[#allocation68_spill] sm:$0xff] }
 0x2e4   :  { %v1705_v62 = vmul.f32 %v5877_v38, %v6929_v29  ;;  %v9125_v29 = vld [vmem:[#allocation55_spill] sm:$0xff]  ;;  %v9140_v38 = vld [vmem:[#allocation70_spill] sm:$0xff] }
 0x2e5   :  { %v5879_v55 = vpop.eup %5878 }
 0x2e6   :  { %v7017_v32 = vadd.f32 %v1706_v20, %v1705_v62  ;;  %v9139_v20 = vld [vmem:[#allocation69_spill] sm:$0xff]  ;;  %v9142_v62 = vld [vmem:[#allocation72_spill] sm:$0xff] }
 0x2e8   :  { %5880 = vtanh.f32 %v7017_v32 }
 0x2f2   :  { %v5881_v8 = vpop.eup %5880 }
 0x2f3   :  { %v7020_v61 = vmul.f32 %v5881_v8, %v5879_v55  ;;  %v9143_v55 = vld [vmem:[#allocation73_spill] sm:$0xff]  ;;  %v9144_v8 = vld [vmem:[#allocation74_spill] sm:$0xff] }
 0x2f5   :  { %9124 = vst [vmem:[#allocation80_spill] sm:$0xff] %v7020_v61  ;;  %v1722_v52 = vpack.c.bf16 %v7020_v61, %v7020_v61  ;;  %v9146_v61 = vld [vmem:[#allocation76_spill] sm:$0xff] }
 0x2f7   :  { %1756 = vmatmul.mubr.bf16.vlgmr.msra.gmra.mrb[24].mxu0 %v1722_v52  ;;  %1797 = vmatmul.mubr.bf16.vlgmr.msra.gmra.mrb[24].mxu1 %v1722_v52 }
 0x2f8   :  { %1806 = vmatpush1.bf16.msra.mxu0 %v6565_v24  ;;  %1847 = vmatpush1.bf16.msra.mxu1 %v6569_v26 }
 0x2f9   :  { %1807 = vmatprep.subr.bf16.mxu0 %v6571_v27  ;;  %1848 = vmatprep.subr.bf16.mxu1 %v6574_v28 }
 0x2fa   :  { %1837 = vmatprep.mubr.bf16.mxu0 %v9029_v16  ;;  %1878 = vmatprep.mubr.bf16.mxu1 %v9029_v16 }
 0x2fc   :  { %1808 = vmatpush1.bf16.msra.mxu0 %v6579_v40  ;;  %1849 = vmatpush1.bf16.msra.mxu1 %v6583_v41 }
 0x2fd   :  { %1809 = vmatprep.subr.bf16.mxu0 %v6585_v42  ;;  %1850 = vmatprep.subr.bf16.mxu1 %v6588_v43 }
 0x300   :  { %1810 = vmatpush1.bf16.msra.mxu0 %v6593_v57  ;;  %1851 = vmatpush1.bf16.msra.mxu1 %v9080_v15 }
 0x301   :  { %1811 = vmatprep.subr.bf16.mxu0 %v9081_v19  ;;  %1852 = vmatprep.subr.bf16.mxu1 %v9082_v56 }
 0x304   :  { %1812 = vmatpush1.bf16.msra.mxu0 %v9083_v47  ;;  %1853 = vmatpush1.bf16.msra.mxu1 %v9084_v25 }
 0x305   :  { %1813 = vmatprep.subr.bf16.mxu0 %v9085_v7  ;;  %1854 = vmatprep.subr.bf16.mxu1 %v9086_v60 }
 0x308   :  { %1814 = vmatpush1.bf16.msra.mxu0 %v6617_v6  ;;  %1855 = vmatpush1.bf16.msra.mxu1 %v6621_v5 }
 0x309   :  { %1815 = vmatprep.subr.bf16.mxu0 %v6623_v13  ;;  %1856 = vmatprep.subr.bf16.mxu1 %v9087_v14 }
 0x30c   :  { %1816 = vmatpush1.bf16.msra.mxu0 %v6629_v4  ;;  %1857 = vmatpush1.bf16.msra.mxu1 %v6633_v3 }
 0x30d   :  { %1817 = vmatprep.subr.bf16.mxu0 %v6635_v11  ;;  %1858 = vmatprep.subr.bf16.mxu1 %v6638_v12 }
 0x310   :  { %1818 = vmatpush1.bf16.msra.mxu0 %v6641_v2  ;;  %1859 = vmatpush1.bf16.msra.mxu1 %v6645_v1 }
 0x311   :  { %1819 = vmatprep.subr.bf16.mxu0 %v6647_v9  ;;  %1860 = vmatprep.subr.bf16.mxu1 %v6650_v10 }
 0x314   :  { %1820 = vmatpush1.bf16.msra.mxu0 %v9088_v48  ;;  %1861 = vmatpush1.bf16.msra.mxu1 %v9089_v63 }
 0x315   :  { %1940 = vmatprep.subr.bf16.mxu0 %v9090_v39  ;;  %1981 = vmatprep.subr.bf16.mxu1 %v9091_v21 }
 0x317   :  { %1838 = vmatmul.mubr.bf16.vlgmr.msra.gmra.mrb[28].mxu0 %v1722_v52  ;;  %1879 = vmatmul.mubr.bf16.vlgmr.msra.gmra.mrb[28].mxu1 %v1722_v52  ;;  %v9145_v52 = vld [vmem:[#allocation75_spill] sm:$0xff] }
 0x318   :  { %1941 = vmatpush1.bf16.msra.mxu0 %v9092_v17  ;;  %1982 = vmatpush1.bf16.msra.mxu1 %v9093_v18 }
 0x319   :  { %1942 = vmatprep.subr.bf16.mxu0 %v9094_v33  ;;  %1983 = vmatprep.subr.bf16.mxu1 %v9095_v30 }
 0x31a   :  { %1972 = vmatprep.mubr.bf16.mxu0 %v9029_v16  ;;  %2013 = vmatprep.mubr.bf16.mxu1 %v9029_v16 }
 0x31c   :  { %1943 = vmatpush1.bf16.msra.mxu0 %v9096_v44  ;;  %1984 = vmatpush1.bf16.msra.mxu1 %v9097_v0 }
 0x31d   :  { %1944 = vmatprep.subr.bf16.mxu0 %v9098_v36  ;;  %1985 = vmatprep.subr.bf16.mxu1 %v9125_v29 }
 0x320   :  { %1945 = vmatpush1.bf16.msra.mxu0 %v9126_v58  ;;  %1986 = vmatpush1.bf16.msra.mxu1 %v9127_v54 }
 0x321   :  { %1946 = vmatprep.subr.bf16.mxu0 %v9128_v46  ;;  %1987 = vmatprep.subr.bf16.mxu1 %v9129_v37  ;;  %v9152_v46 = vld [vmem:[#allocation92_spill] sm:$0xff] }
 0x324   :  { %1947 = vmatpush1.bf16.msra.mxu0 %v9130_v50  ;;  %1988 = vmatpush1.bf16.msra.mxu1 %v9131_v22  ;;  %v9150_v22 = vld [vmem:[#allocation90_spill] sm:$0xff]  ;;  %v9151_v50 = vld [vmem:[#allocation91_spill] sm:$0xff] }
 0x325   :  { %1948 = vmatprep.subr.bf16.mxu0 %v9132_v51  ;;  %1989 = vmatprep.subr.bf16.mxu1 %v9133_v35 }
 0x328   :  { %1949 = vmatpush1.bf16.msra.mxu0 %v9134_v31  ;;  %1990 = vmatpush1.bf16.msra.mxu1 %v9135_v45 }
 0x329   :  { %1950 = vmatprep.subr.bf16.mxu0 %v9136_v34  ;;  %1991 = vmatprep.subr.bf16.mxu1 %v9137_v53  ;;  %v9147_v34 = vld [vmem:[#allocation77_spill] sm:$0xff]  ;;  %v9148_v53 = vld [vmem:[#allocation78_spill] sm:$0xff] }
 0x32c   :  { %1951 = vmatpush1.bf16.msra.mxu0 %v9138_v49  ;;  %1992 = vmatpush1.bf16.msra.mxu1 %v9139_v20  ;;  %v9149_v49 = vld [vmem:[#allocation79_spill] sm:$0xff] }
 0x32d   :  { %1952 = vmatprep.subr.bf16.mxu0 %v9140_v38  ;;  %1993 = vmatprep.subr.bf16.mxu1 %v9141_v23 }
 0x330   :  { %1953 = vmatpush1.bf16.msra.mxu0 %v9142_v62  ;;  %1994 = vmatpush1.bf16.msra.mxu1 %v9143_v55 }
 0x331   :  { %1954 = vmatprep.subr.bf16.mxu0 %v9144_v8  ;;  %1995 = vmatprep.subr.bf16.mxu1 %v9145_v52 }
 0x334   :  { %1955 = vmatpush1.bf16.msra.mxu0 %v9146_v61  ;;  %1996 = vmatpush1.bf16.msra.mxu1 %v9147_v34 }
 0x335   :  { %2022 = vmatprep.subr.bf16.mxu0 %v9148_v53  ;;  %2063 = vmatprep.subr.bf16.mxu1 %v9149_v49 }
 0x3ca   :  { %v1757_v20 = vpop.f32.mrb[24].mxu0  ;;  %v1798_v38 = vpop.f32.mrb[24].mxu1 }
 0x3cb   :  { %v1759_v45 = vpop.f32.mrb[25].mxu0  ;;  %v1800_v23 = vpop.f32.mrb[25].mxu1 }
 0x3cc   :  { %v1761_v31 = vpop.f32.mrb[26].mxu0  ;;  %v1802_v62 = vpop.f32.mrb[26].mxu1 }
 0x3cd   :  { %v1762_v35 = vpop.f32.mrb[27].mxu0  ;;  %v1803_v55 = vpop.f32.mrb[27].mxu1 }
 0x3ea   :  { %v1839_v51 = vpop.f32.mrb[28].mxu0  ;;  %v1880_v8 = vpop.f32.mrb[28].mxu1 }
 0x3eb   :  { %v1887_v52 = vsel %vm285_vm1, %v1757_v20, %v1839_v51  ;;  %v1889_v34 = vsel %vm285_vm1, %v1798_v38, %v1880_v8  ;;  %v1841_v61 = vpop.f32.mrb[29].mxu0  ;;  %v1882_v53 = vpop.f32.mrb[29].mxu1  ;;  %v9153_v51 = vld [vmem:[#allocation93_spill] sm:$0xff] }
 0x3ec   :  { %v1891_v49 = vadd.f32 %v1887_v52, %v9150_v22  ;;  %v1893_v37 = vadd.f32 %v1889_v34, %v9151_v50  ;;  %v1888_v31 = vsel %vm285_vm1, %v1759_v45, %v1841_v61  ;;  %v1890_v35 = vsel %vm285_vm1, %v1800_v23, %v1882_v53  ;;  %v1843_v62 = vpop.f32.mrb[30].mxu0  ;;  %v1884_v55 = vpop.f32.mrb[30].mxu1 }
 0x3ed   :  { %v1892_v54 = vadd.f32 %v1888_v31, %v9152_v46  ;;  %v1894_v20 = vadd.f32 %v1890_v35, %v9153_v51  ;;  %v1844_v58 = vpop.f32.mrb[31].mxu0  ;;  %v1885_v38 = vpop.f32.mrb[31].mxu1  ;;  %v9155_v55 = vld [vmem:[#allocation56_spill] sm:$0xff]  ;;  %v9156_v51 = vld [vmem:[#allocation57_spill] sm:$0xff] }
 0x3ee   :  { %v5760_v8 = vmul.f32 -1.442695, %v1891_v49  ;;  %v5762_v22 = vmul.f32 -1.442695, %v1893_v37  ;;  %v9158_v38 = vld [vmem:[#allocation59_spill] sm:$0xff] }
 0x3ef   :  { %v5761_v29 = vmul.f32 -1.442695, %v1892_v54 }
 0x3f0   :  { %5882 = vpow2.f32 %v5760_v8  ;;  %v9159_v8 = vld [vmem:[#allocation60_spill] sm:$0xff] }
 0x3f1   :  { %5884 = vpow2.f32 %v5761_v29 }
 0x3f2   :  { %5886 = vtanh.f32 %v1894_v20  ;;  %v9157_v20 = vld [vmem:[#allocation58_spill] sm:$0xff] }
 0x3f3   :  { %5888 = vpow2.f32 %v5762_v22  ;;  %v9160_v22 = vld [vmem:[#allocation61_spill] sm:$0xff] }
 0x3fa   :  { %v5883_v50 = vpop.eup %5882 }
 0x3fb   :  { %v1904_v34 = vadd.f32 1.0, %v5883_v50  ;;  %v5885_v61 = vpop.eup %5884  ;;  %v9161_v50 = vld [vmem:[#allocation62_spill] sm:$0xff] }
 0x3fc   :  { %v1905_v45 = vadd.f32 1.0, %v5885_v61  ;;  %v5887_v53 = vpop.eup %5886  ;;  %v9163_v61 = vld [vmem:[#allocation64_spill] sm:$0xff] }
 0x3fd   :  { %5890 = vrcp.f32 %v1904_v34  ;;  %v5889_v23 = vpop.eup %5888  ;;  %v9162_v34 = vld [vmem:[#allocation63_spill] sm:$0xff] }
 0x3fe   :  { %5892 = vrcp.f32 %v1905_v45  ;;  %v1906_v58 = vadd.f32 1.0, %v5889_v23  ;;  %v9164_v45 = vld [vmem:[#allocation65_spill] sm:$0xff]  ;;  %v9166_v23 = vld [vmem:[#allocation67_spill] sm:$0xff] }
 0x400   :  { %5894 = vrcp.f32 %v1906_v58  ;;  %v9170_v58 = vld [vmem:[#allocation71_spill] sm:$0xff] }
 0x407   :  { %v5891_v46 = vpop.eup %5890 }
 0x408   :  { %v1915_v52 = vmul.f32 %v5891_v46, %v5887_v53  ;;  %v5893_v31 = vpop.eup %5892  ;;  %v9165_v53 = vld [vmem:[#allocation66_spill] sm:$0xff]  ;;  %v9167_v46 = vld [vmem:[#allocation68_spill] sm:$0xff] }
 0x409   :  { %v1914_v49 = vmul.f32 %v5893_v31, %v7017_v32  ;;  %v9154_v32 = vld [vmem:[#allocation55_spill] sm:$0xff]  ;;  %v9169_v31 = vld [vmem:[#allocation70_spill] sm:$0xff] }
 0x40a   :  { %v5895_v29 = vpop.eup %5894 }
 0x40b   :  { %v7105_v54 = vadd.f32 %v1915_v52, %v1914_v49  ;;  %v9168_v52 = vld [vmem:[#allocation69_spill] sm:$0xff]  ;;  %v9171_v49 = vld [vmem:[#allocation72_spill] sm:$0xff] }
 0x40d   :  { %5896 = vtanh.f32 %v7105_v54 }
 0x417   :  { %v5897_v37 = vpop.eup %5896 }
 0x418   :  { %v7108_v35 = vmul.f32 %v5897_v37, %v5895_v29  ;;  %v9172_v29 = vld [vmem:[#allocation73_spill] sm:$0xff]  ;;  %v9173_v37 = vld [vmem:[#allocation74_spill] sm:$0xff] }
 0x41a   :  { %v1939_v62 = vpack.c.bf16 %v7108_v35, %v7108_v35 }
 0x41c   :  { %1973 = vmatmul.mubr.bf16.vlgmr.msra.gmra.mrb[32].mxu0 %v1939_v62  ;;  %2014 = vmatmul.mubr.bf16.vlgmr.msra.gmra.mrb[32].mxu1 %v1939_v62 }
 0x41d   :  { %2023 = vmatpush1.bf16.msra.mxu0 %v6565_v24  ;;  %2064 = vmatpush1.bf16.msra.mxu1 %v6569_v26 }
 0x41e   :  { %2024 = vmatprep.subr.bf16.mxu0 %v6571_v27  ;;  %2065 = vmatprep.subr.bf16.mxu1 %v6574_v28 }
 0x41f   :  { %2054 = vmatprep.mubr.bf16.mxu0 %v9029_v16  ;;  %2095 = vmatprep.mubr.bf16.mxu1 %v9029_v16 }
 0x421   :  { %2025 = vmatpush1.bf16.msra.mxu0 %v6579_v40  ;;  %2066 = vmatpush1.bf16.msra.mxu1 %v6583_v41 }
 0x422   :  { %2026 = vmatprep.subr.bf16.mxu0 %v6585_v42  ;;  %2067 = vmatprep.subr.bf16.mxu1 %v6588_v43 }
 0x425   :  { %2027 = vmatpush1.bf16.msra.mxu0 %v6593_v57  ;;  %2068 = vmatpush1.bf16.msra.mxu1 %v9080_v15 }
 0x426   :  { %2028 = vmatprep.subr.bf16.mxu0 %v9081_v19  ;;  %2069 = vmatprep.subr.bf16.mxu1 %v9082_v56 }
 0x429   :  { %2029 = vmatpush1.bf16.msra.mxu0 %v9083_v47  ;;  %2070 = vmatpush1.bf16.msra.mxu1 %v9084_v25 }
 0x42a   :  { %2030 = vmatprep.subr.bf16.mxu0 %v9085_v7  ;;  %2071 = vmatprep.subr.bf16.mxu1 %v9086_v60 }
 0x42d   :  { %2031 = vmatpush1.bf16.msra.mxu0 %v6617_v6  ;;  %2072 = vmatpush1.bf16.msra.mxu1 %v6621_v5 }
 0x42e   :  { %2032 = vmatprep.subr.bf16.mxu0 %v6623_v13  ;;  %2073 = vmatprep.subr.bf16.mxu1 %v9087_v14 }
 0x431   :  { %2033 = vmatpush1.bf16.msra.mxu0 %v6629_v4  ;;  %2074 = vmatpush1.bf16.msra.mxu1 %v6633_v3 }
 0x432   :  { %2034 = vmatprep.subr.bf16.mxu0 %v6635_v11  ;;  %2075 = vmatprep.subr.bf16.mxu1 %v6638_v12 }
 0x435   :  { %2035 = vmatpush1.bf16.msra.mxu0 %v6641_v2  ;;  %2076 = vmatpush1.bf16.msra.mxu1 %v6645_v1 }
 0x436   :  { %2036 = vmatprep.subr.bf16.mxu0 %v6647_v9  ;;  %2077 = vmatprep.subr.bf16.mxu1 %v6650_v10 }
 0x439   :  { %2037 = vmatpush1.bf16.msra.mxu0 %v9088_v48  ;;  %2078 = vmatpush1.bf16.msra.mxu1 %v9089_v63 }
 0x43a   :  { %2153 = vmatprep.subr.bf16.mxu0 %v9090_v39  ;;  %2194 = vmatprep.subr.bf16.mxu1 %v9091_v21 }
 0x43c   :  { %2055 = vmatmul.mubr.bf16.vlgmr.msra.gmra.mrb[36].mxu0 %v1939_v62  ;;  %2096 = vmatmul.mubr.bf16.vlgmr.msra.gmra.mrb[36].mxu1 %v1939_v62  ;;  %v9174_v62 = vld [vmem:[#allocation75_spill] sm:$0xff] }
 0x43d   :  { %2154 = vmatpush1.bf16.msra.mxu0 %v9092_v17  ;;  %2195 = vmatpush1.bf16.msra.mxu1 %v9093_v18 }
 0x43e   :  { %2155 = vmatprep.subr.bf16.mxu0 %v9094_v33  ;;  %2196 = vmatprep.subr.bf16.mxu1 %v9095_v30 }
 0x43f   :  { %2185 = vmatprep.mubr.bf16.mxu0 %v9029_v16  ;;  %2226 = vmatprep.mubr.bf16.mxu1 %v9029_v16 }
 0x441   :  { %2156 = vmatpush1.bf16.msra.mxu0 %v9096_v44  ;;  %2197 = vmatpush1.bf16.msra.mxu1 %v9097_v0 }
 0x442   :  { %2157 = vmatprep.subr.bf16.mxu0 %v9098_v36  ;;  %2198 = vmatprep.subr.bf16.mxu1 %v9154_v32 }
 0x445   :  { %2158 = vmatpush1.bf16.msra.mxu0 %v9155_v55  ;;  %2199 = vmatpush1.bf16.msra.mxu1 %v9156_v51  ;;  %v9181_v51 = vld [vmem:[#allocation99_spill] sm:$0xff] }
 0x446   :  { %2159 = vmatprep.subr.bf16.mxu0 %v9157_v20  ;;  %2200 = vmatprep.subr.bf16.mxu1 %v9158_v38  ;;  %v9180_v38 = vld [vmem:[#allocation98_spill] sm:$0xff] }
 0x449   :  { %2160 = vmatpush1.bf16.msra.mxu0 %v9159_v8  ;;  %2201 = vmatpush1.bf16.msra.mxu1 %v9160_v22  ;;  %v9179_v8 = vld [vmem:[#allocation97_spill] sm:$0xff] }
 0x44a   :  { %2161 = vmatprep.subr.bf16.mxu0 %v9161_v50  ;;  %2202 = vmatprep.subr.bf16.mxu1 %v9162_v34 }
 0x44d   :  { %2162 = vmatpush1.bf16.msra.mxu0 %v9163_v61  ;;  %2203 = vmatpush1.bf16.msra.mxu1 %v9164_v45  ;;  %v9175_v45 = vld [vmem:[#allocation76_spill] sm:$0xff] }
 0x44e   :  { %2163 = vmatprep.subr.bf16.mxu0 %v9165_v53  ;;  %2204 = vmatprep.subr.bf16.mxu1 %v9166_v23  ;;  %v9176_v53 = vld [vmem:[#allocation77_spill] sm:$0xff]  ;;  %v9177_v23 = vld [vmem:[#allocation78_spill] sm:$0xff] }
 0x451   :  { %2164 = vmatpush1.bf16.msra.mxu0 %v9167_v46  ;;  %2205 = vmatpush1.bf16.msra.mxu1 %v9168_v52  ;;  %v9178_v46 = vld [vmem:[#allocation79_spill] sm:$0xff] }
 0x452   :  { %2165 = vmatprep.subr.bf16.mxu0 %v9169_v31  ;;  %2206 = vmatprep.subr.bf16.mxu1 %v9170_v58 }
 0x455   :  { %2166 = vmatpush1.bf16.msra.mxu0 %v9171_v49  ;;  %2207 = vmatpush1.bf16.msra.mxu1 %v9172_v29 }
 0x456   :  { %2167 = vmatprep.subr.bf16.mxu0 %v9173_v37  ;;  %2208 = vmatprep.subr.bf16.mxu1 %v9174_v62 }
 0x459   :  { %2168 = vmatpush1.bf16.msra.mxu0 %v9175_v45  ;;  %2209 = vmatpush1.bf16.msra.mxu1 %v9176_v53 }
 0x45a   :  { %2235 = vmatprep.subr.bf16.mxu0 %v9177_v23  ;;  %2276 = vmatprep.subr.bf16.mxu1 %v9178_v46 }
 0x4ef   :  { %v1974_v52 = vpop.f32.mrb[32].mxu0  ;;  %v2015_v31 = vpop.f32.mrb[32].mxu1 }
 0x4f0   :  { %v1976_v61 = vpop.f32.mrb[33].mxu0  ;;  %v2017_v58 = vpop.f32.mrb[33].mxu1 }
 0x4f1   :  { %v1978_v34 = vpop.f32.mrb[34].mxu0  ;;  %v2019_v49 = vpop.f32.mrb[34].mxu1 }
 0x4f2   :  { %v1979_v50 = vpop.f32.mrb[35].mxu0  ;;  %v2020_v29 = vpop.f32.mrb[35].mxu1 }
 0x50f   :  { %v2056_v22 = vpop.f32.mrb[36].mxu0  ;;  %v2097_v37 = vpop.f32.mrb[36].mxu1 }
 0x510   :  { %v2104_v62 = vsel %vm285_vm1, %v1974_v52, %v2056_v22  ;;  %v2106_v53 = vsel %vm285_vm1, %v2015_v31, %v2097_v37  ;;  %v2058_v45 = vpop.f32.mrb[37].mxu0  ;;  %v2099_v23 = vpop.f32.mrb[37].mxu1  ;;  %v9182_v22 = vld [vmem:[#allocation100_spill] sm:$0xff] }
 0x511   :  { %v2108_v46 = vadd.f32 %v2104_v62, %v9179_v8  ;;  %v2110_v20 = vadd.f32 %v2106_v53, %v9180_v38  ;;  %v2105_v34 = vsel %vm285_vm1, %v1976_v61, %v2058_v45  ;;  %v2107_v50 = vsel %vm285_vm1, %v2017_v58, %v2099_v23  ;;  %v2060_v49 = vpop.f32.mrb[38].mxu0  ;;  %v2101_v29 = vpop.f32.mrb[38].mxu1 }
 0x512   :  { %v2109_v55 = vadd.f32 %v2105_v34, %v9181_v51  ;;  %v2111_v52 = vadd.f32 %v2107_v50, %v9182_v22  ;;  %v2061_v32 = vpop.f32.mrb[39].mxu0  ;;  %v2102_v31 = vpop.f32.mrb[39].mxu1  ;;  %v3000_v29 = vrot.slane %v7108_v35, 4 }
 0x513   :  { %v5763_v37 = vmul.f32 -1.442695, %v2108_v46  ;;  %v5765_v8 = vmul.f32 -1.442695, %v2110_v20  ;;  %v9183_v20 = vld [vmem:[#allocation80_spill] sm:$0xff] }
 0x514   :  { %v5764_v36 = vmul.f32 -1.442695, %v2109_v55  ;;  %v2997_v50 = vrot.slane %v9183_v20, 6  ;;  %v9197_v20 = vld [vmem:[#allocation64_spill] sm:$0xff] }
 0x515   :  { %5898 = vpow2.f32 %v5763_v37 }
 0x516   :  { %5900 = vpow2.f32 %v5764_v36 }
 0x517   :  { %5902 = vtanh.f32 %v2111_v52  ;;  %v9184_v52 = vld [vmem:[#allocation114_spill] sm:$0xff] }
 0x518   :  { %5904 = vpow2.f32 %v5765_v8  ;;  %v3014_v31 = vsel %vm968_vm0, %v9184_v52, %v2997_v50  ;;  %v9209_v52 = vld [vmem:[#allocation76_spill] sm:$0xff] }
 0x51f   :  { %v5899_v38 = vpop.eup %5898 }
 0x520   :  { %v2121_v53 = vadd.f32 1.0, %v5899_v38  ;;  %v5901_v61 = vpop.eup %5900 }
 0x521   :  { %v2122_v45 = vadd.f32 1.0, %v5901_v61  ;;  %v5903_v23 = vpop.eup %5902 }
 0x522   :  { %5906 = vrcp.f32 %v2121_v53  ;;  %v5905_v58 = vpop.eup %5904 }
 0x523   :  { %5908 = vrcp.f32 %v2122_v45  ;;  %v2123_v32 = vadd.f32 1.0, %v5905_v58  ;;  %v9188_v45 = vld [vmem:[#allocation55_spill] sm:$0xff]  ;;  %v9190_v58 = vld [vmem:[#allocation57_spill] sm:$0xff] }
 0x525   :  { %5910 = vrcp.f32 %v2123_v32  ;;  %v9194_v32 = vld [vmem:[#allocation61_spill] sm:$0xff] }
 0x52c   :  { %v5907_v51 = vpop.eup %5906 }
 0x52d   :  { %v2132_v62 = vmul.f32 %v5907_v51, %v5903_v23  ;;  %v5909_v34 = vpop.eup %5908  ;;  %v9189_v23 = vld [vmem:[#allocation56_spill] sm:$0xff]  ;;  %v9191_v51 = vld [vmem:[#allocation58_spill] sm:$0xff] }
 0x52e   :  { %v2131_v46 = vmul.f32 %v5909_v34, %v7105_v54  ;;  %v3016_v54 = vsel %vm3015_vm2, %v3014_v31, %v3000_v29  ;;  %v9193_v34 = vld [vmem:[#allocation60_spill] sm:$0xff]  ;;  %v9200_v29 = vld [vmem:[#allocation67_spill] sm:$0xff]  ;;  %v9202_v31 = vld [vmem:[#allocation69_spill] sm:$0xff] }
 0x52f   :  { %v5911_v36 = vpop.eup %5910 }
 0x530   :  { %v7193_v55 = vadd.f32 %v2132_v62, %v2131_v46  ;;  %v9192_v62 = vld [vmem:[#allocation59_spill] sm:$0xff]  ;;  %v9195_v46 = vld [vmem:[#allocation62_spill] sm:$0xff] }
 0x532   :  { %5912 = vtanh.f32 %v7193_v55 }
 0x53c   :  { %v5913_v49 = vpop.eup %5912 }
 0x53d   :  { %v2135_v22 = vmul.f32 %v5913_v49, %v5911_v36  ;;  %v9196_v36 = vld [vmem:[#allocation63_spill] sm:$0xff]  ;;  %v9199_v49 = vld [vmem:[#allocation66_spill] sm:$0xff] }
 0x53f   :  { %v2152_v37 = vpack.c.bf16 %v2135_v22, %v2135_v22  ;;  %v3003_v8 = vrot.slane %v2135_v22, 2  ;;  %v9201_v22 = vld [vmem:[#allocation68_spill] sm:$0xff] }
 0x541   :  { %2186 = vmatmul.mubr.bf16.vlgmr.msra.gmra.mrb[40].mxu0 %v2152_v37  ;;  %v7202_v38 = vsel %vm3017_vm3, %v3016_v54, %v3003_v8  ;;  %v3031_v53 = vsel %vm968_vm0, %v3003_v8, %v7108_v35  ;;  %2227 = vmatmul.mubr.bf16.vlgmr.msra.gmra.mrb[40].mxu1 %v2152_v37  ;;  %v9187_v35 = vld [vmem:[#allocation54_spill] sm:$0xff]  ;;  %v9204_v8 = vld [vmem:[#allocation71_spill] sm:$0xff]  ;;  %v9205_v54 = vld [vmem:[#allocation72_spill] sm:$0xff] }
 0x542   :  { %9185 = vst [vmem:[#allocation81_spill] sm:$0xff] %v7202_v38  ;;  %v7207_v61 = vsel %vm3015_vm2, %v3031_v53, %v2997_v50  ;;  %2236 = vmatpush1.bf16.msra.mxu0 %v6565_v24  ;;  %2277 = vmatpush1.bf16.msra.mxu1 %v6569_v26  ;;  %v9198_v50 = vld [vmem:[#allocation65_spill] sm:$0xff]  ;;  %v9208_v38 = vld [vmem:[#allocation75_spill] sm:$0xff] }
 0x543   :  { %9186 = vst [vmem:[#allocation82_spill] sm:$0xff] %v7207_v61  ;;  %2237 = vmatprep.subr.bf16.mxu0 %v6571_v27  ;;  %2278 = vmatprep.subr.bf16.mxu1 %v6574_v28  ;;  %v9206_v53 = vld [vmem:[#allocation73_spill] sm:$0xff]  ;;  %v9207_v61 = vld [vmem:[#allocation74_spill] sm:$0xff] }
 0x544   :  { %2267 = vmatprep.mubr.bf16.mxu0 %v9029_v16  ;;  %2308 = vmatprep.mubr.bf16.mxu1 %v9029_v16 }
 0x546   :  { %2238 = vmatpush1.bf16.msra.mxu0 %v6579_v40  ;;  %2279 = vmatpush1.bf16.msra.mxu1 %v6583_v41 }
 0x547   :  { %2239 = vmatprep.subr.bf16.mxu0 %v6585_v42  ;;  %2280 = vmatprep.subr.bf16.mxu1 %v6588_v43 }
 0x54a   :  { %2240 = vmatpush1.bf16.msra.mxu0 %v6593_v57  ;;  %2281 = vmatpush1.bf16.msra.mxu1 %v9080_v15 }
 0x54b   :  { %2241 = vmatprep.subr.bf16.mxu0 %v9081_v19  ;;  %2282 = vmatprep.subr.bf16.mxu1 %v9082_v56 }
 0x54e   :  { %2242 = vmatpush1.bf16.msra.mxu0 %v9083_v47  ;;  %2283 = vmatpush1.bf16.msra.mxu1 %v9084_v25 }
 0x54f   :  { %2243 = vmatprep.subr.bf16.mxu0 %v9085_v7  ;;  %2284 = vmatprep.subr.bf16.mxu1 %v9086_v60 }
 0x552   :  { %2244 = vmatpush1.bf16.msra.mxu0 %v6617_v6  ;;  %2285 = vmatpush1.bf16.msra.mxu1 %v6621_v5 }
 0x553   :  { %2245 = vmatprep.subr.bf16.mxu0 %v6623_v13  ;;  %2286 = vmatprep.subr.bf16.mxu1 %v9087_v14 }
 0x556   :  { %2246 = vmatpush1.bf16.msra.mxu0 %v6629_v4  ;;  %2287 = vmatpush1.bf16.msra.mxu1 %v6633_v3 }
 0x557   :  { %2247 = vmatprep.subr.bf16.mxu0 %v6635_v11  ;;  %2288 = vmatprep.subr.bf16.mxu1 %v6638_v12 }
 0x55a   :  { %2248 = vmatpush1.bf16.msra.mxu0 %v6641_v2  ;;  %2289 = vmatpush1.bf16.msra.mxu1 %v6645_v1 }
 0x55b   :  { %2249 = vmatprep.subr.bf16.mxu0 %v6647_v9  ;;  %2290 = vmatprep.subr.bf16.mxu1 %v6650_v10 }
 0x55e   :  { %2250 = vmatpush1.bf16.msra.mxu0 %v9088_v48  ;;  %2291 = vmatpush1.bf16.msra.mxu1 %v9089_v63 }
 0x55f   :  { %2374 = vmatprep.subr.bf16.mxu0 %v9090_v39  ;;  %2415 = vmatprep.subr.bf16.mxu1 %v9091_v21 }
 0x561   :  { %2268 = vmatmul.mubr.bf16.vlgmr.msra.gmra.mrb[44].mxu0 %v2152_v37  ;;  %2309 = vmatmul.mubr.bf16.vlgmr.msra.gmra.mrb[44].mxu1 %v2152_v37  ;;  %v9203_v37 = vld [vmem:[#allocation70_spill] sm:$0xff] }
 0x562   :  { %2375 = vmatpush1.bf16.msra.mxu0 %v9092_v17  ;;  %2416 = vmatpush1.bf16.msra.mxu1 %v9093_v18 }
 0x563   :  { %2376 = vmatprep.subr.bf16.mxu0 %v9094_v33  ;;  %2417 = vmatprep.subr.bf16.mxu1 %v9095_v30 }
 0x564   :  { %2406 = vmatprep.mubr.bf16.mxu0 %v9029_v16  ;;  %2447 = vmatprep.mubr.bf16.mxu1 %v9029_v16 }
 0x566   :  { %2377 = vmatpush1.bf16.msra.mxu0 %v9096_v44  ;;  %2418 = vmatpush1.bf16.msra.mxu1 %v9097_v0 }
 0x567   :  { %2378 = vmatprep.subr.bf16.mxu0 %v9187_v35  ;;  %2419 = vmatprep.subr.bf16.mxu1 %v9188_v45 }
 0x56a   :  { %2379 = vmatpush1.bf16.msra.mxu0 %v9189_v23  ;;  %2420 = vmatpush1.bf16.msra.mxu1 %v9190_v58 }
 0x56b   :  { %2380 = vmatprep.subr.bf16.mxu0 %v9191_v51  ;;  %2421 = vmatprep.subr.bf16.mxu1 %v9192_v62  ;;  %v9215_v51 = vld [vmem:[#allocation96_spill] sm:$0xff] }
 0x56e   :  { %2381 = vmatpush1.bf16.msra.mxu0 %v9193_v34  ;;  %2422 = vmatpush1.bf16.msra.mxu1 %v9194_v32  ;;  %v9213_v32 = vld [vmem:[#allocation94_spill] sm:$0xff]  ;;  %v9214_v34 = vld [vmem:[#allocation95_spill] sm:$0xff] }
 0x56f   :  { %2382 = vmatprep.subr.bf16.mxu0 %v9195_v46  ;;  %2423 = vmatprep.subr.bf16.mxu1 %v9196_v36 }
 0x572   :  { %2383 = vmatpush1.bf16.msra.mxu0 %v9197_v20  ;;  %2424 = vmatpush1.bf16.msra.mxu1 %v9198_v50 }
 0x573   :  { %2384 = vmatprep.subr.bf16.mxu0 %v9199_v49  ;;  %2425 = vmatprep.subr.bf16.mxu1 %v9200_v29  ;;  %v9210_v49 = vld [vmem:[#allocation77_spill] sm:$0xff]  ;;  %v9211_v29 = vld [vmem:[#allocation78_spill] sm:$0xff] }
 0x576   :  { %2385 = vmatpush1.bf16.msra.mxu0 %v9201_v22  ;;  %2426 = vmatpush1.bf16.msra.mxu1 %v9202_v31  ;;  %v9212_v22 = vld [vmem:[#allocation79_spill] sm:$0xff] }
 0x577   :  { %2386 = vmatprep.subr.bf16.mxu0 %v9203_v37  ;;  %2427 = vmatprep.subr.bf16.mxu1 %v9204_v8 }
 0x57a   :  { %2387 = vmatpush1.bf16.msra.mxu0 %v9205_v54  ;;  %2428 = vmatpush1.bf16.msra.mxu1 %v9206_v53 }
 0x57b   :  { %2388 = vmatprep.subr.bf16.mxu0 %v9207_v61  ;;  %2429 = vmatprep.subr.bf16.mxu1 %v9208_v38 }
 0x57e   :  { %2389 = vmatpush1.bf16.msra.mxu0 %v9209_v52  ;;  %2430 = vmatpush1.bf16.msra.mxu1 %v9210_v49 }
 0x57f   :  { %2456 = vmatprep.subr.bf16.mxu0 %v9211_v29  ;;  %2497 = vmatprep.subr.bf16.mxu1 %v9212_v22 }
 0x614   :  { %v2187_v31 = vpop.f32.mrb[40].mxu0  ;;  %v2228_v37 = vpop.f32.mrb[40].mxu1 }
 0x615   :  { %v2189_v50 = vpop.f32.mrb[41].mxu0  ;;  %v2230_v8 = vpop.f32.mrb[41].mxu1 }
 0x616   :  { %v2191_v20 = vpop.f32.mrb[42].mxu0  ;;  %v2232_v54 = vpop.f32.mrb[42].mxu1 }
 0x617   :  { %v2192_v36 = vpop.f32.mrb[43].mxu0  ;;  %v2233_v53 = vpop.f32.mrb[43].mxu1 }
 0x634   :  { %v2269_v46 = vpop.f32.mrb[44].mxu0  ;;  %v2310_v61 = vpop.f32.mrb[44].mxu1 }
 0x635   :  { %v2317_v38 = vsel %vm285_vm1, %v2187_v31, %v2269_v46  ;;  %v2319_v49 = vsel %vm285_vm1, %v2228_v37, %v2310_v61  ;;  %v2271_v52 = vpop.f32.mrb[45].mxu0  ;;  %v2312_v29 = vpop.f32.mrb[45].mxu1  ;;  %v9216_v46 = vld [vmem:[#allocation102_spill] sm:$0xff] }
 0x636   :  { %v2321_v22 = vadd.f32 %v2317_v38, %v9213_v32  ;;  %v2323_v62 = vadd.f32 %v2319_v49, %v9214_v34  ;;  %v2318_v20 = vsel %vm285_vm1, %v2189_v50, %v2271_v52  ;;  %v2320_v36 = vsel %vm285_vm1, %v2230_v8, %v2312_v29  ;;  %v2273_v54 = vpop.f32.mrb[46].mxu0  ;;  %v2314_v53 = vpop.f32.mrb[46].mxu1 }
 0x637   :  { %v2322_v58 = vadd.f32 %v2318_v20, %v9215_v51  ;;  %v2324_v31 = vadd.f32 %v2320_v36, %v9216_v46  ;;  %v2274_v23 = vpop.f32.mrb[47].mxu0  ;;  %v2315_v61 = vpop.f32.mrb[47].mxu1  ;;  %v9219_v53 = vld [vmem:[#allocation56_spill] sm:$0xff]  ;;  %v9220_v46 = vld [vmem:[#allocation57_spill] sm:$0xff] }
 0x638   :  { %v5766_v37 = vmul.f32 -1.442695, %v2321_v22  ;;  %v5768_v38 = vmul.f32 -1.442695, %v2323_v62  ;;  %v9222_v61 = vld [vmem:[#allocation59_spill] sm:$0xff] }
 0x639   :  { %v5767_v45 = vmul.f32 -1.442695, %v2322_v58 }
 0x63a   :  { %5914 = vpow2.f32 %v5766_v37  ;;  %v9223_v37 = vld [vmem:[#allocation60_spill] sm:$0xff] }
 0x63b   :  { %5916 = vpow2.f32 %v5767_v45 }
 0x63c   :  { %5918 = vtanh.f32 %v2324_v31  ;;  %v9221_v31 = vld [vmem:[#allocation58_spill] sm:$0xff] }
 0x63d   :  { %5920 = vpow2.f32 %v5768_v38  ;;  %v9224_v38 = vld [vmem:[#allocation61_spill] sm:$0xff] }
 0x644   :  { %v5915_v34 = vpop.eup %5914 }
 0x645   :  { %v2334_v32 = vadd.f32 1.0, %v5915_v34  ;;  %v5917_v52 = vpop.eup %5916  ;;  %v9225_v34 = vld [vmem:[#allocation62_spill] sm:$0xff] }
 0x646   :  { %v2335_v50 = vadd.f32 1.0, %v5917_v52  ;;  %v5919_v49 = vpop.eup %5918  ;;  %v9227_v52 = vld [vmem:[#allocation64_spill] sm:$0xff] }
 0x647   :  { %5922 = vrcp.f32 %v2334_v32  ;;  %v5921_v29 = vpop.eup %5920  ;;  %v9226_v32 = vld [vmem:[#allocation63_spill] sm:$0xff] }
 0x648   :  { %5924 = vrcp.f32 %v2335_v50  ;;  %v2336_v23 = vadd.f32 1.0, %v5921_v29  ;;  %v9228_v50 = vld [vmem:[#allocation65_spill] sm:$0xff]  ;;  %v9230_v29 = vld [vmem:[#allocation67_spill] sm:$0xff] }
 0x64a   :  { %5926 = vrcp.f32 %v2336_v23  ;;  %v9234_v23 = vld [vmem:[#allocation71_spill] sm:$0xff] }
 0x651   :  { %v5923_v51 = vpop.eup %5922 }
 0x652   :  { %v2345_v8 = vmul.f32 %v5923_v51, %v5919_v49  ;;  %v5925_v20 = vpop.eup %5924  ;;  %v9229_v49 = vld [vmem:[#allocation66_spill] sm:$0xff]  ;;  %v9231_v51 = vld [vmem:[#allocation68_spill] sm:$0xff] }
 0x653   :  { %v2344_v22 = vmul.f32 %v5925_v20, %v7193_v55  ;;  %v9218_v55 = vld [vmem:[#allocation55_spill] sm:$0xff]  ;;  %v9233_v20 = vld [vmem:[#allocation70_spill] sm:$0xff] }
 0x654   :  { %v5927_v45 = vpop.eup %5926 }
 0x655   :  { %v7290_v58 = vadd.f32 %v2345_v8, %v2344_v22  ;;  %v9232_v8 = vld [vmem:[#allocation69_spill] sm:$0xff]  ;;  %v9235_v22 = vld [vmem:[#allocation72_spill] sm:$0xff] }
 0x657   :  { %5928 = vtanh.f32 %v7290_v58 }
 0x661   :  { %v5929_v62 = vpop.eup %5928 }
 0x662   :  { %v7293_v36 = vmul.f32 %v5929_v62, %v5927_v45  ;;  %v9236_v45 = vld [vmem:[#allocation73_spill] sm:$0xff]  ;;  %v9237_v62 = vld [vmem:[#allocation74_spill] sm:$0xff] }
 0x664   :  { %9217 = vst [vmem:[#allocation83_spill] sm:$0xff] %v7293_v36  ;;  %v2373_v54 = vpack.c.bf16 %v7293_v36, %v7293_v36  ;;  %v9239_v36 = vld [vmem:[#allocation76_spill] sm:$0xff] }
 0x666   :  { %2407 = vmatmul.mubr.bf16.vlgmr.msra.gmra.mrb[48].mxu0 %v2373_v54  ;;  %2448 = vmatmul.mubr.bf16.vlgmr.msra.gmra.mrb[48].mxu1 %v2373_v54 }
 0x667   :  { %2457 = vmatpush1.bf16.msra.mxu0 %v6565_v24  ;;  %2498 = vmatpush1.bf16.msra.mxu1 %v6569_v26 }
 0x668   :  { %2458 = vmatprep.subr.bf16.mxu0 %v6571_v27  ;;  %2499 = vmatprep.subr.bf16.mxu1 %v6574_v28 }
 0x669   :  { %2488 = vmatprep.mubr.bf16.mxu0 %v9029_v16  ;;  %2529 = vmatprep.mubr.bf16.mxu1 %v9029_v16 }
 0x66b   :  { %2459 = vmatpush1.bf16.msra.mxu0 %v6579_v40  ;;  %2500 = vmatpush1.bf16.msra.mxu1 %v6583_v41 }
 0x66c   :  { %2460 = vmatprep.subr.bf16.mxu0 %v6585_v42  ;;  %2501 = vmatprep.subr.bf16.mxu1 %v6588_v43 }
 0x66f   :  { %2461 = vmatpush1.bf16.msra.mxu0 %v6593_v57  ;;  %2502 = vmatpush1.bf16.msra.mxu1 %v9080_v15 }
 0x670   :  { %2462 = vmatprep.subr.bf16.mxu0 %v9081_v19  ;;  %2503 = vmatprep.subr.bf16.mxu1 %v9082_v56 }
 0x673   :  { %2463 = vmatpush1.bf16.msra.mxu0 %v9083_v47  ;;  %2504 = vmatpush1.bf16.msra.mxu1 %v9084_v25 }
 0x674   :  { %2464 = vmatprep.subr.bf16.mxu0 %v9085_v7  ;;  %2505 = vmatprep.subr.bf16.mxu1 %v9086_v60 }
 0x677   :  { %2465 = vmatpush1.bf16.msra.mxu0 %v6617_v6  ;;  %2506 = vmatpush1.bf16.msra.mxu1 %v6621_v5 }
 0x678   :  { %2466 = vmatprep.subr.bf16.mxu0 %v6623_v13  ;;  %2507 = vmatprep.subr.bf16.mxu1 %v9087_v14 }
 0x67b   :  { %2467 = vmatpush1.bf16.msra.mxu0 %v6629_v4  ;;  %2508 = vmatpush1.bf16.msra.mxu1 %v6633_v3 }
 0x67c   :  { %2468 = vmatprep.subr.bf16.mxu0 %v6635_v11  ;;  %2509 = vmatprep.subr.bf16.mxu1 %v6638_v12 }
 0x67f   :  { %2469 = vmatpush1.bf16.msra.mxu0 %v6641_v2  ;;  %2510 = vmatpush1.bf16.msra.mxu1 %v6645_v1 }
 0x680   :  { %2470 = vmatprep.subr.bf16.mxu0 %v6647_v9  ;;  %2511 = vmatprep.subr.bf16.mxu1 %v6650_v10 }
 0x683   :  { %2471 = vmatpush1.bf16.msra.mxu0 %v9088_v48  ;;  %2512 = vmatpush1.bf16.msra.mxu1 %v9089_v63 }
 0x684   :  { %2583 = vmatprep.subr.bf16.mxu0 %v9090_v39  ;;  %2624 = vmatprep.subr.bf16.mxu1 %v9091_v21 }
 0x686   :  { %2489 = vmatmul.mubr.bf16.vlgmr.msra.gmra.mrb[52].mxu0 %v2373_v54  ;;  %2530 = vmatmul.mubr.bf16.vlgmr.msra.gmra.mrb[52].mxu1 %v2373_v54  ;;  %v9238_v54 = vld [vmem:[#allocation75_spill] sm:$0xff] }
 0x687   :  { %2584 = vmatpush1.bf16.msra.mxu0 %v9092_v17  ;;  %2625 = vmatpush1.bf16.msra.mxu1 %v9093_v18 }
 0x688   :  { %2585 = vmatprep.subr.bf16.mxu0 %v9094_v33  ;;  %2626 = vmatprep.subr.bf16.mxu1 %v9095_v30 }
 0x689   :  { %2615 = vmatprep.mubr.bf16.mxu0 %v9029_v16  ;;  %2656 = vmatprep.mubr.bf16.mxu1 %v9029_v16 }
 0x68b   :  { %2586 = vmatpush1.bf16.msra.mxu0 %v9096_v44  ;;  %2627 = vmatpush1.bf16.msra.mxu1 %v9097_v0 }
 0x68c   :  { %2587 = vmatprep.subr.bf16.mxu0 %v9187_v35  ;;  %2628 = vmatprep.subr.bf16.mxu1 %v9218_v55 }
 0x68f   :  { %2588 = vmatpush1.bf16.msra.mxu0 %v9219_v53  ;;  %2629 = vmatpush1.bf16.msra.mxu1 %v9220_v46 }
 0x690   :  { %2589 = vmatprep.subr.bf16.mxu0 %v9221_v31  ;;  %2630 = vmatprep.subr.bf16.mxu1 %v9222_v61  ;;  %v9245_v31 = vld [vmem:[#allocation106_spill] sm:$0xff] }
 0x693   :  { %2590 = vmatpush1.bf16.msra.mxu0 %v9223_v37  ;;  %2631 = vmatpush1.bf16.msra.mxu1 %v9224_v38  ;;  %v9243_v38 = vld [vmem:[#allocation101_spill] sm:$0xff] }
 0x694   :  { %2591 = vmatprep.subr.bf16.mxu0 %v9225_v34  ;;  %2632 = vmatprep.subr.bf16.mxu1 %v9226_v32  ;;  %v9244_v37 = vld [vmem:[#allocation105_spill] sm:$0xff] }
 0x697   :  { %2592 = vmatpush1.bf16.msra.mxu0 %v9227_v52  ;;  %2633 = vmatpush1.bf16.msra.mxu1 %v9228_v50 }
 0x698   :  { %2593 = vmatprep.subr.bf16.mxu0 %v9229_v49  ;;  %2634 = vmatprep.subr.bf16.mxu1 %v9230_v29  ;;  %v9240_v49 = vld [vmem:[#allocation77_spill] sm:$0xff]  ;;  %v9241_v29 = vld [vmem:[#allocation78_spill] sm:$0xff] }
 0x69b   :  { %2594 = vmatpush1.bf16.msra.mxu0 %v9231_v51  ;;  %2635 = vmatpush1.bf16.msra.mxu1 %v9232_v8  ;;  %v9242_v51 = vld [vmem:[#allocation79_spill] sm:$0xff] }
 0x69c   :  { %2595 = vmatprep.subr.bf16.mxu0 %v9233_v20  ;;  %2636 = vmatprep.subr.bf16.mxu1 %v9234_v23 }
 0x69f   :  { %2596 = vmatpush1.bf16.msra.mxu0 %v9235_v22  ;;  %2637 = vmatpush1.bf16.msra.mxu1 %v9236_v45 }
 0x6a0   :  { %2597 = vmatprep.subr.bf16.mxu0 %v9237_v62  ;;  %2638 = vmatprep.subr.bf16.mxu1 %v9238_v54 }
 0x6a3   :  { %2598 = vmatpush1.bf16.msra.mxu0 %v9239_v36  ;;  %2639 = vmatpush1.bf16.msra.mxu1 %v9240_v49 }
 0x6a4   :  { %2665 = vmatprep.subr.bf16.mxu0 %v9241_v29  ;;  %2706 = vmatprep.subr.bf16.mxu1 %v9242_v51 }
 0x739   :  { %v2408_v8 = vpop.f32.mrb[48].mxu0  ;;  %v2449_v20 = vpop.f32.mrb[48].mxu1 }
 0x73a   :  { %v2410_v50 = vpop.f32.mrb[49].mxu0  ;;  %v2451_v23 = vpop.f32.mrb[49].mxu1 }
 0x73b   :  { %v2412_v52 = vpop.f32.mrb[50].mxu0  ;;  %v2453_v22 = vpop.f32.mrb[50].mxu1 }
 0x73c   :  { %v2413_v32 = vpop.f32.mrb[51].mxu0  ;;  %v2454_v45 = vpop.f32.mrb[51].mxu1 }
 0x759   :  { %v2490_v34 = vpop.f32.mrb[52].mxu0  ;;  %v2531_v62 = vpop.f32.mrb[52].mxu1 }
 0x75a   :  { %v2538_v54 = vsel %vm285_vm1, %v2408_v8, %v2490_v34  ;;  %v2540_v49 = vsel %vm285_vm1, %v2449_v20, %v2531_v62  ;;  %v2492_v36 = vpop.f32.mrb[53].mxu0  ;;  %v2533_v29 = vpop.f32.mrb[53].mxu1  ;;  %v9246_v34 = vld [vmem:[#allocation109_spill] sm:$0xff] }
 0x75b   :  { %v2542_v51 = vadd.f32 %v2538_v54, %v9243_v38  ;;  %v2544_v61 = vadd.f32 %v2540_v49, %v9244_v37  ;;  %v2539_v52 = vsel %vm285_vm1, %v2410_v50, %v2492_v36  ;;  %v2541_v32 = vsel %vm285_vm1, %v2451_v23, %v2533_v29  ;;  %v2494_v22 = vpop.f32.mrb[54].mxu0  ;;  %v2535_v45 = vpop.f32.mrb[54].mxu1 }
 0x75c   :  { %v2543_v46 = vadd.f32 %v2539_v52, %v9245_v31  ;;  %v2545_v8 = vadd.f32 %v2541_v32, %v9246_v34  ;;  %v2495_v53 = vpop.f32.mrb[55].mxu0  ;;  %v2536_v20 = vpop.f32.mrb[55].mxu1  ;;  %v9254_v45 = vld [vmem:[#allocation62_spill] sm:$0xff] }
 0x75d   :  { %v5769_v62 = vmul.f32 -1.442695, %v2542_v51  ;;  %v5771_v38 = vmul.f32 -1.442695, %v2544_v61  ;;  %v9258_v34 = vld [vmem:[#allocation66_spill] sm:$0xff]  ;;  %v9260_v20 = vld [vmem:[#allocation68_spill] sm:$0xff] }
 0x75e   :  { %v5770_v55 = vmul.f32 -1.442695, %v2543_v46 }
 0x75f   :  { %5930 = vpow2.f32 %v5769_v62  ;;  %v9261_v62 = vld [vmem:[#allocation69_spill] sm:$0xff] }
 0x760   :  { %5932 = vpow2.f32 %v5770_v55 }
 0x761   :  { %5934 = vtanh.f32 %v2545_v8  ;;  %v9259_v8 = vld [vmem:[#allocation67_spill] sm:$0xff] }
 0x762   :  { %5936 = vpow2.f32 %v5771_v38  ;;  %v9262_v38 = vld [vmem:[#allocation70_spill] sm:$0xff] }
 0x769   :  { %v5931_v37 = vpop.eup %5930 }
 0x76a   :  { %v2555_v49 = vadd.f32 1.0, %v5931_v37  ;;  %v5933_v36 = vpop.eup %5932  ;;  %v9263_v37 = vld [vmem:[#allocation71_spill] sm:$0xff] }
 0x76b   :  { %v2556_v50 = vadd.f32 1.0, %v5933_v36  ;;  %v5935_v29 = vpop.eup %5934  ;;  %v9265_v36 = vld [vmem:[#allocation73_spill] sm:$0xff] }
 0x76c   :  { %5938 = vrcp.f32 %v2555_v49  ;;  %v5937_v23 = vpop.eup %5936  ;;  %v9264_v49 = vld [vmem:[#allocation72_spill] sm:$0xff] }
 0x76d   :  { %5940 = vrcp.f32 %v2556_v50  ;;  %v2557_v53 = vadd.f32 1.0, %v5937_v23  ;;  %v9266_v50 = vld [vmem:[#allocation74_spill] sm:$0xff]  ;;  %v9268_v23 = vld [vmem:[#allocation76_spill] sm:$0xff] }
 0x76f   :  { %5942 = vrcp.f32 %v2557_v53 }
 0x776   :  { %v5939_v31 = vpop.eup %5938 }
 0x777   :  { %v2566_v54 = vmul.f32 %v5939_v31, %v5935_v29  ;;  %v5941_v52 = vpop.eup %5940  ;;  %v9267_v29 = vld [vmem:[#allocation75_spill] sm:$0xff]  ;;  %v9269_v31 = vld [vmem:[#allocation77_spill] sm:$0xff] }
 0x778   :  { %v2565_v51 = vmul.f32 %v5941_v52, %v7290_v58  ;;  %v9253_v58 = vld [vmem:[#allocation61_spill] sm:$0xff]  ;;  %v9271_v52 = vld [vmem:[#allocation79_spill] sm:$0xff] }
 0x779   :  { %v5943_v55 = vpop.eup %5942 }
 0x77a   :  { %v7378_v46 = vadd.f32 %v2566_v54, %v2565_v51  ;;  %v9270_v54 = vld [vmem:[#allocation78_spill] sm:$0xff] }
 0x77c   :  { %5944 = vtanh.f32 %v7378_v46 }
 0x786   :  { %v5945_v61 = vpop.eup %5944 }
 0x787   :  { %v7381_v32 = vmul.f32 %v5945_v61, %v5943_v55 }
 0x789   :  { %v2582_v22 = vpack.c.bf16 %v7381_v32, %v7381_v32 }
 0x78b   :  { %2616 = vmatmul.mubr.bf16.vlgmr.msra.gmra.mrb[56].mxu0 %v2582_v22  ;;  %2657 = vmatmul.mubr.bf16.vlgmr.msra.gmra.mrb[56].mxu1 %v2582_v22 }
 0x78c   :  { %2666 = vmatpush1.bf16.msra.mxu0 %v6565_v24  ;;  %2707 = vmatpush1.bf16.msra.mxu1 %v6569_v26 }
 0x78d   :  { %2667 = vmatprep.subr.bf16.mxu0 %v6571_v27  ;;  %2708 = vmatprep.subr.bf16.mxu1 %v6574_v28 }
 0x78e   :  { %2697 = vmatprep.mubr.bf16.mxu0 %v9029_v16  ;;  %2738 = vmatprep.mubr.bf16.mxu1 %v9029_v16 }
 0x790   :  { %2668 = vmatpush1.bf16.msra.mxu0 %v6579_v40  ;;  %2709 = vmatpush1.bf16.msra.mxu1 %v6583_v41 }
 0x791   :  { %2669 = vmatprep.subr.bf16.mxu0 %v6585_v42  ;;  %2710 = vmatprep.subr.bf16.mxu1 %v6588_v43 }
 0x794   :  { %2670 = vmatpush1.bf16.msra.mxu0 %v6593_v57  ;;  %2711 = vmatpush1.bf16.msra.mxu1 %v9080_v15 }
 0x795   :  { %2671 = vmatprep.subr.bf16.mxu0 %v9081_v19  ;;  %2712 = vmatprep.subr.bf16.mxu1 %v9082_v56 }
 0x798   :  { %2672 = vmatpush1.bf16.msra.mxu0 %v9083_v47  ;;  %2713 = vmatpush1.bf16.msra.mxu1 %v9084_v25 }
 0x799   :  { %2673 = vmatprep.subr.bf16.mxu0 %v9085_v7  ;;  %2714 = vmatprep.subr.bf16.mxu1 %v9086_v60 }
 0x79c   :  { %2674 = vmatpush1.bf16.msra.mxu0 %v6617_v6  ;;  %2715 = vmatpush1.bf16.msra.mxu1 %v6621_v5 }
 0x79d   :  { %2675 = vmatprep.subr.bf16.mxu0 %v6623_v13  ;;  %2716 = vmatprep.subr.bf16.mxu1 %v9087_v14 }
 0x7a0   :  { %2676 = vmatpush1.bf16.msra.mxu0 %v6629_v4  ;;  %2717 = vmatpush1.bf16.msra.mxu1 %v6633_v3 }
 0x7a1   :  { %2677 = vmatprep.subr.bf16.mxu0 %v6635_v11  ;;  %2718 = vmatprep.subr.bf16.mxu1 %v6638_v12 }
 0x7a4   :  { %2678 = vmatpush1.bf16.msra.mxu0 %v6641_v2  ;;  %2719 = vmatpush1.bf16.msra.mxu1 %v6645_v1 }
 0x7a5   :  { %2679 = vmatprep.subr.bf16.mxu0 %v6647_v9  ;;  %2720 = vmatprep.subr.bf16.mxu1 %v6650_v10 }
 0x7a8   :  { %2680 = vmatpush1.bf16.msra.mxu0 %v9088_v48  ;;  %2721 = vmatpush1.bf16.msra.mxu1 %v9089_v63 }
 0x7a9   :  { %2800 = vmatprep.subr.bf16.mxu0 %v9090_v39  ;;  %2841 = vmatprep.subr.bf16.mxu1 %v9091_v21  ;;  %v9247_v39 = vld [vmem:[#allocation55_spill] sm:$0xff]  ;;  %v9248_v21 = vld [vmem:[#allocation56_spill] sm:$0xff] }
 0x7ab   :  { %2698 = vmatmul.mubr.bf16.vlgmr.msra.gmra.mrb[60].mxu0 %v2582_v22  ;;  %2739 = vmatmul.mubr.bf16.vlgmr.msra.gmra.mrb[60].mxu1 %v2582_v22 }
 0x7ac   :  { %2801 = vmatpush1.bf16.msra.mxu0 %v9092_v17  ;;  %2842 = vmatpush1.bf16.msra.mxu1 %v9093_v18  ;;  %v9249_v17 = vld [vmem:[#allocation57_spill] sm:$0xff]  ;;  %v9250_v18 = vld [vmem:[#allocation58_spill] sm:$0xff] }
 0x7ad   :  { %2802 = vmatprep.subr.bf16.mxu0 %v9094_v33  ;;  %2843 = vmatprep.subr.bf16.mxu1 %v9095_v30  ;;  %v9251_v33 = vld [vmem:[#allocation59_spill] sm:$0xff]  ;;  %v9252_v30 = vld [vmem:[#allocation60_spill] sm:$0xff] }
 0x7ae   :  { %2832 = vmatprep.mubr.bf16.mxu0 %v9029_v16  ;;  %2873 = vmatprep.mubr.bf16.mxu1 %v9029_v16 }
 0x7b0   :  { %2803 = vmatpush1.bf16.msra.mxu0 %v9096_v44  ;;  %2844 = vmatpush1.bf16.msra.mxu1 %v9097_v0  ;;  %v9255_v44 = vld [vmem:[#allocation63_spill] sm:$0xff]  ;;  %v9256_v0 = vld [vmem:[#allocation64_spill] sm:$0xff] }
 0x7b1   :  { %2804 = vmatprep.subr.bf16.mxu0 %v9187_v35  ;;  %2845 = vmatprep.subr.bf16.mxu1 %v9247_v39  ;;  %v9257_v35 = vld [vmem:[#allocation65_spill] sm:$0xff] }
 0x7b4   :  { %2805 = vmatpush1.bf16.msra.mxu0 %v9248_v21  ;;  %2846 = vmatpush1.bf16.msra.mxu1 %v9249_v17 }
 0x7b5   :  { %2806 = vmatprep.subr.bf16.mxu0 %v9250_v18  ;;  %2847 = vmatprep.subr.bf16.mxu1 %v9251_v33 }
 0x7b8   :  { %2807 = vmatpush1.bf16.msra.mxu0 %v9252_v30  ;;  %2848 = vmatpush1.bf16.msra.mxu1 %v9253_v58 }
 0x7b9   :  { %2808 = vmatprep.subr.bf16.mxu0 %v9254_v45  ;;  %2849 = vmatprep.subr.bf16.mxu1 %v9255_v44 }
 0x7bc   :  { %2809 = vmatpush1.bf16.msra.mxu0 %v9256_v0  ;;  %2850 = vmatpush1.bf16.msra.mxu1 %v9257_v35  ;;  %v9272_v0 = vld [vmem:[#allocation103_spill] sm:$0xff] }
 0x7bd   :  { %2810 = vmatprep.subr.bf16.mxu0 %v9258_v34  ;;  %2851 = vmatprep.subr.bf16.mxu1 %v9259_v8  ;;  %v9273_v34 = vld [vmem:[#allocation104_spill] sm:$0xff] }
 0x7c0   :  { %2811 = vmatpush1.bf16.msra.mxu0 %v9260_v20  ;;  %2852 = vmatpush1.bf16.msra.mxu1 %v9261_v62 }
 0x7c1   :  { %2812 = vmatprep.subr.bf16.mxu0 %v9262_v38  ;;  %2853 = vmatprep.subr.bf16.mxu1 %v9263_v37 }
 0x7c4   :  { %2813 = vmatpush1.bf16.msra.mxu0 %v9264_v49  ;;  %2854 = vmatpush1.bf16.msra.mxu1 %v9265_v36  ;;  %v9274_v49 = vld [vmem:[#allocation107_spill] sm:$0xff] }
 0x7c5   :  { %2814 = vmatprep.subr.bf16.mxu0 %v9266_v50  ;;  %2855 = vmatprep.subr.bf16.mxu1 %v9267_v29  ;;  %v9275_v50 = vld [vmem:[#allocation108_spill] sm:$0xff] }
 0x7c8   :  { %2815 = vmatpush1.bf16.msra.mxu0 %v9268_v23  ;;  %2856 = vmatpush1.bf16.msra.mxu1 %v9269_v31 }
 0x7c9   :  { %2882 = vmatprep.subr.bf16.mxu0 %v9270_v54  ;;  %2923 = vmatprep.subr.bf16.mxu1 %v9271_v52 }
 0x85e   :  { %v2617_v53 = vpop.f32.mrb[56].mxu0  ;;  %v2658_v51 = vpop.f32.mrb[56].mxu1 }
 0x85f   :  { %v2619_v55 = vpop.f32.mrb[57].mxu0  ;;  %v2660_v61 = vpop.f32.mrb[57].mxu1 }
 0x860   :  { %v2621_v22 = vpop.f32.mrb[58].mxu0  ;;  %v2662_v39 = vpop.f32.mrb[58].mxu1 }
 0x861   :  { %v2622_v21 = vpop.f32.mrb[59].mxu0  ;;  %v2663_v17 = vpop.f32.mrb[59].mxu1 }
 0x87e   :  { %v2699_v18 = vpop.f32.mrb[60].mxu0  ;;  %v2740_v33 = vpop.f32.mrb[60].mxu1 }
 0x87f   :  { %v2747_v30 = vsel %vm285_vm1, %v2617_v53, %v2699_v18  ;;  %v2749_v58 = vsel %vm285_vm1, %v2658_v51, %v2740_v33  ;;  %v2701_v45 = vpop.f32.mrb[61].mxu0  ;;  %v2742_v44 = vpop.f32.mrb[61].mxu1 }
 0x880   :  { %v2751_v35 = vadd.f32 %v2747_v30, %v9272_v0  ;;  %v2753_v8 = vadd.f32 %v2749_v58, %v9273_v34  ;;  %v2748_v20 = vsel %vm285_vm1, %v2619_v55, %v2701_v45  ;;  %v2750_v62 = vsel %vm285_vm1, %v2660_v61, %v2742_v44  ;;  %v2703_v38 = vpop.f32.mrb[62].mxu0  ;;  %v2744_v37 = vpop.f32.mrb[62].mxu1 }
 0x881   :  { %v2752_v36 = vadd.f32 %v2748_v20, %v9274_v49  ;;  %v2754_v29 = vadd.f32 %v2750_v62, %v9275_v50  ;;  %v2704_v23 = vpop.f32.mrb[63].mxu0  ;;  %v2745_v31 = vpop.f32.mrb[63].mxu1 }
 0x882   :  { %v5772_v54 = vmul.f32 -1.442695, %v2751_v35  ;;  %v5774_v53 = vmul.f32 -1.442695, %v2753_v8 }
 0x883   :  { %v5773_v52 = vmul.f32 -1.442695, %v2752_v36 }
 0x884   :  { %5946 = vpow2.f32 %v5772_v54 }
 0x885   :  { %5948 = vpow2.f32 %v5773_v52 }
 0x886   :  { %5950 = vtanh.f32 %v2754_v29 }
 0x887   :  { %5952 = vpow2.f32 %v5774_v53  ;;  %v3006_v53 = vrot.slane %v7381_v32, 6 }
 0x88e   :  { %v5947_v51 = vpop.eup %5946 }
 0x88f   :  { %v2764_v22 = vadd.f32 1.0, %v5947_v51  ;;  %v5949_v55 = vpop.eup %5948 }
 0x890   :  { %v2765_v61 = vadd.f32 1.0, %v5949_v55  ;;  %v5951_v39 = vpop.eup %5950 }
 0x891   :  { %5954 = vrcp.f32 %v2764_v22  ;;  %v5953_v21 = vpop.eup %5952 }
 0x892   :  { %5956 = vrcp.f32 %v2765_v61  ;;  %v2766_v30 = vadd.f32 1.0, %v5953_v21  ;;  %v9280_v61 = vld [vmem:[#allocation83_spill] sm:$0xff] }
 0x894   :  { %5958 = vrcp.f32 %v2766_v30  ;;  %v3023_v30 = vrot.slane %v9280_v61, 4 }
 0x89b   :  { %v5955_v17 = vpop.eup %5954 }
 0x89c   :  { %v2775_v18 = vmul.f32 %v5955_v17, %v5951_v39  ;;  %v5957_v33 = vpop.eup %5956  ;;  %v3019_v39 = vsel %vm968_vm0, %v9280_v61, %v3006_v53 }
 0x89d   :  { %v2774_v58 = vmul.f32 %v5957_v33, %v7378_v46 }
 0x89e   :  { %v5959_v44 = vpop.eup %5958 }
 0x89f   :  { %v7466_v45 = vadd.f32 %v2775_v18, %v2774_v58  ;;  %v9281_v18 = vld [vmem:[#allocation114_spill] sm:$0xff] }
 0x8a0   :  { %v3026_v33 = vrot.slane %v9281_v18, 4 }
 0x8a1   :  { %5960 = vtanh.f32 %v7466_v45 }
 0x8ab   :  { %v5961_v0 = vpop.eup %5960 }
 0x8ac   :  { %v7469_v35 = vmul.f32 %v5961_v0, %v5959_v44  ;;  %v9282_v44 = vld [vmem:[#allocation81_spill] sm:$0xff] }
 0x8ae   :  { %v2799_v34 = vpack.c.bf16 %v7469_v35, %v7469_v35  ;;  %v3009_v22 = vrot.slane %v7469_v35, 4 }
 0x8b0   :  { %2833 = vmatmul.mubr.bf16.vlgmr.msra.gmra.mrb[64].mxu0 %v2799_v34  ;;  %2874 = vmatmul.mubr.bf16.vlgmr.msra.gmra.mrb[64].mxu1 %v2799_v34  ;;  %v3020_v17 = vsel %vm3015_vm2, %v3019_v39, %v3009_v22 }
 0x8b1   :  { %2883 = vmatpush1.bf16.msra.mxu0 %v6565_v24  ;;  %2924 = vmatpush1.bf16.msra.mxu1 %v6569_v26 }
 0x8b2   :  { %2884 = vmatprep.subr.bf16.mxu0 %v6571_v27  ;;  %2925 = vmatprep.subr.bf16.mxu1 %v6574_v28 }
 0x8b3   :  { %2914 = vmatprep.mubr.bf16.mxu0 %v9029_v16  ;;  %2955 = vmatprep.mubr.bf16.mxu1 %v9029_v16 }
 0x8b5   :  { %2885 = vmatpush1.bf16.msra.mxu0 %v6579_v40  ;;  %2926 = vmatpush1.bf16.msra.mxu1 %v6583_v41 }
 0x8b6   :  { %2886 = vmatprep.subr.bf16.mxu0 %v6585_v42  ;;  %2927 = vmatprep.subr.bf16.mxu1 %v6588_v43 }
 0x8b9   :  { %2887 = vmatpush1.bf16.msra.mxu0 %v6593_v57  ;;  %2928 = vmatpush1.bf16.msra.mxu1 %v9080_v15 }
 0x8ba   :  { %2888 = vmatprep.subr.bf16.mxu0 %v9081_v19  ;;  %2929 = vmatprep.subr.bf16.mxu1 %v9082_v56  ;;  %v9278_v56 = vld [vmem:[#allocation112_spill] sm:$0xff] }
 0x8bd   :  { %2889 = vmatpush1.bf16.msra.mxu0 %v9083_v47  ;;  %2930 = vmatpush1.bf16.msra.mxu1 %v9084_v25  ;;  %v9279_v25 = vld [vmem:[#allocation113_spill] sm:$0xff] }
 0x8be   :  { %2890 = vmatprep.subr.bf16.mxu0 %v9085_v7  ;;  %2931 = vmatprep.subr.bf16.mxu1 %v9086_v60 }
 0x8c1   :  { %2891 = vmatpush1.bf16.msra.mxu0 %v6617_v6  ;;  %2932 = vmatpush1.bf16.msra.mxu1 %v6621_v5 }
 0x8c2   :  { %2892 = vmatprep.subr.bf16.mxu0 %v6623_v13  ;;  %2933 = vmatprep.subr.bf16.mxu1 %v9087_v14 }
 0x8c5   :  { %2893 = vmatpush1.bf16.msra.mxu0 %v6629_v4  ;;  %2934 = vmatpush1.bf16.msra.mxu1 %v6633_v3 }
 0x8c6   :  { %2894 = vmatprep.subr.bf16.mxu0 %v6635_v11  ;;  %2935 = vmatprep.subr.bf16.mxu1 %v6638_v12  ;;  %v9276_v11 = vld [vmem:[#allocation110_spill] sm:$0xff] }
 0x8c9   :  { %2895 = vmatpush1.bf16.msra.mxu0 %v6641_v2  ;;  %2936 = vmatpush1.bf16.msra.mxu1 %v6645_v1  ;;  %v9277_v2 = vld [vmem:[#allocation111_spill] sm:$0xff] }
 0x8ca   :  { %2896 = vmatprep.subr.bf16.mxu0 %v6647_v9  ;;  %2937 = vmatprep.subr.bf16.mxu1 %v6650_v10 }
 0x8cd   :  { %2897 = vmatpush1.bf16.msra.mxu0 %v9088_v48  ;;  %2938 = vmatpush1.bf16.msra.mxu1 %v9089_v63 }
 0x8d0   :  { %2915 = vmatmul.mubr.bf16.vlgmr.msra.gmra.mrb[68].mxu0 %v2799_v34  ;;  %2956 = vmatmul.mubr.bf16.vlgmr.msra.gmra.mrb[68].mxu1 %v2799_v34  ;;  %v9283_v34 = vld [vmem:[#allocation82_spill] sm:$0xff] }
 0x983   :  { %v2834_v24 = vpop.f32.mrb[64].mxu0  ;;  %v2875_v26 = vpop.f32.mrb[64].mxu1 }
 0x984   :  { %v2836_v27 = vpop.f32.mrb[65].mxu0  ;;  %v2877_v28 = vpop.f32.mrb[65].mxu1 }
 0x985   :  { %v2838_v40 = vpop.f32.mrb[66].mxu0  ;;  %v2879_v41 = vpop.f32.mrb[66].mxu1 }
 0x986   :  { %v2839_v42 = vpop.f32.mrb[67].mxu0  ;;  %v2880_v43 = vpop.f32.mrb[67].mxu1 }
 0x9a3   :  { %v2916_v57 = vpop.f32.mrb[68].mxu0  ;;  %v2957_v6 = vpop.f32.mrb[68].mxu1 }
 0x9a4   :  { %v2964_v5 = vsel %vm285_vm1, %v2834_v24, %v2916_v57  ;;  %v2966_v13 = vsel %vm285_vm1, %v2875_v26, %v2957_v6  ;;  %v2918_v4 = vpop.f32.mrb[69].mxu0  ;;  %v2959_v3 = vpop.f32.mrb[69].mxu1  ;;  %v3033_v24 = vsel %vm3017_vm3, %v9283_v34, %v3026_v33 }
 0x9a5   :  { %v2968_v12 = vadd.f32 %v2964_v5, %v9276_v11  ;;  %v2970_v1 = vadd.f32 %v2966_v13, %v9277_v2  ;;  %v2965_v9 = vsel %vm285_vm1, %v2836_v27, %v2918_v4  ;;  %v2967_v10 = vsel %vm285_vm1, %v2877_v28, %v2959_v3  ;;  %v2920_v15 = vpop.f32.mrb[70].mxu0  ;;  %v2961_v19 = vpop.f32.mrb[70].mxu1 }
 0x9a6   :  { %v2969_v47 = vadd.f32 %v2965_v9, %v9278_v56  ;;  %v2971_v7 = vadd.f32 %v2967_v10, %v9279_v25  ;;  %v2921_v60 = vpop.f32.mrb[71].mxu0  ;;  %v2962_v14 = vpop.f32.mrb[71].mxu1 }
 0x9a7   :  { %v5775_v48 = vmul.f32 -1.442695, %v2968_v12  ;;  %v5777_v46 = vmul.f32 -1.442695, %v2970_v1 }
 0x9a8   :  { %v5776_v63 = vmul.f32 -1.442695, %v2969_v47 }
 0x9a9   :  { %5962 = vpow2.f32 %v5775_v48 }
 0x9aa   :  { %5964 = vpow2.f32 %v5776_v63 }
 0x9ab   :  { %5966 = vtanh.f32 %v2971_v7 }
 0x9ac   :  { %5968 = vpow2.f32 %v5777_v46 }
 0x9b3   :  { %v5963_v8 = vpop.eup %5962 }
 0x9b4   :  { %v2981_v20 = vadd.f32 1.0, %v5963_v8  ;;  %v5965_v62 = vpop.eup %5964 }
 0x9b5   :  { %v2982_v38 = vadd.f32 1.0, %v5965_v62  ;;  %v5967_v37 = vpop.eup %5966 }
 0x9b6   :  { %5970 = vrcp.f32 %v2981_v20  ;;  %v5969_v49 = vpop.eup %5968 }
 0x9b7   :  { %5972 = vrcp.f32 %v2982_v38  ;;  %v2983_v23 = vadd.f32 1.0, %v5969_v49 }
 0x9b9   :  { %5974 = vrcp.f32 %v2983_v23 }
 0x9c0   :  { %v5971_v36 = vpop.eup %5970 }
 0x9c1   :  { %v2992_v50 = vmul.f32 %v5971_v36, %v5967_v37  ;;  %v5973_v29 = vpop.eup %5972 }
 0x9c2   :  { %v2991_v31 = vmul.f32 %v5973_v29, %v7466_v45 }
 0x9c3   :  { %v5975_v52 = vpop.eup %5974 }
 0x9c4   :  { %v2993_v54 = vadd.f32 %v2992_v50, %v2991_v31 }
 0x9c6   :  { %5976 = vtanh.f32 %v2993_v54 }
 0x9d0   :  { %v5977_v51 = vpop.eup %5976 }
 0x9d1   :  { %v2995_v55 = vmul.f32 %v5977_v51, %v5975_v52 }
 0x9d3   :  { %v3012_v21 = vrot.slane %v2995_v55, 2 }
 0x9d5   :  { %v3021_v58 = vsel %vm3017_vm3, %v3020_v17, %v3012_v21  ;;  %v3028_v45 = vsel %vm968_vm0, %v3012_v21, %v7469_v35 }
 0x9d6   :  { %v3029_v32 = vsel %vm3015_vm2, %v3028_v45, %v3006_v53  ;;  %v7530_v0 = vpack.c.bf16 %v3021_v58, %v9282_v44 }
 0x9d7   :  { %v3030_v26 = vsel %vm3017_vm3, %v3029_v32, %v3023_v30 }
 0x9d8   :  { %v7535_v27 = vpack.c.bf16 %v3033_v24, %v3030_v26 }
 0x9d9   :  { %6246 = dma.done.wait [#allocation7], 16384 }
 0x9da   :  { %6247 = vsyncadd [#allocation7], 4294950912 }
 0x9db   :  { %6248 = dma.done.wait [#allocation7 + $0x1], 8192 }
 0x9dc   :  { %6249 = vsyncadd [#allocation7 + $0x1], 4294959104 }
 0x9dd   :  { %6250 = dma.done.wait [#allocation7 + $0x2], 128 }
 0x9de   :  { %6251 = vsyncadd [#allocation7 + $0x2], 4294967168  ;;  %3249 = vmatprep.mubr.bf16.mxu0 %v7535_v27  ;;  %3292 = vmatprep.mubr.bf16.mxu1 %v7535_v27  ;;  %v3048_v35 = vld [vmem:[#allocation2 + $0x8] sm:$0xff]  ;;  %v3050_v28 = vld [vmem:[#allocation2 + $0x18] sm:$0xff]  ;;  %vm5300_vm6 = vcmask 130048  }
 0x9df   :  { %v3047_v40 = vld [vmem:[#allocation2] sm:$0xff]  ;;  %3217 = vmatprep.subr.bf16.mxu0 %v3048_v35  ;;  %3260 = vmatprep.subr.bf16.mxu1 %v3050_v28  ;;  %v3049_v41 = vld [vmem:[#allocation2 + $0x10] sm:$0xff]  ;;  %v3056_v42 = vld [vmem:[#allocation2 + $0x48] sm:$0xff] }
 0x9e0   :  { %v3058_v43 = vld [vmem:[#allocation2 + $0x58] sm:$0xff]  ;;  %3218 = vmatpush1.bf16.msra.mxu0 %v3047_v40  ;;  %3261 = vmatpush1.bf16.msra.mxu1 %v3049_v41  ;;  %v3055_v57 = vld [vmem:[#allocation2 + $0x40] sm:$0xff]  ;;  %v3057_v6 = vld [vmem:[#allocation2 + $0x50] sm:$0xff] }
 0x9e1   :  { %3219 = vmatprep.subr.bf16.mxu0 %v3056_v42  ;;  %3262 = vmatprep.subr.bf16.mxu1 %v3058_v43  ;;  %v3064_v5 = vld [vmem:[#allocation2 + $0x88] sm:$0xff]  ;;  %v3066_v13 = vld [vmem:[#allocation2 + $0x98] sm:$0xff]  ;;  %v3063_v4 = vld [vmem:[#allocation2 + $0x80] sm:$0xff] }
 0x9e2   :  { %v3065_v3 = vld [vmem:[#allocation2 + $0x90] sm:$0xff]  ;;  %v3072_v11 = vld [vmem:[#allocation2 + $0xc8] sm:$0xff]  ;;  %v3074_v12 = vld [vmem:[#allocation2 + $0xd8] sm:$0xff] }
 0x9e3   :  { %v3071_v2 = vld [vmem:[#allocation2 + $0xc0] sm:$0xff]  ;;  %v3073_v1 = vld [vmem:[#allocation2 + $0xd0] sm:$0xff]  ;;  %v3080_v9 = vld [vmem:[#allocation2 + $0x108] sm:$0xff] }
 0x9e4   :  { %3220 = vmatpush1.bf16.msra.mxu0 %v3055_v57  ;;  %3263 = vmatpush1.bf16.msra.mxu1 %v3057_v6  ;;  %v3082_v10 = vld [vmem:[#allocation2 + $0x118] sm:$0xff]  ;;  %v3079_v15 = vld [vmem:[#allocation2 + $0x100] sm:$0xff]  ;;  %v3081_v19 = vld [vmem:[#allocation2 + $0x110] sm:$0xff] }
 0x9e5   :  { %3221 = vmatprep.subr.bf16.mxu0 %v3064_v5  ;;  %3264 = vmatprep.subr.bf16.mxu1 %v3066_v13  ;;  %v3088_v56 = vld [vmem:[#allocation2 + $0x148] sm:$0xff]  ;;  %v3090_v47 = vld [vmem:[#allocation2 + $0x158] sm:$0xff]  ;;  %v3087_v25 = vld [vmem:[#allocation2 + $0x140] sm:$0xff] }
 0x9e6   :  { %v3089_v7 = vld [vmem:[#allocation2 + $0x150] sm:$0xff]  ;;  %v3096_v60 = vld [vmem:[#allocation2 + $0x188] sm:$0xff]  ;;  %v3098_v14 = vld [vmem:[#allocation2 + $0x198] sm:$0xff] }
 0x9e7   :  { %v3095_v48 = vld [vmem:[#allocation2 + $0x180] sm:$0xff]  ;;  %v3097_v63 = vld [vmem:[#allocation2 + $0x190] sm:$0xff]  ;;  %v3104_v46 = vld [vmem:[#allocation2 + $0x1c8] sm:$0xff] }
 0x9e8   :  { %3222 = vmatpush1.bf16.msra.mxu0 %v3063_v4  ;;  %3265 = vmatpush1.bf16.msra.mxu1 %v3065_v3  ;;  %v3106_v8 = vld [vmem:[#allocation2 + $0x1d8] sm:$0xff]  ;;  %v3103_v20 = vld [vmem:[#allocation2 + $0x1c0] sm:$0xff]  ;;  %v3105_v62 = vld [vmem:[#allocation2 + $0x1d0] sm:$0xff] }
 0x9e9   :  { %3223 = vmatprep.subr.bf16.mxu0 %v3072_v11  ;;  %3266 = vmatprep.subr.bf16.mxu1 %v3074_v12  ;;  %v3112_v38 = vld [vmem:[#allocation2 + $0x208] sm:$0xff]  ;;  %v3114_v37 = vld [vmem:[#allocation2 + $0x218] sm:$0xff]  ;;  %v3111_v49 = vld [vmem:[#allocation2 + $0x200] sm:$0xff] }
 0x9ea   :  { %v3113_v36 = vld [vmem:[#allocation2 + $0x210] sm:$0xff]  ;;  %v3120_v50 = vld [vmem:[#allocation2 + $0x248] sm:$0xff]  ;;  %v3122_v29 = vld [vmem:[#allocation2 + $0x258] sm:$0xff] }
 0x9eb   :  { %v3119_v23 = vld [vmem:[#allocation2 + $0x240] sm:$0xff]  ;;  %v3121_v31 = vld [vmem:[#allocation2 + $0x250] sm:$0xff]  ;;  %v3128_v54 = vld [vmem:[#allocation2 + $0x288] sm:$0xff] }
 0x9ec   :  { %3224 = vmatpush1.bf16.msra.mxu0 %v3071_v2  ;;  %3267 = vmatpush1.bf16.msra.mxu1 %v3073_v1  ;;  %v3130_v52 = vld [vmem:[#allocation2 + $0x298] sm:$0xff]  ;;  %v3127_v53 = vld [vmem:[#allocation2 + $0x280] sm:$0xff]  ;;  %v3129_v51 = vld [vmem:[#allocation2 + $0x290] sm:$0xff] }
 0x9ed   :  { %3225 = vmatprep.subr.bf16.mxu0 %v3080_v9  ;;  %3268 = vmatprep.subr.bf16.mxu1 %v3082_v10  ;;  %v3136_v22 = vld [vmem:[#allocation2 + $0x2c8] sm:$0xff]  ;;  %v3138_v55 = vld [vmem:[#allocation2 + $0x2d8] sm:$0xff]  ;;  %v3135_v61 = vld [vmem:[#allocation2 + $0x2c0] sm:$0xff] }
 0x9ee   :  { %v3137_v39 = vld [vmem:[#allocation2 + $0x2d0] sm:$0xff]  ;;  %v3144_v21 = vld [vmem:[#allocation2 + $0x308] sm:$0xff]  ;;  %v3146_v17 = vld [vmem:[#allocation2 + $0x318] sm:$0xff] }
 0x9ef   :  { %v3143_v18 = vld [vmem:[#allocation2 + $0x300] sm:$0xff]  ;;  %v3145_v33 = vld [vmem:[#allocation2 + $0x310] sm:$0xff]  ;;  %v3152_v30 = vld [vmem:[#allocation2 + $0x348] sm:$0xff] }
 0x9f0   :  { %3226 = vmatpush1.bf16.msra.mxu0 %v3079_v15  ;;  %3269 = vmatpush1.bf16.msra.mxu1 %v3081_v19  ;;  %v3154_v58 = vld [vmem:[#allocation2 + $0x358] sm:$0xff]  ;;  %v3151_v45 = vld [vmem:[#allocation2 + $0x340] sm:$0xff]  ;;  %v3153_v32 = vld [vmem:[#allocation2 + $0x350] sm:$0xff] }
 0x9f1   :  { %3227 = vmatprep.subr.bf16.mxu0 %v3088_v56  ;;  %3270 = vmatprep.subr.bf16.mxu1 %v3090_v47  ;;  %v3160_v44 = vld [vmem:[#allocation2 + $0x388] sm:$0xff]  ;;  %v3162_v34 = vld [vmem:[#allocation2 + $0x398] sm:$0xff]  ;;  %v3159_v24 = vld [vmem:[#allocation2 + $0x380] sm:$0xff] }
 0x9f2   :  { %v3161_v26 = vld [vmem:[#allocation2 + $0x390] sm:$0xff]  ;;  %v3168_v35 = vld [vmem:[#allocation2 + $0x3c8] sm:$0xff]  ;;  %v3170_v28 = vld [vmem:[#allocation2 + $0x3d8] sm:$0xff] }
 0x9f3   :  { %v3167_v40 = vld [vmem:[#allocation2 + $0x3c0] sm:$0xff]  ;;  %v3169_v41 = vld [vmem:[#allocation2 + $0x3d0] sm:$0xff]  ;;  %v3052_v42 = vld [vmem:[#allocation2 + $0x28] sm:$0xff] }
 0x9f4   :  { %3228 = vmatpush1.bf16.msra.mxu0 %v3087_v25  ;;  %3271 = vmatpush1.bf16.msra.mxu1 %v3089_v7  ;;  %v3054_v43 = vld [vmem:[#allocation2 + $0x38] sm:$0xff]  ;;  %v3051_v57 = vld [vmem:[#allocation2 + $0x20] sm:$0xff]  ;;  %v3053_v6 = vld [vmem:[#allocation2 + $0x30] sm:$0xff] }
 0x9f5   :  { %3229 = vmatprep.subr.bf16.mxu0 %v3096_v60  ;;  %3272 = vmatprep.subr.bf16.mxu1 %v3098_v14  ;;  %v3060_v5 = vld [vmem:[#allocation2 + $0x68] sm:$0xff]  ;;  %v3062_v13 = vld [vmem:[#allocation2 + $0x78] sm:$0xff]  ;;  %v3059_v4 = vld [vmem:[#allocation2 + $0x60] sm:$0xff] }
 0x9f6   :  { %v3061_v3 = vld [vmem:[#allocation2 + $0x70] sm:$0xff]  ;;  %v3068_v11 = vld [vmem:[#allocation2 + $0xa8] sm:$0xff]  ;;  %v3070_v12 = vld [vmem:[#allocation2 + $0xb8] sm:$0xff] }
 0x9f7   :  { %v3067_v2 = vld [vmem:[#allocation2 + $0xa0] sm:$0xff]  ;;  %v3069_v1 = vld [vmem:[#allocation2 + $0xb0] sm:$0xff]  ;;  %v3076_v9 = vld [vmem:[#allocation2 + $0xe8] sm:$0xff] }
 0x9f8   :  { %3230 = vmatpush1.bf16.msra.mxu0 %v3095_v48  ;;  %3273 = vmatpush1.bf16.msra.mxu1 %v3097_v63  ;;  %v3078_v10 = vld [vmem:[#allocation2 + $0xf8] sm:$0xff]  ;;  %v3075_v15 = vld [vmem:[#allocation2 + $0xe0] sm:$0xff]  ;;  %v3077_v19 = vld [vmem:[#allocation2 + $0xf0] sm:$0xff] }
 0x9f9   :  { %3231 = vmatprep.subr.bf16.mxu0 %v3104_v46  ;;  %3274 = vmatprep.subr.bf16.mxu1 %v3106_v8  ;;  %v3084_v56 = vld [vmem:[#allocation2 + $0x128] sm:$0xff]  ;;  %v3086_v47 = vld [vmem:[#allocation2 + $0x138] sm:$0xff]  ;;  %v3085_v25 = vld [vmem:[#allocation2 + $0x130] sm:$0xff] }
 0x9fa   :  { %v3092_v7 = vld [vmem:[#allocation2 + $0x168] sm:$0xff]  ;;  %v3094_v60 = vld [vmem:[#allocation2 + $0x178] sm:$0xff]  ;;  %v3091_v14 = vld [vmem:[#allocation2 + $0x160] sm:$0xff] }
 0x9fb   :  { %v3093_v48 = vld [vmem:[#allocation2 + $0x170] sm:$0xff]  ;;  %v3100_v63 = vld [vmem:[#allocation2 + $0x1a8] sm:$0xff]  ;;  %v3102_v46 = vld [vmem:[#allocation2 + $0x1b8] sm:$0xff] }
 0x9fc   :  { %3232 = vmatpush1.bf16.msra.mxu0 %v3103_v20  ;;  %3275 = vmatpush1.bf16.msra.mxu1 %v3105_v62  ;;  %v3099_v8 = vld [vmem:[#allocation2 + $0x1a0] sm:$0xff]  ;;  %v3101_v20 = vld [vmem:[#allocation2 + $0x1b0] sm:$0xff]  ;;  %v3108_v62 = vld [vmem:[#allocation2 + $0x1e8] sm:$0xff] }
 0x9fd   :  { %3233 = vmatprep.subr.bf16.mxu0 %v3112_v38  ;;  %3276 = vmatprep.subr.bf16.mxu1 %v3114_v37  ;;  %v3110_v38 = vld [vmem:[#allocation2 + $0x1f8] sm:$0xff]  ;;  %v3107_v37 = vld [vmem:[#allocation2 + $0x1e0] sm:$0xff] }
 0xa00   :  { %3234 = vmatpush1.bf16.msra.mxu0 %v3111_v49  ;;  %3277 = vmatpush1.bf16.msra.mxu1 %v3113_v36  ;;  %v3109_v49 = vld [vmem:[#allocation2 + $0x1f0] sm:$0xff]  ;;  %v3116_v36 = vld [vmem:[#allocation2 + $0x228] sm:$0xff] }
 0xa01   :  { %3235 = vmatprep.subr.bf16.mxu0 %v3120_v50  ;;  %3278 = vmatprep.subr.bf16.mxu1 %v3122_v29  ;;  %v3118_v50 = vld [vmem:[#allocation2 + $0x238] sm:$0xff]  ;;  %v3115_v29 = vld [vmem:[#allocation2 + $0x220] sm:$0xff] }
 0xa04   :  { %3236 = vmatpush1.bf16.msra.mxu0 %v3119_v23  ;;  %3279 = vmatpush1.bf16.msra.mxu1 %v3121_v31  ;;  %v3117_v23 = vld [vmem:[#allocation2 + $0x230] sm:$0xff]  ;;  %v3124_v31 = vld [vmem:[#allocation2 + $0x268] sm:$0xff] }
 0xa05   :  { %3237 = vmatprep.subr.bf16.mxu0 %v3128_v54  ;;  %3280 = vmatprep.subr.bf16.mxu1 %v3130_v52  ;;  %v3126_v54 = vld [vmem:[#allocation2 + $0x278] sm:$0xff]  ;;  %v3123_v52 = vld [vmem:[#allocation2 + $0x260] sm:$0xff] }
 0xa08   :  { %3238 = vmatpush1.bf16.msra.mxu0 %v3127_v53  ;;  %3281 = vmatpush1.bf16.msra.mxu1 %v3129_v51  ;;  %v3125_v53 = vld [vmem:[#allocation2 + $0x270] sm:$0xff]  ;;  %v3132_v51 = vld [vmem:[#allocation2 + $0x2a8] sm:$0xff] }
 0xa09   :  { %3239 = vmatprep.subr.bf16.mxu0 %v3136_v22  ;;  %3282 = vmatprep.subr.bf16.mxu1 %v3138_v55  ;;  %v3134_v22 = vld [vmem:[#allocation2 + $0x2b8] sm:$0xff]  ;;  %v3131_v55 = vld [vmem:[#allocation2 + $0x2a0] sm:$0xff] }
 0xa0c   :  { %3240 = vmatpush1.bf16.msra.mxu0 %v3135_v61  ;;  %3283 = vmatpush1.bf16.msra.mxu1 %v3137_v39  ;;  %v3133_v61 = vld [vmem:[#allocation2 + $0x2b0] sm:$0xff]  ;;  %v3140_v39 = vld [vmem:[#allocation2 + $0x2e8] sm:$0xff] }
 0xa0d   :  { %3241 = vmatprep.subr.bf16.mxu0 %v3144_v21  ;;  %3284 = vmatprep.subr.bf16.mxu1 %v3146_v17  ;;  %v3142_v21 = vld [vmem:[#allocation2 + $0x2f8] sm:$0xff]  ;;  %v3139_v17 = vld [vmem:[#allocation2 + $0x2e0] sm:$0xff] }
 0xa10   :  { %3242 = vmatpush1.bf16.msra.mxu0 %v3143_v18  ;;  %3285 = vmatpush1.bf16.msra.mxu1 %v3145_v33  ;;  %v3141_v18 = vld [vmem:[#allocation2 + $0x2f0] sm:$0xff]  ;;  %v3148_v33 = vld [vmem:[#allocation2 + $0x328] sm:$0xff] }
 0xa11   :  { %3243 = vmatprep.subr.bf16.mxu0 %v3152_v30  ;;  %3286 = vmatprep.subr.bf16.mxu1 %v3154_v58  ;;  %v3150_v30 = vld [vmem:[#allocation2 + $0x338] sm:$0xff]  ;;  %v3147_v58 = vld [vmem:[#allocation2 + $0x320] sm:$0xff] }
 0xa14   :  { %3244 = vmatpush1.bf16.msra.mxu0 %v3151_v45  ;;  %3287 = vmatpush1.bf16.msra.mxu1 %v3153_v32  ;;  %v3149_v45 = vld [vmem:[#allocation2 + $0x330] sm:$0xff]  ;;  %v3156_v32 = vld [vmem:[#allocation2 + $0x368] sm:$0xff] }
 0xa15   :  { %3245 = vmatprep.subr.bf16.mxu0 %v3160_v44  ;;  %3288 = vmatprep.subr.bf16.mxu1 %v3162_v34  ;;  %v3158_v44 = vld [vmem:[#allocation2 + $0x378] sm:$0xff]  ;;  %v3155_v34 = vld [vmem:[#allocation2 + $0x360] sm:$0xff] }
 0xa18   :  { %3246 = vmatpush1.bf16.msra.mxu0 %v3159_v24  ;;  %3289 = vmatpush1.bf16.msra.mxu1 %v3161_v26  ;;  %v3157_v24 = vld [vmem:[#allocation2 + $0x370] sm:$0xff]  ;;  %v3164_v26 = vld [vmem:[#allocation2 + $0x3a8] sm:$0xff] }
 0xa19   :  { %3247 = vmatprep.subr.bf16.mxu0 %v3168_v35  ;;  %3290 = vmatprep.subr.bf16.mxu1 %v3170_v28  ;;  %v3166_v35 = vld [vmem:[#allocation2 + $0x3b8] sm:$0xff]  ;;  %v3163_v28 = vld [vmem:[#allocation2 + $0x3a0] sm:$0xff] }
 0xa1c   :  { %3248 = vmatpush1.bf16.msra.mxu0 %v3167_v40  ;;  %3291 = vmatpush1.bf16.msra.mxu1 %v3169_v41  ;;  %v3165_v40 = vld [vmem:[#allocation2 + $0x3b0] sm:$0xff]  ;;  %v3172_v41 = vld [vmem:[#allocation2 + $0x3e8] sm:$0xff] }
 0xa1d   :  { %3303 = vmatprep.subr.bf16.mxu0 %v3052_v42  ;;  %3346 = vmatprep.subr.bf16.mxu1 %v3054_v43  ;;  %v3174_v42 = vld [vmem:[#allocation2 + $0x3f8] sm:$0xff]  ;;  %v3171_v43 = vld [vmem:[#allocation2 + $0x3e0] sm:$0xff] }
 0xa1f   :  { %3250 = vmatmul.mubr.bf16.vlgmr.msra.gmra.mrb[72].mxu0 %v7530_v0  ;;  %3293 = vmatmul.mubr.bf16.vlgmr.msra.gmra.mrb[72].mxu1 %v7530_v0 }
 0xa20   :  { %3304 = vmatpush1.bf16.msra.mxu0 %v3051_v57  ;;  %3347 = vmatpush1.bf16.msra.mxu1 %v3053_v6  ;;  %v3173_v57 = vld [vmem:[#allocation2 + $0x3f0] sm:$0xff]  ;;  %v7543_v6 = vld [vmem:[#allocation3 + $0x8] sm:$0xff] }
 0xa21   :  { %3305 = vmatprep.subr.bf16.mxu0 %v3060_v5  ;;  %3348 = vmatprep.subr.bf16.mxu1 %v3062_v13  ;;  %v7545_v5 = vld [vmem:[#allocation3 + $0x18] sm:$0xff]  ;;  %v7549_v13 = vld [vmem:[#allocation3] sm:$0xff] }
 0xa22   :  { %3335 = vmatprep.mubr.bf16.mxu0 %v7535_v27  ;;  %3378 = vmatprep.mubr.bf16.mxu1 %v7535_v27  ;;  %v3083_v27 = vld [vmem:[#allocation2 + $0x120] sm:$0xff]  ;;  %9284 = vst [vmem:[#allocation84_spill] sm:$0xff] %v7549_v13 }
 0xa24   :  { %3306 = vmatpush1.bf16.msra.mxu0 %v3059_v4  ;;  %3349 = vmatpush1.bf16.msra.mxu1 %v3061_v3  ;;  %v7551_v4 = vld [vmem:[#allocation3 + $0x10] sm:$0xff]  ;;  %v7553_v3 = vld [vmem:[#allocation3 + $0x48] sm:$0xff] }
 0xa25   :  { %3307 = vmatprep.subr.bf16.mxu0 %v3068_v11  ;;  %3350 = vmatprep.subr.bf16.mxu1 %v3070_v12  ;;  %9285 = vst [vmem:[#allocation85_spill] sm:$0xff] %v7551_v4  ;;  %9286 = vst [vmem:[#allocation86_spill] sm:$0xff] %v7553_v3  ;;  %v7555_v11 = vld [vmem:[#allocation3 + $0x58] sm:$0xff]  ;;  %v7563_v12 = vld [vmem:[#allocation3 + $0x40] sm:$0xff] }
 0xa26   :  { %9287 = vst [vmem:[#allocation87_spill] sm:$0xff] %v7555_v11  ;;  %9288 = vst [vmem:[#allocation88_spill] sm:$0xff] %v7563_v12 }
 0xa28   :  { %3308 = vmatpush1.bf16.msra.mxu0 %v3067_v2  ;;  %3351 = vmatpush1.bf16.msra.mxu1 %v3069_v1  ;;  %v7565_v2 = vld [vmem:[#allocation3 + $0x50] sm:$0xff]  ;;  %v7567_v1 = vld [vmem:[#allocation3 + $0x88] sm:$0xff] }
 0xa29   :  { %3309 = vmatprep.subr.bf16.mxu0 %v3076_v9  ;;  %3352 = vmatprep.subr.bf16.mxu1 %v3078_v10  ;;  %9289 = vst [vmem:[#allocation89_spill] sm:$0xff] %v7565_v2  ;;  %9290 = vst [vmem:[#allocation46_spill] sm:$0xff] %v7567_v1  ;;  %v7569_v9 = vld [vmem:[#allocation3 + $0x98] sm:$0xff]  ;;  %v7579_v10 = vld [vmem:[#allocation3 + $0x90] sm:$0xff] }
 0xa2a   :  { %9291 = vst [vmem:[#allocation47_spill] sm:$0xff] %v7569_v9  ;;  %9293 = vst [vmem:[#allocation49_spill] sm:$0xff] %v7579_v10 }
 0xa2c   :  { %3310 = vmatpush1.bf16.msra.mxu0 %v3075_v15  ;;  %3353 = vmatpush1.bf16.msra.mxu1 %v3077_v19  ;;  %v7581_v15 = vld [vmem:[#allocation3 + $0xc8] sm:$0xff]  ;;  %v7583_v19 = vld [vmem:[#allocation3 + $0xd8] sm:$0xff] }
 0xa2d   :  { %3311 = vmatprep.subr.bf16.mxu0 %v3084_v56  ;;  %3354 = vmatprep.subr.bf16.mxu1 %v3086_v47  ;;  %9294 = vst [vmem:[#allocation50_spill] sm:$0xff] %v7581_v15  ;;  %9295 = vst [vmem:[#allocation51_spill] sm:$0xff] %v7583_v19  ;;  %v7589_v56 = vld [vmem:[#allocation3 + $0xc0] sm:$0xff]  ;;  %v7591_v47 = vld [vmem:[#allocation3 + $0xd0] sm:$0xff] }
 0xa2e   :  { %9296 = vst [vmem:[#allocation52_spill] sm:$0xff] %v7589_v56  ;;  %9297 = vst [vmem:[#allocation53_spill] sm:$0xff] %v7591_v47 }
 0xa30   :  { %3312 = vmatpush1.bf16.msra.mxu0 %v3083_v27  ;;  %3355 = vmatpush1.bf16.msra.mxu1 %v3085_v25  ;;  %v7593_v27 = vld [vmem:[#allocation3 + $0x108] sm:$0xff]  ;;  %v7595_v25 = vld [vmem:[#allocation3 + $0x118] sm:$0xff] }
 0xa31   :  { %3313 = vmatprep.subr.bf16.mxu0 %v3092_v7  ;;  %3356 = vmatprep.subr.bf16.mxu1 %v3094_v60  ;;  %9298 = vst [vmem:[#allocation90_spill] sm:$0xff] %v7593_v27  ;;  %9299 = vst [vmem:[#allocation91_spill] sm:$0xff] %v7595_v25  ;;  %v7601_v7 = vld [vmem:[#allocation3 + $0x100] sm:$0xff]  ;;  %v7603_v60 = vld [vmem:[#allocation3 + $0x110] sm:$0xff] }
 0xa32   :  { %9300 = vst [vmem:[#allocation92_spill] sm:$0xff] %v7601_v7  ;;  %9301 = vst [vmem:[#allocation93_spill] sm:$0xff] %v7603_v60 }
 0xa34   :  { %3314 = vmatpush1.bf16.msra.mxu0 %v3091_v14  ;;  %3357 = vmatpush1.bf16.msra.mxu1 %v3093_v48  ;;  %v7605_v14 = vld [vmem:[#allocation3 + $0x148] sm:$0xff]  ;;  %v7607_v48 = vld [vmem:[#allocation3 + $0x158] sm:$0xff] }
 0xa35   :  { %3315 = vmatprep.subr.bf16.mxu0 %v3100_v63  ;;  %3358 = vmatprep.subr.bf16.mxu1 %v3102_v46  ;;  %9302 = vst [vmem:[#allocation97_spill] sm:$0xff] %v7605_v14  ;;  %9303 = vst [vmem:[#allocation98_spill] sm:$0xff] %v7607_v48  ;;  %v7613_v63 = vld [vmem:[#allocation3 + $0x140] sm:$0xff]  ;;  %v7615_v46 = vld [vmem:[#allocation3 + $0x150] sm:$0xff] }
 0xa36   :  { %9304 = vst [vmem:[#allocation99_spill] sm:$0xff] %v7613_v63  ;;  %9305 = vst [vmem:[#allocation100_spill] sm:$0xff] %v7615_v46 }
 0xa38   :  { %3316 = vmatpush1.bf16.msra.mxu0 %v3099_v8  ;;  %3359 = vmatpush1.bf16.msra.mxu1 %v3101_v20  ;;  %v7617_v8 = vld [vmem:[#allocation3 + $0x188] sm:$0xff]  ;;  %v7619_v20 = vld [vmem:[#allocation3 + $0x198] sm:$0xff] }
 0xa39   :  { %3317 = vmatprep.subr.bf16.mxu0 %v3108_v62  ;;  %3360 = vmatprep.subr.bf16.mxu1 %v3110_v38  ;;  %9306 = vst [vmem:[#allocation80_spill] sm:$0xff] %v7617_v8  ;;  %9307 = vst [vmem:[#allocation54_spill] sm:$0xff] %v7619_v20  ;;  %v7625_v62 = vld [vmem:[#allocation3 + $0x180] sm:$0xff]  ;;  %v7627_v38 = vld [vmem:[#allocation3 + $0x190] sm:$0xff] }
 0xa3a   :  { %9308 = vst [vmem:[#allocation94_spill] sm:$0xff] %v7625_v62  ;;  %9309 = vst [vmem:[#allocation95_spill] sm:$0xff] %v7627_v38 }
 0xa3c   :  { %3318 = vmatpush1.bf16.msra.mxu0 %v3107_v37  ;;  %3361 = vmatpush1.bf16.msra.mxu1 %v3109_v49  ;;  %v7629_v37 = vld [vmem:[#allocation3 + $0x1c8] sm:$0xff]  ;;  %v7631_v49 = vld [vmem:[#allocation3 + $0x1d8] sm:$0xff] }
 0xa3d   :  { %3319 = vmatprep.subr.bf16.mxu0 %v3116_v36  ;;  %3362 = vmatprep.subr.bf16.mxu1 %v3118_v50  ;;  %9310 = vst [vmem:[#allocation96_spill] sm:$0xff] %v7629_v37  ;;  %9311 = vst [vmem:[#allocation102_spill] sm:$0xff] %v7631_v49  ;;  %v7637_v36 = vld [vmem:[#allocation3 + $0x1c0] sm:$0xff]  ;;  %v7639_v50 = vld [vmem:[#allocation3 + $0x1d0] sm:$0xff] }
 0xa3e   :  { %9312 = vst [vmem:[#allocation101_spill] sm:$0xff] %v7637_v36  ;;  %9313 = vst [vmem:[#allocation105_spill] sm:$0xff] %v7639_v50 }
 0xa40   :  { %3320 = vmatpush1.bf16.msra.mxu0 %v3115_v29  ;;  %3363 = vmatpush1.bf16.msra.mxu1 %v3117_v23  ;;  %v7641_v29 = vld [vmem:[#allocation3 + $0x28] sm:$0xff]  ;;  %v7643_v23 = vld [vmem:[#allocation3 + $0x38] sm:$0xff] }
 0xa41   :  { %3321 = vmatprep.subr.bf16.mxu0 %v3124_v31  ;;  %3364 = vmatprep.subr.bf16.mxu1 %v3126_v54  ;;  %9314 = vst [vmem:[#allocation106_spill] sm:$0xff] %v7641_v29  ;;  %9315 = vst [vmem:[#allocation109_spill] sm:$0xff] %v7643_v23  ;;  %v7649_v31 = vld [vmem:[#allocation3 + $0x20] sm:$0xff]  ;;  %v7651_v54 = vld [vmem:[#allocation3 + $0x30] sm:$0xff] }
 0xa44   :  { %3322 = vmatpush1.bf16.msra.mxu0 %v3123_v52  ;;  %3365 = vmatpush1.bf16.msra.mxu1 %v3125_v53  ;;  %v7653_v52 = vld [vmem:[#allocation3 + $0x68] sm:$0xff]  ;;  %v7655_v53 = vld [vmem:[#allocation3 + $0x78] sm:$0xff] }
 0xa45   :  { %3323 = vmatprep.subr.bf16.mxu0 %v3132_v51  ;;  %3366 = vmatprep.subr.bf16.mxu1 %v3134_v22  ;;  %v7663_v51 = vld [vmem:[#allocation3 + $0x60] sm:$0xff]  ;;  %v7665_v22 = vld [vmem:[#allocation3 + $0x70] sm:$0xff] }
 0xa48   :  { %3324 = vmatpush1.bf16.msra.mxu0 %v3131_v55  ;;  %3367 = vmatpush1.bf16.msra.mxu1 %v3133_v61  ;;  %v7667_v55 = vld [vmem:[#allocation3 + $0xa8] sm:$0xff]  ;;  %v7669_v61 = vld [vmem:[#allocation3 + $0xb8] sm:$0xff] }
 0xa49   :  { %3325 = vmatprep.subr.bf16.mxu0 %v3140_v39  ;;  %3368 = vmatprep.subr.bf16.mxu1 %v3142_v21  ;;  %v7677_v39 = vld [vmem:[#allocation3 + $0xa0] sm:$0xff]  ;;  %v7679_v21 = vld [vmem:[#allocation3 + $0xb0] sm:$0xff] }
 0xa4c   :  { %3326 = vmatpush1.bf16.msra.mxu0 %v3139_v17  ;;  %3369 = vmatpush1.bf16.msra.mxu1 %v3141_v18  ;;  %v7681_v17 = vld [vmem:[#allocation3 + $0xe8] sm:$0xff]  ;;  %v7683_v18 = vld [vmem:[#allocation3 + $0xf8] sm:$0xff] }
 0xa4d   :  { %3327 = vmatprep.subr.bf16.mxu0 %v3148_v33  ;;  %3370 = vmatprep.subr.bf16.mxu1 %v3150_v30  ;;  %v7689_v33 = vld [vmem:[#allocation3 + $0xe0] sm:$0xff]  ;;  %v7691_v30 = vld [vmem:[#allocation3 + $0xf0] sm:$0xff] }
 0xa50   :  { %3328 = vmatpush1.bf16.msra.mxu0 %v3147_v58  ;;  %3371 = vmatpush1.bf16.msra.mxu1 %v3149_v45  ;;  %v7693_v58 = vld [vmem:[#allocation3 + $0x128] sm:$0xff]  ;;  %v7695_v45 = vld [vmem:[#allocation3 + $0x138] sm:$0xff] }
 0xa51   :  { %3329 = vmatprep.subr.bf16.mxu0 %v3156_v32  ;;  %3372 = vmatprep.subr.bf16.mxu1 %v3158_v44  ;;  %v7701_v32 = vld [vmem:[#allocation3 + $0x120] sm:$0xff]  ;;  %v7703_v44 = vld [vmem:[#allocation3 + $0x130] sm:$0xff] }
 0xa54   :  { %3330 = vmatpush1.bf16.msra.mxu0 %v3155_v34  ;;  %3373 = vmatpush1.bf16.msra.mxu1 %v3157_v24  ;;  %v7705_v34 = vld [vmem:[#allocation3 + $0x168] sm:$0xff]  ;;  %v7707_v24 = vld [vmem:[#allocation3 + $0x178] sm:$0xff] }
 0xa55   :  { %3331 = vmatprep.subr.bf16.mxu0 %v3164_v26  ;;  %3374 = vmatprep.subr.bf16.mxu1 %v3166_v35  ;;  %v7713_v26 = vld [vmem:[#allocation3 + $0x160] sm:$0xff]  ;;  %v7715_v35 = vld [vmem:[#allocation3 + $0x170] sm:$0xff] }
 0xa56   :  { %9316 = vst [vmem:[#allocation55_spill] sm:$0xff] %v7715_v35 }
 0xa58   :  { %3332 = vmatpush1.bf16.msra.mxu0 %v3163_v28  ;;  %3375 = vmatpush1.bf16.msra.mxu1 %v3165_v40  ;;  %v7717_v28 = vld [vmem:[#allocation3 + $0x1a8] sm:$0xff]  ;;  %v7719_v40 = vld [vmem:[#allocation3 + $0x1b8] sm:$0xff] }
 0xa59   :  { %3333 = vmatprep.subr.bf16.mxu0 %v3172_v41  ;;  %3376 = vmatprep.subr.bf16.mxu1 %v3174_v42  ;;  %9317 = vst [vmem:[#allocation56_spill] sm:$0xff] %v7717_v28  ;;  %v7725_v41 = vld [vmem:[#allocation3 + $0x1a0] sm:$0xff]  ;;  %v7727_v42 = vld [vmem:[#allocation3 + $0x1b0] sm:$0xff] }
 0xa5c   :  { %3334 = vmatpush1.bf16.msra.mxu0 %v3171_v43  ;;  %3377 = vmatpush1.bf16.msra.mxu1 %v3173_v57  ;;  %v7729_v43 = vld [vmem:[#allocation3 + $0x1e8] sm:$0xff]  ;;  %v7731_v57 = vld [vmem:[#allocation3 + $0x1f8] sm:$0xff] }
 0xa5d   :  { %3469 = vmatprep.subr.bf16.mxu0 %v7543_v6  ;;  %3510 = vmatprep.subr.bf16.mxu1 %v7545_v5 }
 0xa5f   :  { %3336 = vmatmul.mubr.bf16.vlgmr.msra.gmra.mrb[76].mxu0 %v7530_v0  ;;  %3379 = vmatmul.mubr.bf16.vlgmr.msra.gmra.mrb[76].mxu1 %v7530_v0  ;;  %v7577_v0 = vld [vmem:[#allocation3 + $0x80] sm:$0xff] }
 0xa60   :  { %3470 = vmatpush1.bf16.msra.mxu0 %v7549_v13  ;;  %3511 = vmatpush1.bf16.msra.mxu1 %v7551_v4  ;;  %9292 = vst [vmem:[#allocation48_spill] sm:$0xff] %v7577_v0 }
 0xa61   :  { %3471 = vmatprep.subr.bf16.mxu0 %v7553_v3  ;;  %3512 = vmatprep.subr.bf16.mxu1 %v7555_v11 }
 0xa62   :  { %3501 = vmatprep.mubr.bf16.mxu0 %v9029_v16  ;;  %3542 = vmatprep.mubr.bf16.mxu1 %v9029_v16 }
 0xa64   :  { %3472 = vmatpush1.bf16.msra.mxu0 %v7563_v12  ;;  %3513 = vmatpush1.bf16.msra.mxu1 %v7565_v2 }
 0xa65   :  { %3473 = vmatprep.subr.bf16.mxu0 %v7567_v1  ;;  %3514 = vmatprep.subr.bf16.mxu1 %v7569_v9 }
 0xa68   :  { %3474 = vmatpush1.bf16.msra.mxu0 %v7577_v0  ;;  %3515 = vmatpush1.bf16.msra.mxu1 %v7579_v10 }
 0xa69   :  { %3475 = vmatprep.subr.bf16.mxu0 %v7581_v15  ;;  %3516 = vmatprep.subr.bf16.mxu1 %v7583_v19 }
 0xa6c   :  { %3476 = vmatpush1.bf16.msra.mxu0 %v7589_v56  ;;  %3517 = vmatpush1.bf16.msra.mxu1 %v7591_v47 }
 0xa6d   :  { %3477 = vmatprep.subr.bf16.mxu0 %v7593_v27  ;;  %3518 = vmatprep.subr.bf16.mxu1 %v7595_v25 }
 0xa70   :  { %3478 = vmatpush1.bf16.msra.mxu0 %v7601_v7  ;;  %3519 = vmatpush1.bf16.msra.mxu1 %v7603_v60 }
 0xa71   :  { %3479 = vmatprep.subr.bf16.mxu0 %v7605_v14  ;;  %3520 = vmatprep.subr.bf16.mxu1 %v7607_v48 }
 0xa74   :  { %3480 = vmatpush1.bf16.msra.mxu0 %v7613_v63  ;;  %3521 = vmatpush1.bf16.msra.mxu1 %v7615_v46 }
 0xa75   :  { %3481 = vmatprep.subr.bf16.mxu0 %v7617_v8  ;;  %3522 = vmatprep.subr.bf16.mxu1 %v7619_v20 }
 0xa78   :  { %3482 = vmatpush1.bf16.msra.mxu0 %v7625_v62  ;;  %3523 = vmatpush1.bf16.msra.mxu1 %v7627_v38 }
 0xa79   :  { %3483 = vmatprep.subr.bf16.mxu0 %v7629_v37  ;;  %3524 = vmatprep.subr.bf16.mxu1 %v7631_v49 }
 0xa7c   :  { %3484 = vmatpush1.bf16.msra.mxu0 %v7637_v36  ;;  %3525 = vmatpush1.bf16.msra.mxu1 %v7639_v50 }
 0xa7d   :  { %3551 = vmatprep.subr.bf16.mxu0 %v7641_v29  ;;  %3592 = vmatprep.subr.bf16.mxu1 %v7643_v23 }
 0xa7f   :  { %3502 = vmatmul.mubr.bf16.vlgmr.msra.gmra.mrb[80].mxu0 %v9029_v16  ;;  %3543 = vmatmul.mubr.bf16.vlgmr.msra.gmra.mrb[80].mxu1 %v9029_v16 }
 0xa80   :  { %3552 = vmatpush1.bf16.msra.mxu0 %v7649_v31  ;;  %3593 = vmatpush1.bf16.msra.mxu1 %v7651_v54 }
 0xa81   :  { %3553 = vmatprep.subr.bf16.mxu0 %v7653_v52  ;;  %3594 = vmatprep.subr.bf16.mxu1 %v7655_v53 }
 0xa82   :  { %3583 = vmatprep.mubr.bf16.mxu0 %v9029_v16  ;;  %3624 = vmatprep.mubr.bf16.mxu1 %v9029_v16 }
 0xa84   :  { %3554 = vmatpush1.bf16.msra.mxu0 %v7663_v51  ;;  %3595 = vmatpush1.bf16.msra.mxu1 %v7665_v22 }
 0xa85   :  { %3555 = vmatprep.subr.bf16.mxu0 %v7667_v55  ;;  %3596 = vmatprep.subr.bf16.mxu1 %v7669_v61 }
 0xa88   :  { %3556 = vmatpush1.bf16.msra.mxu0 %v7677_v39  ;;  %3597 = vmatpush1.bf16.msra.mxu1 %v7679_v21 }
 0xa89   :  { %3557 = vmatprep.subr.bf16.mxu0 %v7681_v17  ;;  %3598 = vmatprep.subr.bf16.mxu1 %v7683_v18 }
 0xa8c   :  { %3558 = vmatpush1.bf16.msra.mxu0 %v7689_v33  ;;  %3599 = vmatpush1.bf16.msra.mxu1 %v7691_v30 }
 0xa8d   :  { %3559 = vmatprep.subr.bf16.mxu0 %v7693_v58  ;;  %3600 = vmatprep.subr.bf16.mxu1 %v7695_v45 }
 0xa90   :  { %3560 = vmatpush1.bf16.msra.mxu0 %v7701_v32  ;;  %3601 = vmatpush1.bf16.msra.mxu1 %v7703_v44 }
 0xa91   :  { %3561 = vmatprep.subr.bf16.mxu0 %v7705_v34  ;;  %3602 = vmatprep.subr.bf16.mxu1 %v7707_v24 }
 0xa94   :  { %3562 = vmatpush1.bf16.msra.mxu0 %v7713_v26  ;;  %3603 = vmatpush1.bf16.msra.mxu1 %v7715_v35  ;;  %v7737_v35 = vld [vmem:[#allocation3 + $0x1e0] sm:$0xff] }
 0xa95   :  { %3563 = vmatprep.subr.bf16.mxu0 %v7717_v28  ;;  %3604 = vmatprep.subr.bf16.mxu1 %v7719_v40  ;;  %v7739_v28 = vld [vmem:[#allocation3 + $0x1f0] sm:$0xff] }
 0xa98   :  { %3564 = vmatpush1.bf16.msra.mxu0 %v7725_v41  ;;  %3605 = vmatpush1.bf16.msra.mxu1 %v7727_v42 }
 0xa99   :  { %3565 = vmatprep.subr.bf16.mxu0 %v7729_v43  ;;  %3606 = vmatprep.subr.bf16.mxu1 %v7731_v57 }
 0xa9c   :  { %3566 = vmatpush1.bf16.msra.mxu0 %v7737_v35  ;;  %3607 = vmatpush1.bf16.msra.mxu1 %v7739_v28 }
 0xa9d   :  { %3690 = vmatprep.subr.bf16.mxu0 %v7543_v6  ;;  %3731 = vmatprep.subr.bf16.mxu1 %v7545_v5 }
 0xa9f   :  { %3584 = vmatmul.mubr.bf16.vlgmr.msra.gmra.mrb[84].mxu0 %v9029_v16  ;;  %3625 = vmatmul.mubr.bf16.vlgmr.msra.gmra.mrb[84].mxu1 %v9029_v16 }
 0xaa0   :  { %3691 = vmatpush1.bf16.msra.mxu0 %v7549_v13  ;;  %3732 = vmatpush1.bf16.msra.mxu1 %v7551_v4 }
 0xaa1   :  { %3692 = vmatprep.subr.bf16.mxu0 %v7553_v3  ;;  %3733 = vmatprep.subr.bf16.mxu1 %v7555_v11 }
 0xaa2   :  { %3722 = vmatprep.mubr.bf16.mxu0 %v9029_v16  ;;  %3763 = vmatprep.mubr.bf16.mxu1 %v9029_v16 }
 0xaa4   :  { %3693 = vmatpush1.bf16.msra.mxu0 %v7563_v12  ;;  %3734 = vmatpush1.bf16.msra.mxu1 %v7565_v2 }
 0xaa5   :  { %3694 = vmatprep.subr.bf16.mxu0 %v7567_v1  ;;  %3735 = vmatprep.subr.bf16.mxu1 %v7569_v9 }
 0xaa8   :  { %3695 = vmatpush1.bf16.msra.mxu0 %v7577_v0  ;;  %3736 = vmatpush1.bf16.msra.mxu1 %v7579_v10 }
 0xaa9   :  { %3696 = vmatprep.subr.bf16.mxu0 %v7581_v15  ;;  %3737 = vmatprep.subr.bf16.mxu1 %v7583_v19  ;;  %v9328_v19 = vsub.s32 6, %v6701_v59  ;;  %v9329_v15 = vsub.s32 5, %v6701_v59 }
 0xaac   :  { %3697 = vmatpush1.bf16.msra.mxu0 %v7589_v56  ;;  %3738 = vmatpush1.bf16.msra.mxu1 %v7591_v47 }
 0xaad   :  { %3698 = vmatprep.subr.bf16.mxu0 %v7593_v27  ;;  %3739 = vmatprep.subr.bf16.mxu1 %v7595_v25 }
 0xab0   :  { %3699 = vmatpush1.bf16.msra.mxu0 %v7601_v7  ;;  %3740 = vmatpush1.bf16.msra.mxu1 %v7603_v60 }
 0xab1   :  { %3700 = vmatprep.subr.bf16.mxu0 %v7605_v14  ;;  %3741 = vmatprep.subr.bf16.mxu1 %v7607_v48 }
 0xab4   :  { %3701 = vmatpush1.bf16.msra.mxu0 %v7613_v63  ;;  %3742 = vmatpush1.bf16.msra.mxu1 %v7615_v46  ;;  %v9319_v46 = vld [vmem:[#allocation29_spill] sm:$0xff] }
 0xab5   :  { %3702 = vmatprep.subr.bf16.mxu0 %v7617_v8  ;;  %3743 = vmatprep.subr.bf16.mxu1 %v7619_v20  ;;  %v9318_v8 = vsub.s32 0, %v6701_v59 }
 0xab7   :  { %v3180_v20 = vrot.slane %v9319_v46, %v9318_v8 }
 0xab8   :  { %3703 = vmatpush1.bf16.msra.mxu0 %v7625_v62  ;;  %3744 = vmatpush1.bf16.msra.mxu1 %v7627_v38  ;;  %v9320_v62 = vsub.s32 2, %v6701_v59 }
 0xab9   :  { %3704 = vmatprep.subr.bf16.mxu0 %v7629_v37  ;;  %3745 = vmatprep.subr.bf16.mxu1 %v7631_v49  ;;  %v9321_v49 = vsub.s32 3, %v6701_v59 }
 0xaba   :  { %v3188_v38 = vrot.slane %v9319_v46, %v9320_v62 }
 0xabc   :  { %3705 = vmatpush1.bf16.msra.mxu0 %v7637_v36  ;;  %3746 = vmatpush1.bf16.msra.mxu1 %v7639_v50  ;;  %v3192_v36 = vrot.slane %v9319_v46, %v9321_v49  ;;  %v9327_v49 = vsub.s32 4, %v6701_v59 }
 0xabd   :  { %3772 = vmatprep.subr.bf16.mxu0 %v7641_v29  ;;  %3813 = vmatprep.subr.bf16.mxu1 %v7643_v23  ;;  %v9322_v29 = vsub.s32 1, %v6701_v59 }
 0xabe   :  { %v3196_v56 = vrot.slane %v9319_v46, %v9327_v49 }
 0xabf   :  { %v3184_v23 = vrot.slane %v9319_v46, %v9322_v29  ;;  %v3204_v29 = vrot.slane %v9319_v46, %v9328_v19 }
 0xaf2   :  { %v3251_v63 = vpop.f32.mrb[72].mxu0  ;;  %v3294_v37 = vpop.f32.mrb[72].mxu1 }
 0xaf3   :  { %v3253_v48 = vpop.f32.mrb[73].mxu0  ;;  %v3296_v50 = vpop.f32.mrb[73].mxu1 }
 0xaf4   :  { %v3255_v14 = vpop.f32.mrb[74].mxu0  ;;  %v3298_v60 = vpop.f32.mrb[74].mxu1 }
 0xaf5   :  { %v7793_v7 = vadd.f32 %v3255_v14, %v3180_v20  ;;  %v3257_v8 = vpop.f32.mrb[75].mxu0  ;;  %v7795_v25 = vadd.f32 %v3298_v60, %v3188_v38  ;;  %v3300_v62 = vpop.f32.mrb[75].mxu1  ;;  %v3200_v14 = vrot.slane %v9319_v46, %v9329_v15  ;;  %v9330_v60 = vsub.s32 7, %v6701_v59 }
 0xaf6   :  { %v7797_v27 = vadd.f32 %v3257_v8, %v3184_v23  ;;  %v7799_v47 = vadd.f32 %v3300_v62, %v3192_v36 }
 0xaf7   :  { %9323 = vst [vmem:[#allocation57_spill] sm:$0xff] %v7793_v7  ;;  %9324 = vst [vmem:[#allocation58_spill] sm:$0xff] %v7795_v25  ;;  %v3208_v25 = vrot.slane %v9319_v46, %v9330_v60 }
 0xaf8   :  { %9325 = vst [vmem:[#allocation59_spill] sm:$0xff] %v7797_v27  ;;  %9326 = vst [vmem:[#allocation60_spill] sm:$0xff] %v7799_v47 }
 0xb32   :  { %v3337_v8 = vpop.f32.mrb[76].mxu0  ;;  %v3380_v27 = vpop.f32.mrb[76].mxu1 }
 0xb33   :  { %v7813_v62 = vadd.f32 %v3337_v8, %v3196_v56  ;;  %v7815_v47 = vadd.f32 %v3380_v27, %v3204_v29  ;;  %v3339_v7 = vpop.f32.mrb[77].mxu0  ;;  %v3382_v49 = vpop.f32.mrb[77].mxu1 }
 0xb34   :  { %v7817_v10 = vadd.f32 %v3339_v7, %v3200_v14  ;;  %v7819_v0 = vadd.f32 %v3382_v49, %v3208_v25  ;;  %v3341_v19 = vpop.f32.mrb[78].mxu0  ;;  %v3384_v9 = vpop.f32.mrb[78].mxu1 }
 0xb35   :  { %9331 = vst [vmem:[#allocation61_spill] sm:$0xff] %v7813_v62  ;;  %9332 = vst [vmem:[#allocation62_spill] sm:$0xff] %v7815_v47  ;;  %v3343_v1 = vpop.f32.mrb[79].mxu0  ;;  %v3386_v15 = vpop.f32.mrb[79].mxu1  ;;  %v7821_v27 = vadd.f32 %v3341_v19, %v3196_v56  ;;  %v7823_v47 = vadd.f32 %v3384_v9, %v3204_v29  ;;  %v7837_v56 = vadd.f32 %v3253_v48, %v3184_v23 }
 0xb36   :  { %9333 = vst [vmem:[#allocation63_spill] sm:$0xff] %v7817_v10  ;;  %9334 = vst [vmem:[#allocation64_spill] sm:$0xff] %v7819_v0  ;;  %v7825_v7 = vadd.f32 %v3343_v1, %v3200_v14  ;;  %v7827_v49 = vadd.f32 %v3386_v15, %v3208_v25  ;;  %v7839_v9 = vadd.f32 %v3296_v50, %v3192_v36 }
 0xb37   :  { %9335 = vst [vmem:[#allocation65_spill] sm:$0xff] %v7821_v27  ;;  %9336 = vst [vmem:[#allocation66_spill] sm:$0xff] %v7823_v47  ;;  %v3457_v0 = vrot.slane %v7821_v27, 4  ;;  %v3459_v10 = vrot.slane %v7823_v47, 4 }
 0xb38   :  { %9337 = vst [vmem:[#allocation67_spill] sm:$0xff] %v7825_v7  ;;  %9338 = vst [vmem:[#allocation68_spill] sm:$0xff] %v7827_v49  ;;  %v3458_v4 = vrot.slane %v7825_v7, 4  ;;  %v3460_v13 = vrot.slane %v7827_v49, 4 }
 0xb39   :  { %9341 = vst [vmem:[#allocation71_spill] sm:$0xff] %v7837_v56  ;;  %9342 = vst [vmem:[#allocation72_spill] sm:$0xff] %v7839_v9 }
 0xb3a   :  { %v3466_v48 = vsel %vm968_vm0, %v7837_v56, %v3458_v4 }
 0xb52   :  { %v3503_v2 = vpop.f32.mrb[80].mxu0  ;;  %v3544_v12 = vpop.f32.mrb[80].mxu1 }
 0xb53   :  { %v3505_v11 = vpop.f32.mrb[81].mxu0  ;;  %v3546_v46 = vpop.f32.mrb[81].mxu1 }
 0xb54   :  { %v3507_v60 = vpop.f32.mrb[82].mxu0  ;;  %v3548_v3 = vpop.f32.mrb[82].mxu1 }
 0xb55   :  { %v3508_v8 = vpop.f32.mrb[83].mxu0  ;;  %v3549_v62 = vpop.f32.mrb[83].mxu1  ;;  %v7833_v60 = vadd.f32 %v3251_v63, %v3180_v20  ;;  %v7835_v3 = vadd.f32 %v3294_v37, %v3188_v38  ;;  %v3468_v38 = vsel %vm968_vm0, %v7839_v9, %v3460_v13 }
 0xb57   :  { %9339 = vst [vmem:[#allocation69_spill] sm:$0xff] %v7833_v60  ;;  %9340 = vst [vmem:[#allocation70_spill] sm:$0xff] %v7835_v3  ;;  %v3465_v1 = vsel %vm968_vm0, %v7833_v60, %v3457_v0  ;;  %v3467_v29 = vsel %vm968_vm0, %v7835_v3, %v3459_v10 }
 0xb72   :  { %v3585_v25 = vpop.f32.mrb[84].mxu0  ;;  %v3626_v14 = vpop.f32.mrb[84].mxu1 }
 0xb73   :  { %v3633_v62 = vsel %vm285_vm1, %v3503_v2, %v3585_v25  ;;  %v3635_v63 = vsel %vm285_vm1, %v3544_v12, %v3626_v14  ;;  %v3587_v20 = vpop.f32.mrb[85].mxu0  ;;  %v3628_v37 = vpop.f32.mrb[85].mxu1 }
 0xb74   :  { %v3637_v0 = vadd.f32 %v3633_v62, %v3465_v1  ;;  %v3639_v36 = vadd.f32 %v3635_v63, %v3467_v29  ;;  %v3634_v10 = vsel %vm285_vm1, %v3505_v11, %v3587_v20  ;;  %v3636_v50 = vsel %vm285_vm1, %v3546_v46, %v3628_v37  ;;  %v3589_v2 = vpop.f32.mrb[86].mxu0  ;;  %v3630_v23 = vpop.f32.mrb[86].mxu1 }
 0xb75   :  { %v3638_v19 = vadd.f32 %v3634_v10, %v3466_v48  ;;  %v3640_v12 = vadd.f32 %v3636_v50, %v3468_v38  ;;  %v3590_v15 = vpop.f32.mrb[87].mxu0  ;;  %v3631_v8 = vpop.f32.mrb[87].mxu1  ;;  %v9344_v23 = vld [vmem:[#allocation55_spill] sm:$0xff] }
 0xb76   :  { %v5778_v4 = vmul.f32 -1.442695, %v3637_v0  ;;  %v5780_v13 = vmul.f32 -1.442695, %v3639_v36  ;;  %v9347_v15 = vld [vmem:[#allocation85_spill] sm:$0xff]  ;;  %v9348_v8 = vld [vmem:[#allocation86_spill] sm:$0xff] }
 0xb77   :  { %v5779_v25 = vmul.f32 -1.442695, %v3638_v19  ;;  %v9345_v19 = vld [vmem:[#allocation56_spill] sm:$0xff] }
 0xb78   :  { %5978 = vpow2.f32 %v5778_v4  ;;  %v9349_v4 = vld [vmem:[#allocation87_spill] sm:$0xff] }
 0xb79   :  { %5980 = vpow2.f32 %v5779_v25  ;;  %v9350_v25 = vld [vmem:[#allocation88_spill] sm:$0xff] }
 0xb7a   :  { %5982 = vtanh.f32 %v3640_v12  ;;  %v9346_v12 = vld [vmem:[#allocation84_spill] sm:$0xff] }
 0xb7b   :  { %5984 = vpow2.f32 %v5780_v13  ;;  %v9351_v13 = vld [vmem:[#allocation89_spill] sm:$0xff] }
 0xb82   :  { %v5979_v14 = vpop.eup %5978 }
 0xb83   :  { %v3650_v1 = vadd.f32 1.0, %v5979_v14  ;;  %v5981_v29 = vpop.eup %5980  ;;  %v9352_v14 = vld [vmem:[#allocation46_spill] sm:$0xff] }
 0xb84   :  { %v3651_v11 = vadd.f32 1.0, %v5981_v29  ;;  %v5983_v46 = vpop.eup %5982  ;;  %v9354_v29 = vld [vmem:[#allocation48_spill] sm:$0xff] }
 0xb85   :  { %5986 = vrcp.f32 %v3650_v1  ;;  %v5985_v62 = vpop.eup %5984  ;;  %v9353_v1 = vld [vmem:[#allocation47_spill] sm:$0xff] }
 0xb86   :  { %5988 = vrcp.f32 %v3651_v11  ;;  %v3652_v38 = vadd.f32 1.0, %v5985_v62  ;;  %v9355_v11 = vld [vmem:[#allocation49_spill] sm:$0xff]  ;;  %v9357_v62 = vld [vmem:[#allocation51_spill] sm:$0xff] }
 0xb88   :  { %5990 = vrcp.f32 %v3652_v38  ;;  %v9361_v38 = vld [vmem:[#allocation91_spill] sm:$0xff] }
 0xb8f   :  { %v5987_v63 = vpop.eup %5986 }
 0xb90   :  { %v3661_v48 = vmul.f32 %v5987_v63, %v5983_v46  ;;  %v5989_v20 = vpop.eup %5988  ;;  %v9356_v46 = vld [vmem:[#allocation50_spill] sm:$0xff]  ;;  %v9358_v63 = vld [vmem:[#allocation52_spill] sm:$0xff] }
 0xb91   :  { %v3660_v37 = vmul.f32 0.0, %v5989_v20  ;;  %v9360_v20 = vld [vmem:[#allocation90_spill] sm:$0xff] }
 0xb92   :  { %v5991_v36 = vpop.eup %5990 }
 0xb93   :  { %v7857_v0 = vadd.f32 %v3661_v48, %v3660_v37  ;;  %v9359_v48 = vld [vmem:[#allocation53_spill] sm:$0xff]  ;;  %v9362_v37 = vld [vmem:[#allocation92_spill] sm:$0xff] }
 0xb95   :  { %5992 = vtanh.f32 %v7857_v0 }
 0xb9f   :  { %v5993_v10 = vpop.eup %5992 }
 0xba0   :  { %v7860_v50 = vmul.f32 %v5993_v10, %v5991_v36  ;;  %v9363_v36 = vld [vmem:[#allocation93_spill] sm:$0xff] }
 0xba1   :  { %v9364_v10 = vld [vmem:[#allocation97_spill] sm:$0xff] }
 0xba2   :  { %9343 = vst [vmem:[#allocation73_spill] sm:$0xff] %v7860_v50  ;;  %v3689_v2 = vpack.c.bf16 %v7860_v50, %v7860_v50  ;;  %v9366_v50 = vld [vmem:[#allocation99_spill] sm:$0xff] }
 0xba4   :  { %3723 = vmatmul.mubr.bf16.vlgmr.msra.gmra.mrb[88].mxu0 %v3689_v2  ;;  %3764 = vmatmul.mubr.bf16.vlgmr.msra.gmra.mrb[88].mxu1 %v3689_v2 }
 0xba5   :  { %3773 = vmatpush1.bf16.msra.mxu0 %v7649_v31  ;;  %3814 = vmatpush1.bf16.msra.mxu1 %v7651_v54 }
 0xba6   :  { %3774 = vmatprep.subr.bf16.mxu0 %v7653_v52  ;;  %3815 = vmatprep.subr.bf16.mxu1 %v7655_v53 }
 0xba7   :  { %3804 = vmatprep.mubr.bf16.mxu0 %v9029_v16  ;;  %3845 = vmatprep.mubr.bf16.mxu1 %v9029_v16 }
 0xba9   :  { %3775 = vmatpush1.bf16.msra.mxu0 %v7663_v51  ;;  %3816 = vmatpush1.bf16.msra.mxu1 %v7665_v22 }
 0xbaa   :  { %3776 = vmatprep.subr.bf16.mxu0 %v7667_v55  ;;  %3817 = vmatprep.subr.bf16.mxu1 %v7669_v61 }
 0xbad   :  { %3777 = vmatpush1.bf16.msra.mxu0 %v7677_v39  ;;  %3818 = vmatpush1.bf16.msra.mxu1 %v7679_v21 }
 0xbae   :  { %3778 = vmatprep.subr.bf16.mxu0 %v7681_v17  ;;  %3819 = vmatprep.subr.bf16.mxu1 %v7683_v18 }
 0xbb1   :  { %3779 = vmatpush1.bf16.msra.mxu0 %v7689_v33  ;;  %3820 = vmatpush1.bf16.msra.mxu1 %v7691_v30 }
 0xbb2   :  { %3780 = vmatprep.subr.bf16.mxu0 %v7693_v58  ;;  %3821 = vmatprep.subr.bf16.mxu1 %v7695_v45 }
 0xbb5   :  { %3781 = vmatpush1.bf16.msra.mxu0 %v7701_v32  ;;  %3822 = vmatpush1.bf16.msra.mxu1 %v7703_v44 }
 0xbb6   :  { %3782 = vmatprep.subr.bf16.mxu0 %v7705_v34  ;;  %3823 = vmatprep.subr.bf16.mxu1 %v7707_v24 }
 0xbb9   :  { %3783 = vmatpush1.bf16.msra.mxu0 %v7713_v26  ;;  %3824 = vmatpush1.bf16.msra.mxu1 %v9344_v23 }
 0xbba   :  { %3784 = vmatprep.subr.bf16.mxu0 %v9345_v19  ;;  %3825 = vmatprep.subr.bf16.mxu1 %v7719_v40 }
 0xbbd   :  { %3785 = vmatpush1.bf16.msra.mxu0 %v7725_v41  ;;  %3826 = vmatpush1.bf16.msra.mxu1 %v7727_v42 }
 0xbbe   :  { %3786 = vmatprep.subr.bf16.mxu0 %v7729_v43  ;;  %3827 = vmatprep.subr.bf16.mxu1 %v7731_v57 }
 0xbc1   :  { %3787 = vmatpush1.bf16.msra.mxu0 %v7737_v35  ;;  %3828 = vmatpush1.bf16.msra.mxu1 %v7739_v28 }
 0xbc2   :  { %3899 = vmatprep.subr.bf16.mxu0 %v7543_v6  ;;  %3940 = vmatprep.subr.bf16.mxu1 %v7545_v5 }
 0xbc4   :  { %3805 = vmatmul.mubr.bf16.vlgmr.msra.gmra.mrb[92].mxu0 %v3689_v2  ;;  %3846 = vmatmul.mubr.bf16.vlgmr.msra.gmra.mrb[92].mxu1 %v3689_v2  ;;  %v9365_v2 = vld [vmem:[#allocation98_spill] sm:$0xff] }
 0xbc5   :  { %3900 = vmatpush1.bf16.msra.mxu0 %v9346_v12  ;;  %3941 = vmatpush1.bf16.msra.mxu1 %v9347_v15 }
 0xbc6   :  { %3901 = vmatprep.subr.bf16.mxu0 %v9348_v8  ;;  %3942 = vmatprep.subr.bf16.mxu1 %v9349_v4 }
 0xbc7   :  { %3931 = vmatprep.mubr.bf16.mxu0 %v9029_v16  ;;  %3972 = vmatprep.mubr.bf16.mxu1 %v9029_v16 }
 0xbc9   :  { %3902 = vmatpush1.bf16.msra.mxu0 %v9350_v25  ;;  %3943 = vmatpush1.bf16.msra.mxu1 %v9351_v13  ;;  %v3672_v13 = vrot.slane %v7839_v9, 2 }
 0xbca   :  { %3903 = vmatprep.subr.bf16.mxu0 %v9352_v14  ;;  %3944 = vmatprep.subr.bf16.mxu1 %v9353_v1  ;;  %v3670_v14 = vrot.slane %v7837_v56, 2 }
 0xbcd   :  { %3904 = vmatpush1.bf16.msra.mxu0 %v9354_v29  ;;  %3945 = vmatpush1.bf16.msra.mxu1 %v9355_v11 }
 0xbce   :  { %3905 = vmatprep.subr.bf16.mxu0 %v9356_v46  ;;  %3946 = vmatprep.subr.bf16.mxu1 %v9357_v62  ;;  %v9367_v46 = vld [vmem:[#allocation100_spill] sm:$0xff] }
 0xbcf   :  { %v9368_v62 = vld [vmem:[#allocation80_spill] sm:$0xff] }
 0xbd1   :  { %3906 = vmatpush1.bf16.msra.mxu0 %v9358_v63  ;;  %3947 = vmatpush1.bf16.msra.mxu1 %v9359_v48  ;;  %v9369_v63 = vld [vmem:[#allocation54_spill] sm:$0xff] }
 0xbd2   :  { %3907 = vmatprep.subr.bf16.mxu0 %v9360_v20  ;;  %3948 = vmatprep.subr.bf16.mxu1 %v9361_v38  ;;  %v9370_v48 = vld [vmem:[#allocation94_spill] sm:$0xff]  ;;  %v9371_v20 = vld [vmem:[#allocation95_spill] sm:$0xff]  ;;  %v9372_v38 = vld [vmem:[#allocation96_spill] sm:$0xff] }
 0xbd5   :  { %3908 = vmatpush1.bf16.msra.mxu0 %v9362_v37  ;;  %3949 = vmatpush1.bf16.msra.mxu1 %v9363_v36  ;;  %v9373_v37 = vld [vmem:[#allocation102_spill] sm:$0xff]  ;;  %v9374_v36 = vld [vmem:[#allocation101_spill] sm:$0xff] }
 0xbd6   :  { %3909 = vmatprep.subr.bf16.mxu0 %v9364_v10  ;;  %3950 = vmatprep.subr.bf16.mxu1 %v9365_v2  ;;  %v9375_v10 = vld [vmem:[#allocation105_spill] sm:$0xff]  ;;  %v9376_v2 = vld [vmem:[#allocation106_spill] sm:$0xff] }
 0xbd9   :  { %3910 = vmatpush1.bf16.msra.mxu0 %v9366_v50  ;;  %3951 = vmatpush1.bf16.msra.mxu1 %v9367_v46  ;;  %v9377_v50 = vld [vmem:[#allocation109_spill] sm:$0xff] }
 0xbda   :  { %3911 = vmatprep.subr.bf16.mxu0 %v9368_v62  ;;  %3952 = vmatprep.subr.bf16.mxu1 %v9369_v63 }
 0xbdd   :  { %3912 = vmatpush1.bf16.msra.mxu0 %v9370_v48  ;;  %3953 = vmatpush1.bf16.msra.mxu1 %v9371_v20 }
 0xbde   :  { %3913 = vmatprep.subr.bf16.mxu0 %v9372_v38  ;;  %3954 = vmatprep.subr.bf16.mxu1 %v9373_v37  ;;  %v3677_v38 = vrot.slane %v7821_v27, 2  ;;  %v3679_v37 = vrot.slane %v7823_v47, 2 }
 0xbe1   :  { %3914 = vmatpush1.bf16.msra.mxu0 %v9374_v36  ;;  %3955 = vmatpush1.bf16.msra.mxu1 %v9375_v10  ;;  %v3678_v36 = vrot.slane %v7825_v7, 2  ;;  %v3680_v10 = vrot.slane %v7827_v49, 2 }
 0xbe2   :  { %3981 = vmatprep.subr.bf16.mxu0 %v9376_v2  ;;  %4022 = vmatprep.subr.bf16.mxu1 %v9377_v50  ;;  %v3669_v2 = vrot.slane %v7833_v60, 2  ;;  %v3671_v50 = vrot.slane %v7835_v3, 2 }
 0xbe3   :  { %v3686_v7 = vsel %vm968_vm0, %v3670_v14, %v3678_v36  ;;  %v3688_v3 = vsel %vm968_vm0, %v3672_v13, %v3680_v10 }
 0xc77   :  { %v3724_v46 = vpop.f32.mrb[88].mxu0  ;;  %v3765_v62 = vpop.f32.mrb[88].mxu1 }
 0xc78   :  { %v3726_v11 = vpop.f32.mrb[89].mxu0  ;;  %v3767_v63 = vpop.f32.mrb[89].mxu1 }
 0xc79   :  { %v3728_v29 = vpop.f32.mrb[90].mxu0  ;;  %v3769_v48 = vpop.f32.mrb[90].mxu1 }
 0xc7a   :  { %v3729_v1 = vpop.f32.mrb[91].mxu0  ;;  %v3770_v20 = vpop.f32.mrb[91].mxu1  ;;  %v3685_v29 = vsel %vm968_vm0, %v3669_v2, %v3677_v38  ;;  %v3687_v48 = vsel %vm968_vm0, %v3671_v50, %v3679_v37 }
 0xc97   :  { %v3806_v1 = vpop.f32.mrb[92].mxu0  ;;  %v3847_v20 = vpop.f32.mrb[92].mxu1 }
 0xc98   :  { %v3854_v47 = vsel %vm285_vm1, %v3724_v46, %v3806_v1  ;;  %v3856_v49 = vsel %vm285_vm1, %v3765_v62, %v3847_v20  ;;  %v3808_v27 = vpop.f32.mrb[93].mxu0  ;;  %v3849_v56 = vpop.f32.mrb[93].mxu1 }
 0xc99   :  { %v3858_v60 = vadd.f32 %v3854_v47, %v3685_v29  ;;  %v3860_v9 = vadd.f32 %v3856_v49, %v3687_v48  ;;  %v3855_v38 = vsel %vm285_vm1, %v3726_v11, %v3808_v27  ;;  %v3857_v50 = vsel %vm285_vm1, %v3767_v63, %v3849_v56  ;;  %v3810_v37 = vpop.f32.mrb[94].mxu0  ;;  %v3851_v2 = vpop.f32.mrb[94].mxu1 }
 0xc9a   :  { %v3859_v46 = vadd.f32 %v3855_v38, %v3686_v7  ;;  %v3861_v1 = vadd.f32 %v3857_v50, %v3688_v3  ;;  %v3811_v25 = vpop.f32.mrb[95].mxu0  ;;  %v3852_v62 = vpop.f32.mrb[95].mxu1  ;;  %v9380_v50 = vld [vmem:[#allocation89_spill] sm:$0xff]  ;;  %v9383_v37 = vld [vmem:[#allocation48_spill] sm:$0xff] }
 0xc9b   :  { %v5781_v20 = vmul.f32 -1.442695, %v3858_v60  ;;  %v5783_v13 = vmul.f32 -1.442695, %v3860_v9  ;;  %v9388_v2 = vld [vmem:[#allocation53_spill] sm:$0xff]  ;;  %v9391_v62 = vld [vmem:[#allocation92_spill] sm:$0xff] }
 0xc9c   :  { %v5782_v14 = vmul.f32 -1.442695, %v3859_v46  ;;  %v9389_v46 = vld [vmem:[#allocation90_spill] sm:$0xff] }
 0xc9d   :  { %5994 = vpow2.f32 %v5781_v20  ;;  %v9392_v20 = vld [vmem:[#allocation93_spill] sm:$0xff] }
 0xc9e   :  { %5996 = vpow2.f32 %v5782_v14  ;;  %v9393_v14 = vld [vmem:[#allocation97_spill] sm:$0xff] }
 0xc9f   :  { %5998 = vtanh.f32 %v3861_v1  ;;  %v9390_v1 = vld [vmem:[#allocation91_spill] sm:$0xff] }
 0xca0   :  { %6000 = vpow2.f32 %v5783_v13  ;;  %v9394_v13 = vld [vmem:[#allocation98_spill] sm:$0xff] }
 0xca7   :  { %v5995_v36 = vpop.eup %5994 }
 0xca8   :  { %v3871_v47 = vadd.f32 1.0, %v5995_v36  ;;  %v5997_v49 = vpop.eup %5996  ;;  %v9395_v36 = vld [vmem:[#allocation99_spill] sm:$0xff] }
 0xca9   :  { %v3872_v27 = vadd.f32 1.0, %v5997_v49  ;;  %v5999_v56 = vpop.eup %5998  ;;  %v9397_v49 = vld [vmem:[#allocation80_spill] sm:$0xff] }
 0xcaa   :  { %6002 = vrcp.f32 %v3871_v47  ;;  %v6001_v11 = vpop.eup %6000  ;;  %v9396_v47 = vld [vmem:[#allocation100_spill] sm:$0xff] }
 0xcab   :  { %6004 = vrcp.f32 %v3872_v27  ;;  %v3873_v25 = vadd.f32 1.0, %v6001_v11  ;;  %v9398_v27 = vld [vmem:[#allocation54_spill] sm:$0xff]  ;;  %v9400_v11 = vld [vmem:[#allocation95_spill] sm:$0xff] }
 0xcad   :  { %6006 = vrcp.f32 %v3873_v25  ;;  %v9404_v25 = vld [vmem:[#allocation105_spill] sm:$0xff] }
 0xcb4   :  { %v6003_v63 = vpop.eup %6002 }
 0xcb5   :  { %v3882_v7 = vmul.f32 %v6003_v63, %v5999_v56  ;;  %v6005_v3 = vpop.eup %6004  ;;  %v9399_v56 = vld [vmem:[#allocation94_spill] sm:$0xff]  ;;  %v9401_v63 = vld [vmem:[#allocation96_spill] sm:$0xff] }
 0xcb6   :  { %v3881_v60 = vmul.f32 %v6005_v3, %v7857_v0  ;;  %v9379_v0 = vld [vmem:[#allocation88_spill] sm:$0xff]  ;;  %v9403_v3 = vld [vmem:[#allocation101_spill] sm:$0xff] }
 0xcb7   :  { %v6007_v9 = vpop.eup %6006 }
 0xcb8   :  { %v7953_v10 = vadd.f32 %v3882_v7, %v3881_v60  ;;  %v9402_v7 = vld [vmem:[#allocation102_spill] sm:$0xff] }
 0xcb9   :  { %v9405_v60 = vld [vmem:[#allocation106_spill] sm:$0xff] }
 0xcba   :  { %6008 = vtanh.f32 %v7953_v10 }
 0xcc4   :  { %v6009_v29 = vpop.eup %6008 }
 0xcc5   :  { %v7956_v48 = vmul.f32 %v6009_v29, %v6007_v9  ;;  %v9406_v9 = vld [vmem:[#allocation109_spill] sm:$0xff] }
 0xcc7   :  { %9378 = vst [vmem:[#allocation74_spill] sm:$0xff] %v7956_v48  ;;  %v3898_v38 = vpack.c.bf16 %v7956_v48, %v7956_v48 }
 0xcc9   :  { %3932 = vmatmul.mubr.bf16.vlgmr.msra.gmra.mrb[96].mxu0 %v3898_v38  ;;  %3973 = vmatmul.mubr.bf16.vlgmr.msra.gmra.mrb[96].mxu1 %v3898_v38 }
 0xcca   :  { %3982 = vmatpush1.bf16.msra.mxu0 %v7649_v31  ;;  %4023 = vmatpush1.bf16.msra.mxu1 %v7651_v54 }
 0xccb   :  { %3983 = vmatprep.subr.bf16.mxu0 %v7653_v52  ;;  %4024 = vmatprep.subr.bf16.mxu1 %v7655_v53 }
 0xccc   :  { %4013 = vmatprep.mubr.bf16.mxu0 %v9029_v16  ;;  %4054 = vmatprep.mubr.bf16.mxu1 %v9029_v16 }
 0xcce   :  { %3984 = vmatpush1.bf16.msra.mxu0 %v7663_v51  ;;  %4025 = vmatpush1.bf16.msra.mxu1 %v7665_v22 }
 0xccf   :  { %3985 = vmatprep.subr.bf16.mxu0 %v7667_v55  ;;  %4026 = vmatprep.subr.bf16.mxu1 %v7669_v61 }
 0xcd2   :  { %3986 = vmatpush1.bf16.msra.mxu0 %v7677_v39  ;;  %4027 = vmatpush1.bf16.msra.mxu1 %v7679_v21 }
 0xcd3   :  { %3987 = vmatprep.subr.bf16.mxu0 %v7681_v17  ;;  %4028 = vmatprep.subr.bf16.mxu1 %v7683_v18 }
 0xcd6   :  { %3988 = vmatpush1.bf16.msra.mxu0 %v7689_v33  ;;  %4029 = vmatpush1.bf16.msra.mxu1 %v7691_v30 }
 0xcd7   :  { %3989 = vmatprep.subr.bf16.mxu0 %v7693_v58  ;;  %4030 = vmatprep.subr.bf16.mxu1 %v7695_v45 }
 0xcda   :  { %3990 = vmatpush1.bf16.msra.mxu0 %v7701_v32  ;;  %4031 = vmatpush1.bf16.msra.mxu1 %v7703_v44 }
 0xcdb   :  { %3991 = vmatprep.subr.bf16.mxu0 %v7705_v34  ;;  %4032 = vmatprep.subr.bf16.mxu1 %v7707_v24 }
 0xcde   :  { %3992 = vmatpush1.bf16.msra.mxu0 %v7713_v26  ;;  %4033 = vmatpush1.bf16.msra.mxu1 %v9344_v23 }
 0xcdf   :  { %3993 = vmatprep.subr.bf16.mxu0 %v9345_v19  ;;  %4034 = vmatprep.subr.bf16.mxu1 %v7719_v40 }
 0xce2   :  { %3994 = vmatpush1.bf16.msra.mxu0 %v7725_v41  ;;  %4035 = vmatpush1.bf16.msra.mxu1 %v7727_v42 }
 0xce3   :  { %3995 = vmatprep.subr.bf16.mxu0 %v7729_v43  ;;  %4036 = vmatprep.subr.bf16.mxu1 %v7731_v57 }
 0xce6   :  { %3996 = vmatpush1.bf16.msra.mxu0 %v7737_v35  ;;  %4037 = vmatpush1.bf16.msra.mxu1 %v7739_v28 }
 0xce7   :  { %4116 = vmatprep.subr.bf16.mxu0 %v7543_v6  ;;  %4157 = vmatprep.subr.bf16.mxu1 %v7545_v5  ;;  %v9381_v6 = vld [vmem:[#allocation46_spill] sm:$0xff]  ;;  %v9382_v5 = vld [vmem:[#allocation47_spill] sm:$0xff] }
 0xce9   :  { %4014 = vmatmul.mubr.bf16.vlgmr.msra.gmra.mrb[100].mxu0 %v3898_v38  ;;  %4055 = vmatmul.mubr.bf16.vlgmr.msra.gmra.mrb[100].mxu1 %v3898_v38 }
 0xcea   :  { %4117 = vmatpush1.bf16.msra.mxu0 %v9346_v12  ;;  %4158 = vmatpush1.bf16.msra.mxu1 %v9347_v15  ;;  %v9384_v12 = vld [vmem:[#allocation49_spill] sm:$0xff]  ;;  %v9385_v15 = vld [vmem:[#allocation50_spill] sm:$0xff] }
 0xceb   :  { %4118 = vmatprep.subr.bf16.mxu0 %v9348_v8  ;;  %4159 = vmatprep.subr.bf16.mxu1 %v9349_v4  ;;  %v9386_v8 = vld [vmem:[#allocation51_spill] sm:$0xff]  ;;  %v9387_v4 = vld [vmem:[#allocation52_spill] sm:$0xff] }
 0xcec   :  { %4148 = vmatprep.mubr.bf16.mxu0 %v9029_v16  ;;  %4189 = vmatprep.mubr.bf16.mxu1 %v9029_v16 }
 0xcee   :  { %4119 = vmatpush1.bf16.msra.mxu0 %v9379_v0  ;;  %4160 = vmatpush1.bf16.msra.mxu1 %v9380_v50 }
 0xcef   :  { %4120 = vmatprep.subr.bf16.mxu0 %v9381_v6  ;;  %4161 = vmatprep.subr.bf16.mxu1 %v9382_v5 }
 0xcf2   :  { %4121 = vmatpush1.bf16.msra.mxu0 %v9383_v37  ;;  %4162 = vmatpush1.bf16.msra.mxu1 %v9384_v12 }
 0xcf3   :  { %4122 = vmatprep.subr.bf16.mxu0 %v9385_v15  ;;  %4163 = vmatprep.subr.bf16.mxu1 %v9386_v8  ;;  %v9407_v15 = vld [vmem:[#allocation69_spill] sm:$0xff] }
 0xcf4   :  { %v3886_v8 = vrot.slane %v9407_v15, 4 }
 0xcf6   :  { %4123 = vmatpush1.bf16.msra.mxu0 %v9387_v4  ;;  %4164 = vmatpush1.bf16.msra.mxu1 %v9388_v2  ;;  %v9408_v4 = vld [vmem:[#allocation70_spill] sm:$0xff] }
 0xcf7   :  { %4124 = vmatprep.subr.bf16.mxu0 %v9389_v46  ;;  %4165 = vmatprep.subr.bf16.mxu1 %v9390_v1  ;;  %v3888_v2 = vrot.slane %v9408_v4, 4  ;;  %v9409_v46 = vld [vmem:[#allocation71_spill] sm:$0xff] }
 0xcf8   :  { %v3887_v1 = vrot.slane %v9409_v46, 4 }
 0xcfa   :  { %4125 = vmatpush1.bf16.msra.mxu0 %v9391_v62  ;;  %4166 = vmatpush1.bf16.msra.mxu1 %v9392_v20  ;;  %v9410_v62 = vld [vmem:[#allocation72_spill] sm:$0xff] }
 0xcfb   :  { %4126 = vmatprep.subr.bf16.mxu0 %v9393_v14  ;;  %4167 = vmatprep.subr.bf16.mxu1 %v9394_v13  ;;  %v3889_v20 = vrot.slane %v9410_v62, 4  ;;  %v9411_v14 = vld [vmem:[#allocation65_spill] sm:$0xff] }
 0xcfc   :  { %v3894_v13 = vsel %vm968_vm0, %v3886_v8, %v9411_v14 }
 0xcfe   :  { %4127 = vmatpush1.bf16.msra.mxu0 %v9395_v36  ;;  %4168 = vmatpush1.bf16.msra.mxu1 %v9396_v47  ;;  %v9412_v47 = vld [vmem:[#allocation66_spill] sm:$0xff] }
 0xcff   :  { %4128 = vmatprep.subr.bf16.mxu0 %v9397_v49  ;;  %4169 = vmatprep.subr.bf16.mxu1 %v9398_v27  ;;  %v3896_v49 = vsel %vm968_vm0, %v3888_v2, %v9412_v47 }
 0xd02   :  { %4129 = vmatpush1.bf16.msra.mxu0 %v9399_v56  ;;  %4170 = vmatpush1.bf16.msra.mxu1 %v9400_v11 }
 0xd03   :  { %4130 = vmatprep.subr.bf16.mxu0 %v9401_v63  ;;  %4171 = vmatprep.subr.bf16.mxu1 %v9402_v7  ;;  %v9413_v63 = vld [vmem:[#allocation67_spill] sm:$0xff] }
 0xd04   :  { %v3895_v7 = vsel %vm968_vm0, %v3887_v1, %v9413_v63 }
 0xd06   :  { %4131 = vmatpush1.bf16.msra.mxu0 %v9403_v3  ;;  %4172 = vmatpush1.bf16.msra.mxu1 %v9404_v25  ;;  %v9414_v25 = vld [vmem:[#allocation68_spill] sm:$0xff] }
 0xd07   :  { %4198 = vmatprep.subr.bf16.mxu0 %v9405_v60  ;;  %4239 = vmatprep.subr.bf16.mxu1 %v9406_v9  ;;  %v3897_v60 = vsel %vm968_vm0, %v3889_v20, %v9414_v25 }
 0xd9c   :  { %v3933_v29 = vpop.f32.mrb[96].mxu0  ;;  %v3974_v38 = vpop.f32.mrb[96].mxu1 }
 0xd9d   :  { %v3935_v0 = vpop.f32.mrb[97].mxu0  ;;  %v3976_v50 = vpop.f32.mrb[97].mxu1 }
 0xd9e   :  { %v3937_v6 = vpop.f32.mrb[98].mxu0  ;;  %v3978_v5 = vpop.f32.mrb[98].mxu1 }
 0xd9f   :  { %v3938_v37 = vpop.f32.mrb[99].mxu0  ;;  %v3979_v12 = vpop.f32.mrb[99].mxu1 }
 0xdbc   :  { %v4015_v36 = vpop.f32.mrb[100].mxu0  ;;  %v4056_v27 = vpop.f32.mrb[100].mxu1 }
 0xdbd   :  { %v4063_v56 = vsel %vm285_vm1, %v3933_v29, %v4015_v36  ;;  %v4065_v11 = vsel %vm285_vm1, %v3974_v38, %v4056_v27  ;;  %v4017_v3 = vpop.f32.mrb[101].mxu0  ;;  %v4058_v9 = vpop.f32.mrb[101].mxu1 }
 0xdbe   :  { %v4067_v6 = vadd.f32 %v4063_v56, %v3894_v13  ;;  %v4069_v5 = vadd.f32 %v4065_v11, %v3896_v49  ;;  %v4064_v37 = vsel %vm285_vm1, %v3935_v0, %v4017_v3  ;;  %v4066_v12 = vsel %vm285_vm1, %v3976_v50, %v4058_v9  ;;  %v4019_v29 = vpop.f32.mrb[102].mxu0  ;;  %v4060_v8 = vpop.f32.mrb[102].mxu1 }
 0xdbf   :  { %v4068_v2 = vadd.f32 %v4064_v37, %v3895_v7  ;;  %v4070_v38 = vadd.f32 %v4066_v12, %v3897_v60  ;;  %v4020_v36 = vpop.f32.mrb[103].mxu0  ;;  %v4061_v27 = vpop.f32.mrb[103].mxu1  ;;  %v8183_v12 = vld [vmem:[#allocation3 + $0x1d0] sm:$0xff]  ;;  %v8186_v29 = vld [vmem:[#allocation3 + $0x28] sm:$0xff]  ;;  %v8189_v8 = vld [vmem:[#allocation3 + $0x38] sm:$0xff] }
 0xdc0   :  { %v5784_v1 = vmul.f32 -1.442695, %v4067_v6  ;;  %v5786_v20 = vmul.f32 -1.442695, %v4069_v5  ;;  %9440 = vst [vmem:[#allocation89_spill] sm:$0xff] %v8183_v12  ;;  %9441 = vst [vmem:[#allocation46_spill] sm:$0xff] %v8186_v29 }
 0xdc1   :  { %v5785_v48 = vmul.f32 -1.442695, %v4068_v2  ;;  %9442 = vst [vmem:[#allocation47_spill] sm:$0xff] %v8189_v8 }
 0xdc2   :  { %6010 = vpow2.f32 %v5784_v1 }
 0xdc3   :  { %6012 = vpow2.f32 %v5785_v48 }
 0xdc4   :  { %6014 = vtanh.f32 %v4070_v38 }
 0xdc5   :  { %6016 = vpow2.f32 %v5786_v20 }
 0xdcc   :  { %v6011_v62 = vpop.eup %6010 }
 0xdcd   :  { %v4080_v13 = vadd.f32 1.0, %v6011_v62  ;;  %v6013_v49 = vpop.eup %6012 }
 0xdce   :  { %v4081_v0 = vadd.f32 1.0, %v6013_v49  ;;  %v6015_v50 = vpop.eup %6014 }
 0xdcf   :  { %6018 = vrcp.f32 %v4080_v13  ;;  %v6017_v56 = vpop.eup %6016 }
 0xdd0   :  { %6020 = vrcp.f32 %v4081_v0  ;;  %v4082_v60 = vadd.f32 1.0, %v6017_v56  ;;  %v4103_v0 = vrot.slane %v9411_v14, 6  ;;  %v4104_v56 = vrot.slane %v9413_v63, 6 }
 0xdd2   :  { %6022 = vrcp.f32 %v4082_v60  ;;  %v4096_v60 = vrot.slane %v9409_v46, 6 }
 0xdd9   :  { %v6019_v11 = vpop.eup %6018 }
 0xdda   :  { %v4091_v7 = vmul.f32 %v6019_v11, %v6015_v50  ;;  %v6021_v3 = vpop.eup %6020  ;;  %v4105_v50 = vrot.slane %v9412_v47, 6  ;;  %v4106_v11 = vrot.slane %v9414_v25, 6 }
 0xddb   :  { %v4090_v9 = vmul.f32 %v6021_v3, %v7953_v10  ;;  %v8180_v10 = vld [vmem:[#allocation3 + $0x1c0] sm:$0xff]  ;;  %v4097_v3 = vrot.slane %v9408_v4, 6 }
 0xddc   :  { %v6023_v48 = vpop.eup %6022  ;;  %9439 = vst [vmem:[#allocation88_spill] sm:$0xff] %v8180_v10 }
 0xddd   :  { %v8049_v6 = vadd.f32 %v4091_v7, %v4090_v9  ;;  %v4095_v7 = vrot.slane %v9407_v15, 6  ;;  %v9443_v9 = vld [vmem:[#allocation72_spill] sm:$0xff]  ;;  %v4112_v15 = vsel %vm968_vm0, %v4096_v60, %v4104_v56 }
 0xddf   :  { %6024 = vtanh.f32 %v8049_v6 }
 0xde9   :  { %v6025_v62 = vpop.eup %6024 }
 0xdea   :  { %v8052_v5 = vmul.f32 %v6025_v62, %v6023_v48  ;;  %v4098_v48 = vrot.slane %v9443_v9, 6  ;;  %v4111_v62 = vsel %vm968_vm0, %v4095_v7, %v4103_v0 }
 0xdec   :  { %v4115_v37 = vpack.c.bf16 %v8052_v5, %v8052_v5  ;;  %v4114_v4 = vsel %vm968_vm0, %v4098_v48, %v4106_v11 }
 0xdee   :  { %4149 = vmatmul.mubr.bf16.vlgmr.msra.gmra.mrb[104].mxu0 %v4115_v37  ;;  %4190 = vmatmul.mubr.bf16.vlgmr.msra.gmra.mrb[104].mxu1 %v4115_v37 }
 0xdef   :  { %4199 = vmatpush1.bf16.msra.mxu0 %v7649_v31  ;;  %4240 = vmatpush1.bf16.msra.mxu1 %v7651_v54  ;;  %v8088_v31 = vld [vmem:[#allocation3 + $0x8] sm:$0xff]  ;;  %v8091_v54 = vld [vmem:[#allocation3 + $0x18] sm:$0xff] }
 0xdf0   :  { %4200 = vmatprep.subr.bf16.mxu0 %v7653_v52  ;;  %4241 = vmatprep.subr.bf16.mxu1 %v7655_v53  ;;  %v8094_v52 = vld [vmem:[#allocation3] sm:$0xff]  ;;  %v8097_v53 = vld [vmem:[#allocation3 + $0x10] sm:$0xff] }
 0xdf1   :  { %4230 = vmatprep.mubr.bf16.mxu0 %v9029_v16  ;;  %4271 = vmatprep.mubr.bf16.mxu1 %v9029_v16 }
 0xdf3   :  { %4201 = vmatpush1.bf16.msra.mxu0 %v7663_v51  ;;  %4242 = vmatpush1.bf16.msra.mxu1 %v7665_v22  ;;  %v8100_v51 = vld [vmem:[#allocation3 + $0x48] sm:$0xff]  ;;  %v8103_v22 = vld [vmem:[#allocation3 + $0x58] sm:$0xff] }
 0xdf4   :  { %4202 = vmatprep.subr.bf16.mxu0 %v7667_v55  ;;  %4243 = vmatprep.subr.bf16.mxu1 %v7669_v61  ;;  %v8108_v55 = vld [vmem:[#allocation3 + $0x40] sm:$0xff]  ;;  %v8111_v61 = vld [vmem:[#allocation3 + $0x50] sm:$0xff] }
 0xdf5   :  { %9415 = vst [vmem:[#allocation75_spill] sm:$0xff] %v8108_v55  ;;  %9416 = vst [vmem:[#allocation76_spill] sm:$0xff] %v8111_v61 }
 0xdf7   :  { %4203 = vmatpush1.bf16.msra.mxu0 %v7677_v39  ;;  %4244 = vmatpush1.bf16.msra.mxu1 %v7679_v21  ;;  %v8114_v39 = vld [vmem:[#allocation3 + $0x88] sm:$0xff]  ;;  %v8117_v21 = vld [vmem:[#allocation3 + $0x98] sm:$0xff] }
 0xdf8   :  { %4204 = vmatprep.subr.bf16.mxu0 %v7681_v17  ;;  %4245 = vmatprep.subr.bf16.mxu1 %v7683_v18  ;;  %9417 = vst [vmem:[#allocation77_spill] sm:$0xff] %v8114_v39  ;;  %9418 = vst [vmem:[#allocation78_spill] sm:$0xff] %v8117_v21  ;;  %v8120_v17 = vld [vmem:[#allocation3 + $0x80] sm:$0xff]  ;;  %v8123_v18 = vld [vmem:[#allocation3 + $0x90] sm:$0xff] }
 0xdf9   :  { %9419 = vst [vmem:[#allocation79_spill] sm:$0xff] %v8120_v17  ;;  %9420 = vst [vmem:[#allocation103_spill] sm:$0xff] %v8123_v18 }
 0xdfb   :  { %4205 = vmatpush1.bf16.msra.mxu0 %v7689_v33  ;;  %4246 = vmatpush1.bf16.msra.mxu1 %v7691_v30  ;;  %v8126_v33 = vld [vmem:[#allocation3 + $0xc8] sm:$0xff]  ;;  %v8129_v30 = vld [vmem:[#allocation3 + $0xd8] sm:$0xff] }
 0xdfc   :  { %4206 = vmatprep.subr.bf16.mxu0 %v7693_v58  ;;  %4247 = vmatprep.subr.bf16.mxu1 %v7695_v45  ;;  %9421 = vst [vmem:[#allocation104_spill] sm:$0xff] %v8126_v33  ;;  %9422 = vst [vmem:[#allocation107_spill] sm:$0xff] %v8129_v30  ;;  %v8132_v58 = vld [vmem:[#allocation3 + $0xc0] sm:$0xff]  ;;  %v8135_v45 = vld [vmem:[#allocation3 + $0xd0] sm:$0xff] }
 0xdfd   :  { %9423 = vst [vmem:[#allocation108_spill] sm:$0xff] %v8132_v58  ;;  %9424 = vst [vmem:[#allocation110_spill] sm:$0xff] %v8135_v45 }
 0xdff   :  { %4207 = vmatpush1.bf16.msra.mxu0 %v7701_v32  ;;  %4248 = vmatpush1.bf16.msra.mxu1 %v7703_v44  ;;  %v8138_v32 = vld [vmem:[#allocation3 + $0x108] sm:$0xff]  ;;  %v8141_v44 = vld [vmem:[#allocation3 + $0x118] sm:$0xff] }
 0xe00   :  { %4208 = vmatprep.subr.bf16.mxu0 %v7705_v34  ;;  %4249 = vmatprep.subr.bf16.mxu1 %v7707_v24  ;;  %9425 = vst [vmem:[#allocation111_spill] sm:$0xff] %v8138_v32  ;;  %9426 = vst [vmem:[#allocation112_spill] sm:$0xff] %v8141_v44  ;;  %v8144_v34 = vld [vmem:[#allocation3 + $0x100] sm:$0xff]  ;;  %v8147_v24 = vld [vmem:[#allocation3 + $0x110] sm:$0xff] }
 0xe01   :  { %9427 = vst [vmem:[#allocation113_spill] sm:$0xff] %v8144_v34  ;;  %9428 = vst [vmem:[#allocation83_spill] sm:$0xff] %v8147_v24 }
 0xe03   :  { %4209 = vmatpush1.bf16.msra.mxu0 %v7713_v26  ;;  %4250 = vmatpush1.bf16.msra.mxu1 %v9344_v23  ;;  %v8150_v26 = vld [vmem:[#allocation3 + $0x148] sm:$0xff] }
 0xe04   :  { %4210 = vmatprep.subr.bf16.mxu0 %v9345_v19  ;;  %4251 = vmatprep.subr.bf16.mxu1 %v7719_v40  ;;  %9429 = vst [vmem:[#allocation114_spill] sm:$0xff] %v8150_v26  ;;  %v8159_v40 = vld [vmem:[#allocation3 + $0x150] sm:$0xff]  ;;  %v8174_v23 = vld [vmem:[#allocation3 + $0x1c8] sm:$0xff]  ;;  %v8177_v19 = vld [vmem:[#allocation3 + $0x1d8] sm:$0xff] }
 0xe05   :  { %9432 = vst [vmem:[#allocation29_spill] sm:$0xff] %v8159_v40  ;;  %9437 = vst [vmem:[#allocation86_spill] sm:$0xff] %v8174_v23 }
 0xe06   :  { %9438 = vst [vmem:[#allocation87_spill] sm:$0xff] %v8177_v19 }
 0xe07   :  { %4211 = vmatpush1.bf16.msra.mxu0 %v7725_v41  ;;  %4252 = vmatpush1.bf16.msra.mxu1 %v7727_v42  ;;  %v8162_v41 = vld [vmem:[#allocation3 + $0x188] sm:$0xff]  ;;  %v8165_v42 = vld [vmem:[#allocation3 + $0x198] sm:$0xff] }
 0xe08   :  { %4212 = vmatprep.subr.bf16.mxu0 %v7729_v43  ;;  %4253 = vmatprep.subr.bf16.mxu1 %v7731_v57  ;;  %9433 = vst [vmem:[#allocation55_spill] sm:$0xff] %v8162_v41  ;;  %9434 = vst [vmem:[#allocation56_spill] sm:$0xff] %v8165_v42  ;;  %v8168_v43 = vld [vmem:[#allocation3 + $0x180] sm:$0xff]  ;;  %v8171_v57 = vld [vmem:[#allocation3 + $0x190] sm:$0xff] }
 0xe09   :  { %9435 = vst [vmem:[#allocation84_spill] sm:$0xff] %v8168_v43  ;;  %9436 = vst [vmem:[#allocation85_spill] sm:$0xff] %v8171_v57 }
 0xe0b   :  { %4213 = vmatpush1.bf16.msra.mxu0 %v7737_v35  ;;  %4254 = vmatpush1.bf16.msra.mxu1 %v7739_v28  ;;  %v8153_v35 = vld [vmem:[#allocation3 + $0x158] sm:$0xff]  ;;  %v8156_v28 = vld [vmem:[#allocation3 + $0x140] sm:$0xff] }
 0xe0c   :  { %4329 = vmatprep.subr.bf16.mxu0 %v8088_v31  ;;  %4370 = vmatprep.subr.bf16.mxu1 %v8091_v54  ;;  %9430 = vst [vmem:[#allocation81_spill] sm:$0xff] %v8153_v35  ;;  %9431 = vst [vmem:[#allocation82_spill] sm:$0xff] %v8156_v28 }
 0xe0e   :  { %4231 = vmatmul.mubr.bf16.vlgmr.msra.gmra.mrb[108].mxu0 %v4115_v37  ;;  %4272 = vmatmul.mubr.bf16.vlgmr.msra.gmra.mrb[108].mxu1 %v4115_v37 }
 0xe0f   :  { %4330 = vmatpush1.bf16.msra.mxu0 %v8094_v52  ;;  %4371 = vmatpush1.bf16.msra.mxu1 %v8097_v53 }
 0xe10   :  { %4331 = vmatprep.subr.bf16.mxu0 %v8100_v51  ;;  %4372 = vmatprep.subr.bf16.mxu1 %v8103_v22 }
 0xe11   :  { %4361 = vmatprep.mubr.bf16.mxu0 %v9029_v16  ;;  %4402 = vmatprep.mubr.bf16.mxu1 %v9029_v16 }
 0xe13   :  { %4332 = vmatpush1.bf16.msra.mxu0 %v8108_v55  ;;  %4373 = vmatpush1.bf16.msra.mxu1 %v8111_v61 }
 0xe14   :  { %4333 = vmatprep.subr.bf16.mxu0 %v8114_v39  ;;  %4374 = vmatprep.subr.bf16.mxu1 %v8117_v21 }
 0xe17   :  { %4334 = vmatpush1.bf16.msra.mxu0 %v8120_v17  ;;  %4375 = vmatpush1.bf16.msra.mxu1 %v8123_v18 }
 0xe18   :  { %4335 = vmatprep.subr.bf16.mxu0 %v8126_v33  ;;  %4376 = vmatprep.subr.bf16.mxu1 %v8129_v30 }
 0xe1b   :  { %4336 = vmatpush1.bf16.msra.mxu0 %v8132_v58  ;;  %4377 = vmatpush1.bf16.msra.mxu1 %v8135_v45 }
 0xe1c   :  { %4337 = vmatprep.subr.bf16.mxu0 %v8138_v32  ;;  %4378 = vmatprep.subr.bf16.mxu1 %v8141_v44 }
 0xe1f   :  { %4338 = vmatpush1.bf16.msra.mxu0 %v8144_v34  ;;  %4379 = vmatpush1.bf16.msra.mxu1 %v8147_v24 }
 0xe20   :  { %4339 = vmatprep.subr.bf16.mxu0 %v8150_v26  ;;  %4380 = vmatprep.subr.bf16.mxu1 %v8153_v35 }
 0xe23   :  { %4340 = vmatpush1.bf16.msra.mxu0 %v8156_v28  ;;  %4381 = vmatpush1.bf16.msra.mxu1 %v8159_v40 }
 0xe24   :  { %4341 = vmatprep.subr.bf16.mxu0 %v8162_v41  ;;  %4382 = vmatprep.subr.bf16.mxu1 %v8165_v42 }
 0xe27   :  { %4342 = vmatpush1.bf16.msra.mxu0 %v8168_v43  ;;  %4383 = vmatpush1.bf16.msra.mxu1 %v8171_v57 }
 0xe28   :  { %4343 = vmatprep.subr.bf16.mxu0 %v8174_v23  ;;  %4384 = vmatprep.subr.bf16.mxu1 %v8177_v19 }
 0xe2b   :  { %4344 = vmatpush1.bf16.msra.mxu0 %v8180_v10  ;;  %4385 = vmatpush1.bf16.msra.mxu1 %v8183_v12 }
 0xe2c   :  { %4411 = vmatprep.subr.bf16.mxu0 %v8186_v29  ;;  %4452 = vmatprep.subr.bf16.mxu1 %v8189_v8 }
 0xec1   :  { %v4150_v2 = vpop.f32.mrb[104].mxu0  ;;  %v4191_v38 = vpop.f32.mrb[104].mxu1 }
 0xec2   :  { %v4152_v36 = vpop.f32.mrb[105].mxu0  ;;  %v4193_v27 = vpop.f32.mrb[105].mxu1 }
 0xec3   :  { %v4154_v1 = vpop.f32.mrb[106].mxu0  ;;  %v4195_v20 = vpop.f32.mrb[106].mxu1 }
 0xec4   :  { %v4155_v13 = vpop.f32.mrb[107].mxu0  ;;  %v4196_v49 = vpop.f32.mrb[107].mxu1  ;;  %v4113_v1 = vsel %vm968_vm0, %v4097_v3, %v4105_v50 }
 0xee1   :  { %v4232_v37 = vpop.f32.mrb[108].mxu0  ;;  %v4273_v14 = vpop.f32.mrb[108].mxu1 }
 0xee2   :  { %v4280_v47 = vsel %vm285_vm1, %v4150_v2, %v4232_v37  ;;  %v4282_v63 = vsel %vm285_vm1, %v4191_v38, %v4273_v14  ;;  %v4234_v25 = vpop.f32.mrb[109].mxu0  ;;  %v4275_v46 = vpop.f32.mrb[109].mxu1 }
 0xee3   :  { %v4284_v20 = vadd.f32 %v4280_v47, %v4111_v62  ;;  %v4286_v13 = vadd.f32 %v4282_v63, %v4113_v1  ;;  %v4281_v49 = vsel %vm285_vm1, %v4152_v36, %v4234_v25  ;;  %v4283_v0 = vsel %vm285_vm1, %v4193_v27, %v4275_v46  ;;  %v4236_v50 = vpop.f32.mrb[110].mxu0  ;;  %v4277_v7 = vpop.f32.mrb[110].mxu1 }
 0xee4   :  { %v4285_v2 = vadd.f32 %v4281_v49, %v4112_v15  ;;  %v4287_v3 = vadd.f32 %v4283_v0, %v4114_v4  ;;  %v4237_v9 = vpop.f32.mrb[111].mxu0  ;;  %v4278_v38 = vpop.f32.mrb[111].mxu1  ;;  %v5176_v0 = vrot.slane %v8052_v5, 4 }
 0xee5   :  { %v5787_v37 = vmul.f32 -1.442695, %v4284_v20  ;;  %v5789_v11 = vmul.f32 -1.442695, %v4286_v13  ;;  %v9444_v20 = vld [vmem:[#allocation74_spill] sm:$0xff] }
 0xee6   :  { %v5788_v56 = vmul.f32 -1.442695, %v4285_v2  ;;  %v5173_v13 = vrot.slane %v9444_v20, 6  ;;  %v8277_v20 = vld [vmem:[#allocation3 + $0x128] sm:$0xff] }
 0xee7   :  { %6026 = vpow2.f32 %v5787_v37 }
 0xee8   :  { %6028 = vpow2.f32 %v5788_v56  ;;  %v8230_v56 = vld [vmem:[#allocation3 + $0x20] sm:$0xff] }
 0xee9   :  { %6030 = vtanh.f32 %v4287_v3  ;;  %v9445_v3 = vld [vmem:[#allocation73_spill] sm:$0xff] }
 0xeea   :  { %6032 = vpow2.f32 %v5789_v11  ;;  %v5190_v9 = vsel %vm968_vm0, %v9445_v3, %v5173_v13  ;;  %v8233_v11 = vld [vmem:[#allocation3 + $0x30] sm:$0xff] }
 0xeeb   :  { %v8310_v3 = vld [vmem:[#allocation3 + $0x1b0] sm:$0xff] }
 0xef1   :  { %v6027_v60 = vpop.eup %6026 }
 0xef2   :  { %v4297_v48 = vadd.f32 1.0, %v6027_v60  ;;  %v6029_v62 = vpop.eup %6028 }
 0xef3   :  { %v4298_v36 = vadd.f32 1.0, %v6029_v62  ;;  %v6031_v27 = vpop.eup %6030  ;;  %v8242_v62 = vld [vmem:[#allocation3 + $0x78] sm:$0xff] }
 0xef4   :  { %6034 = vrcp.f32 %v4297_v48  ;;  %v6033_v1 = vpop.eup %6032  ;;  %v8239_v48 = vld [vmem:[#allocation3 + $0x68] sm:$0xff] }
 0xef5   :  { %6036 = vrcp.f32 %v4298_v36  ;;  %v4299_v15 = vadd.f32 1.0, %v6033_v1  ;;  %v8250_v36 = vld [vmem:[#allocation3 + $0x70] sm:$0xff]  ;;  %v8256_v1 = vld [vmem:[#allocation3 + $0xb8] sm:$0xff] }
 0xef7   :  { %6038 = vrcp.f32 %v4299_v15  ;;  %v8268_v15 = vld [vmem:[#allocation3 + $0xf8] sm:$0xff] }
 0xefe   :  { %v6035_v14 = vpop.eup %6034 }
 0xeff   :  { %v4308_v47 = vmul.f32 %v6035_v14, %v6031_v27  ;;  %v6037_v63 = vpop.eup %6036  ;;  %v8253_v27 = vld [vmem:[#allocation3 + $0xa8] sm:$0xff]  ;;  %v8259_v14 = vld [vmem:[#allocation3 + $0xa0] sm:$0xff] }
 0xf00   :  { %v4307_v25 = vmul.f32 %v6037_v63, %v8049_v6  ;;  %v5191_v6 = vsel %vm3015_vm2, %v5190_v9, %v5176_v0  ;;  %v8265_v63 = vld [vmem:[#allocation3 + $0xe8] sm:$0xff]  ;;  %v8286_v0 = vld [vmem:[#allocation3 + $0x130] sm:$0xff]  ;;  %v8295_v9 = vld [vmem:[#allocation3 + $0x160] sm:$0xff] }
 0xf01   :  { %v6039_v46 = vpop.eup %6038  ;;  %9448 = vst [vmem:[#allocation50_spill] sm:$0xff] %v8295_v9 }
 0xf02   :  { %v8213_v4 = vadd.f32 %v4308_v47, %v4307_v25  ;;  %v8262_v47 = vld [vmem:[#allocation3 + $0xb0] sm:$0xff]  ;;  %v8271_v25 = vld [vmem:[#allocation3 + $0xe0] sm:$0xff] }
 0xf04   :  { %6040 = vtanh.f32 %v8213_v4 }
 0xf0e   :  { %v6041_v49 = vpop.eup %6040 }
 0xf0f   :  { %v4311_v50 = vmul.f32 %v6041_v49, %v6039_v46  ;;  %v8274_v46 = vld [vmem:[#allocation3 + $0xf0] sm:$0xff]  ;;  %v8283_v49 = vld [vmem:[#allocation3 + $0x120] sm:$0xff] }
 0xf11   :  { %v8218_v7 = vpack.c.bf16 %v4311_v50, %v4311_v50  ;;  %v5179_v2 = vrot.slane %v4311_v50, 2  ;;  %v8289_v50 = vld [vmem:[#allocation3 + $0x168] sm:$0xff] }
 0xf13   :  { %4362 = vmatmul.mubr.bf16.vlgmr.msra.gmra.mrb[112].mxu0 %v8218_v7  ;;  %4403 = vmatmul.mubr.bf16.vlgmr.msra.gmra.mrb[112].mxu1 %v8218_v7  ;;  %v5205_v38 = vsel %vm968_vm0, %v5179_v2, %v8052_v5  ;;  %v8228_v37 = vsel %vm3017_vm3, %v5191_v6, %v5179_v2  ;;  %v8247_v5 = vld [vmem:[#allocation3 + $0x60] sm:$0xff]  ;;  %v8292_v2 = vld [vmem:[#allocation3 + $0x178] sm:$0xff]  ;;  %v8298_v6 = vld [vmem:[#allocation3 + $0x170] sm:$0xff] }
 0xf14   :  { %9446 = vst [vmem:[#allocation48_spill] sm:$0xff] %v8228_v37  ;;  %4412 = vmatpush1.bf16.msra.mxu0 %v8230_v56  ;;  %4453 = vmatpush1.bf16.msra.mxu1 %v8233_v11  ;;  %v8237_v60 = vsel %vm3015_vm2, %v5205_v38, %v5173_v13  ;;  %v8280_v13 = vld [vmem:[#allocation3 + $0x138] sm:$0xff]  ;;  %9449 = vst [vmem:[#allocation51_spill] sm:$0xff] %v8298_v6  ;;  %v8301_v38 = vld [vmem:[#allocation3 + $0x1a8] sm:$0xff] }
 0xf15   :  { %9447 = vst [vmem:[#allocation49_spill] sm:$0xff] %v8237_v60  ;;  %4413 = vmatprep.subr.bf16.mxu0 %v8239_v48  ;;  %4454 = vmatprep.subr.bf16.mxu1 %v8242_v62  ;;  %9450 = vst [vmem:[#allocation52_spill] sm:$0xff] %v8301_v38  ;;  %v8304_v37 = vld [vmem:[#allocation3 + $0x1b8] sm:$0xff]  ;;  %v8307_v60 = vld [vmem:[#allocation3 + $0x1a0] sm:$0xff] }
 0xf16   :  { %4443 = vmatprep.mubr.bf16.mxu0 %v9029_v16  ;;  %4484 = vmatprep.mubr.bf16.mxu1 %v9029_v16  ;;  %9451 = vst [vmem:[#allocation53_spill] sm:$0xff] %v8304_v37 }
 0xf18   :  { %4414 = vmatpush1.bf16.msra.mxu0 %v8247_v5  ;;  %4455 = vmatpush1.bf16.msra.mxu1 %v8250_v36 }
 0xf19   :  { %4415 = vmatprep.subr.bf16.mxu0 %v8253_v27  ;;  %4456 = vmatprep.subr.bf16.mxu1 %v8256_v1 }
 0xf1c   :  { %4416 = vmatpush1.bf16.msra.mxu0 %v8259_v14  ;;  %4457 = vmatpush1.bf16.msra.mxu1 %v8262_v47 }
 0xf1d   :  { %4417 = vmatprep.subr.bf16.mxu0 %v8265_v63  ;;  %4458 = vmatprep.subr.bf16.mxu1 %v8268_v15 }
 0xf20   :  { %4418 = vmatpush1.bf16.msra.mxu0 %v8271_v25  ;;  %4459 = vmatpush1.bf16.msra.mxu1 %v8274_v46 }
 0xf21   :  { %4419 = vmatprep.subr.bf16.mxu0 %v8277_v20  ;;  %4460 = vmatprep.subr.bf16.mxu1 %v8280_v13 }
 0xf24   :  { %4420 = vmatpush1.bf16.msra.mxu0 %v8283_v49  ;;  %4461 = vmatpush1.bf16.msra.mxu1 %v8286_v0 }
 0xf25   :  { %4421 = vmatprep.subr.bf16.mxu0 %v8289_v50  ;;  %4462 = vmatprep.subr.bf16.mxu1 %v8292_v2 }
 0xf28   :  { %4422 = vmatpush1.bf16.msra.mxu0 %v8295_v9  ;;  %4463 = vmatpush1.bf16.msra.mxu1 %v8298_v6  ;;  %v8313_v9 = vld [vmem:[#allocation3 + $0x1e8] sm:$0xff]  ;;  %v8316_v6 = vld [vmem:[#allocation3 + $0x1f8] sm:$0xff] }
 0xf29   :  { %4423 = vmatprep.subr.bf16.mxu0 %v8301_v38  ;;  %4464 = vmatprep.subr.bf16.mxu1 %v8304_v37  ;;  %v8319_v38 = vld [vmem:[#allocation3 + $0x1e0] sm:$0xff]  ;;  %v8322_v37 = vld [vmem:[#allocation3 + $0x1f0] sm:$0xff] }
 0xf2c   :  { %4424 = vmatpush1.bf16.msra.mxu0 %v8307_v60  ;;  %4465 = vmatpush1.bf16.msra.mxu1 %v8310_v3 }
 0xf2d   :  { %4425 = vmatprep.subr.bf16.mxu0 %v8313_v9  ;;  %4466 = vmatprep.subr.bf16.mxu1 %v8316_v6 }
 0xf30   :  { %4426 = vmatpush1.bf16.msra.mxu0 %v8319_v38  ;;  %4467 = vmatpush1.bf16.msra.mxu1 %v8322_v37 }
 0xf31   :  { %4550 = vmatprep.subr.bf16.mxu0 %v8088_v31  ;;  %4591 = vmatprep.subr.bf16.mxu1 %v8091_v54 }
 0xf33   :  { %4444 = vmatmul.mubr.bf16.vlgmr.msra.gmra.mrb[116].mxu0 %v8218_v7  ;;  %4485 = vmatmul.mubr.bf16.vlgmr.msra.gmra.mrb[116].mxu1 %v8218_v7 }
 0xf34   :  { %4551 = vmatpush1.bf16.msra.mxu0 %v8094_v52  ;;  %4592 = vmatpush1.bf16.msra.mxu1 %v8097_v53 }
 0xf35   :  { %4552 = vmatprep.subr.bf16.mxu0 %v8100_v51  ;;  %4593 = vmatprep.subr.bf16.mxu1 %v8103_v22 }
 0xf36   :  { %4582 = vmatprep.mubr.bf16.mxu0 %v9029_v16  ;;  %4623 = vmatprep.mubr.bf16.mxu1 %v9029_v16 }
 0xf38   :  { %4553 = vmatpush1.bf16.msra.mxu0 %v8108_v55  ;;  %4594 = vmatpush1.bf16.msra.mxu1 %v8111_v61 }
 0xf39   :  { %4554 = vmatprep.subr.bf16.mxu0 %v8114_v39  ;;  %4595 = vmatprep.subr.bf16.mxu1 %v8117_v21 }
 0xf3c   :  { %4555 = vmatpush1.bf16.msra.mxu0 %v8120_v17  ;;  %4596 = vmatpush1.bf16.msra.mxu1 %v8123_v18 }
 0xf3d   :  { %4556 = vmatprep.subr.bf16.mxu0 %v8126_v33  ;;  %4597 = vmatprep.subr.bf16.mxu1 %v8129_v30 }
 0xf40   :  { %4557 = vmatpush1.bf16.msra.mxu0 %v8132_v58  ;;  %4598 = vmatpush1.bf16.msra.mxu1 %v8135_v45  ;;  %v9457_v45 = vld [vmem:[#allocation58_spill] sm:$0xff] }
 0xf41   :  { %4558 = vmatprep.subr.bf16.mxu0 %v8138_v32  ;;  %4599 = vmatprep.subr.bf16.mxu1 %v8141_v44  ;;  %v9455_v44 = vld [vmem:[#allocation64_spill] sm:$0xff]  ;;  %v9456_v32 = vld [vmem:[#allocation57_spill] sm:$0xff] }
 0xf44   :  { %4559 = vmatpush1.bf16.msra.mxu0 %v8144_v34  ;;  %4600 = vmatpush1.bf16.msra.mxu1 %v8147_v24  ;;  %v9453_v24 = vld [vmem:[#allocation62_spill] sm:$0xff]  ;;  %v9454_v34 = vld [vmem:[#allocation63_spill] sm:$0xff] }
 0xf45   :  { %4560 = vmatprep.subr.bf16.mxu0 %v8150_v26  ;;  %4601 = vmatprep.subr.bf16.mxu1 %v8153_v35  ;;  %v9452_v26 = vld [vmem:[#allocation61_spill] sm:$0xff] }
 0xf48   :  { %4561 = vmatpush1.bf16.msra.mxu0 %v8156_v28  ;;  %4602 = vmatpush1.bf16.msra.mxu1 %v8159_v40 }
 0xf49   :  { %4562 = vmatprep.subr.bf16.mxu0 %v8162_v41  ;;  %4603 = vmatprep.subr.bf16.mxu1 %v8165_v42 }
 0xf4c   :  { %4563 = vmatpush1.bf16.msra.mxu0 %v8168_v43  ;;  %4604 = vmatpush1.bf16.msra.mxu1 %v8171_v57 }
 0xf4d   :  { %4564 = vmatprep.subr.bf16.mxu0 %v8174_v23  ;;  %4605 = vmatprep.subr.bf16.mxu1 %v8177_v19  ;;  %v4316_v23 = vrot.slane %v9452_v26, 4  ;;  %v4318_v19 = vrot.slane %v9453_v24, 4  ;;  %v9459_v24 = vld [vmem:[#allocation60_spill] sm:$0xff] }
 0xf4f   :  { %v4326_v58 = vsel %vm968_vm0, %v9457_v45, %v4318_v19 }
 0xf50   :  { %4565 = vmatpush1.bf16.msra.mxu0 %v8180_v10  ;;  %4606 = vmatpush1.bf16.msra.mxu1 %v8183_v12  ;;  %v4317_v10 = vrot.slane %v9454_v34, 4  ;;  %v4319_v12 = vrot.slane %v9455_v44, 4 }
 0xf51   :  { %4632 = vmatprep.subr.bf16.mxu0 %v8186_v29  ;;  %4673 = vmatprep.subr.bf16.mxu1 %v8189_v8  ;;  %v4324_v29 = vsel %vm968_vm0, %v9456_v32, %v4316_v23 }
 0xf52   :  { %v4327_v44 = vsel %vm968_vm0, %v9459_v24, %v4319_v12 }
 0xfe6   :  { %v4363_v7 = vpop.f32.mrb[112].mxu0  ;;  %v4404_v41 = vpop.f32.mrb[112].mxu1 }
 0xfe7   :  { %v4365_v40 = vpop.f32.mrb[113].mxu0  ;;  %v4406_v42 = vpop.f32.mrb[113].mxu1 }
 0xfe8   :  { %v4367_v28 = vpop.f32.mrb[114].mxu0  ;;  %v4408_v43 = vpop.f32.mrb[114].mxu1 }
 0xfe9   :  { %v4368_v35 = vpop.f32.mrb[115].mxu0  ;;  %v4409_v57 = vpop.f32.mrb[115].mxu1  ;;  %v9458_v43 = vld [vmem:[#allocation59_spill] sm:$0xff] }
 0xfea   :  { %v4325_v57 = vsel %vm968_vm0, %v9458_v43, %v4317_v10 }
0x1006   :  { %v4445_v8 = vpop.f32.mrb[116].mxu0  ;;  %v4486_v30 = vpop.f32.mrb[116].mxu1 }
0x1007   :  { %v4493_v35 = vsel %vm285_vm1, %v4363_v7, %v4445_v8  ;;  %v4495_v28 = vsel %vm285_vm1, %v4404_v41, %v4486_v30  ;;  %v4447_v34 = vpop.f32.mrb[117].mxu0  ;;  %v4488_v26 = vpop.f32.mrb[117].mxu1 }
0x1008   :  { %v4497_v23 = vadd.f32 %v4493_v35, %v4324_v29  ;;  %v4499_v32 = vadd.f32 %v4495_v28, %v4326_v58  ;;  %v4494_v19 = vsel %vm285_vm1, %v4365_v40, %v4447_v34  ;;  %v4496_v45 = vsel %vm285_vm1, %v4406_v42, %v4488_v26  ;;  %v4449_v8 = vpop.f32.mrb[118].mxu0  ;;  %v4490_v7 = vpop.f32.mrb[118].mxu1 }
0x1009   :  { %v4498_v33 = vadd.f32 %v4494_v19, %v4325_v57  ;;  %v4500_v30 = vadd.f32 %v4496_v45, %v4327_v44  ;;  %v4450_v41 = vpop.f32.mrb[119].mxu0  ;;  %v4491_v18 = vpop.f32.mrb[119].mxu1  ;;  %v9462_v57 = vld [vmem:[#allocation51_spill] sm:$0xff]  ;;  %v9464_v19 = vld [vmem:[#allocation53_spill] sm:$0xff]  ;;  %v9466_v7 = vld [vmem:[#allocation104_spill] sm:$0xff] }
0x100a   :  { %v5790_v10 = vmul.f32 -1.442695, %v4497_v23  ;;  %v5792_v12 = vmul.f32 -1.442695, %v4499_v32  ;;  %v9463_v23 = vld [vmem:[#allocation52_spill] sm:$0xff]  ;;  %v9465_v8 = vld [vmem:[#allocation103_spill] sm:$0xff] }
0x100b   :  { %v5791_v43 = vmul.f32 -1.442695, %v4498_v33  ;;  %v9468_v41 = vld [vmem:[#allocation108_spill] sm:$0xff] }
0x100c   :  { %6042 = vpow2.f32 %v5790_v10  ;;  %v9469_v10 = vld [vmem:[#allocation110_spill] sm:$0xff] }
0x100d   :  { %6044 = vpow2.f32 %v5791_v43 }
0x100e   :  { %6046 = vtanh.f32 %v4500_v30  ;;  %v9467_v30 = vld [vmem:[#allocation107_spill] sm:$0xff] }
0x100f   :  { %6048 = vpow2.f32 %v5792_v12  ;;  %v9470_v12 = vld [vmem:[#allocation111_spill] sm:$0xff] }
0x1016   :  { %v6043_v24 = vpop.eup %6042 }
0x1017   :  { %v4510_v29 = vadd.f32 1.0, %v6043_v24  ;;  %v6045_v58 = vpop.eup %6044 }
0x1018   :  { %v4511_v34 = vadd.f32 1.0, %v6045_v58  ;;  %v6047_v26 = vpop.eup %6046  ;;  %v9472_v58 = vld [vmem:[#allocation113_spill] sm:$0xff] }
0x1019   :  { %6050 = vrcp.f32 %v4510_v29  ;;  %v6049_v40 = vpop.eup %6048  ;;  %v9471_v29 = vld [vmem:[#allocation112_spill] sm:$0xff] }
0x101a   :  { %6052 = vrcp.f32 %v4511_v34  ;;  %v4512_v44 = vadd.f32 1.0, %v6049_v40  ;;  %v9473_v34 = vld [vmem:[#allocation83_spill] sm:$0xff]  ;;  %v9475_v40 = vld [vmem:[#allocation81_spill] sm:$0xff] }
0x101c   :  { %6054 = vrcp.f32 %v4512_v44  ;;  %v9479_v44 = vld [vmem:[#allocation56_spill] sm:$0xff] }
0x1023   :  { %v6051_v42 = vpop.eup %6050 }
0x1024   :  { %v4521_v35 = vmul.f32 %v6051_v42, %v6047_v26  ;;  %v6053_v45 = vpop.eup %6052  ;;  %v9474_v26 = vld [vmem:[#allocation114_spill] sm:$0xff] }
0x1025   :  { %v4520_v18 = vmul.f32 %v6053_v45, %v8213_v4  ;;  %v9461_v4 = vld [vmem:[#allocation50_spill] sm:$0xff]  ;;  %v9478_v45 = vld [vmem:[#allocation55_spill] sm:$0xff] }
0x1026   :  { %v6055_v32 = vpop.eup %6054  ;;  %v9476_v42 = vld [vmem:[#allocation82_spill] sm:$0xff] }
0x1027   :  { %v8384_v33 = vadd.f32 %v4521_v35, %v4520_v18  ;;  %v9477_v35 = vld [vmem:[#allocation29_spill] sm:$0xff]  ;;  %v9480_v18 = vld [vmem:[#allocation84_spill] sm:$0xff] }
0x1029   :  { %6056 = vtanh.f32 %v8384_v33 }
0x1033   :  { %v6057_v24 = vpop.eup %6056 }
0x1034   :  { %v8387_v28 = vmul.f32 %v6057_v24, %v6055_v32  ;;  %v9481_v32 = vld [vmem:[#allocation85_spill] sm:$0xff]  ;;  %v9482_v24 = vld [vmem:[#allocation86_spill] sm:$0xff] }
0x1036   :  { %9460 = vst [vmem:[#allocation90_spill] sm:$0xff] %v8387_v28  ;;  %v4549_v43 = vpack.c.bf16 %v8387_v28, %v8387_v28  ;;  %v9484_v28 = vld [vmem:[#allocation88_spill] sm:$0xff] }
0x1038   :  { %4583 = vmatmul.mubr.bf16.vlgmr.msra.gmra.mrb[120].mxu0 %v4549_v43  ;;  %4624 = vmatmul.mubr.bf16.vlgmr.msra.gmra.mrb[120].mxu1 %v4549_v43 }
0x1039   :  { %4633 = vmatpush1.bf16.msra.mxu0 %v8230_v56  ;;  %4674 = vmatpush1.bf16.msra.mxu1 %v8233_v11 }
0x103a   :  { %4634 = vmatprep.subr.bf16.mxu0 %v8239_v48  ;;  %4675 = vmatprep.subr.bf16.mxu1 %v8242_v62 }
0x103b   :  { %4664 = vmatprep.mubr.bf16.mxu0 %v9029_v16  ;;  %4705 = vmatprep.mubr.bf16.mxu1 %v9029_v16 }
0x103d   :  { %4635 = vmatpush1.bf16.msra.mxu0 %v8247_v5  ;;  %4676 = vmatpush1.bf16.msra.mxu1 %v8250_v36 }
0x103e   :  { %4636 = vmatprep.subr.bf16.mxu0 %v8253_v27  ;;  %4677 = vmatprep.subr.bf16.mxu1 %v8256_v1 }
0x1041   :  { %4637 = vmatpush1.bf16.msra.mxu0 %v8259_v14  ;;  %4678 = vmatpush1.bf16.msra.mxu1 %v8262_v47 }
0x1042   :  { %4638 = vmatprep.subr.bf16.mxu0 %v8265_v63  ;;  %4679 = vmatprep.subr.bf16.mxu1 %v8268_v15 }
0x1045   :  { %4639 = vmatpush1.bf16.msra.mxu0 %v8271_v25  ;;  %4680 = vmatpush1.bf16.msra.mxu1 %v8274_v46 }
0x1046   :  { %4640 = vmatprep.subr.bf16.mxu0 %v8277_v20  ;;  %4681 = vmatprep.subr.bf16.mxu1 %v8280_v13 }
0x1049   :  { %4641 = vmatpush1.bf16.msra.mxu0 %v8283_v49  ;;  %4682 = vmatpush1.bf16.msra.mxu1 %v8286_v0 }
0x104a   :  { %4642 = vmatprep.subr.bf16.mxu0 %v8289_v50  ;;  %4683 = vmatprep.subr.bf16.mxu1 %v8292_v2 }
0x104d   :  { %4643 = vmatpush1.bf16.msra.mxu0 %v9461_v4  ;;  %4684 = vmatpush1.bf16.msra.mxu1 %v9462_v57 }
0x104e   :  { %4644 = vmatprep.subr.bf16.mxu0 %v9463_v23  ;;  %4685 = vmatprep.subr.bf16.mxu1 %v9464_v19 }
0x1051   :  { %4645 = vmatpush1.bf16.msra.mxu0 %v8307_v60  ;;  %4686 = vmatpush1.bf16.msra.mxu1 %v8310_v3 }
0x1052   :  { %4646 = vmatprep.subr.bf16.mxu0 %v8313_v9  ;;  %4687 = vmatprep.subr.bf16.mxu1 %v8316_v6 }
0x1055   :  { %4647 = vmatpush1.bf16.msra.mxu0 %v8319_v38  ;;  %4688 = vmatpush1.bf16.msra.mxu1 %v8322_v37 }
0x1056   :  { %4759 = vmatprep.subr.bf16.mxu0 %v8088_v31  ;;  %4800 = vmatprep.subr.bf16.mxu1 %v8091_v54 }
0x1058   :  { %4665 = vmatmul.mubr.bf16.vlgmr.msra.gmra.mrb[124].mxu0 %v4549_v43  ;;  %4706 = vmatmul.mubr.bf16.vlgmr.msra.gmra.mrb[124].mxu1 %v4549_v43  ;;  %v9483_v43 = vld [vmem:[#allocation87_spill] sm:$0xff] }
0x1059   :  { %4760 = vmatpush1.bf16.msra.mxu0 %v8094_v52  ;;  %4801 = vmatpush1.bf16.msra.mxu1 %v8097_v53 }
0x105a   :  { %4761 = vmatprep.subr.bf16.mxu0 %v8100_v51  ;;  %4802 = vmatprep.subr.bf16.mxu1 %v8103_v22 }
0x105b   :  { %4791 = vmatprep.mubr.bf16.mxu0 %v9029_v16  ;;  %4832 = vmatprep.mubr.bf16.mxu1 %v9029_v16 }
0x105d   :  { %4762 = vmatpush1.bf16.msra.mxu0 %v8108_v55  ;;  %4803 = vmatpush1.bf16.msra.mxu1 %v8111_v61 }
0x105e   :  { %4763 = vmatprep.subr.bf16.mxu0 %v8114_v39  ;;  %4804 = vmatprep.subr.bf16.mxu1 %v8117_v21  ;;  %v9495_v39 = vld [vmem:[#allocation60_spill] sm:$0xff] }
0x105f   :  { %v4532_v61 = vrot.slane %v9495_v39, 2 }
0x1061   :  { %4764 = vmatpush1.bf16.msra.mxu0 %v8120_v17  ;;  %4805 = vmatpush1.bf16.msra.mxu1 %v9465_v8  ;;  %v9493_v8 = vld [vmem:[#allocation58_spill] sm:$0xff]  ;;  %v9494_v17 = vld [vmem:[#allocation59_spill] sm:$0xff] }
0x1062   :  { %4765 = vmatprep.subr.bf16.mxu0 %v9466_v7  ;;  %4806 = vmatprep.subr.bf16.mxu1 %v9467_v30  ;;  %v9491_v30 = vld [vmem:[#allocation64_spill] sm:$0xff]  ;;  %v9492_v7 = vld [vmem:[#allocation57_spill] sm:$0xff]  ;;  %v4530_v21 = vrot.slane %v9494_v17, 2 }
0x1065   :  { %4766 = vmatpush1.bf16.msra.mxu0 %v9468_v41  ;;  %4807 = vmatpush1.bf16.msra.mxu1 %v9469_v10  ;;  %v9489_v10 = vld [vmem:[#allocation62_spill] sm:$0xff]  ;;  %v9490_v41 = vld [vmem:[#allocation63_spill] sm:$0xff] }
0x1066   :  { %4767 = vmatprep.subr.bf16.mxu0 %v9470_v12  ;;  %4808 = vmatprep.subr.bf16.mxu1 %v9471_v29  ;;  %v9488_v12 = vld [vmem:[#allocation61_spill] sm:$0xff] }
0x1069   :  { %4768 = vmatpush1.bf16.msra.mxu0 %v9472_v58  ;;  %4809 = vmatpush1.bf16.msra.mxu1 %v9473_v34 }
0x106a   :  { %4769 = vmatprep.subr.bf16.mxu0 %v9474_v26  ;;  %4810 = vmatprep.subr.bf16.mxu1 %v9475_v40  ;;  %v9485_v26 = vld [vmem:[#allocation89_spill] sm:$0xff]  ;;  %v9486_v40 = vld [vmem:[#allocation46_spill] sm:$0xff] }
0x106d   :  { %4770 = vmatpush1.bf16.msra.mxu0 %v9476_v42  ;;  %4811 = vmatpush1.bf16.msra.mxu1 %v9477_v35  ;;  %v9487_v42 = vld [vmem:[#allocation47_spill] sm:$0xff] }
0x106e   :  { %4771 = vmatprep.subr.bf16.mxu0 %v9478_v45  ;;  %4812 = vmatprep.subr.bf16.mxu1 %v9479_v44 }
0x1071   :  { %4772 = vmatpush1.bf16.msra.mxu0 %v9480_v18  ;;  %4813 = vmatpush1.bf16.msra.mxu1 %v9481_v32 }
0x1072   :  { %4773 = vmatprep.subr.bf16.mxu0 %v9482_v24  ;;  %4814 = vmatprep.subr.bf16.mxu1 %v9483_v43  ;;  %v4537_v24 = vrot.slane %v9488_v12, 2  ;;  %v4539_v43 = vrot.slane %v9489_v10, 2 }
0x1075   :  { %4774 = vmatpush1.bf16.msra.mxu0 %v9484_v28  ;;  %4815 = vmatpush1.bf16.msra.mxu1 %v9485_v26  ;;  %v4538_v28 = vrot.slane %v9490_v41, 2  ;;  %v4540_v26 = vrot.slane %v9491_v30, 2 }
0x1076   :  { %4841 = vmatprep.subr.bf16.mxu0 %v9486_v40  ;;  %4882 = vmatprep.subr.bf16.mxu1 %v9487_v42  ;;  %v4529_v40 = vrot.slane %v9492_v7, 2  ;;  %v4531_v42 = vrot.slane %v9493_v8, 2 }
0x1077   :  { %v4546_v41 = vsel %vm968_vm0, %v4530_v21, %v4538_v28  ;;  %v4548_v8 = vsel %vm968_vm0, %v4532_v61, %v4540_v26 }
0x110b   :  { %v4584_v35 = vpop.f32.mrb[120].mxu0  ;;  %v4625_v45 = vpop.f32.mrb[120].mxu1 }
0x110c   :  { %v4586_v34 = vpop.f32.mrb[121].mxu0  ;;  %v4627_v44 = vpop.f32.mrb[121].mxu1 }
0x110d   :  { %v4588_v58 = vpop.f32.mrb[122].mxu0  ;;  %v4629_v18 = vpop.f32.mrb[122].mxu1 }
0x110e   :  { %v4589_v29 = vpop.f32.mrb[123].mxu0  ;;  %v4630_v32 = vpop.f32.mrb[123].mxu1  ;;  %v4545_v58 = vsel %vm968_vm0, %v4529_v40, %v4537_v24  ;;  %v4547_v18 = vsel %vm968_vm0, %v4531_v42, %v4539_v43 }
0x112b   :  { %v4666_v29 = vpop.f32.mrb[124].mxu0  ;;  %v4707_v32 = vpop.f32.mrb[124].mxu1 }
0x112c   :  { %v4714_v10 = vsel %vm285_vm1, %v4584_v35, %v4666_v29  ;;  %v4716_v30 = vsel %vm285_vm1, %v4625_v45, %v4707_v32  ;;  %v4668_v12 = vpop.f32.mrb[125].mxu0  ;;  %v4709_v17 = vpop.f32.mrb[125].mxu1 }
0x112d   :  { %v4718_v7 = vadd.f32 %v4714_v10, %v4545_v58  ;;  %v4720_v39 = vadd.f32 %v4716_v30, %v4547_v18  ;;  %v4715_v40 = vsel %vm285_vm1, %v4586_v34, %v4668_v12  ;;  %v4717_v42 = vsel %vm285_vm1, %v4627_v44, %v4709_v17  ;;  %v4670_v24 = vpop.f32.mrb[126].mxu0  ;;  %v4711_v43 = vpop.f32.mrb[126].mxu1 }
0x112e   :  { %v4719_v35 = vadd.f32 %v4715_v40, %v4546_v41  ;;  %v4721_v29 = vadd.f32 %v4717_v42, %v4548_v8  ;;  %v4671_v55 = vpop.f32.mrb[127].mxu0  ;;  %v4712_v45 = vpop.f32.mrb[127].mxu1  ;;  %v9498_v42 = vld [vmem:[#allocation76_spill] sm:$0xff]  ;;  %v9501_v24 = vld [vmem:[#allocation79_spill] sm:$0xff]  ;;  %v9506_v43 = vld [vmem:[#allocation110_spill] sm:$0xff] }
0x112f   :  { %v5793_v32 = vmul.f32 -1.442695, %v4718_v7  ;;  %v5795_v61 = vmul.f32 -1.442695, %v4720_v39  ;;  %v9509_v45 = vld [vmem:[#allocation113_spill] sm:$0xff] }
0x1130   :  { %v5794_v21 = vmul.f32 -1.442695, %v4719_v35  ;;  %v9507_v35 = vld [vmem:[#allocation111_spill] sm:$0xff] }
0x1131   :  { %6058 = vpow2.f32 %v5793_v32  ;;  %v9510_v32 = vld [vmem:[#allocation83_spill] sm:$0xff] }
0x1132   :  { %6060 = vpow2.f32 %v5794_v21  ;;  %v9511_v21 = vld [vmem:[#allocation114_spill] sm:$0xff] }
0x1133   :  { %6062 = vtanh.f32 %v4721_v29  ;;  %v9508_v29 = vld [vmem:[#allocation112_spill] sm:$0xff] }
0x1134   :  { %6064 = vpow2.f32 %v5795_v61  ;;  %v9512_v61 = vld [vmem:[#allocation81_spill] sm:$0xff] }
0x113b   :  { %v6059_v28 = vpop.eup %6058 }
0x113c   :  { %v4731_v10 = vadd.f32 1.0, %v6059_v28  ;;  %v6061_v30 = vpop.eup %6060  ;;  %v9513_v28 = vld [vmem:[#allocation82_spill] sm:$0xff] }
0x113d   :  { %v4732_v12 = vadd.f32 1.0, %v6061_v30  ;;  %v6063_v17 = vpop.eup %6062  ;;  %v9515_v30 = vld [vmem:[#allocation55_spill] sm:$0xff] }
0x113e   :  { %6066 = vrcp.f32 %v4731_v10  ;;  %v6065_v34 = vpop.eup %6064  ;;  %v9514_v10 = vld [vmem:[#allocation29_spill] sm:$0xff] }
0x113f   :  { %6068 = vrcp.f32 %v4732_v12  ;;  %v4733_v55 = vadd.f32 1.0, %v6065_v34  ;;  %v9516_v12 = vld [vmem:[#allocation56_spill] sm:$0xff]  ;;  %v9518_v34 = vld [vmem:[#allocation85_spill] sm:$0xff] }
0x1141   :  { %6070 = vrcp.f32 %v4733_v55  ;;  %v9522_v55 = vld [vmem:[#allocation89_spill] sm:$0xff] }
0x1148   :  { %v6067_v26 = vpop.eup %6066 }
0x1149   :  { %v4742_v41 = vmul.f32 %v6067_v26, %v6063_v17  ;;  %v6069_v8 = vpop.eup %6068  ;;  %v9517_v17 = vld [vmem:[#allocation84_spill] sm:$0xff]  ;;  %v9519_v26 = vld [vmem:[#allocation86_spill] sm:$0xff] }
0x114a   :  { %v4741_v7 = vmul.f32 %v6069_v8, %v8384_v33  ;;  %v9497_v33 = vld [vmem:[#allocation75_spill] sm:$0xff]  ;;  %v9521_v8 = vld [vmem:[#allocation88_spill] sm:$0xff] }
0x114b   :  { %v6071_v39 = vpop.eup %6070 }
0x114c   :  { %v8480_v44 = vadd.f32 %v4742_v41, %v4741_v7  ;;  %v9520_v41 = vld [vmem:[#allocation87_spill] sm:$0xff]  ;;  %v9523_v7 = vld [vmem:[#allocation46_spill] sm:$0xff] }
0x114e   :  { %6072 = vtanh.f32 %v8480_v44 }
0x1158   :  { %v6073_v58 = vpop.eup %6072 }
0x1159   :  { %v8483_v18 = vmul.f32 %v6073_v58, %v6071_v39  ;;  %v9524_v39 = vld [vmem:[#allocation47_spill] sm:$0xff] }
0x115b   :  { %9496 = vst [vmem:[#allocation91_spill] sm:$0xff] %v8483_v18  ;;  %v4758_v40 = vpack.c.bf16 %v8483_v18, %v8483_v18 }
0x115d   :  { %4792 = vmatmul.mubr.bf16.vlgmr.msra.gmra.mrb[128].mxu0 %v4758_v40  ;;  %4833 = vmatmul.mubr.bf16.vlgmr.msra.gmra.mrb[128].mxu1 %v4758_v40 }
0x115e   :  { %4842 = vmatpush1.bf16.msra.mxu0 %v8230_v56  ;;  %4883 = vmatpush1.bf16.msra.mxu1 %v8233_v11 }
0x115f   :  { %4843 = vmatprep.subr.bf16.mxu0 %v8239_v48  ;;  %4884 = vmatprep.subr.bf16.mxu1 %v8242_v62 }
0x1160   :  { %4873 = vmatprep.mubr.bf16.mxu0 %v9029_v16  ;;  %4914 = vmatprep.mubr.bf16.mxu1 %v9029_v16 }
0x1162   :  { %4844 = vmatpush1.bf16.msra.mxu0 %v8247_v5  ;;  %4885 = vmatpush1.bf16.msra.mxu1 %v8250_v36 }
0x1163   :  { %4845 = vmatprep.subr.bf16.mxu0 %v8253_v27  ;;  %4886 = vmatprep.subr.bf16.mxu1 %v8256_v1 }
0x1166   :  { %4846 = vmatpush1.bf16.msra.mxu0 %v8259_v14  ;;  %4887 = vmatpush1.bf16.msra.mxu1 %v8262_v47 }
0x1167   :  { %4847 = vmatprep.subr.bf16.mxu0 %v8265_v63  ;;  %4888 = vmatprep.subr.bf16.mxu1 %v8268_v15 }
0x116a   :  { %4848 = vmatpush1.bf16.msra.mxu0 %v8271_v25  ;;  %4889 = vmatpush1.bf16.msra.mxu1 %v8274_v46 }
0x116b   :  { %4849 = vmatprep.subr.bf16.mxu0 %v8277_v20  ;;  %4890 = vmatprep.subr.bf16.mxu1 %v8280_v13 }
0x116e   :  { %4850 = vmatpush1.bf16.msra.mxu0 %v8283_v49  ;;  %4891 = vmatpush1.bf16.msra.mxu1 %v8286_v0 }
0x116f   :  { %4851 = vmatprep.subr.bf16.mxu0 %v8289_v50  ;;  %4892 = vmatprep.subr.bf16.mxu1 %v8292_v2 }
0x1172   :  { %4852 = vmatpush1.bf16.msra.mxu0 %v9461_v4  ;;  %4893 = vmatpush1.bf16.msra.mxu1 %v9462_v57 }
0x1173   :  { %4853 = vmatprep.subr.bf16.mxu0 %v9463_v23  ;;  %4894 = vmatprep.subr.bf16.mxu1 %v9464_v19 }
0x1176   :  { %4854 = vmatpush1.bf16.msra.mxu0 %v8307_v60  ;;  %4895 = vmatpush1.bf16.msra.mxu1 %v8310_v3 }
0x1177   :  { %4855 = vmatprep.subr.bf16.mxu0 %v8313_v9  ;;  %4896 = vmatprep.subr.bf16.mxu1 %v8316_v6 }
0x117a   :  { %4856 = vmatpush1.bf16.msra.mxu0 %v8319_v38  ;;  %4897 = vmatpush1.bf16.msra.mxu1 %v8322_v37 }
0x117b   :  { %4976 = vmatprep.subr.bf16.mxu0 %v8088_v31  ;;  %5017 = vmatprep.subr.bf16.mxu1 %v8091_v54  ;;  %v9499_v31 = vld [vmem:[#allocation77_spill] sm:$0xff]  ;;  %v9500_v54 = vld [vmem:[#allocation78_spill] sm:$0xff] }
0x117d   :  { %4874 = vmatmul.mubr.bf16.vlgmr.msra.gmra.mrb[132].mxu0 %v4758_v40  ;;  %4915 = vmatmul.mubr.bf16.vlgmr.msra.gmra.mrb[132].mxu1 %v4758_v40 }
0x117e   :  { %4977 = vmatpush1.bf16.msra.mxu0 %v8094_v52  ;;  %5018 = vmatpush1.bf16.msra.mxu1 %v8097_v53  ;;  %v9502_v52 = vld [vmem:[#allocation103_spill] sm:$0xff]  ;;  %v9503_v53 = vld [vmem:[#allocation104_spill] sm:$0xff] }
0x117f   :  { %4978 = vmatprep.subr.bf16.mxu0 %v8100_v51  ;;  %5019 = vmatprep.subr.bf16.mxu1 %v8103_v22  ;;  %v9504_v51 = vld [vmem:[#allocation107_spill] sm:$0xff]  ;;  %v9505_v22 = vld [vmem:[#allocation108_spill] sm:$0xff] }
0x1180   :  { %5008 = vmatprep.mubr.bf16.mxu0 %v9029_v16  ;;  %5049 = vmatprep.mubr.bf16.mxu1 %v9029_v16 }
0x1182   :  { %4979 = vmatpush1.bf16.msra.mxu0 %v9497_v33  ;;  %5020 = vmatpush1.bf16.msra.mxu1 %v9498_v42 }
0x1183   :  { %4980 = vmatprep.subr.bf16.mxu0 %v9499_v31  ;;  %5021 = vmatprep.subr.bf16.mxu1 %v9500_v54 }
0x1186   :  { %4981 = vmatpush1.bf16.msra.mxu0 %v9501_v24  ;;  %5022 = vmatpush1.bf16.msra.mxu1 %v9502_v52 }
0x1187   :  { %4982 = vmatprep.subr.bf16.mxu0 %v9503_v53  ;;  %5023 = vmatprep.subr.bf16.mxu1 %v9504_v51  ;;  %v9525_v53 = vld [vmem:[#allocation57_spill] sm:$0xff] }
0x1188   :  { %v4746_v51 = vrot.slane %v9525_v53, 4 }
0x118a   :  { %4983 = vmatpush1.bf16.msra.mxu0 %v9505_v22  ;;  %5024 = vmatpush1.bf16.msra.mxu1 %v9506_v43  ;;  %v9526_v22 = vld [vmem:[#allocation58_spill] sm:$0xff] }
0x118b   :  { %4984 = vmatprep.subr.bf16.mxu0 %v9507_v35  ;;  %5025 = vmatprep.subr.bf16.mxu1 %v9508_v29  ;;  %v4748_v43 = vrot.slane %v9526_v22, 4  ;;  %v9527_v35 = vld [vmem:[#allocation59_spill] sm:$0xff] }
0x118c   :  { %v4747_v29 = vrot.slane %v9527_v35, 4 }
0x118e   :  { %4985 = vmatpush1.bf16.msra.mxu0 %v9509_v45  ;;  %5026 = vmatpush1.bf16.msra.mxu1 %v9510_v32  ;;  %v9528_v45 = vld [vmem:[#allocation60_spill] sm:$0xff] }
0x118f   :  { %4986 = vmatprep.subr.bf16.mxu0 %v9511_v21  ;;  %5027 = vmatprep.subr.bf16.mxu1 %v9512_v61  ;;  %v4749_v32 = vrot.slane %v9528_v45, 4  ;;  %v9529_v21 = vld [vmem:[#allocation61_spill] sm:$0xff] }
0x1190   :  { %v4754_v61 = vsel %vm968_vm0, %v4746_v51, %v9529_v21 }
0x1192   :  { %4987 = vmatpush1.bf16.msra.mxu0 %v9513_v28  ;;  %5028 = vmatpush1.bf16.msra.mxu1 %v9514_v10  ;;  %v9530_v10 = vld [vmem:[#allocation62_spill] sm:$0xff] }
0x1193   :  { %4988 = vmatprep.subr.bf16.mxu0 %v9515_v30  ;;  %5029 = vmatprep.subr.bf16.mxu1 %v9516_v12  ;;  %v4756_v30 = vsel %vm968_vm0, %v4748_v43, %v9530_v10 }
0x1196   :  { %4989 = vmatpush1.bf16.msra.mxu0 %v9517_v17  ;;  %5030 = vmatpush1.bf16.msra.mxu1 %v9518_v34 }
0x1197   :  { %4990 = vmatprep.subr.bf16.mxu0 %v9519_v26  ;;  %5031 = vmatprep.subr.bf16.mxu1 %v9520_v41  ;;  %v9531_v26 = vld [vmem:[#allocation63_spill] sm:$0xff] }
0x1198   :  { %v4755_v41 = vsel %vm968_vm0, %v4747_v29, %v9531_v26 }
0x119a   :  { %4991 = vmatpush1.bf16.msra.mxu0 %v9521_v8  ;;  %5032 = vmatpush1.bf16.msra.mxu1 %v9522_v55  ;;  %v9532_v55 = vld [vmem:[#allocation64_spill] sm:$0xff] }
0x119b   :  { %5058 = vmatprep.subr.bf16.mxu0 %v9523_v7  ;;  %5099 = vmatprep.subr.bf16.mxu1 %v9524_v39  ;;  %v4757_v7 = vsel %vm968_vm0, %v4749_v32, %v9532_v55 }
0x1230   :  { %v4793_v58 = vpop.f32.mrb[128].mxu0  ;;  %v4834_v40 = vpop.f32.mrb[128].mxu1 }
0x1231   :  { %v4795_v33 = vpop.f32.mrb[129].mxu0  ;;  %v4836_v42 = vpop.f32.mrb[129].mxu1 }
0x1232   :  { %v4797_v31 = vpop.f32.mrb[130].mxu0  ;;  %v4838_v54 = vpop.f32.mrb[130].mxu1 }
0x1233   :  { %v4798_v24 = vpop.f32.mrb[131].mxu0  ;;  %v4839_v52 = vpop.f32.mrb[131].mxu1 }
0x1250   :  { %v4875_v28 = vpop.f32.mrb[132].mxu0  ;;  %v4916_v12 = vpop.f32.mrb[132].mxu1 }
0x1251   :  { %v4923_v17 = vsel %vm285_vm1, %v4793_v58, %v4875_v28  ;;  %v4925_v34 = vsel %vm285_vm1, %v4834_v40, %v4916_v12  ;;  %v4877_v8 = vpop.f32.mrb[133].mxu0  ;;  %v4918_v39 = vpop.f32.mrb[133].mxu1 }
0x1252   :  { %v4927_v31 = vadd.f32 %v4923_v17, %v4754_v61  ;;  %v4929_v54 = vadd.f32 %v4925_v34, %v4756_v30  ;;  %v4924_v24 = vsel %vm285_vm1, %v4795_v33, %v4877_v8  ;;  %v4926_v52 = vsel %vm285_vm1, %v4836_v42, %v4918_v39  ;;  %v4879_v58 = vpop.f32.mrb[134].mxu0  ;;  %v4920_v51 = vpop.f32.mrb[134].mxu1 }
0x1253   :  { %v4928_v43 = vadd.f32 %v4924_v24, %v4755_v41  ;;  %v4930_v40 = vadd.f32 %v4926_v52, %v4757_v7  ;;  %v4880_v28 = vpop.f32.mrb[135].mxu0  ;;  %v4921_v12 = vpop.f32.mrb[135].mxu1 }
0x1254   :  { %v5796_v29 = vmul.f32 -1.442695, %v4927_v31  ;;  %v5798_v32 = vmul.f32 -1.442695, %v4929_v54 }
0x1255   :  { %v5797_v18 = vmul.f32 -1.442695, %v4928_v43 }
0x1256   :  { %6074 = vpow2.f32 %v5796_v29 }
0x1257   :  { %6076 = vpow2.f32 %v5797_v18 }
0x1258   :  { %6078 = vtanh.f32 %v4930_v40 }
0x1259   :  { %6080 = vpow2.f32 %v5798_v32 }
0x1260   :  { %v6075_v45 = vpop.eup %6074 }
0x1261   :  { %v4940_v61 = vadd.f32 1.0, %v6075_v45  ;;  %v6077_v30 = vpop.eup %6076 }
0x1262   :  { %v4941_v33 = vadd.f32 1.0, %v6077_v30  ;;  %v6079_v42 = vpop.eup %6078 }
0x1263   :  { %6082 = vrcp.f32 %v4940_v61  ;;  %v6081_v17 = vpop.eup %6080 }
0x1264   :  { %6084 = vrcp.f32 %v4941_v33  ;;  %v4942_v7 = vadd.f32 1.0, %v6081_v17 }
0x1266   :  { %6086 = vrcp.f32 %v4942_v7 }
0x126d   :  { %v6083_v34 = vpop.eup %6082 }
0x126e   :  { %v4951_v41 = vmul.f32 %v6083_v34, %v6079_v42  ;;  %v6085_v8 = vpop.eup %6084  ;;  %v9534_v34 = vld [vmem:[#allocation91_spill] sm:$0xff] }
0x126f   :  { %v4950_v39 = vmul.f32 %v6085_v8, %v8480_v44 }
0x1270   :  { %v6087_v18 = vpop.eup %6086 }
0x1271   :  { %v8576_v31 = vadd.f32 %v4951_v41, %v4950_v39  ;;  %v5182_v41 = vrot.slane %v9534_v34, 6 }
0x1273   :  { %6088 = vtanh.f32 %v8576_v31 }
0x127d   :  { %v6089_v45 = vpop.eup %6088 }
0x127e   :  { %v8579_v54 = vmul.f32 %v6089_v45, %v6087_v18  ;;  %v9535_v45 = vld [vmem:[#allocation90_spill] sm:$0xff] }
0x1280   :  { %v4975_v24 = vpack.c.bf16 %v8579_v54, %v8579_v54  ;;  %v5185_v7 = vrot.slane %v8579_v54, 4 }
0x1282   :  { %5009 = vmatmul.mubr.bf16.vlgmr.msra.gmra.mrb[136].mxu0 %v4975_v24  ;;  %5050 = vmatmul.mubr.bf16.vlgmr.msra.gmra.mrb[136].mxu1 %v4975_v24 }
0x1283   :  { %5059 = vmatpush1.bf16.msra.mxu0 %v8230_v56  ;;  %5100 = vmatpush1.bf16.msra.mxu1 %v8233_v11 }
0x1284   :  { %5060 = vmatprep.subr.bf16.mxu0 %v8239_v48  ;;  %5101 = vmatprep.subr.bf16.mxu1 %v8242_v62 }
0x1285   :  { %5090 = vmatprep.mubr.bf16.mxu0 %v9029_v16  ;;  %5131 = vmatprep.mubr.bf16.mxu1 %v9029_v16 }
0x1287   :  { %5061 = vmatpush1.bf16.msra.mxu0 %v8247_v5  ;;  %5102 = vmatpush1.bf16.msra.mxu1 %v8250_v36 }
0x1288   :  { %5062 = vmatprep.subr.bf16.mxu0 %v8253_v27  ;;  %5103 = vmatprep.subr.bf16.mxu1 %v8256_v1  ;;  %v4965_v27 = vrot.slane %v9530_v10, 6  ;;  %v4964_v1 = vrot.slane %v9531_v26, 6 }
0x128b   :  { %5063 = vmatpush1.bf16.msra.mxu0 %v8259_v14  ;;  %5104 = vmatpush1.bf16.msra.mxu1 %v8262_v47  ;;  %v4966_v14 = vrot.slane %v9532_v55, 6  ;;  %v4957_v47 = vrot.slane %v9526_v22, 6 }
0x128c   :  { %5064 = vmatprep.subr.bf16.mxu0 %v8265_v63  ;;  %5105 = vmatprep.subr.bf16.mxu1 %v8268_v15  ;;  %v4956_v63 = vrot.slane %v9527_v35, 6  ;;  %v9533_v15 = vld [vmem:[#allocation60_spill] sm:$0xff] }
0x128f   :  { %5065 = vmatpush1.bf16.msra.mxu0 %v8271_v25  ;;  %5106 = vmatpush1.bf16.msra.mxu1 %v8274_v46  ;;  %v4958_v25 = vrot.slane %v9533_v15, 6 }
0x1290   :  { %5066 = vmatprep.subr.bf16.mxu0 %v8277_v20  ;;  %5107 = vmatprep.subr.bf16.mxu1 %v8280_v13  ;;  %v4973_v13 = vsel %vm968_vm0, %v4957_v47, %v4965_v27 }
0x1293   :  { %5067 = vmatpush1.bf16.msra.mxu0 %v8283_v49  ;;  %5108 = vmatpush1.bf16.msra.mxu1 %v8286_v0 }
0x1294   :  { %5068 = vmatprep.subr.bf16.mxu0 %v8289_v50  ;;  %5109 = vmatprep.subr.bf16.mxu1 %v8292_v2  ;;  %v4972_v2 = vsel %vm968_vm0, %v4956_v63, %v4964_v1  ;;  %v9538_v1 = vld [vmem:[#allocation48_spill] sm:$0xff] }
0x1297   :  { %5069 = vmatpush1.bf16.msra.mxu0 %v9461_v4  ;;  %5110 = vmatpush1.bf16.msra.mxu1 %v9462_v57 }
0x1298   :  { %5070 = vmatprep.subr.bf16.mxu0 %v9463_v23  ;;  %5111 = vmatprep.subr.bf16.mxu1 %v9464_v19 }
0x129b   :  { %5071 = vmatpush1.bf16.msra.mxu0 %v8307_v60  ;;  %5112 = vmatpush1.bf16.msra.mxu1 %v8310_v3  ;;  %v4963_v3 = vrot.slane %v9529_v21, 6 }
0x129c   :  { %5072 = vmatprep.subr.bf16.mxu0 %v8313_v9  ;;  %5113 = vmatprep.subr.bf16.mxu1 %v8316_v6  ;;  %v4974_v6 = vsel %vm968_vm0, %v4958_v25, %v4966_v14 }
0x129f   :  { %5073 = vmatpush1.bf16.msra.mxu0 %v8319_v38  ;;  %5114 = vmatpush1.bf16.msra.mxu1 %v8322_v37  ;;  %v4955_v37 = vrot.slane %v9525_v53, 6 }
0x12a1   :  { %v4971_v46 = vsel %vm968_vm0, %v4955_v37, %v4963_v3 }
0x12a2   :  { %5091 = vmatmul.mubr.bf16.vlgmr.msra.gmra.mrb[140].mxu0 %v4975_v24  ;;  %5132 = vmatmul.mubr.bf16.vlgmr.msra.gmra.mrb[140].mxu1 %v4975_v24  ;;  %v5193_v24 = vsel %vm968_vm0, %v9535_v45, %v5182_v41 }
0x1355   :  { %v5010_v16 = vpop.f32.mrb[136].mxu0  ;;  %v5051_v56 = vpop.f32.mrb[136].mxu1 }
0x1356   :  { %v5012_v11 = vpop.f32.mrb[137].mxu0  ;;  %v5053_v48 = vpop.f32.mrb[137].mxu1 }
0x1357   :  { %v5014_v62 = vpop.f32.mrb[138].mxu0  ;;  %v5055_v5 = vpop.f32.mrb[138].mxu1 }
0x1358   :  { %v5015_v36 = vpop.f32.mrb[139].mxu0  ;;  %v5056_v60 = vpop.f32.mrb[139].mxu1 }
0x1359   :  { %v9537_v60 = vld [vmem:[#allocation49_spill] sm:$0xff] }
0x1375   :  { %v5092_v20 = vpop.f32.mrb[140].mxu0  ;;  %v5133_v49 = vpop.f32.mrb[140].mxu1 }
0x1376   :  { %v5140_v0 = vsel %vm285_vm1, %v5010_v16, %v5092_v20  ;;  %v5142_v50 = vsel %vm285_vm1, %v5051_v56, %v5133_v49  ;;  %v5094_v9 = vpop.f32.mrb[141].mxu0  ;;  %v5135_v38 = vpop.f32.mrb[141].mxu1  ;;  %v5194_v16 = vsel %vm3015_vm2, %v5193_v24, %v5185_v7  ;;  %v5197_v56 = vrot.slane %v9535_v45, 4 }
0x1377   :  { %v5144_v4 = vadd.f32 %v5140_v0, %v4971_v46  ;;  %v5146_v57 = vadd.f32 %v5142_v50, %v4973_v13  ;;  %v5141_v23 = vsel %vm285_vm1, %v5012_v11, %v5094_v9  ;;  %v5143_v19 = vsel %vm285_vm1, %v5053_v48, %v5135_v38  ;;  %v5096_v44 = vpop.f32.mrb[142].mxu0  ;;  %v5137_v53 = vpop.f32.mrb[142].mxu1  ;;  %v9536_v11 = vld [vmem:[#allocation73_spill] sm:$0xff] }
0x1378   :  { %v5145_v22 = vadd.f32 %v5141_v23, %v4972_v2  ;;  %v5147_v35 = vadd.f32 %v5143_v19, %v4974_v6  ;;  %v5097_v21 = vpop.f32.mrb[143].mxu0  ;;  %v5138_v10 = vpop.f32.mrb[143].mxu1  ;;  %v9539_v13 = vlaneseq  ;;  %v5253_v0 = vadd.s32 8, %v6701_v59 }
0x1379   :  { %v5799_v26 = vmul.f32 -1.442695, %v5144_v4  ;;  %v5801_v52 = vmul.f32 -1.442695, %v5146_v57  ;;  %v5258_v50 = vand.u32 1, %v6701_v59 }
0x137a   :  { %v5800_v55 = vmul.f32 -1.442695, %v5145_v22  ;;  %v5279_v49 = vand.u32 127, %v9539_v13  ;;  %v5265_v9 = vand.u32 1, %v5253_v0 }
0x137b   :  { %6090 = vpow2.f32 %v5799_v26 }
0x137c   :  { %6092 = vpow2.f32 %v5800_v55  ;;  %v5284_v2 = vand.u32 1, %v5279_v49 }
0x137d   :  { %6094 = vtanh.f32 %v5147_v35 }
0x137e   :  { %6096 = vpow2.f32 %v5801_v52  ;;  %vm5292_vm4 = vcmp.eq.s32.totalorder %v5258_v50, %v5284_v2  ;;  %vm5293_vm5 = vcmp.eq.s32.totalorder %v5265_v9, %v5284_v2 }
0x1385   :  { %v6091_v58 = vpop.eup %6090 }
0x1386   :  { %v5157_v51 = vadd.f32 1.0, %v6091_v58  ;;  %v6093_v43 = vpop.eup %6092 }
0x1387   :  { %v5158_v40 = vadd.f32 1.0, %v6093_v43  ;;  %v6095_v28 = vpop.eup %6094 }
0x1388   :  { %6098 = vrcp.f32 %v5157_v51  ;;  %v6097_v12 = vpop.eup %6096 }
0x1389   :  { %6100 = vrcp.f32 %v5158_v40  ;;  %v5159_v30 = vadd.f32 1.0, %v6097_v12  ;;  %v6275_v40 = vmov 1983009808  }
0x138b   :  { %6102 = vrcp.f32 %v5159_v30 }
0x1392   :  { %v6099_v29 = vpop.eup %6098 }
0x1393   :  { %v5168_v32 = vmul.f32 %v6099_v29, %v6095_v28  ;;  %v6101_v61 = vpop.eup %6100  ;;  %v5330_v28 = vunpack.c.l.s4 %v6275_v40 }
0x1394   :  { %v5167_v33 = vmul.f32 %v6101_v61, %v8576_v31  ;;  %v5200_v31 = vrot.slane %v9536_v11, 4 }
0x1395   :  { %v6103_v17 = vpop.eup %6102  ;;  %v5331_v12 = vunpack.c.0.s8 %v5330_v28 }
0x1396   :  { %v5169_v42 = vadd.f32 %v5168_v32, %v5167_v33  ;;  %v5207_v3 = vsel %vm3017_vm3, %v9537_v60, %v5200_v31 }
0x1397   :  { %v5334_v32 = vsub.s32 %v5331_v12, %v6701_v59 }
0x1398   :  { %6104 = vtanh.f32 %v5169_v42 }
0x13a2   :  { %v6105_v8 = vpop.eup %6104 }
0x13a3   :  { %v5171_v39 = vmul.f32 %v6105_v8, %v6103_v17 }
0x13a5   :  { %v5188_v18 = vrot.slane %v5171_v39, 2 }
0x13a7   :  { %v5202_v48 = vsel %vm968_vm0, %v5188_v18, %v8579_v54  ;;  %v5195_v62 = vsel %vm3017_vm3, %v5194_v16, %v5188_v18 }
0x13a8   :  { %v5203_v5 = vsel %vm3015_vm2, %v5202_v48, %v5182_v41  ;;  %v5208_v14 = vpack.c.bf16 %v5195_v62, %v9538_v1 }
0x13a9   :  { %v5204_v36 = vsel %vm3017_vm3, %v5203_v5, %v5197_v56 }
0x13aa   :  { %v5209_v27 = vpack.c.bf16 %v5207_v3, %v5204_v36 }
0x13ac   :  { %5210 = vmatprep.subr.bf16.mxu0 %v5209_v27  ;;  %5242 = vmatprep.mubr.bf16.mxu0 %v5209_v27 }
0x13ad   :  { %5211 = vmatpush1.bf16.xpose.msra.mxu0 %v5208_v14 }
0x13b4   :  { %5243 = vmatmul.mubr.bf16.vlgmr.msra.gmra.mrb[144].mxu0 %v5208_v14 }
0x1487   :  { %v5244_v37 = vpop.f32.mrb[144].mxu0 }
0x1488   :  { %v5251_v47 = vmul.f32 0.0625, %v5244_v37  ;;  %v5246_v63 = vpop.f32.mrb[145].mxu0 }
0x1489   :  { %v5247_v54 = vpop.f32.mrb[146].mxu0 }
0x148a   :  { %v5294_v15 = vmul.f32 1.442695, %v5251_v47  ;;  %v5252_v25 = vmul.f32 0.0625, %v5247_v54  ;;  %v5249_v46 = vpop.f32.mrb[147].mxu0 }
0x148c   :  { %6106 = vpow2.f32 %v5294_v15  ;;  %v5296_v20 = vmul.f32 1.442695, %v5252_v25 }
0x148e   :  { %6108 = vpow2.f32 %v5296_v20 }
0x1496   :  { %v6107_v6 = vpop.eup %6106 }
0x1497   :  { %v5298_v38 = vsel %vm5292_vm4, %v6107_v6, 0.0 }
0x1498   :  { %v6109_v4 = vpop.eup %6108  ;;  %v5301_v23 = vsel %vm5300_vm6, %v5298_v38, 0.0 }
0x1499   :  { %v5299_v57 = vsel %vm5293_vm5, %v6109_v4, 0.0 }
0x149a   :  { %v5302_v19 = vsel %vm5300_vm6, %v5299_v57, 0.0 }
0x149b   :  { %v5303_v44 = vadd.f32 %v5302_v19, %v5301_v23 }
0x149d   :  { %v5304_v53 = vrot.slane %v5303_v44, 4 }
0x149f   :  { %v5305_v22 = vadd.f32 %v5304_v53, %v5303_v44 }
0x14a1   :  { %v5306_v35 = vrot.slane %v5305_v22, 2 }
0x14a3   :  { %v5307_v21 = vadd.f32 %v5306_v35, %v5305_v22 }
0x14a5   :  { %v5308_v10 = vrot.slane %v5307_v21, 1 }
0x14a7   :  { %v5309_v26 = vadd.f32 %v5308_v10, %v5307_v21 }
0x14a9   :  { %6110 = vrcp.f32 %v5309_v26 }
0x14b3   :  { %v6111_v55 = vpop.eup %6110 }
0x14b4   :  { %v5311_v52 = vmul.f32 %v6111_v55, %v5298_v38  ;;  %v5312_v58 = vmul.f32 %v6111_v55, %v5299_v57 }
0x14b6   :  { %v5313_v51 = vsel %vm5300_vm6, %v5311_v52, 0.0  ;;  %v5316_v43 = vsel %vm5300_vm6, %v5312_v58, 0.0 }
0x14b7   :  { %5314 = vadd.xlane.f32.xlu0 %v5313_v51 }
0x14bb   :  { %5317 = vadd.xlane.f32.xlu0 %v5316_v43 }
0x1544   :  { %v5315_v29 = vpop.xlane.xlu0 %5314 }
0x1545   :  { %v5319_v61 = vmul.f32 %v5315_v29, %v9538_v1  ;;  %v5320_v30 = vmul.f32 %v5315_v29, %v5204_v36 }
0x1547   :  { %v5327_v33 = vcombine.low %v5319_v61, %v5320_v30  ;;  %v5328_v42 = vcombine.high %v5319_v61, %v5320_v30 }
0x1548   :  { %v5318_v17 = vpop.xlane.xlu0 %5317 }
0x1549   :  { %v5335_v34 = vrot.slane %v5327_v33, %v5334_v32  ;;  %v5342_v41 = vrot.slane %v5328_v42, %v5334_v32  ;;  %v5321_v8 = vmul.f32 %v5318_v17, %v5195_v62  ;;  %v5322_v7 = vmul.f32 %v5318_v17, %v5207_v3 }
0x154b   :  { %v5343_v39 = vcombine.high %v5335_v34, %v5335_v34  ;;  %v5344_v18 = vcombine.high %v5342_v41, %v5342_v41  ;;  %v5369_v45 = vrot.slane %v5335_v34, %v5334_v32  ;;  %v5385_v24 = vrot.slane %v5342_v41, %v5334_v32 }
0x154c   :  { %v5345_v16 = vcombine.low %v5321_v8, %v5322_v7  ;;  %v5346_v56 = vcombine.high %v5321_v8, %v5322_v7 }
0x154d   :  { %v5370_v11 = vcombine.high %v5369_v45, %v5369_v45  ;;  %v5377_v31 = vrot.slane %v5343_v39, %v5334_v32  ;;  %v5393_v48 = vrot.slane %v5344_v18, %v5334_v32  ;;  %v5386_v36 = vcombine.high %v5385_v24, %v5385_v24 }
0x154e   :  { %v5353_v59 = vrot.slane %v5345_v16, %v5334_v32  ;;  %v5360_v5 = vrot.slane %v5346_v56, %v5334_v32  ;;  %v5443_v27 = vsel %vm968_vm0, %v5369_v45, 0.0  ;;  %v5446_v3 = vsel %vm968_vm0, %v5385_v24, 0.0 }
0x154f   :  { %v5378_v60 = vcombine.high %v5377_v31, %v5377_v31  ;;  %v5444_v1 = vsel %vm968_vm0, %v5377_v31, 0.0  ;;  %v5394_v14 = vcombine.high %v5393_v48, %v5393_v48  ;;  %v5458_v47 = vsel %vm968_vm0, %v5370_v11, 0.0 }
0x1550   :  { %v5445_v62 = vadd.f32 %v5444_v1, %v5443_v27  ;;  %v5361_v37 = vcombine.high %v5353_v59, %v5353_v59  ;;  %v5362_v54 = vcombine.high %v5360_v5, %v5360_v5  ;;  %v5401_v15 = vrot.slane %v5353_v59, %v5334_v32 }
0x1551   :  { %v5459_v63 = vsel %vm968_vm0, %v5378_v60, 0.0  ;;  %v5448_v13 = vsel %vm968_vm0, %v5393_v48, 0.0  ;;  %v5461_v49 = vsel %vm968_vm0, %v5386_v36, 0.0  ;;  %v5417_v50 = vrot.slane %v5360_v5, %v5334_v32 }
0x1552   :  { %v5447_v25 = vadd.f32 %v5446_v3, %v5445_v62  ;;  %v5460_v46 = vadd.f32 %v5459_v63, %v5458_v47  ;;  %v5409_v20 = vrot.slane %v5361_v37, %v5334_v32  ;;  %v5402_v0 = vcombine.high %v5401_v15, %v5401_v15 }
0x1553   :  { %v5463_v6 = vsel %vm968_vm0, %v5394_v14, 0.0  ;;  %v5425_v4 = vrot.slane %v5362_v54, %v5334_v32  ;;  %v5450_v57 = vsel %vm968_vm0, %v5401_v15, 0.0  ;;  %v5418_v44 = vcombine.high %v5417_v50, %v5417_v50 }
0x1554   :  { %v5462_v2 = vadd.f32 %v5461_v49, %v5460_v46  ;;  %v5449_v9 = vadd.f32 %v5448_v13, %v5447_v25  ;;  %v5410_v38 = vcombine.high %v5409_v20, %v5409_v20  ;;  %v5452_v53 = vsel %vm968_vm0, %v5409_v20, 0.0 }
0x1555   :  { %v5465_v22 = vsel %vm968_vm0, %v5402_v0, 0.0  ;;  %v5426_v10 = vcombine.high %v5425_v4, %v5425_v4  ;;  %v5454_v26 = vsel %vm968_vm0, %v5417_v50, 0.0  ;;  %v5456_v51 = vsel %vm968_vm0, %v5425_v4, 0.0 }
0x1556   :  { %v5464_v23 = vadd.f32 %v5463_v6, %v5462_v2  ;;  %v5451_v19 = vadd.f32 %v5450_v57, %v5449_v9  ;;  %v5467_v55 = vsel %vm968_vm0, %v5410_v38, 0.0  ;;  %v5469_v43 = vsel %vm968_vm0, %v5418_v44, 0.0 }
0x1557   :  { %v5471_v12 = vsel %vm968_vm0, %v5426_v10, 0.0 }
0x1558   :  { %v5453_v35 = vadd.f32 %v5452_v53, %v5451_v19  ;;  %v5466_v21 = vadd.f32 %v5465_v22, %v5464_v23 }
0x155a   :  { %v5455_v52 = vadd.f32 %v5454_v26, %v5453_v35  ;;  %v5468_v58 = vadd.f32 %v5467_v55, %v5466_v21 }
0x155c   :  { %v5457_v40 = vadd.f32 %v5456_v51, %v5455_v52  ;;  %v5470_v28 = vadd.f32 %v5469_v43, %v5468_v58 }
0x155e   :  { %v5472_v29 = vadd.f32 %v5471_v12, %v5470_v28 }
0x155f   :  { %6252 = dma.done.wait [#allocation7 + $0x3], 2048 }
0x1560   :  { %6253 = vsyncadd [#allocation7 + $0x3], 4294965248  ;;  %v9540_v32 = vld [vmem:[#allocation38_spill] sm:$0xff]  ;;  %v5497_v61 = vpack.c.bf16 %v5472_v29, %v5472_v29 }
0x1561   :  { %5808 = vmatprep.subr.bf16.mxu1 %v9540_v32 }
0x1562   :  { %6254 = dma.done.wait [#allocation7 + $0x4], 16 }
0x1563   :  { %6255 = vsyncadd [#allocation7 + $0x4], 4294967280  ;;  %v9541_v30 = vld [vmem:[#allocation30_spill] sm:$0xff]  ;;  %v9542_v33 = vld [vmem:[#allocation39_spill] sm:$0xff]  ;;  %5536 = vmatprep.mubr.bf16.mxu1 %v5497_v61  ;;  %v5496_v11 = vpack.c.bf16 %v5457_v40, %v5457_v40  ;;  %s6276_s3 = smov [#allocation13]  }
0x1564   :  { %5809 = vmatpush3.bf16.msra.mxu1 %v9541_v30  ;;  %v9543_v42 = vld [vmem:[#allocation31_spill] sm:$0xff]  ;;  %v9544_v17 = vld [vmem:[#allocation40_spill] sm:$0xff]  ;;  %v9546_v41 = vld [vmem:[#allocation41_spill] sm:$0xff]  ;;  %s5551_s21 = sshll.u32 %s6276_s3, 4  ;;  %s5552_s21 = int_to_ptr.vmem [resolvable:$true] %s5551_s21 }
0x1565   :  { %5810 = vmatprep.subr.bf16.mxu1 %v9542_v33  ;;  %v9545_v34 = vld [vmem:[#allocation32_spill] sm:$0xff]  ;;  %v9547_v8 = vld [vmem:[#allocation33_spill] sm:$0xff]  ;;  %v9548_v7 = vld [vmem:[#allocation42_spill] sm:$0xff]  ;;  %s6220_s22 = scalar_lea.vmem %s5552_s21, 32  ;;  %p6225_p3 = scmp.lt.s32.totalorder %s5552_s21, %s5552_s21 }
0x1566   :  { %v9549_v39 = vld [vmem:[#allocation34_spill] sm:$0xff]  ;;  %v9550_v18 = vld [vmem:[#allocation43_spill] sm:$0xff]  ;;  %v9552_v24 = vld [vmem:[#allocation44_spill] sm:$0xff]  ;;  %p6221_p2 = scmp.ne.s32.totalorder %s5552_s21, %s6220_s22  ;;  %p6226_p4 = scmp.lt.s32.totalorder %s6220_s22, %s6220_s22 }
0x1567   :  { %v9551_v45 = vld [vmem:[#allocation35_spill] sm:$0xff]  ;;  %v9553_v16 = vld [vmem:[#allocation36_spill] sm:$0xff]  ;;  %v9554_v56 = vld [vmem:[#allocation45_spill] sm:$0xff] }
0x1568   :  { %5811 = vmatpush3.bf16.msra.mxu1 %v9543_v42  ;;  %v9555_v31 = vld [vmem:[#allocation37_spill] sm:$0xff]  ;;  %v5802_v59 = vld [vmem:[#allocation6] ss:$0 sm:$0xff]  ;;  %p6227_p5 = por %p6226_p4, %p6225_p3 }
0x1569   :  { %5812 = vmatprep.subr.bf16.mxu1 %v9544_v17 }
0x156a   :  { %p6228_p6 = pnand %p6227_p5, %p6221_p2 }
0x156c   :  { %5813 = vmatpush3.bf16.msra.mxu1 %v9545_v34 }
0x156d   :  { %5814 = vmatprep.subr.bf16.mxu1 %v9546_v41 }
0x1570   :  { %5815 = vmatpush3.bf16.msra.mxu1 %v9547_v8 }
0x1571   :  { %5816 = vmatprep.subr.bf16.mxu1 %v9548_v7 }
0x1574   :  { %5817 = vmatpush3.bf16.msra.mxu1 %v9549_v39 }
0x1575   :  { %5818 = vmatprep.subr.bf16.mxu1 %v9550_v18 }
0x1578   :  { %5819 = vmatpush3.bf16.msra.mxu1 %v9551_v45 }
0x1579   :  { %5820 = vmatprep.subr.bf16.mxu1 %v9552_v24 }
0x157c   :  { %5821 = vmatpush3.bf16.msra.mxu1 %v9553_v16 }
0x157d   :  { %5822 = vmatprep.subr.bf16.mxu1 %v9554_v56 }
0x1580   :  { %5823 = vmatpush3.bf16.msra.mxu1 %v9555_v31 }
0x1583   :  { %5537 = vmatmul.mubr.bf16.vlgmr.msra.gmra.mrb[144].mxu1 %v5496_v11 }
0x1656   :  { %v5824_v48 = vpop.f32.mrb[144].mxu1 }
0x1657   :  { %v5825_v5 = vpop.f32.mrb[145].mxu1 }
0x1658   :  { %v5826_v60 = vadd.f32 %v5825_v5, %v5824_v48  ;;  %v5827_v36 = vpop.f32.mrb[146].mxu1 }
0x1659   :  { %v5828_v27 = vpop.f32.mrb[147].mxu1 }
0x165a   :  { %v5539_v1 = vadd.f32 %v5826_v60, %v5802_v59 }
0x165c   :  { %5544 = vst [vmem:[#allocation13] sm:$0x3] %v5539_v1 }
0x165d   :  { %6231 = shalt.err (!%p6228_p6)
}
0x165e   :  { %s6232_s23 = scalar_lea.hbm %s8713_s9, 32 }
0x165f   :  { %p6233_p7 = scmp.ne.s32.totalorder %s8713_s9, %s6232_s23  ;;  %p6236_p8 = scmp.lt.u32.totalorder %s6232_s23, %s8713_s9 }
0x1661   :  { %p6238_p9 = pnand %p6236_p8, %p6233_p7 }
0x1663   :  { %6241 = shalt.err (!%p6238_p9)
}
0x1664   :  { %5554 = dma.vmem_to_hbm [thread:$0]  %s5552_s21, 32, %s8713_s9, [#allocation10]  }
0x1665   :  { %6256 = dma.done.wait [#allocation10], 32  }
0x1666   :  { %6257 = vsyncadd [#allocation10], 4294967264 }
0x1667   :  { %5558 = vsyncpa [#allocation9], 1 }
0x1668   :  { %5559 = vsyncpa [#allocation12], 1 }
0x1669   :  { %5560 = vsyncpa [#allocation10], 1 }
0x166a   :  { %5561 = vsyncmov [#allocation7] }
0x166d   :  { %s5562_s30 = vpop.sfrf %5561 }
0x166e   :  { %p5803_p10 = scmp.ne.s32.totalorder %s5562_s30, 0 }
0x1670   :  { %5566 = shalt.err (%p5803_p10)  }
0x1671   :  { %5568 = vsyncmov [#allocation7 + $0x1] }
0x1674   :  { %s5569_s11 = vpop.sfrf %5568 }
0x1675   :  { %p5804_p11 = scmp.ne.s32.totalorder %s5569_s11, 0 }
0x1677   :  { %5573 = shalt.err (%p5804_p11)  }
0x1678   :  { %5575 = vsyncmov [#allocation7 + $0x2] }
0x167b   :  { %s5576_s12 = vpop.sfrf %5575 }
0x167c   :  { %p5805_p12 = scmp.ne.s32.totalorder %s5576_s12, 0 }
0x167e   :  { %5580 = shalt.err (%p5805_p12)  }
0x167f   :  { %5582 = vsyncmov [#allocation7 + $0x3] }
0x1682   :  { %s5583_s1 = vpop.sfrf %5582 }
0x1683   :  { %p5806_p13 = scmp.ne.s32.totalorder %s5583_s1, 0 }
0x1685   :  { %5587 = shalt.err (%p5806_p13)  }
0x1686   :  { %5589 = vsyncmov [#allocation7 + $0x4] }
0x1689   :  { %s5590_s9 = vpop.sfrf %5589 }
0x168a   :  { %p5807_p0 = scmp.ne.s32.totalorder %s5590_s9, 0 }
0x168c   :  { %5594 = shalt.err (%p5807_p0)  }

</bundles_post_ra>
